<compile_context>
chip_gen: v6e
topology: v6e:2x2x1
jax: 0.10.0
libtpu: 0.0.40
codegen_flags: <defaults>
</compile_context>

<pallas_src>
import jax
import jax.numpy as jnp
from jax.experimental import pallas as pl
from jax.experimental.pallas import tpu as pltpu

# ----------------------- model hyper-parameters (small) ---------------------
IN_CH = 3          # input image channels (CRNN default input_shape=(3, H, W))
IMG_H = 16
IMG_W = 32
FEAT_CH = 8        # synthetic backbone output channels
CONV_K = 3
CONV_STRIDE = (4, 2)
CONV_PAD = (1, 1)
RNN_UNITS = 32     # rnn_units (small; default in doctr is 128)
VOCAB_LEN = 20     # len(vocab)
NUM_CLASSES = VOCAB_LEN + 1
CLASS_PAD = 128    # lane-dense classifier output, sliced back to NUM_CLASSES
BP = 8             # batch padded to one sublane tile
KPAD = 128         # im2col contraction dim (Ho*Cin*K*K = 108) padded to 128

HO = (IMG_H + 2 * CONV_PAD[0] - CONV_K) // CONV_STRIDE[0] + 1   # 4
WO = (IMG_W + 2 * CONV_PAD[1] - CONV_K) // CONV_STRIDE[1] + 1   # 16
LSTM_IN = FEAT_CH * HO                                          # 32


# ----------------------- Pallas kernel: conv GEMM + biLSTM x2 + Linear ------
def _crnn_fused_kernel(a_ref, cw_ref, cb_ref,
                       wih0f_ref, whh0f_ref, b0f_ref,
                       wih0b_ref, whh0b_ref, b0b_ref,
                       wih1f_ref, whh1f_ref, b1f_ref,
                       wih1b_ref, whh1b_ref, b1b_ref,
                       linw_ref, linb_ref,
                       o_ref,
                       gxf_sc, gxb_sc, h0f_sc, h0b_sc, h1f_sc, h1b_sc):
    f32 = jnp.float32
    bf16 = jnp.bfloat16
    H = whh0f_ref.shape[0]
    T = a_ref.shape[0] // BP

    # ---- conv feature extractor as one GEMM (+ bias + relu) -----------------
    # a: (T*BP, KPAD) bf16 im2col, cw: (KPAD, C*Ho) block-diag weight.
    feat = jnp.dot(a_ref[...], cw_ref[...], preferred_element_type=f32) + cb_ref[...]
    x = jnp.maximum(feat, 0.0).astype(bf16)                      # (T*BP, C*Ho)

    def cell(gates, c_prev):
        # PyTorch gate order: i, f, g, o.  Evaluate sigmoid/tanh once on the
        # full (BP, 4H) tile (2 EUP ops instead of 5), then lane-slice.
        sg = jax.nn.sigmoid(gates)
        tg = jnp.tanh(gates)
        i_g = sg[:, 0 * H:1 * H]
        f_g = sg[:, 1 * H:2 * H]
        g_g = tg[:, 2 * H:3 * H]
        o_g = sg[:, 3 * H:4 * H]
        c_new = f_g * c_prev + i_g * g_g
        h_new = o_g * jnp.tanh(c_new)
        return h_new, c_new

    def run_layer(whh_f, whh_b, out_f_sc, out_b_sc):
        # gxf_sc / gxb_sc already hold x @ Wih + (b_ih + b_hh) for every step.
        h_f = jnp.zeros((BP, H), f32)
        c_f = jnp.zeros((BP, H), f32)
        h_b = jnp.zeros((BP, H), f32)
        c_b = jnp.zeros((BP, H), f32)
        for t in range(T):                       # fully unrolled, static offsets
            tb = T - 1 - t
            # fwd (time t) and bwd (time T-1-t) recurrent dots back-to-back so
            # the independent MXU pushes overlap on the latency-bound path.
            g_f = gxf_sc[pl.ds(t * BP, BP), :] + jnp.dot(
                h_f.astype(bf16), whh_f, preferred_element_type=f32)
            g_b = gxb_sc[pl.ds(tb * BP, BP), :] + jnp.dot(
                h_b.astype(bf16), whh_b, preferred_element_type=f32)
            h_f, c_f = cell(g_f, c_f)
            h_b, c_b = cell(g_b, c_b)
            out_f_sc[pl.ds(t * BP, BP), :] = h_f
            out_b_sc[pl.ds(tb * BP, BP), :] = h_b

    # ---- layer 0: hoisted input-to-hidden matmuls (bias folded in) ----------
    gxf_sc[...] = jnp.dot(x, wih0f_ref[...], preferred_element_type=f32) + b0f_ref[...]
    gxb_sc[...] = jnp.dot(x, wih0b_ref[...], preferred_element_type=f32) + b0b_ref[...]
    run_layer(whh0f_ref[...], whh0b_ref[...], h0f_sc, h0b_sc)

    # ---- layer 1: input is [fwd_h, bwd_h]; handled by row-split of Wih1 -----
    h0f = h0f_sc[...].astype(bf16)                               # (T*BP, H)
    h0b = h0b_sc[...].astype(bf16)
    gxf_sc[...] = (jnp.dot(h0f, wih1f_ref[pl.ds(0, H), :], preferred_element_type=f32)
                   + jnp.dot(h0b, wih1f_ref[pl.ds(H, H), :], preferred_element_type=f32)
                   + b1f_ref[...])
    gxb_sc[...] = (jnp.dot(h0f, wih1b_ref[pl.ds(0, H), :], preferred_element_type=f32)
                   + jnp.dot(h0b, wih1b_ref[pl.ds(H, H), :], preferred_element_type=f32)
                   + b1b_ref[...])
    run_layer(whh1f_ref[...], whh1b_ref[...], h1f_sc, h1b_sc)

    # ---- final Linear, padded to 128 classes (lane-dense, unmasked stores) --
    o_ref[...] = (jnp.dot(h1f_sc[...].astype(bf16), linw_ref[pl.ds(0, H), :],
                          preferred_element_type=f32)
                  + jnp.dot(h1b_sc[...].astype(bf16), linw_ref[pl.ds(H, H), :],
                            preferred_element_type=f32)
                  + linb_ref[...])


def crnn_fused(a_pad, kp):
    """a_pad: (T*BP, KPAD) bf16 im2col -> (T*BP, CLASS_PAD) f32 padded logits."""
    tbp = a_pad.shape[0]
    H = RNN_UNITS
    args = (a_pad, kp["conv_gw"], kp["conv_gb"],
            *kp["l0f"], *kp["l0b"], *kp["l1f"], *kp["l1b"],
            kp["lin_w"], kp["lin_b"])
    in_specs = [pl.BlockSpec(a.shape, lambda i: (0, 0)) for a in args]
    return pl.pallas_call(
        _crnn_fused_kernel,
        out_shape=jax.ShapeDtypeStruct((tbp, CLASS_PAD), jnp.float32),
        grid=(1,),
        in_specs=in_specs,
        out_specs=pl.BlockSpec((tbp, CLASS_PAD), lambda i: (0, 0)),
        scratch_shapes=[
            pltpu.VMEM((tbp, 4 * H), jnp.float32),   # hoisted fwd input gates (reused l0/l1)
            pltpu.VMEM((tbp, 4 * H), jnp.float32),   # hoisted bwd input gates
            pltpu.VMEM((tbp, H), jnp.float32),       # layer-0 fwd hidden sequence
            pltpu.VMEM((tbp, H), jnp.float32),       # layer-0 bwd hidden sequence
            pltpu.VMEM((tbp, H), jnp.float32),       # layer-1 fwd hidden sequence
            pltpu.VMEM((tbp, H), jnp.float32),       # layer-1 bwd hidden sequence
        ],
        compiler_params=pltpu.CompilerParams(dimension_semantics=("arbitrary",)),
    )(*args)


# ----------------------- parameter initialization ---------------------------
def init_lstm_dir(key, input_size, hidden):
    k1, k2, k3, k4 = jax.random.split(key, 4)
    s = float(1.0 / (hidden ** 0.5))
    return dict(
        w_ih=jax.random.uniform(k1, (4 * hidden, input_size), jnp.float32, -s, s),
        w_hh=jax.random.uniform(k2, (4 * hidden, hidden), jnp.float32, -s, s),
        b_ih=jax.random.uniform(k3, (4 * hidden,), jnp.float32, -s, s),
        b_hh=jax.random.uniform(k4, (4 * hidden,), jnp.float32, -s, s),
    )


def init_params(key):
    keys = jax.random.split(key, 8)
    # synthetic backbone conv (kaiming_normal fan_out, zero bias)
    fan_out = FEAT_CH * CONV_K * CONV_K
    conv_w = jax.random.normal(keys[0], (FEAT_CH, IN_CH, CONV_K, CONV_K),
                               jnp.float32) * (2.0 / fan_out) ** 0.5
    conv_b = jnp.zeros((FEAT_CH,), jnp.float32)

    lstm0 = dict(fwd=init_lstm_dir(keys[1], LSTM_IN, RNN_UNITS),
                 bwd=init_lstm_dir(keys[2], LSTM_IN, RNN_UNITS))
    lstm1 = dict(fwd=init_lstm_dir(keys[3], 2 * RNN_UNITS, RNN_UNITS),
                 bwd=init_lstm_dir(keys[4], 2 * RNN_UNITS, RNN_UNITS))

    s = float(1.0 / ((2 * RNN_UNITS) ** 0.5))
    lin_w = jax.random.uniform(keys[5], (NUM_CLASSES, 2 * RNN_UNITS), jnp.float32, -s, s)
    lin_b = jax.random.uniform(keys[6], (NUM_CLASSES,), jnp.float32, -s, s)

    return dict(conv_w=conv_w, conv_b=conv_b, lstm0=lstm0, lstm1=lstm1,
                lin_w=lin_w, lin_b=lin_b)


def prepare_params(p):
    """One-time layout prep: transpose weights, cast MXU operands to bf16,
    fold b_ih + b_hh, fold the conv into a block-diagonal GEMM weight whose
    output columns are already in LSTM-input order (c*Ho + ho), and pad the
    classifier to a full 128-lane tile."""
    def prep_dir(d):
        return (d["w_ih"].T.astype(jnp.bfloat16),                       # (Din, 4H)
                d["w_hh"].T.astype(jnp.bfloat16),                       # (H, 4H)
                (d["b_ih"] + d["b_hh"]).reshape(1, -1).astype(jnp.float32))

    # conv_gw[(ho, cin, ki, kj), (c, ho')] = w[c, cin, ki, kj] * (ho == ho')
    k_raw = IN_CH * CONV_K * CONV_K                                     # 27
    w2 = p["conv_w"].reshape(FEAT_CH, k_raw)                            # (Cout, 27)
    eye = jnp.eye(HO, dtype=jnp.float32)
    conv_gw = jnp.einsum("ck,ij->ikcj", w2, eye).reshape(HO * k_raw, FEAT_CH * HO)
    conv_gw = jnp.pad(conv_gw, ((0, KPAD - HO * k_raw), (0, 0))).astype(jnp.bfloat16)
    conv_gb = jnp.repeat(p["conv_b"], HO).reshape(1, FEAT_CH * HO).astype(jnp.float32)

    lin_w = jnp.zeros((2 * RNN_UNITS, CLASS_PAD), jnp.float32)
    lin_w = lin_w.at[:, :NUM_CLASSES].set(p["lin_w"].T)
    lin_b = jnp.zeros((1, CLASS_PAD), jnp.float32)
    lin_b = lin_b.at[0, :NUM_CLASSES].set(p["lin_b"])

    return dict(
        conv_gw=conv_gw, conv_gb=conv_gb,
        l0f=prep_dir(p["lstm0"]["fwd"]), l0b=prep_dir(p["lstm0"]["bwd"]),
        l1f=prep_dir(p["lstm1"]["fwd"]), l1b=prep_dir(p["lstm1"]["bwd"]),
        lin_w=lin_w.astype(jnp.bfloat16), lin_b=lin_b)


# ----------------------- CRNN forward ----------------------------------------
def crnn_forward(kp, x):
    N, Cin, Hin, Win = x.shape
    assert N <= BP
    KH = KW = CONV_K
    SH, SW = CONV_STRIDE
    PH, PW = CONV_PAD
    Ho = (Hin + 2 * PH - KH) // SH + 1
    Wo = (Win + 2 * PW - KW) // SW + 1

    # im2col glue (XLA): rows ordered (wo, n), columns (ho, cin, ki, kj) so
    # A @ conv_gw inside the kernel is directly the time-major LSTM input
    # (== torch reshape(N, C*H, W).transpose(1, 2)).  Batch padded to 8 here.
    xb = jnp.pad(x, ((0, BP - N), (0, 0), (0, 0), (0, 0)))
    xp = jnp.pad(xb, ((0, 0), (0, 0), (PH, PH), (PW, PW)))
    pats = [xp[:, :, ki:ki + Ho * SH:SH, kj:kj + Wo * SW:SW]        # (BP,Cin,Ho,Wo)
            for ki in range(KH) for kj in range(KW)]
    cols = jnp.stack(pats, axis=2)                                   # (BP,Cin,9,Ho,Wo)
    a = cols.transpose(4, 0, 3, 1, 2).reshape(Wo * BP, Ho * Cin * KH * KW)
    a = jnp.pad(a, ((0, 0), (0, KPAD - a.shape[1]))).astype(jnp.bfloat16)

    # Single fused kernel: conv GEMM + 2-layer biLSTM + Linear (128-padded).
    logits_pad = crnn_fused(a, kp)                                   # (Wo*BP, 128)
    logits = logits_pad.reshape(Wo, BP, CLASS_PAD)[:, :N, :NUM_CLASSES]
    return logits.transpose(1, 0, 2)                                 # (N, T, classes)
    # TODO(synk): CTCPostProcessor (string decoding via itertools.groupby) is
    # host-side python, not a Pallas kernel; only the logits-producing forward
    # is implemented.


if __name__ == "__main__":
    key = jax.random.PRNGKey(0)
    pkey, xkey = jax.random.split(key)
    params = init_params(pkey)
    kparams = prepare_params(params)
    x = jax.random.normal(xkey, (2, IN_CH, IMG_H, IMG_W), jnp.float32)  # NCHW

    fwd = jax.jit(crnn_forward)
    logits = jax.block_until_ready(fwd(kparams, x))

    expected_T = (IMG_W + 2 * CONV_PAD[1] - CONV_K) // CONV_STRIDE[1] + 1
    assert logits.shape == (2, expected_T, NUM_CLASSES), logits.shape
    assert logits.dtype == jnp.float32
    assert bool(jnp.all(jnp.isfinite(logits)))
    print("KERNEL_OK")
</pallas_src>

<mosaic_0001>
module attributes {stable_mosaic.version = 11 : i64} {
  func.func @_crnn_fused_kernel(%arg0: i32, %arg1: memref<128x128xbf16, #tpu.memory_space<vmem>>, %arg2: memref<128x32xbf16, #tpu.memory_space<vmem>>, %arg3: memref<1x32xf32, #tpu.memory_space<vmem>>, %arg4: memref<32x128xbf16, #tpu.memory_space<vmem>>, %arg5: memref<32x128xbf16, #tpu.memory_space<vmem>>, %arg6: memref<1x128xf32, #tpu.memory_space<vmem>>, %arg7: memref<32x128xbf16, #tpu.memory_space<vmem>>, %arg8: memref<32x128xbf16, #tpu.memory_space<vmem>>, %arg9: memref<1x128xf32, #tpu.memory_space<vmem>>, %arg10: memref<64x128xbf16, #tpu.memory_space<vmem>>, %arg11: memref<32x128xbf16, #tpu.memory_space<vmem>>, %arg12: memref<1x128xf32, #tpu.memory_space<vmem>>, %arg13: memref<64x128xbf16, #tpu.memory_space<vmem>>, %arg14: memref<32x128xbf16, #tpu.memory_space<vmem>>, %arg15: memref<1x128xf32, #tpu.memory_space<vmem>>, %arg16: memref<64x128xbf16, #tpu.memory_space<vmem>>, %arg17: memref<1x128xf32, #tpu.memory_space<vmem>>, %arg18: memref<128x128xf32, #tpu.memory_space<vmem>>, %arg19: memref<128x128xf32, #tpu.memory_space<vmem>>, %arg20: memref<128x128xf32, #tpu.memory_space<vmem>>, %arg21: memref<128x32xf32, #tpu.memory_space<vmem>>, %arg22: memref<128x32xf32, #tpu.memory_space<vmem>>, %arg23: memref<128x32xf32, #tpu.memory_space<vmem>>, %arg24: memref<128x32xf32, #tpu.memory_space<vmem>>) attributes {dimension_semantics = [#tpu.dimension_semantics<arbitrary>], iteration_bounds = array<i64: 1>, scalar_prefetch = 0 : i64, scratch_operands = 6 : i64, tpu.core_type = #tpu.core_type<tc>, window_params = [{pipeline_mode = #tpu.pipeline_mode<synchronous>, transform_indices = @transform_0, window_bounds = array<i64: 128, 128>}, {pipeline_mode = #tpu.pipeline_mode<synchronous>, transform_indices = @transform_1, window_bounds = array<i64: 128, 32>}, {pipeline_mode = #tpu.pipeline_mode<synchronous>, transform_indices = @transform_2, window_bounds = array<i64: 1, 32>}, {pipeline_mode = #tpu.pipeline_mode<synchronous>, transform_indices = @transform_3, window_bounds = array<i64: 32, 128>}, {pipeline_mode = #tpu.pipeline_mode<synchronous>, transform_indices = @transform_4, window_bounds = array<i64: 32, 128>}, {pipeline_mode = #tpu.pipeline_mode<synchronous>, transform_indices = @transform_5, window_bounds = array<i64: 1, 128>}, {pipeline_mode = #tpu.pipeline_mode<synchronous>, transform_indices = @transform_6, window_bounds = array<i64: 32, 128>}, {pipeline_mode = #tpu.pipeline_mode<synchronous>, transform_indices = @transform_7, window_bounds = array<i64: 32, 128>}, {pipeline_mode = #tpu.pipeline_mode<synchronous>, transform_indices = @transform_8, window_bounds = array<i64: 1, 128>}, {pipeline_mode = #tpu.pipeline_mode<synchronous>, transform_indices = @transform_9, window_bounds = array<i64: 64, 128>}, {pipeline_mode = #tpu.pipeline_mode<synchronous>, transform_indices = @transform_10, window_bounds = array<i64: 32, 128>}, {pipeline_mode = #tpu.pipeline_mode<synchronous>, transform_indices = @transform_11, window_bounds = array<i64: 1, 128>}, {pipeline_mode = #tpu.pipeline_mode<synchronous>, transform_indices = @transform_12, window_bounds = array<i64: 64, 128>}, {pipeline_mode = #tpu.pipeline_mode<synchronous>, transform_indices = @transform_13, window_bounds = array<i64: 32, 128>}, {pipeline_mode = #tpu.pipeline_mode<synchronous>, transform_indices = @transform_14, window_bounds = array<i64: 1, 128>}, {pipeline_mode = #tpu.pipeline_mode<synchronous>, transform_indices = @transform_15, window_bounds = array<i64: 64, 128>}, {pipeline_mode = #tpu.pipeline_mode<synchronous>, transform_indices = @transform_16, window_bounds = array<i64: 1, 128>}, {pipeline_mode = #tpu.pipeline_mode<synchronous>, transform_indices = @transform_17, window_bounds = array<i64: 128, 128>}]} {
    %c0 = arith.constant 0 : index
    %c0_0 = arith.constant 0 : index
    %0 = vector.load %arg1[%c0, %c0_0] : memref<128x128xbf16, #tpu.memory_space<vmem>>, vector<128x128xbf16>
    %c0_1 = arith.constant 0 : index
    %c0_2 = arith.constant 0 : index
    %1 = vector.load %arg2[%c0_1, %c0_2] : memref<128x32xbf16, #tpu.memory_space<vmem>>, vector<128x32xbf16>
    %cst = arith.constant dense<0.000000e+00> : vector<128x32xf32>
    %2 = tpu.matmul %0, %1, %cst {dimension_numbers = #tpu.dot_dimension_numbers<[1], [0], [0], [1], [0, 0, 1, 1], [], []>} : vector<128x128xbf16>, vector<128x32xbf16>, vector<128x32xf32> -> vector<128x32xf32>
    %c0_3 = arith.constant 0 : index
    %c0_4 = arith.constant 0 : index
    %3 = vector.load %arg3[%c0_3, %c0_4] : memref<1x32xf32, #tpu.memory_space<vmem>>, vector<1x32xf32>
    %4 = vector.broadcast %3 : vector<1x32xf32> to vector<128x32xf32>
    %5 = arith.addf %2, %4 : vector<128x32xf32>
    %cst_5 = arith.constant 0.000000e+00 : f32
    %6 = vector.broadcast %cst_5 : f32 to vector<128x32xf32>
    %7 = arith.maximumf %5, %6 : vector<128x32xf32>
    %8 = arith.truncf %7 : vector<128x32xf32> to vector<128x32xbf16>
    %c0_6 = arith.constant 0 : index
    %c0_7 = arith.constant 0 : index
    %9 = vector.load %arg4[%c0_6, %c0_7] : memref<32x128xbf16, #tpu.memory_space<vmem>>, vector<32x128xbf16>
    %cst_8 = arith.constant dense<0.000000e+00> : vector<128x128xf32>
    %10 = tpu.matmul %8, %9, %cst_8 {dimension_numbers = #tpu.dot_dimension_numbers<[1], [0], [0], [1], [0, 0, 1, 1], [], []>} : vector<128x32xbf16>, vector<32x128xbf16>, vector<128x128xf32> -> vector<128x128xf32>
    %c0_9 = arith.constant 0 : index
    %c0_10 = arith.constant 0 : index
    %11 = vector.load %arg6[%c0_9, %c0_10] : memref<1x128xf32, #tpu.memory_space<vmem>>, vector<1x128xf32>
    %12 = vector.broadcast %11 : vector<1x128xf32> to vector<128x128xf32>
    %13 = arith.addf %10, %12 : vector<128x128xf32>
    %c0_11 = arith.constant 0 : index
    %c0_12 = arith.constant 0 : index
    %14 = vector.load %arg19[%c0_11, %c0_12] : memref<128x128xf32, #tpu.memory_space<vmem>>, vector<128x128xf32>
    tpu.vector_store %arg19[%c0_11, %c0_12], %13 {strides = array<i32>} : memref<128x128xf32, #tpu.memory_space<vmem>>, vector<128x128xf32>,
    %c0_13 = arith.constant 0 : index
    %c0_14 = arith.constant 0 : index
    %15 = vector.load %arg7[%c0_13, %c0_14] : memref<32x128xbf16, #tpu.memory_space<vmem>>, vector<32x128xbf16>
    %cst_15 = arith.constant dense<0.000000e+00> : vector<128x128xf32>
    %16 = tpu.matmul %8, %15, %cst_15 {dimension_numbers = #tpu.dot_dimension_numbers<[1], [0], [0], [1], [0, 0, 1, 1], [], []>} : vector<128x32xbf16>, vector<32x128xbf16>, vector<128x128xf32> -> vector<128x128xf32>
    %c0_16 = arith.constant 0 : index
    %c0_17 = arith.constant 0 : index
    %17 = vector.load %arg9[%c0_16, %c0_17] : memref<1x128xf32, #tpu.memory_space<vmem>>, vector<1x128xf32>
    %18 = vector.broadcast %17 : vector<1x128xf32> to vector<128x128xf32>
    %19 = arith.addf %16, %18 : vector<128x128xf32>
    %c0_18 = arith.constant 0 : index
    %c0_19 = arith.constant 0 : index
    %20 = vector.load %arg20[%c0_18, %c0_19] : memref<128x128xf32, #tpu.memory_space<vmem>>, vector<128x128xf32>
    tpu.vector_store %arg20[%c0_18, %c0_19], %19 {strides = array<i32>} : memref<128x128xf32, #tpu.memory_space<vmem>>, vector<128x128xf32>,
    %c0_20 = arith.constant 0 : index
    %c0_21 = arith.constant 0 : index
    %21 = vector.load %arg5[%c0_20, %c0_21] : memref<32x128xbf16, #tpu.memory_space<vmem>>, vector<32x128xbf16>
    %c0_22 = arith.constant 0 : index
    %c0_23 = arith.constant 0 : index
    %22 = vector.load %arg8[%c0_22, %c0_23] : memref<32x128xbf16, #tpu.memory_space<vmem>>, vector<32x128xbf16>
    %cst_24 = arith.constant 0.000000e+00 : f32
    %23 = vector.broadcast %cst_24 : f32 to vector<8x32xf32>
    %cst_25 = arith.constant 0.000000e+00 : f32
    %24 = vector.broadcast %cst_25 : f32 to vector<8x32xf32>
    %cst_26 = arith.constant 0.000000e+00 : f32
    %25 = vector.broadcast %cst_26 : f32 to vector<8x32xf32>
    %cst_27 = arith.constant 0.000000e+00 : f32
    %26 = vector.broadcast %cst_27 : f32 to vector<8x32xf32>
    %c0_28 = arith.constant 0 : index
    %c0_29 = arith.constant 0 : index
    %27 = vector.load %arg19[%c0_28, %c0_29] : memref<128x128xf32, #tpu.memory_space<vmem>>, vector<8x128xf32>
    %28 = arith.truncf %23 : vector<8x32xf32> to vector<8x32xbf16>
    %cst_30 = arith.constant dense<0.000000e+00> : vector<8x128xf32>
    %29 = tpu.matmul %28, %21, %cst_30 {dimension_numbers = #tpu.dot_dimension_numbers<[1], [0], [0], [1], [0, 0, 1, 1], [], []>} : vector<8x32xbf16>, vector<32x128xbf16>, vector<8x128xf32> -> vector<8x128xf32>
    %30 = arith.addf %27, %29 : vector<8x128xf32>
    %c120 = arith.constant 120 : index
    %c0_31 = arith.constant 0 : index
    %31 = vector.load %arg20[%c120, %c0_31] : memref<128x128xf32, #tpu.memory_space<vmem>>, vector<8x128xf32>
    %32 = arith.truncf %25 : vector<8x32xf32> to vector<8x32xbf16>
    %cst_32 = arith.constant dense<0.000000e+00> : vector<8x128xf32>
    %33 = tpu.matmul %32, %22, %cst_32 {dimension_numbers = #tpu.dot_dimension_numbers<[1], [0], [0], [1], [0, 0, 1, 1], [], []>} : vector<8x32xbf16>, vector<32x128xbf16>, vector<8x128xf32> -> vector<8x128xf32>
    %34 = arith.addf %31, %33 : vector<8x128xf32>
    %35 = arith.negf %30 : vector<8x128xf32>
    %36 = math.exp %35 : vector<8x128xf32>
    %cst_33 = arith.constant 1.000000e+00 : f32
    %37 = vector.broadcast %cst_33 : f32 to vector<8x128xf32>
    %38 = arith.addf %37, %36 : vector<8x128xf32>
    %39 = arith.divf %37, %38 : vector<8x128xf32>
    %40 = math.tanh %30 : vector<8x128xf32>
    %41 = vector.extract_strided_slice %39 {offsets = [0, 0], sizes = [8, 32], strides = [1, 1]} : vector<8x128xf32> to vector<8x32xf32>
    %42 = vector.extract_strided_slice %39 {offsets = [0, 32], sizes = [8, 32], strides = [1, 1]} : vector<8x128xf32> to vector<8x32xf32>
    %43 = vector.extract_strided_slice %40 {offsets = [0, 64], sizes = [8, 32], strides = [1, 1]} : vector<8x128xf32> to vector<8x32xf32>
    %44 = vector.extract_strided_slice %39 {offsets = [0, 96], sizes = [8, 32], strides = [1, 1]} : vector<8x128xf32> to vector<8x32xf32>
    %45 = arith.mulf %42, %24 : vector<8x32xf32>
    %46 = arith.mulf %41, %43 : vector<8x32xf32>
    %47 = arith.addf %45, %46 : vector<8x32xf32>
    %48 = math.tanh %47 : vector<8x32xf32>
    %49 = arith.mulf %44, %48 : vector<8x32xf32>
    %50 = arith.negf %34 : vector<8x128xf32>
    %51 = math.exp %50 : vector<8x128xf32>
    %cst_34 = arith.constant 1.000000e+00 : f32
    %52 = vector.broadcast %cst_34 : f32 to vector<8x128xf32>
    %53 = arith.addf %52, %51 : vector<8x128xf32>
    %54 = arith.divf %52, %53 : vector<8x128xf32>
    %55 = math.tanh %34 : vector<8x128xf32>
    %56 = vector.extract_strided_slice %54 {offsets = [0, 0], sizes = [8, 32], strides = [1, 1]} : vector<8x128xf32> to vector<8x32xf32>
    %57 = vector.extract_strided_slice %54 {offsets = [0, 32], sizes = [8, 32], strides = [1, 1]} : vector<8x128xf32> to vector<8x32xf32>
    %58 = vector.extract_strided_slice %55 {offsets = [0, 64], sizes = [8, 32], strides = [1, 1]} : vector<8x128xf32> to vector<8x32xf32>
    %59 = vector.extract_strided_slice %54 {offsets = [0, 96], sizes = [8, 32], strides = [1, 1]} : vector<8x128xf32> to vector<8x32xf32>
    %60 = arith.mulf %57, %26 : vector<8x32xf32>
    %61 = arith.mulf %56, %58 : vector<8x32xf32>
    %62 = arith.addf %60, %61 : vector<8x32xf32>
    %63 = math.tanh %62 : vector<8x32xf32>
    %64 = arith.mulf %59, %63 : vector<8x32xf32>
    %c0_35 = arith.constant 0 : index
    %c0_36 = arith.constant 0 : index
    %65 = vector.load %arg21[%c0_35, %c0_36] : memref<128x32xf32, #tpu.memory_space<vmem>>, vector<8x32xf32>
    tpu.vector_store %arg21[%c0_35, %c0_36], %49 {strides = array<i32>} : memref<128x32xf32, #tpu.memory_space<vmem>>, vector<8x32xf32>,
    %c120_37 = arith.constant 120 : index
    %c0_38 = arith.constant 0 : index
    %66 = vector.load %arg22[%c120_37, %c0_38] : memref<128x32xf32, #tpu.memory_space<vmem>>, vector<8x32xf32>
    tpu.vector_store %arg22[%c120_37, %c0_38], %64 {strides = array<i32>} : memref<128x32xf32, #tpu.memory_space<vmem>>, vector<8x32xf32>,
    %c8 = arith.constant 8 : index
    %c0_39 = arith.constant 0 : index
    %67 = vector.load %arg19[%c8, %c0_39] : memref<128x128xf32, #tpu.memory_space<vmem>>, vector<8x128xf32>
    %68 = arith.truncf %49 : vector<8x32xf32> to vector<8x32xbf16>
    %cst_40 = arith.constant dense<0.000000e+00> : vector<8x128xf32>
    %69 = tpu.matmul %68, %21, %cst_40 {dimension_numbers = #tpu.dot_dimension_numbers<[1], [0], [0], [1], [0, 0, 1, 1], [], []>} : vector<8x32xbf16>, vector<32x128xbf16>, vector<8x128xf32> -> vector<8x128xf32>
    %70 = arith.addf %67, %69 : vector<8x128xf32>
    %c112 = arith.constant 112 : index
    %c0_41 = arith.constant 0 : index
    %71 = vector.load %arg20[%c112, %c0_41] : memref<128x128xf32, #tpu.memory_space<vmem>>, vector<8x128xf32>
    %72 = arith.truncf %64 : vector<8x32xf32> to vector<8x32xbf16>
    %cst_42 = arith.constant dense<0.000000e+00> : vector<8x128xf32>
    %73 = tpu.matmul %72, %22, %cst_42 {dimension_numbers = #tpu.dot_dimension_numbers<[1], [0], [0], [1], [0, 0, 1, 1], [], []>} : vector<8x32xbf16>, vector<32x128xbf16>, vector<8x128xf32> -> vector<8x128xf32>
    %74 = arith.addf %71, %73 : vector<8x128xf32>
    %75 = arith.negf %70 : vector<8x128xf32>
    %76 = math.exp %75 : vector<8x128xf32>
    %cst_43 = arith.constant 1.000000e+00 : f32
    %77 = vector.broadcast %cst_43 : f32 to vector<8x128xf32>
    %78 = arith.addf %77, %76 : vector<8x128xf32>
    %79 = arith.divf %77, %78 : vector<8x128xf32>
    %80 = math.tanh %70 : vector<8x128xf32>
    %81 = vector.extract_strided_slice %79 {offsets = [0, 0], sizes = [8, 32], strides = [1, 1]} : vector<8x128xf32> to vector<8x32xf32>
    %82 = vector.extract_strided_slice %79 {offsets = [0, 32], sizes = [8, 32], strides = [1, 1]} : vector<8x128xf32> to vector<8x32xf32>
    %83 = vector.extract_strided_slice %80 {offsets = [0, 64], sizes = [8, 32], strides = [1, 1]} : vector<8x128xf32> to vector<8x32xf32>
    %84 = vector.extract_strided_slice %79 {offsets = [0, 96], sizes = [8, 32], strides = [1, 1]} : vector<8x128xf32> to vector<8x32xf32>
    %85 = arith.mulf %82, %47 : vector<8x32xf32>
    %86 = arith.mulf %81, %83 : vector<8x32xf32>
    %87 = arith.addf %85, %86 : vector<8x32xf32>
    %88 = math.tanh %87 : vector<8x32xf32>
    %89 = arith.mulf %84, %88 : vector<8x32xf32>
    %90 = arith.negf %74 : vector<8x128xf32>
    %91 = math.exp %90 : vector<8x128xf32>
    %cst_44 = arith.constant 1.000000e+00 : f32
    %92 = vector.broadcast %cst_44 : f32 to vector<8x128xf32>
    %93 = arith.addf %92, %91 : vector<8x128xf32>
    %94 = arith.divf %92, %93 : vector<8x128xf32>
    %95 = math.tanh %74 : vector<8x128xf32>
    %96 = vector.extract_strided_slice %94 {offsets = [0, 0], sizes = [8, 32], strides = [1, 1]} : vector<8x128xf32> to vector<8x32xf32>
    %97 = vector.extract_strided_slice %94 {offsets = [0, 32], sizes = [8, 32], strides = [1, 1]} : vector<8x128xf32> to vector<8x32xf32>
    %98 = vector.extract_strided_slice %95 {offsets = [0, 64], sizes = [8, 32], strides = [1, 1]} : vector<8x128xf32> to vector<8x32xf32>
    %99 = vector.extract_strided_slice %94 {offsets = [0, 96], sizes = [8, 32], strides = [1, 1]} : vector<8x128xf32> to vector<8x32xf32>
    %100 = arith.mulf %97, %62 : vector<8x32xf32>
    %101 = arith.mulf %96, %98 : vector<8x32xf32>
    %102 = arith.addf %100, %101 : vector<8x32xf32>
    %103 = math.tanh %102 : vector<8x32xf32>
    %104 = arith.mulf %99, %103 : vector<8x32xf32>
    %c8_45 = arith.constant 8 : index
    %c0_46 = arith.constant 0 : index
    %105 = vector.load %arg21[%c8_45, %c0_46] : memref<128x32xf32, #tpu.memory_space<vmem>>, vector<8x32xf32>
    tpu.vector_store %arg21[%c8_45, %c0_46], %89 {strides = array<i32>} : memref<128x32xf32, #tpu.memory_space<vmem>>, vector<8x32xf32>,
    %c112_47 = arith.constant 112 : index
    %c0_48 = arith.constant 0 : index
    %106 = vector.load %arg22[%c112_47, %c0_48] : memref<128x32xf32, #tpu.memory_space<vmem>>, vector<8x32xf32>
    tpu.vector_store %arg22[%c112_47, %c0_48], %104 {strides = array<i32>} : memref<128x32xf32, #tpu.memory_space<vmem>>, vector<8x32xf32>,
    %c16 = arith.constant 16 : index
    %c0_49 = arith.constant 0 : index
    %107 = vector.load %arg19[%c16, %c0_49] : memref<128x128xf32, #tpu.memory_space<vmem>>, vector<8x128xf32>
    %108 = arith.truncf %89 : vector<8x32xf32> to vector<8x32xbf16>
    %cst_50 = arith.constant dense<0.000000e+00> : vector<8x128xf32>
    %109 = tpu.matmul %108, %21, %cst_50 {dimension_numbers = #tpu.dot_dimension_numbers<[1], [0], [0], [1], [0, 0, 1, 1], [], []>} : vector<8x32xbf16>, vector<32x128xbf16>, vector<8x128xf32> -> vector<8x128xf32>
    %110 = arith.addf %107, %109 : vector<8x128xf32>
    %c104 = arith.constant 104 : index
    %c0_51 = arith.constant 0 : index
    %111 = vector.load %arg20[%c104, %c0_51] : memref<128x128xf32, #tpu.memory_space<vmem>>, vector<8x128xf32>
    %112 = arith.truncf %104 : vector<8x32xf32> to vector<8x32xbf16>
    %cst_52 = arith.constant dense<0.000000e+00> : vector<8x128xf32>
    %113 = tpu.matmul %112, %22, %cst_52 {dimension_numbers = #tpu.dot_dimension_numbers<[1], [0], [0], [1], [0, 0, 1, 1], [], []>} : vector<8x32xbf16>, vector<32x128xbf16>, vector<8x128xf32> -> vector<8x128xf32>
    %114 = arith.addf %111, %113 : vector<8x128xf32>
    %115 = arith.negf %110 : vector<8x128xf32>
    %116 = math.exp %115 : vector<8x128xf32>
    %cst_53 = arith.constant 1.000000e+00 : f32
    %117 = vector.broadcast %cst_53 : f32 to vector<8x128xf32>
    %118 = arith.addf %117, %116 : vector<8x128xf32>
    %119 = arith.divf %117, %118 : vector<8x128xf32>
    %120 = math.tanh %110 : vector<8x128xf32>
    %121 = vector.extract_strided_slice %119 {offsets = [0, 0], sizes = [8, 32], strides = [1, 1]} : vector<8x128xf32> to vector<8x32xf32>
    %122 = vector.extract_strided_slice %119 {offsets = [0, 32], sizes = [8, 32], strides = [1, 1]} : vector<8x128xf32> to vector<8x32xf32>
    %123 = vector.extract_strided_slice %120 {offsets = [0, 64], sizes = [8, 32], strides = [1, 1]} : vector<8x128xf32> to vector<8x32xf32>
    %124 = vector.extract_strided_slice %119 {offsets = [0, 96], sizes = [8, 32], strides = [1, 1]} : vector<8x128xf32> to vector<8x32xf32>
    %125 = arith.mulf %122, %87 : vector<8x32xf32>
    %126 = arith.mulf %121, %123 : vector<8x32xf32>
    %127 = arith.addf %125, %126 : vector<8x32xf32>
    %128 = math.tanh %127 : vector<8x32xf32>
    %129 = arith.mulf %124, %128 : vector<8x32xf32>
    %130 = arith.negf %114 : vector<8x128xf32>
    %131 = math.exp %130 : vector<8x128xf32>
    %cst_54 = arith.constant 1.000000e+00 : f32
    %132 = vector.broadcast %cst_54 : f32 to vector<8x128xf32>
    %133 = arith.addf %132, %131 : vector<8x128xf32>
    %134 = arith.divf %132, %133 : vector<8x128xf32>
    %135 = math.tanh %114 : vector<8x128xf32>
    %136 = vector.extract_strided_slice %134 {offsets = [0, 0], sizes = [8, 32], strides = [1, 1]} : vector<8x128xf32> to vector<8x32xf32>
    %137 = vector.extract_strided_slice %134 {offsets = [0, 32], sizes = [8, 32], strides = [1, 1]} : vector<8x128xf32> to vector<8x32xf32>
    %138 = vector.extract_strided_slice %135 {offsets = [0, 64], sizes = [8, 32], strides = [1, 1]} : vector<8x128xf32> to vector<8x32xf32>
    %139 = vector.extract_strided_slice %134 {offsets = [0, 96], sizes = [8, 32], strides = [1, 1]} : vector<8x128xf32> to vector<8x32xf32>
    %140 = arith.mulf %137, %102 : vector<8x32xf32>
    %141 = arith.mulf %136, %138 : vector<8x32xf32>
    %142 = arith.addf %140, %141 : vector<8x32xf32>
    %143 = math.tanh %142 : vector<8x32xf32>
    %144 = arith.mulf %139, %143 : vector<8x32xf32>
    %c16_55 = arith.constant 16 : index
    %c0_56 = arith.constant 0 : index
    %145 = vector.load %arg21[%c16_55, %c0_56] : memref<128x32xf32, #tpu.memory_space<vmem>>, vector<8x32xf32>
    tpu.vector_store %arg21[%c16_55, %c0_56], %129 {strides = array<i32>} : memref<128x32xf32, #tpu.memory_space<vmem>>, vector<8x32xf32>,
    %c104_57 = arith.constant 104 : index
    %c0_58 = arith.constant 0 : index
    %146 = vector.load %arg22[%c104_57, %c0_58] : memref<128x32xf32, #tpu.memory_space<vmem>>, vector<8x32xf32>
    tpu.vector_store %arg22[%c104_57, %c0_58], %144 {strides = array<i32>} : memref<128x32xf32, #tpu.memory_space<vmem>>, vector<8x32xf32>,
    %c24 = arith.constant 24 : index
    %c0_59 = arith.constant 0 : index
    %147 = vector.load %arg19[%c24, %c0_59] : memref<128x128xf32, #tpu.memory_space<vmem>>, vector<8x128xf32>
    %148 = arith.truncf %129 : vector<8x32xf32> to vector<8x32xbf16>
    %cst_60 = arith.constant dense<0.000000e+00> : vector<8x128xf32>
    %149 = tpu.matmul %148, %21, %cst_60 {dimension_numbers = #tpu.dot_dimension_numbers<[1], [0], [0], [1], [0, 0, 1, 1], [], []>} : vector<8x32xbf16>, vector<32x128xbf16>, vector<8x128xf32> -> vector<8x128xf32>
    %150 = arith.addf %147, %149 : vector<8x128xf32>
    %c96 = arith.constant 96 : index
    %c0_61 = arith.constant 0 : index
    %151 = vector.load %arg20[%c96, %c0_61] : memref<128x128xf32, #tpu.memory_space<vmem>>, vector<8x128xf32>
    %152 = arith.truncf %144 : vector<8x32xf32> to vector<8x32xbf16>
    %cst_62 = arith.constant dense<0.000000e+00> : vector<8x128xf32>
    %153 = tpu.matmul %152, %22, %cst_62 {dimension_numbers = #tpu.dot_dimension_numbers<[1], [0], [0], [1], [0, 0, 1, 1], [], []>} : vector<8x32xbf16>, vector<32x128xbf16>, vector<8x128xf32> -> vector<8x128xf32>
    %154 = arith.addf %151, %153 : vector<8x128xf32>
    %155 = arith.negf %150 : vector<8x128xf32>
    %156 = math.exp %155 : vector<8x128xf32>
    %cst_63 = arith.constant 1.000000e+00 : f32
    %157 = vector.broadcast %cst_63 : f32 to vector<8x128xf32>
    %158 = arith.addf %157, %156 : vector<8x128xf32>
    %159 = arith.divf %157, %158 : vector<8x128xf32>
    %160 = math.tanh %150 : vector<8x128xf32>
    %161 = vector.extract_strided_slice %159 {offsets = [0, 0], sizes = [8, 32], strides = [1, 1]} : vector<8x128xf32> to vector<8x32xf32>
    %162 = vector.extract_strided_slice %159 {offsets = [0, 32], sizes = [8, 32], strides = [1, 1]} : vector<8x128xf32> to vector<8x32xf32>
    %163 = vector.extract_strided_slice %160 {offsets = [0, 64], sizes = [8, 32], strides = [1, 1]} : vector<8x128xf32> to vector<8x32xf32>
    %164 = vector.extract_strided_slice %159 {offsets = [0, 96], sizes = [8, 32], strides = [1, 1]} : vector<8x128xf32> to vector<8x32xf32>
    %165 = arith.mulf %162, %127 : vector<8x32xf32>
    %166 = arith.mulf %161, %163 : vector<8x32xf32>
    %167 = arith.addf %165, %166 : vector<8x32xf32>
    %168 = math.tanh %167 : vector<8x32xf32>
    %169 = arith.mulf %164, %168 : vector<8x32xf32>
    %170 = arith.negf %154 : vector<8x128xf32>
    %171 = math.exp %170 : vector<8x128xf32>
    %cst_64 = arith.constant 1.000000e+00 : f32
    %172 = vector.broadcast %cst_64 : f32 to vector<8x128xf32>
    %173 = arith.addf %172, %171 : vector<8x128xf32>
    %174 = arith.divf %172, %173 : vector<8x128xf32>
    %175 = math.tanh %154 : vector<8x128xf32>
    %176 = vector.extract_strided_slice %174 {offsets = [0, 0], sizes = [8, 32], strides = [1, 1]} : vector<8x128xf32> to vector<8x32xf32>
    %177 = vector.extract_strided_slice %174 {offsets = [0, 32], sizes = [8, 32], strides = [1, 1]} : vector<8x128xf32> to vector<8x32xf32>
    %178 = vector.extract_strided_slice %175 {offsets = [0, 64], sizes = [8, 32], strides = [1, 1]} : vector<8x128xf32> to vector<8x32xf32>
    %179 = vector.extract_strided_slice %174 {offsets = [0, 96], sizes = [8, 32], strides = [1, 1]} : vector<8x128xf32> to vector<8x32xf32>
    %180 = arith.mulf %177, %142 : vector<8x32xf32>
    %181 = arith.mulf %176, %178 : vector<8x32xf32>
    %182 = arith.addf %180, %181 : vector<8x32xf32>
    %183 = math.tanh %182 : vector<8x32xf32>
    %184 = arith.mulf %179, %183 : vector<8x32xf32>
    %c24_65 = arith.constant 24 : index
    %c0_66 = arith.constant 0 : index
    %185 = vector.load %arg21[%c24_65, %c0_66] : memref<128x32xf32, #tpu.memory_space<vmem>>, vector<8x32xf32>
    tpu.vector_store %arg21[%c24_65, %c0_66], %169 {strides = array<i32>} : memref<128x32xf32, #tpu.memory_space<vmem>>, vector<8x32xf32>,
    %c96_67 = arith.constant 96 : index
    %c0_68 = arith.constant 0 : index
    %186 = vector.load %arg22[%c96_67, %c0_68] : memref<128x32xf32, #tpu.memory_space<vmem>>, vector<8x32xf32>
    tpu.vector_store %arg22[%c96_67, %c0_68], %184 {strides = array<i32>} : memref<128x32xf32, #tpu.memory_space<vmem>>, vector<8x32xf32>,
    %c32 = arith.constant 32 : index
    %c0_69 = arith.constant 0 : index
    %187 = vector.load %arg19[%c32, %c0_69] : memref<128x128xf32, #tpu.memory_space<vmem>>, vector<8x128xf32>
    %188 = arith.truncf %169 : vector<8x32xf32> to vector<8x32xbf16>
    %cst_70 = arith.constant dense<0.000000e+00> : vector<8x128xf32>
    %189 = tpu.matmul %188, %21, %cst_70 {dimension_numbers = #tpu.dot_dimension_numbers<[1], [0], [0], [1], [0, 0, 1, 1], [], []>} : vector<8x32xbf16>, vector<32x128xbf16>, vector<8x128xf32> -> vector<8x128xf32>
    %190 = arith.addf %187, %189 : vector<8x128xf32>
    %c88 = arith.constant 88 : index
    %c0_71 = arith.constant 0 : index
    %191 = vector.load %arg20[%c88, %c0_71] : memref<128x128xf32, #tpu.memory_space<vmem>>, vector<8x128xf32>
    %192 = arith.truncf %184 : vector<8x32xf32> to vector<8x32xbf16>
    %cst_72 = arith.constant dense<0.000000e+00> : vector<8x128xf32>
    %193 = tpu.matmul %192, %22, %cst_72 {dimension_numbers = #tpu.dot_dimension_numbers<[1], [0], [0], [1], [0, 0, 1, 1], [], []>} : vector<8x32xbf16>, vector<32x128xbf16>, vector<8x128xf32> -> vector<8x128xf32>
    %194 = arith.addf %191, %193 : vector<8x128xf32>
    %195 = arith.negf %190 : vector<8x128xf32>
    %196 = math.exp %195 : vector<8x128xf32>
    %cst_73 = arith.constant 1.000000e+00 : f32
    %197 = vector.broadcast %cst_73 : f32 to vector<8x128xf32>
    %198 = arith.addf %197, %196 : vector<8x128xf32>
    %199 = arith.divf %197, %198 : vector<8x128xf32>
    %200 = math.tanh %190 : vector<8x128xf32>
    %201 = vector.extract_strided_slice %199 {offsets = [0, 0], sizes = [8, 32], strides = [1, 1]} : vector<8x128xf32> to vector<8x32xf32>
    %202 = vector.extract_strided_slice %199 {offsets = [0, 32], sizes = [8, 32], strides = [1, 1]} : vector<8x128xf32> to vector<8x32xf32>
    %203 = vector.extract_strided_slice %200 {offsets = [0, 64], sizes = [8, 32], strides = [1, 1]} : vector<8x128xf32> to vector<8x32xf32>
    %204 = vector.extract_strided_slice %199 {offsets = [0, 96], sizes = [8, 32], strides = [1, 1]} : vector<8x128xf32> to vector<8x32xf32>
    %205 = arith.mulf %202, %167 : vector<8x32xf32>
    %206 = arith.mulf %201, %203 : vector<8x32xf32>
    %207 = arith.addf %205, %206 : vector<8x32xf32>
    %208 = math.tanh %207 : vector<8x32xf32>
    %209 = arith.mulf %204, %208 : vector<8x32xf32>
    %210 = arith.negf %194 : vector<8x128xf32>
    %211 = math.exp %210 : vector<8x128xf32>
    %cst_74 = arith.constant 1.000000e+00 : f32
    %212 = vector.broadcast %cst_74 : f32 to vector<8x128xf32>
    %213 = arith.addf %212, %211 : vector<8x128xf32>
    %214 = arith.divf %212, %213 : vector<8x128xf32>
    %215 = math.tanh %194 : vector<8x128xf32>
    %216 = vector.extract_strided_slice %214 {offsets = [0, 0], sizes = [8, 32], strides = [1, 1]} : vector<8x128xf32> to vector<8x32xf32>
    %217 = vector.extract_strided_slice %214 {offsets = [0, 32], sizes = [8, 32], strides = [1, 1]} : vector<8x128xf32> to vector<8x32xf32>
    %218 = vector.extract_strided_slice %215 {offsets = [0, 64], sizes = [8, 32], strides = [1, 1]} : vector<8x128xf32> to vector<8x32xf32>
    %219 = vector.extract_strided_slice %214 {offsets = [0, 96], sizes = [8, 32], strides = [1, 1]} : vector<8x128xf32> to vector<8x32xf32>
    %220 = arith.mulf %217, %182 : vector<8x32xf32>
    %221 = arith.mulf %216, %218 : vector<8x32xf32>
    %222 = arith.addf %220, %221 : vector<8x32xf32>
    %223 = math.tanh %222 : vector<8x32xf32>
    %224 = arith.mulf %219, %223 : vector<8x32xf32>
    %c32_75 = arith.constant 32 : index
    %c0_76 = arith.constant 0 : index
    %225 = vector.load %arg21[%c32_75, %c0_76] : memref<128x32xf32, #tpu.memory_space<vmem>>, vector<8x32xf32>
    tpu.vector_store %arg21[%c32_75, %c0_76], %209 {strides = array<i32>} : memref<128x32xf32, #tpu.memory_space<vmem>>, vector<8x32xf32>,
    %c88_77 = arith.constant 88 : index
    %c0_78 = arith.constant 0 : index
    %226 = vector.load %arg22[%c88_77, %c0_78] : memref<128x32xf32, #tpu.memory_space<vmem>>, vector<8x32xf32>
    tpu.vector_store %arg22[%c88_77, %c0_78], %224 {strides = array<i32>} : memref<128x32xf32, #tpu.memory_space<vmem>>, vector<8x32xf32>,
    %c40 = arith.constant 40 : index
    %c0_79 = arith.constant 0 : index
    %227 = vector.load %arg19[%c40, %c0_79] : memref<128x128xf32, #tpu.memory_space<vmem>>, vector<8x128xf32>
    %228 = arith.truncf %209 : vector<8x32xf32> to vector<8x32xbf16>
    %cst_80 = arith.constant dense<0.000000e+00> : vector<8x128xf32>
    %229 = tpu.matmul %228, %21, %cst_80 {dimension_numbers = #tpu.dot_dimension_numbers<[1], [0], [0], [1], [0, 0, 1, 1], [], []>} : vector<8x32xbf16>, vector<32x128xbf16>, vector<8x128xf32> -> vector<8x128xf32>
    %230 = arith.addf %227, %229 : vector<8x128xf32>
    %c80 = arith.constant 80 : index
    %c0_81 = arith.constant 0 : index
    %231 = vector.load %arg20[%c80, %c0_81] : memref<128x128xf32, #tpu.memory_space<vmem>>, vector<8x128xf32>
    %232 = arith.truncf %224 : vector<8x32xf32> to vector<8x32xbf16>
    %cst_82 = arith.constant dense<0.000000e+00> : vector<8x128xf32>
    %233 = tpu.matmul %232, %22, %cst_82 {dimension_numbers = #tpu.dot_dimension_numbers<[1], [0], [0], [1], [0, 0, 1, 1], [], []>} : vector<8x32xbf16>, vector<32x128xbf16>, vector<8x128xf32> -> vector<8x128xf32>
    %234 = arith.addf %231, %233 : vector<8x128xf32>
    %235 = arith.negf %230 : vector<8x128xf32>
    %236 = math.exp %235 : vector<8x128xf32>
    %cst_83 = arith.constant 1.000000e+00 : f32
    %237 = vector.broadcast %cst_83 : f32 to vector<8x128xf32>
    %238 = arith.addf %237, %236 : vector<8x128xf32>
    %239 = arith.divf %237, %238 : vector<8x128xf32>
    %240 = math.tanh %230 : vector<8x128xf32>
    %241 = vector.extract_strided_slice %239 {offsets = [0, 0], sizes = [8, 32], strides = [1, 1]} : vector<8x128xf32> to vector<8x32xf32>
    %242 = vector.extract_strided_slice %239 {offsets = [0, 32], sizes = [8, 32], strides = [1, 1]} : vector<8x128xf32> to vector<8x32xf32>
    %243 = vector.extract_strided_slice %240 {offsets = [0, 64], sizes = [8, 32], strides = [1, 1]} : vector<8x128xf32> to vector<8x32xf32>
    %244 = vector.extract_strided_slice %239 {offsets = [0, 96], sizes = [8, 32], strides = [1, 1]} : vector<8x128xf32> to vector<8x32xf32>
    %245 = arith.mulf %242, %207 : vector<8x32xf32>
    %246 = arith.mulf %241, %243 : vector<8x32xf32>
    %247 = arith.addf %245, %246 : vector<8x32xf32>
    %248 = math.tanh %247 : vector<8x32xf32>
    %249 = arith.mulf %244, %248 : vector<8x32xf32>
    %250 = arith.negf %234 : vector<8x128xf32>
    %251 = math.exp %250 : vector<8x128xf32>
    %cst_84 = arith.constant 1.000000e+00 : f32
    %252 = vector.broadcast %cst_84 : f32 to vector<8x128xf32>
    %253 = arith.addf %252, %251 : vector<8x128xf32>
    %254 = arith.divf %252, %253 : vector<8x128xf32>
    %255 = math.tanh %234 : vector<8x128xf32>
    %256 = vector.extract_strided_slice %254 {offsets = [0, 0], sizes = [8, 32], strides = [1, 1]} : vector<8x128xf32> to vector<8x32xf32>
    %257 = vector.extract_strided_slice %254 {offsets = [0, 32], sizes = [8, 32], strides = [1, 1]} : vector<8x128xf32> to vector<8x32xf32>
    %258 = vector.extract_strided_slice %255 {offsets = [0, 64], sizes = [8, 32], strides = [1, 1]} : vector<8x128xf32> to vector<8x32xf32>
    %259 = vector.extract_strided_slice %254 {offsets = [0, 96], sizes = [8, 32], strides = [1, 1]} : vector<8x128xf32> to vector<8x32xf32>
    %260 = arith.mulf %257, %222 : vector<8x32xf32>
    %261 = arith.mulf %256, %258 : vector<8x32xf32>
    %262 = arith.addf %260, %261 : vector<8x32xf32>
    %263 = math.tanh %262 : vector<8x32xf32>
    %264 = arith.mulf %259, %263 : vector<8x32xf32>
    %c40_85 = arith.constant 40 : index
    %c0_86 = arith.constant 0 : index
    %265 = vector.load %arg21[%c40_85, %c0_86] : memref<128x32xf32, #tpu.memory_space<vmem>>, vector<8x32xf32>
    tpu.vector_store %arg21[%c40_85, %c0_86], %249 {strides = array<i32>} : memref<128x32xf32, #tpu.memory_space<vmem>>, vector<8x32xf32>,
    %c80_87 = arith.constant 80 : index
    %c0_88 = arith.constant 0 : index
    %266 = vector.load %arg22[%c80_87, %c0_88] : memref<128x32xf32, #tpu.memory_space<vmem>>, vector<8x32xf32>
    tpu.vector_store %arg22[%c80_87, %c0_88], %264 {strides = array<i32>} : memref<128x32xf32, #tpu.memory_space<vmem>>, vector<8x32xf32>,
    %c48 = arith.constant 48 : index
    %c0_89 = arith.constant 0 : index
    %267 = vector.load %arg19[%c48, %c0_89] : memref<128x128xf32, #tpu.memory_space<vmem>>, vector<8x128xf32>
    %268 = arith.truncf %249 : vector<8x32xf32> to vector<8x32xbf16>
    %cst_90 = arith.constant dense<0.000000e+00> : vector<8x128xf32>
    %269 = tpu.matmul %268, %21, %cst_90 {dimension_numbers = #tpu.dot_dimension_numbers<[1], [0], [0], [1], [0, 0, 1, 1], [], []>} : vector<8x32xbf16>, vector<32x128xbf16>, vector<8x128xf32> -> vector<8x128xf32>
    %270 = arith.addf %267, %269 : vector<8x128xf32>
    %c72 = arith.constant 72 : index
    %c0_91 = arith.constant 0 : index
    %271 = vector.load %arg20[%c72, %c0_91] : memref<128x128xf32, #tpu.memory_space<vmem>>, vector<8x128xf32>
    %272 = arith.truncf %264 : vector<8x32xf32> to vector<8x32xbf16>
    %cst_92 = arith.constant dense<0.000000e+00> : vector<8x128xf32>
    %273 = tpu.matmul %272, %22, %cst_92 {dimension_numbers = #tpu.dot_dimension_numbers<[1], [0], [0], [1], [0, 0, 1, 1], [], []>} : vector<8x32xbf16>, vector<32x128xbf16>, vector<8x128xf32> -> vector<8x128xf32>
    %274 = arith.addf %271, %273 : vector<8x128xf32>
    %275 = arith.negf %270 : vector<8x128xf32>
    %276 = math.exp %275 : vector<8x128xf32>
    %cst_93 = arith.constant 1.000000e+00 : f32
    %277 = vector.broadcast %cst_93 : f32 to vector<8x128xf32>
    %278 = arith.addf %277, %276 : vector<8x128xf32>
    %279 = arith.divf %277, %278 : vector<8x128xf32>
    %280 = math.tanh %270 : vector<8x128xf32>
    %281 = vector.extract_strided_slice %279 {offsets = [0, 0], sizes = [8, 32], strides = [1, 1]} : vector<8x128xf32> to vector<8x32xf32>
    %282 = vector.extract_strided_slice %279 {offsets = [0, 32], sizes = [8, 32], strides = [1, 1]} : vector<8x128xf32> to vector<8x32xf32>
    %283 = vector.extract_strided_slice %280 {offsets = [0, 64], sizes = [8, 32], strides = [1, 1]} : vector<8x128xf32> to vector<8x32xf32>
    %284 = vector.extract_strided_slice %279 {offsets = [0, 96], sizes = [8, 32], strides = [1, 1]} : vector<8x128xf32> to vector<8x32xf32>
    %285 = arith.mulf %282, %247 : vector<8x32xf32>
    %286 = arith.mulf %281, %283 : vector<8x32xf32>
    %287 = arith.addf %285, %286 : vector<8x32xf32>
    %288 = math.tanh %287 : vector<8x32xf32>
    %289 = arith.mulf %284, %288 : vector<8x32xf32>
    %290 = arith.negf %274 : vector<8x128xf32>
    %291 = math.exp %290 : vector<8x128xf32>
    %cst_94 = arith.constant 1.000000e+00 : f32
    %292 = vector.broadcast %cst_94 : f32 to vector<8x128xf32>
    %293 = arith.addf %292, %291 : vector<8x128xf32>
    %294 = arith.divf %292, %293 : vector<8x128xf32>
    %295 = math.tanh %274 : vector<8x128xf32>
    %296 = vector.extract_strided_slice %294 {offsets = [0, 0], sizes = [8, 32], strides = [1, 1]} : vector<8x128xf32> to vector<8x32xf32>
    %297 = vector.extract_strided_slice %294 {offsets = [0, 32], sizes = [8, 32], strides = [1, 1]} : vector<8x128xf32> to vector<8x32xf32>
    %298 = vector.extract_strided_slice %295 {offsets = [0, 64], sizes = [8, 32], strides = [1, 1]} : vector<8x128xf32> to vector<8x32xf32>
    %299 = vector.extract_strided_slice %294 {offsets = [0, 96], sizes = [8, 32], strides = [1, 1]} : vector<8x128xf32> to vector<8x32xf32>
    %300 = arith.mulf %297, %262 : vector<8x32xf32>
    %301 = arith.mulf %296, %298 : vector<8x32xf32>
    %302 = arith.addf %300, %301 : vector<8x32xf32>
    %303 = math.tanh %302 : vector<8x32xf32>
    %304 = arith.mulf %299, %303 : vector<8x32xf32>
    %c48_95 = arith.constant 48 : index
    %c0_96 = arith.constant 0 : index
    %305 = vector.load %arg21[%c48_95, %c0_96] : memref<128x32xf32, #tpu.memory_space<vmem>>, vector<8x32xf32>
    tpu.vector_store %arg21[%c48_95, %c0_96], %289 {strides = array<i32>} : memref<128x32xf32, #tpu.memory_space<vmem>>, vector<8x32xf32>,
    %c72_97 = arith.constant 72 : index
    %c0_98 = arith.constant 0 : index
    %306 = vector.load %arg22[%c72_97, %c0_98] : memref<128x32xf32, #tpu.memory_space<vmem>>, vector<8x32xf32>
    tpu.vector_store %arg22[%c72_97, %c0_98], %304 {strides = array<i32>} : memref<128x32xf32, #tpu.memory_space<vmem>>, vector<8x32xf32>,
    %c56 = arith.constant 56 : index
    %c0_99 = arith.constant 0 : index
    %307 = vector.load %arg19[%c56, %c0_99] : memref<128x128xf32, #tpu.memory_space<vmem>>, vector<8x128xf32>
    %308 = arith.truncf %289 : vector<8x32xf32> to vector<8x32xbf16>
    %cst_100 = arith.constant dense<0.000000e+00> : vector<8x128xf32>
    %309 = tpu.matmul %308, %21, %cst_100 {dimension_numbers = #tpu.dot_dimension_numbers<[1], [0], [0], [1], [0, 0, 1, 1], [], []>} : vector<8x32xbf16>, vector<32x128xbf16>, vector<8x128xf32> -> vector<8x128xf32>
    %310 = arith.addf %307, %309 : vector<8x128xf32>
    %c64 = arith.constant 64 : index
    %c0_101 = arith.constant 0 : index
    %311 = vector.load %arg20[%c64, %c0_101] : memref<128x128xf32, #tpu.memory_space<vmem>>, vector<8x128xf32>
    %312 = arith.truncf %304 : vector<8x32xf32> to vector<8x32xbf16>
    %cst_102 = arith.constant dense<0.000000e+00> : vector<8x128xf32>
    %313 = tpu.matmul %312, %22, %cst_102 {dimension_numbers = #tpu.dot_dimension_numbers<[1], [0], [0], [1], [0, 0, 1, 1], [], []>} : vector<8x32xbf16>, vector<32x128xbf16>, vector<8x128xf32> -> vector<8x128xf32>
    %314 = arith.addf %311, %313 : vector<8x128xf32>
    %315 = arith.negf %310 : vector<8x128xf32>
    %316 = math.exp %315 : vector<8x128xf32>
    %cst_103 = arith.constant 1.000000e+00 : f32
    %317 = vector.broadcast %cst_103 : f32 to vector<8x128xf32>
    %318 = arith.addf %317, %316 : vector<8x128xf32>
    %319 = arith.divf %317, %318 : vector<8x128xf32>
    %320 = math.tanh %310 : vector<8x128xf32>
    %321 = vector.extract_strided_slice %319 {offsets = [0, 0], sizes = [8, 32], strides = [1, 1]} : vector<8x128xf32> to vector<8x32xf32>
    %322 = vector.extract_strided_slice %319 {offsets = [0, 32], sizes = [8, 32], strides = [1, 1]} : vector<8x128xf32> to vector<8x32xf32>
    %323 = vector.extract_strided_slice %320 {offsets = [0, 64], sizes = [8, 32], strides = [1, 1]} : vector<8x128xf32> to vector<8x32xf32>
    %324 = vector.extract_strided_slice %319 {offsets = [0, 96], sizes = [8, 32], strides = [1, 1]} : vector<8x128xf32> to vector<8x32xf32>
    %325 = arith.mulf %322, %287 : vector<8x32xf32>
    %326 = arith.mulf %321, %323 : vector<8x32xf32>
    %327 = arith.addf %325, %326 : vector<8x32xf32>
    %328 = math.tanh %327 : vector<8x32xf32>
    %329 = arith.mulf %324, %328 : vector<8x32xf32>
    %330 = arith.negf %314 : vector<8x128xf32>
    %331 = math.exp %330 : vector<8x128xf32>
    %cst_104 = arith.constant 1.000000e+00 : f32
    %332 = vector.broadcast %cst_104 : f32 to vector<8x128xf32>
    %333 = arith.addf %332, %331 : vector<8x128xf32>
    %334 = arith.divf %332, %333 : vector<8x128xf32>
    %335 = math.tanh %314 : vector<8x128xf32>
    %336 = vector.extract_strided_slice %334 {offsets = [0, 0], sizes = [8, 32], strides = [1, 1]} : vector<8x128xf32> to vector<8x32xf32>
    %337 = vector.extract_strided_slice %334 {offsets = [0, 32], sizes = [8, 32], strides = [1, 1]} : vector<8x128xf32> to vector<8x32xf32>
    %338 = vector.extract_strided_slice %335 {offsets = [0, 64], sizes = [8, 32], strides = [1, 1]} : vector<8x128xf32> to vector<8x32xf32>
    %339 = vector.extract_strided_slice %334 {offsets = [0, 96], sizes = [8, 32], strides = [1, 1]} : vector<8x128xf32> to vector<8x32xf32>
    %340 = arith.mulf %337, %302 : vector<8x32xf32>
    %341 = arith.mulf %336, %338 : vector<8x32xf32>
    %342 = arith.addf %340, %341 : vector<8x32xf32>
    %343 = math.tanh %342 : vector<8x32xf32>
    %344 = arith.mulf %339, %343 : vector<8x32xf32>
    %c56_105 = arith.constant 56 : index
    %c0_106 = arith.constant 0 : index
    %345 = vector.load %arg21[%c56_105, %c0_106] : memref<128x32xf32, #tpu.memory_space<vmem>>, vector<8x32xf32>
    tpu.vector_store %arg21[%c56_105, %c0_106], %329 {strides = array<i32>} : memref<128x32xf32, #tpu.memory_space<vmem>>, vector<8x32xf32>,
    %c64_107 = arith.constant 64 : index
    %c0_108 = arith.constant 0 : index
    %346 = vector.load %arg22[%c64_107, %c0_108] : memref<128x32xf32, #tpu.memory_space<vmem>>, vector<8x32xf32>
    tpu.vector_store %arg22[%c64_107, %c0_108], %344 {strides = array<i32>} : memref<128x32xf32, #tpu.memory_space<vmem>>, vector<8x32xf32>,
    %c64_109 = arith.constant 64 : index
    %c0_110 = arith.constant 0 : index
    %347 = vector.load %arg19[%c64_109, %c0_110] : memref<128x128xf32, #tpu.memory_space<vmem>>, vector<8x128xf32>
    %348 = arith.truncf %329 : vector<8x32xf32> to vector<8x32xbf16>
    %cst_111 = arith.constant dense<0.000000e+00> : vector<8x128xf32>
    %349 = tpu.matmul %348, %21, %cst_111 {dimension_numbers = #tpu.dot_dimension_numbers<[1], [0], [0], [1], [0, 0, 1, 1], [], []>} : vector<8x32xbf16>, vector<32x128xbf16>, vector<8x128xf32> -> vector<8x128xf32>
    %350 = arith.addf %347, %349 : vector<8x128xf32>
    %c56_112 = arith.constant 56 : index
    %c0_113 = arith.constant 0 : index
    %351 = vector.load %arg20[%c56_112, %c0_113] : memref<128x128xf32, #tpu.memory_space<vmem>>, vector<8x128xf32>
    %352 = arith.truncf %344 : vector<8x32xf32> to vector<8x32xbf16>
    %cst_114 = arith.constant dense<0.000000e+00> : vector<8x128xf32>
    %353 = tpu.matmul %352, %22, %cst_114 {dimension_numbers = #tpu.dot_dimension_numbers<[1], [0], [0], [1], [0, 0, 1, 1], [], []>} : vector<8x32xbf16>, vector<32x128xbf16>, vector<8x128xf32> -> vector<8x128xf32>
    %354 = arith.addf %351, %353 : vector<8x128xf32>
    %355 = arith.negf %350 : vector<8x128xf32>
    %356 = math.exp %355 : vector<8x128xf32>
    %cst_115 = arith.constant 1.000000e+00 : f32
    %357 = vector.broadcast %cst_115 : f32 to vector<8x128xf32>
    %358 = arith.addf %357, %356 : vector<8x128xf32>
    %359 = arith.divf %357, %358 : vector<8x128xf32>
    %360 = math.tanh %350 : vector<8x128xf32>
    %361 = vector.extract_strided_slice %359 {offsets = [0, 0], sizes = [8, 32], strides = [1, 1]} : vector<8x128xf32> to vector<8x32xf32>
    %362 = vector.extract_strided_slice %359 {offsets = [0, 32], sizes = [8, 32], strides = [1, 1]} : vector<8x128xf32> to vector<8x32xf32>
    %363 = vector.extract_strided_slice %360 {offsets = [0, 64], sizes = [8, 32], strides = [1, 1]} : vector<8x128xf32> to vector<8x32xf32>
    %364 = vector.extract_strided_slice %359 {offsets = [0, 96], sizes = [8, 32], strides = [1, 1]} : vector<8x128xf32> to vector<8x32xf32>
    %365 = arith.mulf %362, %327 : vector<8x32xf32>
    %366 = arith.mulf %361, %363 : vector<8x32xf32>
    %367 = arith.addf %365, %366 : vector<8x32xf32>
    %368 = math.tanh %367 : vector<8x32xf32>
    %369 = arith.mulf %364, %368 : vector<8x32xf32>
    %370 = arith.negf %354 : vector<8x128xf32>
    %371 = math.exp %370 : vector<8x128xf32>
    %cst_116 = arith.constant 1.000000e+00 : f32
    %372 = vector.broadcast %cst_116 : f32 to vector<8x128xf32>
    %373 = arith.addf %372, %371 : vector<8x128xf32>
    %374 = arith.divf %372, %373 : vector<8x128xf32>
    %375 = math.tanh %354 : vector<8x128xf32>
    %376 = vector.extract_strided_slice %374 {offsets = [0, 0], sizes = [8, 32], strides = [1, 1]} : vector<8x128xf32> to vector<8x32xf32>
    %377 = vector.extract_strided_slice %374 {offsets = [0, 32], sizes = [8, 32], strides = [1, 1]} : vector<8x128xf32> to vector<8x32xf32>
    %378 = vector.extract_strided_slice %375 {offsets = [0, 64], sizes = [8, 32], strides = [1, 1]} : vector<8x128xf32> to vector<8x32xf32>
    %379 = vector.extract_strided_slice %374 {offsets = [0, 96], sizes = [8, 32], strides = [1, 1]} : vector<8x128xf32> to vector<8x32xf32>
    %380 = arith.mulf %377, %342 : vector<8x32xf32>
    %381 = arith.mulf %376, %378 : vector<8x32xf32>
    %382 = arith.addf %380, %381 : vector<8x32xf32>
    %383 = math.tanh %382 : vector<8x32xf32>
    %384 = arith.mulf %379, %383 : vector<8x32xf32>
    %c64_117 = arith.constant 64 : index
    %c0_118 = arith.constant 0 : index
    %385 = vector.load %arg21[%c64_117, %c0_118] : memref<128x32xf32, #tpu.memory_space<vmem>>, vector<8x32xf32>
    tpu.vector_store %arg21[%c64_117, %c0_118], %369 {strides = array<i32>} : memref<128x32xf32, #tpu.memory_space<vmem>>, vector<8x32xf32>,
    %c56_119 = arith.constant 56 : index
    %c0_120 = arith.constant 0 : index
    %386 = vector.load %arg22[%c56_119, %c0_120] : memref<128x32xf32, #tpu.memory_space<vmem>>, vector<8x32xf32>
    tpu.vector_store %arg22[%c56_119, %c0_120], %384 {strides = array<i32>} : memref<128x32xf32, #tpu.memory_space<vmem>>, vector<8x32xf32>,
    %c72_121 = arith.constant 72 : index
    %c0_122 = arith.constant 0 : index
    %387 = vector.load %arg19[%c72_121, %c0_122] : memref<128x128xf32, #tpu.memory_space<vmem>>, vector<8x128xf32>
    %388 = arith.truncf %369 : vector<8x32xf32> to vector<8x32xbf16>
    %cst_123 = arith.constant dense<0.000000e+00> : vector<8x128xf32>
    %389 = tpu.matmul %388, %21, %cst_123 {dimension_numbers = #tpu.dot_dimension_numbers<[1], [0], [0], [1], [0, 0, 1, 1], [], []>} : vector<8x32xbf16>, vector<32x128xbf16>, vector<8x128xf32> -> vector<8x128xf32>
    %390 = arith.addf %387, %389 : vector<8x128xf32>
    %c48_124 = arith.constant 48 : index
    %c0_125 = arith.constant 0 : index
    %391 = vector.load %arg20[%c48_124, %c0_125] : memref<128x128xf32, #tpu.memory_space<vmem>>, vector<8x128xf32>
    %392 = arith.truncf %384 : vector<8x32xf32> to vector<8x32xbf16>
    %cst_126 = arith.constant dense<0.000000e+00> : vector<8x128xf32>
    %393 = tpu.matmul %392, %22, %cst_126 {dimension_numbers = #tpu.dot_dimension_numbers<[1], [0], [0], [1], [0, 0, 1, 1], [], []>} : vector<8x32xbf16>, vector<32x128xbf16>, vector<8x128xf32> -> vector<8x128xf32>
    %394 = arith.addf %391, %393 : vector<8x128xf32>
    %395 = arith.negf %390 : vector<8x128xf32>
    %396 = math.exp %395 : vector<8x128xf32>
    %cst_127 = arith.constant 1.000000e+00 : f32
    %397 = vector.broadcast %cst_127 : f32 to vector<8x128xf32>
    %398 = arith.addf %397, %396 : vector<8x128xf32>
    %399 = arith.divf %397, %398 : vector<8x128xf32>
    %400 = math.tanh %390 : vector<8x128xf32>
    %401 = vector.extract_strided_slice %399 {offsets = [0, 0], sizes = [8, 32], strides = [1, 1]} : vector<8x128xf32> to vector<8x32xf32>
    %402 = vector.extract_strided_slice %399 {offsets = [0, 32], sizes = [8, 32], strides = [1, 1]} : vector<8x128xf32> to vector<8x32xf32>
    %403 = vector.extract_strided_slice %400 {offsets = [0, 64], sizes = [8, 32], strides = [1, 1]} : vector<8x128xf32> to vector<8x32xf32>
    %404 = vector.extract_strided_slice %399 {offsets = [0, 96], sizes = [8, 32], strides = [1, 1]} : vector<8x128xf32> to vector<8x32xf32>
    %405 = arith.mulf %402, %367 : vector<8x32xf32>
    %406 = arith.mulf %401, %403 : vector<8x32xf32>
    %407 = arith.addf %405, %406 : vector<8x32xf32>
    %408 = math.tanh %407 : vector<8x32xf32>
    %409 = arith.mulf %404, %408 : vector<8x32xf32>
    %410 = arith.negf %394 : vector<8x128xf32>
    %411 = math.exp %410 : vector<8x128xf32>
    %cst_128 = arith.constant 1.000000e+00 : f32
    %412 = vector.broadcast %cst_128 : f32 to vector<8x128xf32>
    %413 = arith.addf %412, %411 : vector<8x128xf32>
    %414 = arith.divf %412, %413 : vector<8x128xf32>
    %415 = math.tanh %394 : vector<8x128xf32>
    %416 = vector.extract_strided_slice %414 {offsets = [0, 0], sizes = [8, 32], strides = [1, 1]} : vector<8x128xf32> to vector<8x32xf32>
    %417 = vector.extract_strided_slice %414 {offsets = [0, 32], sizes = [8, 32], strides = [1, 1]} : vector<8x128xf32> to vector<8x32xf32>
    %418 = vector.extract_strided_slice %415 {offsets = [0, 64], sizes = [8, 32], strides = [1, 1]} : vector<8x128xf32> to vector<8x32xf32>
    %419 = vector.extract_strided_slice %414 {offsets = [0, 96], sizes = [8, 32], strides = [1, 1]} : vector<8x128xf32> to vector<8x32xf32>
    %420 = arith.mulf %417, %382 : vector<8x32xf32>
    %421 = arith.mulf %416, %418 : vector<8x32xf32>
    %422 = arith.addf %420, %421 : vector<8x32xf32>
    %423 = math.tanh %422 : vector<8x32xf32>
    %424 = arith.mulf %419, %423 : vector<8x32xf32>
    %c72_129 = arith.constant 72 : index
    %c0_130 = arith.constant 0 : index
    %425 = vector.load %arg21[%c72_129, %c0_130] : memref<128x32xf32, #tpu.memory_space<vmem>>, vector<8x32xf32>
    tpu.vector_store %arg21[%c72_129, %c0_130], %409 {strides = array<i32>} : memref<128x32xf32, #tpu.memory_space<vmem>>, vector<8x32xf32>,
    %c48_131 = arith.constant 48 : index
    %c0_132 = arith.constant 0 : index
    %426 = vector.load %arg22[%c48_131, %c0_132] : memref<128x32xf32, #tpu.memory_space<vmem>>, vector<8x32xf32>
    tpu.vector_store %arg22[%c48_131, %c0_132], %424 {strides = array<i32>} : memref<128x32xf32, #tpu.memory_space<vmem>>, vector<8x32xf32>,
    %c80_133 = arith.constant 80 : index
    %c0_134 = arith.constant 0 : index
    %427 = vector.load %arg19[%c80_133, %c0_134] : memref<128x128xf32, #tpu.memory_space<vmem>>, vector<8x128xf32>
    %428 = arith.truncf %409 : vector<8x32xf32> to vector<8x32xbf16>
    %cst_135 = arith.constant dense<0.000000e+00> : vector<8x128xf32>
    %429 = tpu.matmul %428, %21, %cst_135 {dimension_numbers = #tpu.dot_dimension_numbers<[1], [0], [0], [1], [0, 0, 1, 1], [], []>} : vector<8x32xbf16>, vector<32x128xbf16>, vector<8x128xf32> -> vector<8x128xf32>
    %430 = arith.addf %427, %429 : vector<8x128xf32>
    %c40_136 = arith.constant 40 : index
    %c0_137 = arith.constant 0 : index
    %431 = vector.load %arg20[%c40_136, %c0_137] : memref<128x128xf32, #tpu.memory_space<vmem>>, vector<8x128xf32>
    %432 = arith.truncf %424 : vector<8x32xf32> to vector<8x32xbf16>
    %cst_138 = arith.constant dense<0.000000e+00> : vector<8x128xf32>
    %433 = tpu.matmul %432, %22, %cst_138 {dimension_numbers = #tpu.dot_dimension_numbers<[1], [0], [0], [1], [0, 0, 1, 1], [], []>} : vector<8x32xbf16>, vector<32x128xbf16>, vector<8x128xf32> -> vector<8x128xf32>
    %434 = arith.addf %431, %433 : vector<8x128xf32>
    %435 = arith.negf %430 : vector<8x128xf32>
    %436 = math.exp %435 : vector<8x128xf32>
    %cst_139 = arith.constant 1.000000e+00 : f32
    %437 = vector.broadcast %cst_139 : f32 to vector<8x128xf32>
    %438 = arith.addf %437, %436 : vector<8x128xf32>
    %439 = arith.divf %437, %438 : vector<8x128xf32>
    %440 = math.tanh %430 : vector<8x128xf32>
    %441 = vector.extract_strided_slice %439 {offsets = [0, 0], sizes = [8, 32], strides = [1, 1]} : vector<8x128xf32> to vector<8x32xf32>
    %442 = vector.extract_strided_slice %439 {offsets = [0, 32], sizes = [8, 32], strides = [1, 1]} : vector<8x128xf32> to vector<8x32xf32>
    %443 = vector.extract_strided_slice %440 {offsets = [0, 64], sizes = [8, 32], strides = [1, 1]} : vector<8x128xf32> to vector<8x32xf32>
    %444 = vector.extract_strided_slice %439 {offsets = [0, 96], sizes = [8, 32], strides = [1, 1]} : vector<8x128xf32> to vector<8x32xf32>
    %445 = arith.mulf %442, %407 : vector<8x32xf32>
    %446 = arith.mulf %441, %443 : vector<8x32xf32>
    %447 = arith.addf %445, %446 : vector<8x32xf32>
    %448 = math.tanh %447 : vector<8x32xf32>
    %449 = arith.mulf %444, %448 : vector<8x32xf32>
    %450 = arith.negf %434 : vector<8x128xf32>
    %451 = math.exp %450 : vector<8x128xf32>
    %cst_140 = arith.constant 1.000000e+00 : f32
    %452 = vector.broadcast %cst_140 : f32 to vector<8x128xf32>
    %453 = arith.addf %452, %451 : vector<8x128xf32>
    %454 = arith.divf %452, %453 : vector<8x128xf32>
    %455 = math.tanh %434 : vector<8x128xf32>
    %456 = vector.extract_strided_slice %454 {offsets = [0, 0], sizes = [8, 32], strides = [1, 1]} : vector<8x128xf32> to vector<8x32xf32>
    %457 = vector.extract_strided_slice %454 {offsets = [0, 32], sizes = [8, 32], strides = [1, 1]} : vector<8x128xf32> to vector<8x32xf32>
    %458 = vector.extract_strided_slice %455 {offsets = [0, 64], sizes = [8, 32], strides = [1, 1]} : vector<8x128xf32> to vector<8x32xf32>
    %459 = vector.extract_strided_slice %454 {offsets = [0, 96], sizes = [8, 32], strides = [1, 1]} : vector<8x128xf32> to vector<8x32xf32>
    %460 = arith.mulf %457, %422 : vector<8x32xf32>
    %461 = arith.mulf %456, %458 : vector<8x32xf32>
    %462 = arith.addf %460, %461 : vector<8x32xf32>
    %463 = math.tanh %462 : vector<8x32xf32>
    %464 = arith.mulf %459, %463 : vector<8x32xf32>
    %c80_141 = arith.constant 80 : index
    %c0_142 = arith.constant 0 : index
    %465 = vector.load %arg21[%c80_141, %c0_142] : memref<128x32xf32, #tpu.memory_space<vmem>>, vector<8x32xf32>
    tpu.vector_store %arg21[%c80_141, %c0_142], %449 {strides = array<i32>} : memref<128x32xf32, #tpu.memory_space<vmem>>, vector<8x32xf32>,
    %c40_143 = arith.constant 40 : index
    %c0_144 = arith.constant 0 : index
    %466 = vector.load %arg22[%c40_143, %c0_144] : memref<128x32xf32, #tpu.memory_space<vmem>>, vector<8x32xf32>
    tpu.vector_store %arg22[%c40_143, %c0_144], %464 {strides = array<i32>} : memref<128x32xf32, #tpu.memory_space<vmem>>, vector<8x32xf32>,
    %c88_145 = arith.constant 88 : index
    %c0_146 = arith.constant 0 : index
    %467 = vector.load %arg19[%c88_145, %c0_146] : memref<128x128xf32, #tpu.memory_space<vmem>>, vector<8x128xf32>
    %468 = arith.truncf %449 : vector<8x32xf32> to vector<8x32xbf16>
    %cst_147 = arith.constant dense<0.000000e+00> : vector<8x128xf32>
    %469 = tpu.matmul %468, %21, %cst_147 {dimension_numbers = #tpu.dot_dimension_numbers<[1], [0], [0], [1], [0, 0, 1, 1], [], []>} : vector<8x32xbf16>, vector<32x128xbf16>, vector<8x128xf32> -> vector<8x128xf32>
    %470 = arith.addf %467, %469 : vector<8x128xf32>
    %c32_148 = arith.constant 32 : index
    %c0_149 = arith.constant 0 : index
    %471 = vector.load %arg20[%c32_148, %c0_149] : memref<128x128xf32, #tpu.memory_space<vmem>>, vector<8x128xf32>
    %472 = arith.truncf %464 : vector<8x32xf32> to vector<8x32xbf16>
    %cst_150 = arith.constant dense<0.000000e+00> : vector<8x128xf32>
    %473 = tpu.matmul %472, %22, %cst_150 {dimension_numbers = #tpu.dot_dimension_numbers<[1], [0], [0], [1], [0, 0, 1, 1], [], []>} : vector<8x32xbf16>, vector<32x128xbf16>, vector<8x128xf32> -> vector<8x128xf32>
    %474 = arith.addf %471, %473 : vector<8x128xf32>
    %475 = arith.negf %470 : vector<8x128xf32>
    %476 = math.exp %475 : vector<8x128xf32>
    %cst_151 = arith.constant 1.000000e+00 : f32
    %477 = vector.broadcast %cst_151 : f32 to vector<8x128xf32>
    %478 = arith.addf %477, %476 : vector<8x128xf32>
    %479 = arith.divf %477, %478 : vector<8x128xf32>
    %480 = math.tanh %470 : vector<8x128xf32>
    %481 = vector.extract_strided_slice %479 {offsets = [0, 0], sizes = [8, 32], strides = [1, 1]} : vector<8x128xf32> to vector<8x32xf32>
    %482 = vector.extract_strided_slice %479 {offsets = [0, 32], sizes = [8, 32], strides = [1, 1]} : vector<8x128xf32> to vector<8x32xf32>
    %483 = vector.extract_strided_slice %480 {offsets = [0, 64], sizes = [8, 32], strides = [1, 1]} : vector<8x128xf32> to vector<8x32xf32>
    %484 = vector.extract_strided_slice %479 {offsets = [0, 96], sizes = [8, 32], strides = [1, 1]} : vector<8x128xf32> to vector<8x32xf32>
    %485 = arith.mulf %482, %447 : vector<8x32xf32>
    %486 = arith.mulf %481, %483 : vector<8x32xf32>
    %487 = arith.addf %485, %486 : vector<8x32xf32>
    %488 = math.tanh %487 : vector<8x32xf32>
    %489 = arith.mulf %484, %488 : vector<8x32xf32>
    %490 = arith.negf %474 : vector<8x128xf32>
    %491 = math.exp %490 : vector<8x128xf32>
    %cst_152 = arith.constant 1.000000e+00 : f32
    %492 = vector.broadcast %cst_152 : f32 to vector<8x128xf32>
    %493 = arith.addf %492, %491 : vector<8x128xf32>
    %494 = arith.divf %492, %493 : vector<8x128xf32>
    %495 = math.tanh %474 : vector<8x128xf32>
    %496 = vector.extract_strided_slice %494 {offsets = [0, 0], sizes = [8, 32], strides = [1, 1]} : vector<8x128xf32> to vector<8x32xf32>
    %497 = vector.extract_strided_slice %494 {offsets = [0, 32], sizes = [8, 32], strides = [1, 1]} : vector<8x128xf32> to vector<8x32xf32>
    %498 = vector.extract_strided_slice %495 {offsets = [0, 64], sizes = [8, 32], strides = [1, 1]} : vector<8x128xf32> to vector<8x32xf32>
    %499 = vector.extract_strided_slice %494 {offsets = [0, 96], sizes = [8, 32], strides = [1, 1]} : vector<8x128xf32> to vector<8x32xf32>
    %500 = arith.mulf %497, %462 : vector<8x32xf32>
    %501 = arith.mulf %496, %498 : vector<8x32xf32>
    %502 = arith.addf %500, %501 : vector<8x32xf32>
    %503 = math.tanh %502 : vector<8x32xf32>
    %504 = arith.mulf %499, %503 : vector<8x32xf32>
    %c88_153 = arith.constant 88 : index
    %c0_154 = arith.constant 0 : index
    %505 = vector.load %arg21[%c88_153, %c0_154] : memref<128x32xf32, #tpu.memory_space<vmem>>, vector<8x32xf32>
    tpu.vector_store %arg21[%c88_153, %c0_154], %489 {strides = array<i32>} : memref<128x32xf32, #tpu.memory_space<vmem>>, vector<8x32xf32>,
    %c32_155 = arith.constant 32 : index
    %c0_156 = arith.constant 0 : index
    %506 = vector.load %arg22[%c32_155, %c0_156] : memref<128x32xf32, #tpu.memory_space<vmem>>, vector<8x32xf32>
    tpu.vector_store %arg22[%c32_155, %c0_156], %504 {strides = array<i32>} : memref<128x32xf32, #tpu.memory_space<vmem>>, vector<8x32xf32>,
    %c96_157 = arith.constant 96 : index
    %c0_158 = arith.constant 0 : index
    %507 = vector.load %arg19[%c96_157, %c0_158] : memref<128x128xf32, #tpu.memory_space<vmem>>, vector<8x128xf32>
    %508 = arith.truncf %489 : vector<8x32xf32> to vector<8x32xbf16>
    %cst_159 = arith.constant dense<0.000000e+00> : vector<8x128xf32>
    %509 = tpu.matmul %508, %21, %cst_159 {dimension_numbers = #tpu.dot_dimension_numbers<[1], [0], [0], [1], [0, 0, 1, 1], [], []>} : vector<8x32xbf16>, vector<32x128xbf16>, vector<8x128xf32> -> vector<8x128xf32>
    %510 = arith.addf %507, %509 : vector<8x128xf32>
    %c24_160 = arith.constant 24 : index
    %c0_161 = arith.constant 0 : index
    %511 = vector.load %arg20[%c24_160, %c0_161] : memref<128x128xf32, #tpu.memory_space<vmem>>, vector<8x128xf32>
    %512 = arith.truncf %504 : vector<8x32xf32> to vector<8x32xbf16>
    %cst_162 = arith.constant dense<0.000000e+00> : vector<8x128xf32>
    %513 = tpu.matmul %512, %22, %cst_162 {dimension_numbers = #tpu.dot_dimension_numbers<[1], [0], [0], [1], [0, 0, 1, 1], [], []>} : vector<8x32xbf16>, vector<32x128xbf16>, vector<8x128xf32> -> vector<8x128xf32>
    %514 = arith.addf %511, %513 : vector<8x128xf32>
    %515 = arith.negf %510 : vector<8x128xf32>
    %516 = math.exp %515 : vector<8x128xf32>
    %cst_163 = arith.constant 1.000000e+00 : f32
    %517 = vector.broadcast %cst_163 : f32 to vector<8x128xf32>
    %518 = arith.addf %517, %516 : vector<8x128xf32>
    %519 = arith.divf %517, %518 : vector<8x128xf32>
    %520 = math.tanh %510 : vector<8x128xf32>
    %521 = vector.extract_strided_slice %519 {offsets = [0, 0], sizes = [8, 32], strides = [1, 1]} : vector<8x128xf32> to vector<8x32xf32>
    %522 = vector.extract_strided_slice %519 {offsets = [0, 32], sizes = [8, 32], strides = [1, 1]} : vector<8x128xf32> to vector<8x32xf32>
    %523 = vector.extract_strided_slice %520 {offsets = [0, 64], sizes = [8, 32], strides = [1, 1]} : vector<8x128xf32> to vector<8x32xf32>
    %524 = vector.extract_strided_slice %519 {offsets = [0, 96], sizes = [8, 32], strides = [1, 1]} : vector<8x128xf32> to vector<8x32xf32>
    %525 = arith.mulf %522, %487 : vector<8x32xf32>
    %526 = arith.mulf %521, %523 : vector<8x32xf32>
    %527 = arith.addf %525, %526 : vector<8x32xf32>
    %528 = math.tanh %527 : vector<8x32xf32>
    %529 = arith.mulf %524, %528 : vector<8x32xf32>
    %530 = arith.negf %514 : vector<8x128xf32>
    %531 = math.exp %530 : vector<8x128xf32>
    %cst_164 = arith.constant 1.000000e+00 : f32
    %532 = vector.broadcast %cst_164 : f32 to vector<8x128xf32>
    %533 = arith.addf %532, %531 : vector<8x128xf32>
    %534 = arith.divf %532, %533 : vector<8x128xf32>
    %535 = math.tanh %514 : vector<8x128xf32>
    %536 = vector.extract_strided_slice %534 {offsets = [0, 0], sizes = [8, 32], strides = [1, 1]} : vector<8x128xf32> to vector<8x32xf32>
    %537 = vector.extract_strided_slice %534 {offsets = [0, 32], sizes = [8, 32], strides = [1, 1]} : vector<8x128xf32> to vector<8x32xf32>
    %538 = vector.extract_strided_slice %535 {offsets = [0, 64], sizes = [8, 32], strides = [1, 1]} : vector<8x128xf32> to vector<8x32xf32>
    %539 = vector.extract_strided_slice %534 {offsets = [0, 96], sizes = [8, 32], strides = [1, 1]} : vector<8x128xf32> to vector<8x32xf32>
    %540 = arith.mulf %537, %502 : vector<8x32xf32>
    %541 = arith.mulf %536, %538 : vector<8x32xf32>
    %542 = arith.addf %540, %541 : vector<8x32xf32>
    %543 = math.tanh %542 : vector<8x32xf32>
    %544 = arith.mulf %539, %543 : vector<8x32xf32>
    %c96_165 = arith.constant 96 : index
    %c0_166 = arith.constant 0 : index
    %545 = vector.load %arg21[%c96_165, %c0_166] : memref<128x32xf32, #tpu.memory_space<vmem>>, vector<8x32xf32>
    tpu.vector_store %arg21[%c96_165, %c0_166], %529 {strides = array<i32>} : memref<128x32xf32, #tpu.memory_space<vmem>>, vector<8x32xf32>,
    %c24_167 = arith.constant 24 : index
    %c0_168 = arith.constant 0 : index
    %546 = vector.load %arg22[%c24_167, %c0_168] : memref<128x32xf32, #tpu.memory_space<vmem>>, vector<8x32xf32>
    tpu.vector_store %arg22[%c24_167, %c0_168], %544 {strides = array<i32>} : memref<128x32xf32, #tpu.memory_space<vmem>>, vector<8x32xf32>,
    %c104_169 = arith.constant 104 : index
    %c0_170 = arith.constant 0 : index
    %547 = vector.load %arg19[%c104_169, %c0_170] : memref<128x128xf32, #tpu.memory_space<vmem>>, vector<8x128xf32>
    %548 = arith.truncf %529 : vector<8x32xf32> to vector<8x32xbf16>
    %cst_171 = arith.constant dense<0.000000e+00> : vector<8x128xf32>
    %549 = tpu.matmul %548, %21, %cst_171 {dimension_numbers = #tpu.dot_dimension_numbers<[1], [0], [0], [1], [0, 0, 1, 1], [], []>} : vector<8x32xbf16>, vector<32x128xbf16>, vector<8x128xf32> -> vector<8x128xf32>
    %550 = arith.addf %547, %549 : vector<8x128xf32>
    %c16_172 = arith.constant 16 : index
    %c0_173 = arith.constant 0 : index
    %551 = vector.load %arg20[%c16_172, %c0_173] : memref<128x128xf32, #tpu.memory_space<vmem>>, vector<8x128xf32>
    %552 = arith.truncf %544 : vector<8x32xf32> to vector<8x32xbf16>
    %cst_174 = arith.constant dense<0.000000e+00> : vector<8x128xf32>
    %553 = tpu.matmul %552, %22, %cst_174 {dimension_numbers = #tpu.dot_dimension_numbers<[1], [0], [0], [1], [0, 0, 1, 1], [], []>} : vector<8x32xbf16>, vector<32x128xbf16>, vector<8x128xf32> -> vector<8x128xf32>
    %554 = arith.addf %551, %553 : vector<8x128xf32>
    %555 = arith.negf %550 : vector<8x128xf32>
    %556 = math.exp %555 : vector<8x128xf32>
    %cst_175 = arith.constant 1.000000e+00 : f32
    %557 = vector.broadcast %cst_175 : f32 to vector<8x128xf32>
    %558 = arith.addf %557, %556 : vector<8x128xf32>
    %559 = arith.divf %557, %558 : vector<8x128xf32>
    %560 = math.tanh %550 : vector<8x128xf32>
    %561 = vector.extract_strided_slice %559 {offsets = [0, 0], sizes = [8, 32], strides = [1, 1]} : vector<8x128xf32> to vector<8x32xf32>
    %562 = vector.extract_strided_slice %559 {offsets = [0, 32], sizes = [8, 32], strides = [1, 1]} : vector<8x128xf32> to vector<8x32xf32>
    %563 = vector.extract_strided_slice %560 {offsets = [0, 64], sizes = [8, 32], strides = [1, 1]} : vector<8x128xf32> to vector<8x32xf32>
    %564 = vector.extract_strided_slice %559 {offsets = [0, 96], sizes = [8, 32], strides = [1, 1]} : vector<8x128xf32> to vector<8x32xf32>
    %565 = arith.mulf %562, %527 : vector<8x32xf32>
    %566 = arith.mulf %561, %563 : vector<8x32xf32>
    %567 = arith.addf %565, %566 : vector<8x32xf32>
    %568 = math.tanh %567 : vector<8x32xf32>
    %569 = arith.mulf %564, %568 : vector<8x32xf32>
    %570 = arith.negf %554 : vector<8x128xf32>
    %571 = math.exp %570 : vector<8x128xf32>
    %cst_176 = arith.constant 1.000000e+00 : f32
    %572 = vector.broadcast %cst_176 : f32 to vector<8x128xf32>
    %573 = arith.addf %572, %571 : vector<8x128xf32>
    %574 = arith.divf %572, %573 : vector<8x128xf32>
    %575 = math.tanh %554 : vector<8x128xf32>
    %576 = vector.extract_strided_slice %574 {offsets = [0, 0], sizes = [8, 32], strides = [1, 1]} : vector<8x128xf32> to vector<8x32xf32>
    %577 = vector.extract_strided_slice %574 {offsets = [0, 32], sizes = [8, 32], strides = [1, 1]} : vector<8x128xf32> to vector<8x32xf32>
    %578 = vector.extract_strided_slice %575 {offsets = [0, 64], sizes = [8, 32], strides = [1, 1]} : vector<8x128xf32> to vector<8x32xf32>
    %579 = vector.extract_strided_slice %574 {offsets = [0, 96], sizes = [8, 32], strides = [1, 1]} : vector<8x128xf32> to vector<8x32xf32>
    %580 = arith.mulf %577, %542 : vector<8x32xf32>
    %581 = arith.mulf %576, %578 : vector<8x32xf32>
    %582 = arith.addf %580, %581 : vector<8x32xf32>
    %583 = math.tanh %582 : vector<8x32xf32>
    %584 = arith.mulf %579, %583 : vector<8x32xf32>
    %c104_177 = arith.constant 104 : index
    %c0_178 = arith.constant 0 : index
    %585 = vector.load %arg21[%c104_177, %c0_178] : memref<128x32xf32, #tpu.memory_space<vmem>>, vector<8x32xf32>
    tpu.vector_store %arg21[%c104_177, %c0_178], %569 {strides = array<i32>} : memref<128x32xf32, #tpu.memory_space<vmem>>, vector<8x32xf32>,
    %c16_179 = arith.constant 16 : index
    %c0_180 = arith.constant 0 : index
    %586 = vector.load %arg22[%c16_179, %c0_180] : memref<128x32xf32, #tpu.memory_space<vmem>>, vector<8x32xf32>
    tpu.vector_store %arg22[%c16_179, %c0_180], %584 {strides = array<i32>} : memref<128x32xf32, #tpu.memory_space<vmem>>, vector<8x32xf32>,
    %c112_181 = arith.constant 112 : index
    %c0_182 = arith.constant 0 : index
    %587 = vector.load %arg19[%c112_181, %c0_182] : memref<128x128xf32, #tpu.memory_space<vmem>>, vector<8x128xf32>
    %588 = arith.truncf %569 : vector<8x32xf32> to vector<8x32xbf16>
    %cst_183 = arith.constant dense<0.000000e+00> : vector<8x128xf32>
    %589 = tpu.matmul %588, %21, %cst_183 {dimension_numbers = #tpu.dot_dimension_numbers<[1], [0], [0], [1], [0, 0, 1, 1], [], []>} : vector<8x32xbf16>, vector<32x128xbf16>, vector<8x128xf32> -> vector<8x128xf32>
    %590 = arith.addf %587, %589 : vector<8x128xf32>
    %c8_184 = arith.constant 8 : index
    %c0_185 = arith.constant 0 : index
    %591 = vector.load %arg20[%c8_184, %c0_185] : memref<128x128xf32, #tpu.memory_space<vmem>>, vector<8x128xf32>
    %592 = arith.truncf %584 : vector<8x32xf32> to vector<8x32xbf16>
    %cst_186 = arith.constant dense<0.000000e+00> : vector<8x128xf32>
    %593 = tpu.matmul %592, %22, %cst_186 {dimension_numbers = #tpu.dot_dimension_numbers<[1], [0], [0], [1], [0, 0, 1, 1], [], []>} : vector<8x32xbf16>, vector<32x128xbf16>, vector<8x128xf32> -> vector<8x128xf32>
    %594 = arith.addf %591, %593 : vector<8x128xf32>
    %595 = arith.negf %590 : vector<8x128xf32>
    %596 = math.exp %595 : vector<8x128xf32>
    %cst_187 = arith.constant 1.000000e+00 : f32
    %597 = vector.broadcast %cst_187 : f32 to vector<8x128xf32>
    %598 = arith.addf %597, %596 : vector<8x128xf32>
    %599 = arith.divf %597, %598 : vector<8x128xf32>
    %600 = math.tanh %590 : vector<8x128xf32>
    %601 = vector.extract_strided_slice %599 {offsets = [0, 0], sizes = [8, 32], strides = [1, 1]} : vector<8x128xf32> to vector<8x32xf32>
    %602 = vector.extract_strided_slice %599 {offsets = [0, 32], sizes = [8, 32], strides = [1, 1]} : vector<8x128xf32> to vector<8x32xf32>
    %603 = vector.extract_strided_slice %600 {offsets = [0, 64], sizes = [8, 32], strides = [1, 1]} : vector<8x128xf32> to vector<8x32xf32>
    %604 = vector.extract_strided_slice %599 {offsets = [0, 96], sizes = [8, 32], strides = [1, 1]} : vector<8x128xf32> to vector<8x32xf32>
    %605 = arith.mulf %602, %567 : vector<8x32xf32>
    %606 = arith.mulf %601, %603 : vector<8x32xf32>
    %607 = arith.addf %605, %606 : vector<8x32xf32>
    %608 = math.tanh %607 : vector<8x32xf32>
    %609 = arith.mulf %604, %608 : vector<8x32xf32>
    %610 = arith.negf %594 : vector<8x128xf32>
    %611 = math.exp %610 : vector<8x128xf32>
    %cst_188 = arith.constant 1.000000e+00 : f32
    %612 = vector.broadcast %cst_188 : f32 to vector<8x128xf32>
    %613 = arith.addf %612, %611 : vector<8x128xf32>
    %614 = arith.divf %612, %613 : vector<8x128xf32>
    %615 = math.tanh %594 : vector<8x128xf32>
    %616 = vector.extract_strided_slice %614 {offsets = [0, 0], sizes = [8, 32], strides = [1, 1]} : vector<8x128xf32> to vector<8x32xf32>
    %617 = vector.extract_strided_slice %614 {offsets = [0, 32], sizes = [8, 32], strides = [1, 1]} : vector<8x128xf32> to vector<8x32xf32>
    %618 = vector.extract_strided_slice %615 {offsets = [0, 64], sizes = [8, 32], strides = [1, 1]} : vector<8x128xf32> to vector<8x32xf32>
    %619 = vector.extract_strided_slice %614 {offsets = [0, 96], sizes = [8, 32], strides = [1, 1]} : vector<8x128xf32> to vector<8x32xf32>
    %620 = arith.mulf %617, %582 : vector<8x32xf32>
    %621 = arith.mulf %616, %618 : vector<8x32xf32>
    %622 = arith.addf %620, %621 : vector<8x32xf32>
    %623 = math.tanh %622 : vector<8x32xf32>
    %624 = arith.mulf %619, %623 : vector<8x32xf32>
    %c112_189 = arith.constant 112 : index
    %c0_190 = arith.constant 0 : index
    %625 = vector.load %arg21[%c112_189, %c0_190] : memref<128x32xf32, #tpu.memory_space<vmem>>, vector<8x32xf32>
    tpu.vector_store %arg21[%c112_189, %c0_190], %609 {strides = array<i32>} : memref<128x32xf32, #tpu.memory_space<vmem>>, vector<8x32xf32>,
    %c8_191 = arith.constant 8 : index
    %c0_192 = arith.constant 0 : index
    %626 = vector.load %arg22[%c8_191, %c0_192] : memref<128x32xf32, #tpu.memory_space<vmem>>, vector<8x32xf32>
    tpu.vector_store %arg22[%c8_191, %c0_192], %624 {strides = array<i32>} : memref<128x32xf32, #tpu.memory_space<vmem>>, vector<8x32xf32>,
    %c120_193 = arith.constant 120 : index
    %c0_194 = arith.constant 0 : index
    %627 = vector.load %arg19[%c120_193, %c0_194] : memref<128x128xf32, #tpu.memory_space<vmem>>, vector<8x128xf32>
    %628 = arith.truncf %609 : vector<8x32xf32> to vector<8x32xbf16>
    %cst_195 = arith.constant dense<0.000000e+00> : vector<8x128xf32>
    %629 = tpu.matmul %628, %21, %cst_195 {dimension_numbers = #tpu.dot_dimension_numbers<[1], [0], [0], [1], [0, 0, 1, 1], [], []>} : vector<8x32xbf16>, vector<32x128xbf16>, vector<8x128xf32> -> vector<8x128xf32>
    %630 = arith.addf %627, %629 : vector<8x128xf32>
    %c0_196 = arith.constant 0 : index
    %c0_197 = arith.constant 0 : index
    %631 = vector.load %arg20[%c0_196, %c0_197] : memref<128x128xf32, #tpu.memory_space<vmem>>, vector<8x128xf32>
    %632 = arith.truncf %624 : vector<8x32xf32> to vector<8x32xbf16>
    %cst_198 = arith.constant dense<0.000000e+00> : vector<8x128xf32>
    %633 = tpu.matmul %632, %22, %cst_198 {dimension_numbers = #tpu.dot_dimension_numbers<[1], [0], [0], [1], [0, 0, 1, 1], [], []>} : vector<8x32xbf16>, vector<32x128xbf16>, vector<8x128xf32> -> vector<8x128xf32>
    %634 = arith.addf %631, %633 : vector<8x128xf32>
    %635 = arith.negf %630 : vector<8x128xf32>
    %636 = math.exp %635 : vector<8x128xf32>
    %cst_199 = arith.constant 1.000000e+00 : f32
    %637 = vector.broadcast %cst_199 : f32 to vector<8x128xf32>
    %638 = arith.addf %637, %636 : vector<8x128xf32>
    %639 = arith.divf %637, %638 : vector<8x128xf32>
    %640 = math.tanh %630 : vector<8x128xf32>
    %641 = vector.extract_strided_slice %639 {offsets = [0, 0], sizes = [8, 32], strides = [1, 1]} : vector<8x128xf32> to vector<8x32xf32>
    %642 = vector.extract_strided_slice %639 {offsets = [0, 32], sizes = [8, 32], strides = [1, 1]} : vector<8x128xf32> to vector<8x32xf32>
    %643 = vector.extract_strided_slice %640 {offsets = [0, 64], sizes = [8, 32], strides = [1, 1]} : vector<8x128xf32> to vector<8x32xf32>
    %644 = vector.extract_strided_slice %639 {offsets = [0, 96], sizes = [8, 32], strides = [1, 1]} : vector<8x128xf32> to vector<8x32xf32>
    %645 = arith.mulf %642, %607 : vector<8x32xf32>
    %646 = arith.mulf %641, %643 : vector<8x32xf32>
    %647 = arith.addf %645, %646 : vector<8x32xf32>
    %648 = math.tanh %647 : vector<8x32xf32>
    %649 = arith.mulf %644, %648 : vector<8x32xf32>
    %650 = arith.negf %634 : vector<8x128xf32>
    %651 = math.exp %650 : vector<8x128xf32>
    %cst_200 = arith.constant 1.000000e+00 : f32
    %652 = vector.broadcast %cst_200 : f32 to vector<8x128xf32>
    %653 = arith.addf %652, %651 : vector<8x128xf32>
    %654 = arith.divf %652, %653 : vector<8x128xf32>
    %655 = math.tanh %634 : vector<8x128xf32>
    %656 = vector.extract_strided_slice %654 {offsets = [0, 0], sizes = [8, 32], strides = [1, 1]} : vector<8x128xf32> to vector<8x32xf32>
    %657 = vector.extract_strided_slice %654 {offsets = [0, 32], sizes = [8, 32], strides = [1, 1]} : vector<8x128xf32> to vector<8x32xf32>
    %658 = vector.extract_strided_slice %655 {offsets = [0, 64], sizes = [8, 32], strides = [1, 1]} : vector<8x128xf32> to vector<8x32xf32>
    %659 = vector.extract_strided_slice %654 {offsets = [0, 96], sizes = [8, 32], strides = [1, 1]} : vector<8x128xf32> to vector<8x32xf32>
    %660 = arith.mulf %657, %622 : vector<8x32xf32>
    %661 = arith.mulf %656, %658 : vector<8x32xf32>
    %662 = arith.addf %660, %661 : vector<8x32xf32>
    %663 = math.tanh %662 : vector<8x32xf32>
    %664 = arith.mulf %659, %663 : vector<8x32xf32>
    %c120_201 = arith.constant 120 : index
    %c0_202 = arith.constant 0 : index
    %665 = vector.load %arg21[%c120_201, %c0_202] : memref<128x32xf32, #tpu.memory_space<vmem>>, vector<8x32xf32>
    tpu.vector_store %arg21[%c120_201, %c0_202], %649 {strides = array<i32>} : memref<128x32xf32, #tpu.memory_space<vmem>>, vector<8x32xf32>,
    %c0_203 = arith.constant 0 : index
    %c0_204 = arith.constant 0 : index
    %666 = vector.load %arg22[%c0_203, %c0_204] : memref<128x32xf32, #tpu.memory_space<vmem>>, vector<8x32xf32>
    tpu.vector_store %arg22[%c0_203, %c0_204], %664 {strides = array<i32>} : memref<128x32xf32, #tpu.memory_space<vmem>>, vector<8x32xf32>,
    %c0_205 = arith.constant 0 : index
    %c0_206 = arith.constant 0 : index
    %667 = vector.load %arg21[%c0_205, %c0_206] : memref<128x32xf32, #tpu.memory_space<vmem>>, vector<128x32xf32>
    %668 = arith.truncf %667 : vector<128x32xf32> to vector<128x32xbf16>
    %c0_207 = arith.constant 0 : index
    %c0_208 = arith.constant 0 : index
    %669 = vector.load %arg22[%c0_207, %c0_208] : memref<128x32xf32, #tpu.memory_space<vmem>>, vector<128x32xf32>
    %670 = arith.truncf %669 : vector<128x32xf32> to vector<128x32xbf16>
    %c0_209 = arith.constant 0 : index
    %c0_210 = arith.constant 0 : index
    %671 = vector.load %arg10[%c0_209, %c0_210] : memref<64x128xbf16, #tpu.memory_space<vmem>>, vector<32x128xbf16>
    %cst_211 = arith.constant dense<0.000000e+00> : vector<128x128xf32>
    %672 = tpu.matmul %668, %671, %cst_211 {dimension_numbers = #tpu.dot_dimension_numbers<[1], [0], [0], [1], [0, 0, 1, 1], [], []>} : vector<128x32xbf16>, vector<32x128xbf16>, vector<128x128xf32> -> vector<128x128xf32>
    %c32_212 = arith.constant 32 : index
    %c0_213 = arith.constant 0 : index
    %673 = vector.load %arg10[%c32_212, %c0_213] : memref<64x128xbf16, #tpu.memory_space<vmem>>, vector<32x128xbf16>
    %cst_214 = arith.constant dense<0.000000e+00> : vector<128x128xf32>
    %674 = tpu.matmul %670, %673, %cst_214 {dimension_numbers = #tpu.dot_dimension_numbers<[1], [0], [0], [1], [0, 0, 1, 1], [], []>} : vector<128x32xbf16>, vector<32x128xbf16>, vector<128x128xf32> -> vector<128x128xf32>
    %675 = arith.addf %672, %674 : vector<128x128xf32>
    %c0_215 = arith.constant 0 : index
    %c0_216 = arith.constant 0 : index
    %676 = vector.load %arg12[%c0_215, %c0_216] : memref<1x128xf32, #tpu.memory_space<vmem>>, vector<1x128xf32>
    %677 = vector.broadcast %676 : vector<1x128xf32> to vector<128x128xf32>
    %678 = arith.addf %675, %677 : vector<128x128xf32>
    %c0_217 = arith.constant 0 : index
    %c0_218 = arith.constant 0 : index
    %679 = vector.load %arg19[%c0_217, %c0_218] : memref<128x128xf32, #tpu.memory_space<vmem>>, vector<128x128xf32>
    tpu.vector_store %arg19[%c0_217, %c0_218], %678 {strides = array<i32>} : memref<128x128xf32, #tpu.memory_space<vmem>>, vector<128x128xf32>,
    %c0_219 = arith.constant 0 : index
    %c0_220 = arith.constant 0 : index
    %680 = vector.load %arg13[%c0_219, %c0_220] : memref<64x128xbf16, #tpu.memory_space<vmem>>, vector<32x128xbf16>
    %cst_221 = arith.constant dense<0.000000e+00> : vector<128x128xf32>
    %681 = tpu.matmul %668, %680, %cst_221 {dimension_numbers = #tpu.dot_dimension_numbers<[1], [0], [0], [1], [0, 0, 1, 1], [], []>} : vector<128x32xbf16>, vector<32x128xbf16>, vector<128x128xf32> -> vector<128x128xf32>
    %c32_222 = arith.constant 32 : index
    %c0_223 = arith.constant 0 : index
    %682 = vector.load %arg13[%c32_222, %c0_223] : memref<64x128xbf16, #tpu.memory_space<vmem>>, vector<32x128xbf16>
    %cst_224 = arith.constant dense<0.000000e+00> : vector<128x128xf32>
    %683 = tpu.matmul %670, %682, %cst_224 {dimension_numbers = #tpu.dot_dimension_numbers<[1], [0], [0], [1], [0, 0, 1, 1], [], []>} : vector<128x32xbf16>, vector<32x128xbf16>, vector<128x128xf32> -> vector<128x128xf32>
    %684 = arith.addf %681, %683 : vector<128x128xf32>
    %c0_225 = arith.constant 0 : index
    %c0_226 = arith.constant 0 : index
    %685 = vector.load %arg15[%c0_225, %c0_226] : memref<1x128xf32, #tpu.memory_space<vmem>>, vector<1x128xf32>
    %686 = vector.broadcast %685 : vector<1x128xf32> to vector<128x128xf32>
    %687 = arith.addf %684, %686 : vector<128x128xf32>
    %c0_227 = arith.constant 0 : index
    %c0_228 = arith.constant 0 : index
    %688 = vector.load %arg20[%c0_227, %c0_228] : memref<128x128xf32, #tpu.memory_space<vmem>>, vector<128x128xf32>
    tpu.vector_store %arg20[%c0_227, %c0_228], %687 {strides = array<i32>} : memref<128x128xf32, #tpu.memory_space<vmem>>, vector<128x128xf32>,
    %c0_229 = arith.constant 0 : index
    %c0_230 = arith.constant 0 : index
    %689 = vector.load %arg11[%c0_229, %c0_230] : memref<32x128xbf16, #tpu.memory_space<vmem>>, vector<32x128xbf16>
    %c0_231 = arith.constant 0 : index
    %c0_232 = arith.constant 0 : index
    %690 = vector.load %arg14[%c0_231, %c0_232] : memref<32x128xbf16, #tpu.memory_space<vmem>>, vector<32x128xbf16>
    %cst_233 = arith.constant 0.000000e+00 : f32
    %691 = vector.broadcast %cst_233 : f32 to vector<8x32xf32>
    %cst_234 = arith.constant 0.000000e+00 : f32
    %692 = vector.broadcast %cst_234 : f32 to vector<8x32xf32>
    %cst_235 = arith.constant 0.000000e+00 : f32
    %693 = vector.broadcast %cst_235 : f32 to vector<8x32xf32>
    %cst_236 = arith.constant 0.000000e+00 : f32
    %694 = vector.broadcast %cst_236 : f32 to vector<8x32xf32>
    %c0_237 = arith.constant 0 : index
    %c0_238 = arith.constant 0 : index
    %695 = vector.load %arg19[%c0_237, %c0_238] : memref<128x128xf32, #tpu.memory_space<vmem>>, vector<8x128xf32>
    %696 = arith.truncf %691 : vector<8x32xf32> to vector<8x32xbf16>
    %cst_239 = arith.constant dense<0.000000e+00> : vector<8x128xf32>
    %697 = tpu.matmul %696, %689, %cst_239 {dimension_numbers = #tpu.dot_dimension_numbers<[1], [0], [0], [1], [0, 0, 1, 1], [], []>} : vector<8x32xbf16>, vector<32x128xbf16>, vector<8x128xf32> -> vector<8x128xf32>
    %698 = arith.addf %695, %697 : vector<8x128xf32>
    %c120_240 = arith.constant 120 : index
    %c0_241 = arith.constant 0 : index
    %699 = vector.load %arg20[%c120_240, %c0_241] : memref<128x128xf32, #tpu.memory_space<vmem>>, vector<8x128xf32>
    %700 = arith.truncf %693 : vector<8x32xf32> to vector<8x32xbf16>
    %cst_242 = arith.constant dense<0.000000e+00> : vector<8x128xf32>
    %701 = tpu.matmul %700, %690, %cst_242 {dimension_numbers = #tpu.dot_dimension_numbers<[1], [0], [0], [1], [0, 0, 1, 1], [], []>} : vector<8x32xbf16>, vector<32x128xbf16>, vector<8x128xf32> -> vector<8x128xf32>
    %702 = arith.addf %699, %701 : vector<8x128xf32>
    %703 = arith.negf %698 : vector<8x128xf32>
    %704 = math.exp %703 : vector<8x128xf32>
    %cst_243 = arith.constant 1.000000e+00 : f32
    %705 = vector.broadcast %cst_243 : f32 to vector<8x128xf32>
    %706 = arith.addf %705, %704 : vector<8x128xf32>
    %707 = arith.divf %705, %706 : vector<8x128xf32>
    %708 = math.tanh %698 : vector<8x128xf32>
    %709 = vector.extract_strided_slice %707 {offsets = [0, 0], sizes = [8, 32], strides = [1, 1]} : vector<8x128xf32> to vector<8x32xf32>
    %710 = vector.extract_strided_slice %707 {offsets = [0, 32], sizes = [8, 32], strides = [1, 1]} : vector<8x128xf32> to vector<8x32xf32>
    %711 = vector.extract_strided_slice %708 {offsets = [0, 64], sizes = [8, 32], strides = [1, 1]} : vector<8x128xf32> to vector<8x32xf32>
    %712 = vector.extract_strided_slice %707 {offsets = [0, 96], sizes = [8, 32], strides = [1, 1]} : vector<8x128xf32> to vector<8x32xf32>
    %713 = arith.mulf %710, %692 : vector<8x32xf32>
    %714 = arith.mulf %709, %711 : vector<8x32xf32>
    %715 = arith.addf %713, %714 : vector<8x32xf32>
    %716 = math.tanh %715 : vector<8x32xf32>
    %717 = arith.mulf %712, %716 : vector<8x32xf32>
    %718 = arith.negf %702 : vector<8x128xf32>
    %719 = math.exp %718 : vector<8x128xf32>
    %cst_244 = arith.constant 1.000000e+00 : f32
    %720 = vector.broadcast %cst_244 : f32 to vector<8x128xf32>
    %721 = arith.addf %720, %719 : vector<8x128xf32>
    %722 = arith.divf %720, %721 : vector<8x128xf32>
    %723 = math.tanh %702 : vector<8x128xf32>
    %724 = vector.extract_strided_slice %722 {offsets = [0, 0], sizes = [8, 32], strides = [1, 1]} : vector<8x128xf32> to vector<8x32xf32>
    %725 = vector.extract_strided_slice %722 {offsets = [0, 32], sizes = [8, 32], strides = [1, 1]} : vector<8x128xf32> to vector<8x32xf32>
    %726 = vector.extract_strided_slice %723 {offsets = [0, 64], sizes = [8, 32], strides = [1, 1]} : vector<8x128xf32> to vector<8x32xf32>
    %727 = vector.extract_strided_slice %722 {offsets = [0, 96], sizes = [8, 32], strides = [1, 1]} : vector<8x128xf32> to vector<8x32xf32>
    %728 = arith.mulf %725, %694 : vector<8x32xf32>
    %729 = arith.mulf %724, %726 : vector<8x32xf32>
    %730 = arith.addf %728, %729 : vector<8x32xf32>
    %731 = math.tanh %730 : vector<8x32xf32>
    %732 = arith.mulf %727, %731 : vector<8x32xf32>
    %c0_245 = arith.constant 0 : index
    %c0_246 = arith.constant 0 : index
    %733 = vector.load %arg23[%c0_245, %c0_246] : memref<128x32xf32, #tpu.memory_space<vmem>>, vector<8x32xf32>
    tpu.vector_store %arg23[%c0_245, %c0_246], %717 {strides = array<i32>} : memref<128x32xf32, #tpu.memory_space<vmem>>, vector<8x32xf32>,
    %c120_247 = arith.constant 120 : index
    %c0_248 = arith.constant 0 : index
    %734 = vector.load %arg24[%c120_247, %c0_248] : memref<128x32xf32, #tpu.memory_space<vmem>>, vector<8x32xf32>
    tpu.vector_store %arg24[%c120_247, %c0_248], %732 {strides = array<i32>} : memref<128x32xf32, #tpu.memory_space<vmem>>, vector<8x32xf32>,
    %c8_249 = arith.constant 8 : index
    %c0_250 = arith.constant 0 : index
    %735 = vector.load %arg19[%c8_249, %c0_250] : memref<128x128xf32, #tpu.memory_space<vmem>>, vector<8x128xf32>
    %736 = arith.truncf %717 : vector<8x32xf32> to vector<8x32xbf16>
    %cst_251 = arith.constant dense<0.000000e+00> : vector<8x128xf32>
    %737 = tpu.matmul %736, %689, %cst_251 {dimension_numbers = #tpu.dot_dimension_numbers<[1], [0], [0], [1], [0, 0, 1, 1], [], []>} : vector<8x32xbf16>, vector<32x128xbf16>, vector<8x128xf32> -> vector<8x128xf32>
    %738 = arith.addf %735, %737 : vector<8x128xf32>
    %c112_252 = arith.constant 112 : index
    %c0_253 = arith.constant 0 : index
    %739 = vector.load %arg20[%c112_252, %c0_253] : memref<128x128xf32, #tpu.memory_space<vmem>>, vector<8x128xf32>
    %740 = arith.truncf %732 : vector<8x32xf32> to vector<8x32xbf16>
    %cst_254 = arith.constant dense<0.000000e+00> : vector<8x128xf32>
    %741 = tpu.matmul %740, %690, %cst_254 {dimension_numbers = #tpu.dot_dimension_numbers<[1], [0], [0], [1], [0, 0, 1, 1], [], []>} : vector<8x32xbf16>, vector<32x128xbf16>, vector<8x128xf32> -> vector<8x128xf32>
    %742 = arith.addf %739, %741 : vector<8x128xf32>
    %743 = arith.negf %738 : vector<8x128xf32>
    %744 = math.exp %743 : vector<8x128xf32>
    %cst_255 = arith.constant 1.000000e+00 : f32
    %745 = vector.broadcast %cst_255 : f32 to vector<8x128xf32>
    %746 = arith.addf %745, %744 : vector<8x128xf32>
    %747 = arith.divf %745, %746 : vector<8x128xf32>
    %748 = math.tanh %738 : vector<8x128xf32>
    %749 = vector.extract_strided_slice %747 {offsets = [0, 0], sizes = [8, 32], strides = [1, 1]} : vector<8x128xf32> to vector<8x32xf32>
    %750 = vector.extract_strided_slice %747 {offsets = [0, 32], sizes = [8, 32], strides = [1, 1]} : vector<8x128xf32> to vector<8x32xf32>
    %751 = vector.extract_strided_slice %748 {offsets = [0, 64], sizes = [8, 32], strides = [1, 1]} : vector<8x128xf32> to vector<8x32xf32>
    %752 = vector.extract_strided_slice %747 {offsets = [0, 96], sizes = [8, 32], strides = [1, 1]} : vector<8x128xf32> to vector<8x32xf32>
    %753 = arith.mulf %750, %715 : vector<8x32xf32>
    %754 = arith.mulf %749, %751 : vector<8x32xf32>
    %755 = arith.addf %753, %754 : vector<8x32xf32>
    %756 = math.tanh %755 : vector<8x32xf32>
    %757 = arith.mulf %752, %756 : vector<8x32xf32>
    %758 = arith.negf %742 : vector<8x128xf32>
    %759 = math.exp %758 : vector<8x128xf32>
    %cst_256 = arith.constant 1.000000e+00 : f32
    %760 = vector.broadcast %cst_256 : f32 to vector<8x128xf32>
    %761 = arith.addf %760, %759 : vector<8x128xf32>
    %762 = arith.divf %760, %761 : vector<8x128xf32>
    %763 = math.tanh %742 : vector<8x128xf32>
    %764 = vector.extract_strided_slice %762 {offsets = [0, 0], sizes = [8, 32], strides = [1, 1]} : vector<8x128xf32> to vector<8x32xf32>
    %765 = vector.extract_strided_slice %762 {offsets = [0, 32], sizes = [8, 32], strides = [1, 1]} : vector<8x128xf32> to vector<8x32xf32>
    %766 = vector.extract_strided_slice %763 {offsets = [0, 64], sizes = [8, 32], strides = [1, 1]} : vector<8x128xf32> to vector<8x32xf32>
    %767 = vector.extract_strided_slice %762 {offsets = [0, 96], sizes = [8, 32], strides = [1, 1]} : vector<8x128xf32> to vector<8x32xf32>
    %768 = arith.mulf %765, %730 : vector<8x32xf32>
    %769 = arith.mulf %764, %766 : vector<8x32xf32>
    %770 = arith.addf %768, %769 : vector<8x32xf32>
    %771 = math.tanh %770 : vector<8x32xf32>
    %772 = arith.mulf %767, %771 : vector<8x32xf32>
    %c8_257 = arith.constant 8 : index
    %c0_258 = arith.constant 0 : index
    %773 = vector.load %arg23[%c8_257, %c0_258] : memref<128x32xf32, #tpu.memory_space<vmem>>, vector<8x32xf32>
    tpu.vector_store %arg23[%c8_257, %c0_258], %757 {strides = array<i32>} : memref<128x32xf32, #tpu.memory_space<vmem>>, vector<8x32xf32>,
    %c112_259 = arith.constant 112 : index
    %c0_260 = arith.constant 0 : index
    %774 = vector.load %arg24[%c112_259, %c0_260] : memref<128x32xf32, #tpu.memory_space<vmem>>, vector<8x32xf32>
    tpu.vector_store %arg24[%c112_259, %c0_260], %772 {strides = array<i32>} : memref<128x32xf32, #tpu.memory_space<vmem>>, vector<8x32xf32>,
    %c16_261 = arith.constant 16 : index
    %c0_262 = arith.constant 0 : index
    %775 = vector.load %arg19[%c16_261, %c0_262] : memref<128x128xf32, #tpu.memory_space<vmem>>, vector<8x128xf32>
    %776 = arith.truncf %757 : vector<8x32xf32> to vector<8x32xbf16>
    %cst_263 = arith.constant dense<0.000000e+00> : vector<8x128xf32>
    %777 = tpu.matmul %776, %689, %cst_263 {dimension_numbers = #tpu.dot_dimension_numbers<[1], [0], [0], [1], [0, 0, 1, 1], [], []>} : vector<8x32xbf16>, vector<32x128xbf16>, vector<8x128xf32> -> vector<8x128xf32>
    %778 = arith.addf %775, %777 : vector<8x128xf32>
    %c104_264 = arith.constant 104 : index
    %c0_265 = arith.constant 0 : index
    %779 = vector.load %arg20[%c104_264, %c0_265] : memref<128x128xf32, #tpu.memory_space<vmem>>, vector<8x128xf32>
    %780 = arith.truncf %772 : vector<8x32xf32> to vector<8x32xbf16>
    %cst_266 = arith.constant dense<0.000000e+00> : vector<8x128xf32>
    %781 = tpu.matmul %780, %690, %cst_266 {dimension_numbers = #tpu.dot_dimension_numbers<[1], [0], [0], [1], [0, 0, 1, 1], [], []>} : vector<8x32xbf16>, vector<32x128xbf16>, vector<8x128xf32> -> vector<8x128xf32>
    %782 = arith.addf %779, %781 : vector<8x128xf32>
    %783 = arith.negf %778 : vector<8x128xf32>
    %784 = math.exp %783 : vector<8x128xf32>
    %cst_267 = arith.constant 1.000000e+00 : f32
    %785 = vector.broadcast %cst_267 : f32 to vector<8x128xf32>
    %786 = arith.addf %785, %784 : vector<8x128xf32>
    %787 = arith.divf %785, %786 : vector<8x128xf32>
    %788 = math.tanh %778 : vector<8x128xf32>
    %789 = vector.extract_strided_slice %787 {offsets = [0, 0], sizes = [8, 32], strides = [1, 1]} : vector<8x128xf32> to vector<8x32xf32>
    %790 = vector.extract_strided_slice %787 {offsets = [0, 32], sizes = [8, 32], strides = [1, 1]} : vector<8x128xf32> to vector<8x32xf32>
    %791 = vector.extract_strided_slice %788 {offsets = [0, 64], sizes = [8, 32], strides = [1, 1]} : vector<8x128xf32> to vector<8x32xf32>
    %792 = vector.extract_strided_slice %787 {offsets = [0, 96], sizes = [8, 32], strides = [1, 1]} : vector<8x128xf32> to vector<8x32xf32>
    %793 = arith.mulf %790, %755 : vector<8x32xf32>
    %794 = arith.mulf %789, %791 : vector<8x32xf32>
    %795 = arith.addf %793, %794 : vector<8x32xf32>
    %796 = math.tanh %795 : vector<8x32xf32>
    %797 = arith.mulf %792, %796 : vector<8x32xf32>
    %798 = arith.negf %782 : vector<8x128xf32>
    %799 = math.exp %798 : vector<8x128xf32>
    %cst_268 = arith.constant 1.000000e+00 : f32
    %800 = vector.broadcast %cst_268 : f32 to vector<8x128xf32>
    %801 = arith.addf %800, %799 : vector<8x128xf32>
    %802 = arith.divf %800, %801 : vector<8x128xf32>
    %803 = math.tanh %782 : vector<8x128xf32>
    %804 = vector.extract_strided_slice %802 {offsets = [0, 0], sizes = [8, 32], strides = [1, 1]} : vector<8x128xf32> to vector<8x32xf32>
    %805 = vector.extract_strided_slice %802 {offsets = [0, 32], sizes = [8, 32], strides = [1, 1]} : vector<8x128xf32> to vector<8x32xf32>
    %806 = vector.extract_strided_slice %803 {offsets = [0, 64], sizes = [8, 32], strides = [1, 1]} : vector<8x128xf32> to vector<8x32xf32>
    %807 = vector.extract_strided_slice %802 {offsets = [0, 96], sizes = [8, 32], strides = [1, 1]} : vector<8x128xf32> to vector<8x32xf32>
    %808 = arith.mulf %805, %770 : vector<8x32xf32>
    %809 = arith.mulf %804, %806 : vector<8x32xf32>
    %810 = arith.addf %808, %809 : vector<8x32xf32>
    %811 = math.tanh %810 : vector<8x32xf32>
    %812 = arith.mulf %807, %811 : vector<8x32xf32>
    %c16_269 = arith.constant 16 : index
    %c0_270 = arith.constant 0 : index
    %813 = vector.load %arg23[%c16_269, %c0_270] : memref<128x32xf32, #tpu.memory_space<vmem>>, vector<8x32xf32>
    tpu.vector_store %arg23[%c16_269, %c0_270], %797 {strides = array<i32>} : memref<128x32xf32, #tpu.memory_space<vmem>>, vector<8x32xf32>,
    %c104_271 = arith.constant 104 : index
    %c0_272 = arith.constant 0 : index
    %814 = vector.load %arg24[%c104_271, %c0_272] : memref<128x32xf32, #tpu.memory_space<vmem>>, vector<8x32xf32>
    tpu.vector_store %arg24[%c104_271, %c0_272], %812 {strides = array<i32>} : memref<128x32xf32, #tpu.memory_space<vmem>>, vector<8x32xf32>,
    %c24_273 = arith.constant 24 : index
    %c0_274 = arith.constant 0 : index
    %815 = vector.load %arg19[%c24_273, %c0_274] : memref<128x128xf32, #tpu.memory_space<vmem>>, vector<8x128xf32>
    %816 = arith.truncf %797 : vector<8x32xf32> to vector<8x32xbf16>
    %cst_275 = arith.constant dense<0.000000e+00> : vector<8x128xf32>
    %817 = tpu.matmul %816, %689, %cst_275 {dimension_numbers = #tpu.dot_dimension_numbers<[1], [0], [0], [1], [0, 0, 1, 1], [], []>} : vector<8x32xbf16>, vector<32x128xbf16>, vector<8x128xf32> -> vector<8x128xf32>
    %818 = arith.addf %815, %817 : vector<8x128xf32>
    %c96_276 = arith.constant 96 : index
    %c0_277 = arith.constant 0 : index
    %819 = vector.load %arg20[%c96_276, %c0_277] : memref<128x128xf32, #tpu.memory_space<vmem>>, vector<8x128xf32>
    %820 = arith.truncf %812 : vector<8x32xf32> to vector<8x32xbf16>
    %cst_278 = arith.constant dense<0.000000e+00> : vector<8x128xf32>
    %821 = tpu.matmul %820, %690, %cst_278 {dimension_numbers = #tpu.dot_dimension_numbers<[1], [0], [0], [1], [0, 0, 1, 1], [], []>} : vector<8x32xbf16>, vector<32x128xbf16>, vector<8x128xf32> -> vector<8x128xf32>
    %822 = arith.addf %819, %821 : vector<8x128xf32>
    %823 = arith.negf %818 : vector<8x128xf32>
    %824 = math.exp %823 : vector<8x128xf32>
    %cst_279 = arith.constant 1.000000e+00 : f32
    %825 = vector.broadcast %cst_279 : f32 to vector<8x128xf32>
    %826 = arith.addf %825, %824 : vector<8x128xf32>
    %827 = arith.divf %825, %826 : vector<8x128xf32>
    %828 = math.tanh %818 : vector<8x128xf32>
    %829 = vector.extract_strided_slice %827 {offsets = [0, 0], sizes = [8, 32], strides = [1, 1]} : vector<8x128xf32> to vector<8x32xf32>
    %830 = vector.extract_strided_slice %827 {offsets = [0, 32], sizes = [8, 32], strides = [1, 1]} : vector<8x128xf32> to vector<8x32xf32>
    %831 = vector.extract_strided_slice %828 {offsets = [0, 64], sizes = [8, 32], strides = [1, 1]} : vector<8x128xf32> to vector<8x32xf32>
    %832 = vector.extract_strided_slice %827 {offsets = [0, 96], sizes = [8, 32], strides = [1, 1]} : vector<8x128xf32> to vector<8x32xf32>
    %833 = arith.mulf %830, %795 : vector<8x32xf32>
    %834 = arith.mulf %829, %831 : vector<8x32xf32>
    %835 = arith.addf %833, %834 : vector<8x32xf32>
    %836 = math.tanh %835 : vector<8x32xf32>
    %837 = arith.mulf %832, %836 : vector<8x32xf32>
    %838 = arith.negf %822 : vector<8x128xf32>
    %839 = math.exp %838 : vector<8x128xf32>
    %cst_280 = arith.constant 1.000000e+00 : f32
    %840 = vector.broadcast %cst_280 : f32 to vector<8x128xf32>
    %841 = arith.addf %840, %839 : vector<8x128xf32>
    %842 = arith.divf %840, %841 : vector<8x128xf32>
    %843 = math.tanh %822 : vector<8x128xf32>
    %844 = vector.extract_strided_slice %842 {offsets = [0, 0], sizes = [8, 32], strides = [1, 1]} : vector<8x128xf32> to vector<8x32xf32>
    %845 = vector.extract_strided_slice %842 {offsets = [0, 32], sizes = [8, 32], strides = [1, 1]} : vector<8x128xf32> to vector<8x32xf32>
    %846 = vector.extract_strided_slice %843 {offsets = [0, 64], sizes = [8, 32], strides = [1, 1]} : vector<8x128xf32> to vector<8x32xf32>
    %847 = vector.extract_strided_slice %842 {offsets = [0, 96], sizes = [8, 32], strides = [1, 1]} : vector<8x128xf32> to vector<8x32xf32>
    %848 = arith.mulf %845, %810 : vector<8x32xf32>
    %849 = arith.mulf %844, %846 : vector<8x32xf32>
    %850 = arith.addf %848, %849 : vector<8x32xf32>
    %851 = math.tanh %850 : vector<8x32xf32>
    %852 = arith.mulf %847, %851 : vector<8x32xf32>
    %c24_281 = arith.constant 24 : index
    %c0_282 = arith.constant 0 : index
    %853 = vector.load %arg23[%c24_281, %c0_282] : memref<128x32xf32, #tpu.memory_space<vmem>>, vector<8x32xf32>
    tpu.vector_store %arg23[%c24_281, %c0_282], %837 {strides = array<i32>} : memref<128x32xf32, #tpu.memory_space<vmem>>, vector<8x32xf32>,
    %c96_283 = arith.constant 96 : index
    %c0_284 = arith.constant 0 : index
    %854 = vector.load %arg24[%c96_283, %c0_284] : memref<128x32xf32, #tpu.memory_space<vmem>>, vector<8x32xf32>
    tpu.vector_store %arg24[%c96_283, %c0_284], %852 {strides = array<i32>} : memref<128x32xf32, #tpu.memory_space<vmem>>, vector<8x32xf32>,
    %c32_285 = arith.constant 32 : index
    %c0_286 = arith.constant 0 : index
    %855 = vector.load %arg19[%c32_285, %c0_286] : memref<128x128xf32, #tpu.memory_space<vmem>>, vector<8x128xf32>
    %856 = arith.truncf %837 : vector<8x32xf32> to vector<8x32xbf16>
    %cst_287 = arith.constant dense<0.000000e+00> : vector<8x128xf32>
    %857 = tpu.matmul %856, %689, %cst_287 {dimension_numbers = #tpu.dot_dimension_numbers<[1], [0], [0], [1], [0, 0, 1, 1], [], []>} : vector<8x32xbf16>, vector<32x128xbf16>, vector<8x128xf32> -> vector<8x128xf32>
    %858 = arith.addf %855, %857 : vector<8x128xf32>
    %c88_288 = arith.constant 88 : index
    %c0_289 = arith.constant 0 : index
    %859 = vector.load %arg20[%c88_288, %c0_289] : memref<128x128xf32, #tpu.memory_space<vmem>>, vector<8x128xf32>
    %860 = arith.truncf %852 : vector<8x32xf32> to vector<8x32xbf16>
    %cst_290 = arith.constant dense<0.000000e+00> : vector<8x128xf32>
    %861 = tpu.matmul %860, %690, %cst_290 {dimension_numbers = #tpu.dot_dimension_numbers<[1], [0], [0], [1], [0, 0, 1, 1], [], []>} : vector<8x32xbf16>, vector<32x128xbf16>, vector<8x128xf32> -> vector<8x128xf32>
    %862 = arith.addf %859, %861 : vector<8x128xf32>
    %863 = arith.negf %858 : vector<8x128xf32>
    %864 = math.exp %863 : vector<8x128xf32>
    %cst_291 = arith.constant 1.000000e+00 : f32
    %865 = vector.broadcast %cst_291 : f32 to vector<8x128xf32>
    %866 = arith.addf %865, %864 : vector<8x128xf32>
    %867 = arith.divf %865, %866 : vector<8x128xf32>
    %868 = math.tanh %858 : vector<8x128xf32>
    %869 = vector.extract_strided_slice %867 {offsets = [0, 0], sizes = [8, 32], strides = [1, 1]} : vector<8x128xf32> to vector<8x32xf32>
    %870 = vector.extract_strided_slice %867 {offsets = [0, 32], sizes = [8, 32], strides = [1, 1]} : vector<8x128xf32> to vector<8x32xf32>
    %871 = vector.extract_strided_slice %868 {offsets = [0, 64], sizes = [8, 32], strides = [1, 1]} : vector<8x128xf32> to vector<8x32xf32>
    %872 = vector.extract_strided_slice %867 {offsets = [0, 96], sizes = [8, 32], strides = [1, 1]} : vector<8x128xf32> to vector<8x32xf32>
    %873 = arith.mulf %870, %835 : vector<8x32xf32>
    %874 = arith.mulf %869, %871 : vector<8x32xf32>
    %875 = arith.addf %873, %874 : vector<8x32xf32>
    %876 = math.tanh %875 : vector<8x32xf32>
    %877 = arith.mulf %872, %876 : vector<8x32xf32>
    %878 = arith.negf %862 : vector<8x128xf32>
    %879 = math.exp %878 : vector<8x128xf32>
    %cst_292 = arith.constant 1.000000e+00 : f32
    %880 = vector.broadcast %cst_292 : f32 to vector<8x128xf32>
    %881 = arith.addf %880, %879 : vector<8x128xf32>
    %882 = arith.divf %880, %881 : vector<8x128xf32>
    %883 = math.tanh %862 : vector<8x128xf32>
    %884 = vector.extract_strided_slice %882 {offsets = [0, 0], sizes = [8, 32], strides = [1, 1]} : vector<8x128xf32> to vector<8x32xf32>
    %885 = vector.extract_strided_slice %882 {offsets = [0, 32], sizes = [8, 32], strides = [1, 1]} : vector<8x128xf32> to vector<8x32xf32>
    %886 = vector.extract_strided_slice %883 {offsets = [0, 64], sizes = [8, 32], strides = [1, 1]} : vector<8x128xf32> to vector<8x32xf32>
    %887 = vector.extract_strided_slice %882 {offsets = [0, 96], sizes = [8, 32], strides = [1, 1]} : vector<8x128xf32> to vector<8x32xf32>
    %888 = arith.mulf %885, %850 : vector<8x32xf32>
    %889 = arith.mulf %884, %886 : vector<8x32xf32>
    %890 = arith.addf %888, %889 : vector<8x32xf32>
    %891 = math.tanh %890 : vector<8x32xf32>
    %892 = arith.mulf %887, %891 : vector<8x32xf32>
    %c32_293 = arith.constant 32 : index
    %c0_294 = arith.constant 0 : index
    %893 = vector.load %arg23[%c32_293, %c0_294] : memref<128x32xf32, #tpu.memory_space<vmem>>, vector<8x32xf32>
    tpu.vector_store %arg23[%c32_293, %c0_294], %877 {strides = array<i32>} : memref<128x32xf32, #tpu.memory_space<vmem>>, vector<8x32xf32>,
    %c88_295 = arith.constant 88 : index
    %c0_296 = arith.constant 0 : index
    %894 = vector.load %arg24[%c88_295, %c0_296] : memref<128x32xf32, #tpu.memory_space<vmem>>, vector<8x32xf32>
    tpu.vector_store %arg24[%c88_295, %c0_296], %892 {strides = array<i32>} : memref<128x32xf32, #tpu.memory_space<vmem>>, vector<8x32xf32>,
    %c40_297 = arith.constant 40 : index
    %c0_298 = arith.constant 0 : index
    %895 = vector.load %arg19[%c40_297, %c0_298] : memref<128x128xf32, #tpu.memory_space<vmem>>, vector<8x128xf32>
    %896 = arith.truncf %877 : vector<8x32xf32> to vector<8x32xbf16>
    %cst_299 = arith.constant dense<0.000000e+00> : vector<8x128xf32>
    %897 = tpu.matmul %896, %689, %cst_299 {dimension_numbers = #tpu.dot_dimension_numbers<[1], [0], [0], [1], [0, 0, 1, 1], [], []>} : vector<8x32xbf16>, vector<32x128xbf16>, vector<8x128xf32> -> vector<8x128xf32>
    %898 = arith.addf %895, %897 : vector<8x128xf32>
    %c80_300 = arith.constant 80 : index
    %c0_301 = arith.constant 0 : index
    %899 = vector.load %arg20[%c80_300, %c0_301] : memref<128x128xf32, #tpu.memory_space<vmem>>, vector<8x128xf32>
    %900 = arith.truncf %892 : vector<8x32xf32> to vector<8x32xbf16>
    %cst_302 = arith.constant dense<0.000000e+00> : vector<8x128xf32>
    %901 = tpu.matmul %900, %690, %cst_302 {dimension_numbers = #tpu.dot_dimension_numbers<[1], [0], [0], [1], [0, 0, 1, 1], [], []>} : vector<8x32xbf16>, vector<32x128xbf16>, vector<8x128xf32> -> vector<8x128xf32>
    %902 = arith.addf %899, %901 : vector<8x128xf32>
    %903 = arith.negf %898 : vector<8x128xf32>
    %904 = math.exp %903 : vector<8x128xf32>
    %cst_303 = arith.constant 1.000000e+00 : f32
    %905 = vector.broadcast %cst_303 : f32 to vector<8x128xf32>
    %906 = arith.addf %905, %904 : vector<8x128xf32>
    %907 = arith.divf %905, %906 : vector<8x128xf32>
    %908 = math.tanh %898 : vector<8x128xf32>
    %909 = vector.extract_strided_slice %907 {offsets = [0, 0], sizes = [8, 32], strides = [1, 1]} : vector<8x128xf32> to vector<8x32xf32>
    %910 = vector.extract_strided_slice %907 {offsets = [0, 32], sizes = [8, 32], strides = [1, 1]} : vector<8x128xf32> to vector<8x32xf32>
    %911 = vector.extract_strided_slice %908 {offsets = [0, 64], sizes = [8, 32], strides = [1, 1]} : vector<8x128xf32> to vector<8x32xf32>
    %912 = vector.extract_strided_slice %907 {offsets = [0, 96], sizes = [8, 32], strides = [1, 1]} : vector<8x128xf32> to vector<8x32xf32>
    %913 = arith.mulf %910, %875 : vector<8x32xf32>
    %914 = arith.mulf %909, %911 : vector<8x32xf32>
    %915 = arith.addf %913, %914 : vector<8x32xf32>
    %916 = math.tanh %915 : vector<8x32xf32>
    %917 = arith.mulf %912, %916 : vector<8x32xf32>
    %918 = arith.negf %902 : vector<8x128xf32>
    %919 = math.exp %918 : vector<8x128xf32>
    %cst_304 = arith.constant 1.000000e+00 : f32
    %920 = vector.broadcast %cst_304 : f32 to vector<8x128xf32>
    %921 = arith.addf %920, %919 : vector<8x128xf32>
    %922 = arith.divf %920, %921 : vector<8x128xf32>
    %923 = math.tanh %902 : vector<8x128xf32>
    %924 = vector.extract_strided_slice %922 {offsets = [0, 0], sizes = [8, 32], strides = [1, 1]} : vector<8x128xf32> to vector<8x32xf32>
    %925 = vector.extract_strided_slice %922 {offsets = [0, 32], sizes = [8, 32], strides = [1, 1]} : vector<8x128xf32> to vector<8x32xf32>
    %926 = vector.extract_strided_slice %923 {offsets = [0, 64], sizes = [8, 32], strides = [1, 1]} : vector<8x128xf32> to vector<8x32xf32>
    %927 = vector.extract_strided_slice %922 {offsets = [0, 96], sizes = [8, 32], strides = [1, 1]} : vector<8x128xf32> to vector<8x32xf32>
    %928 = arith.mulf %925, %890 : vector<8x32xf32>
    %929 = arith.mulf %924, %926 : vector<8x32xf32>
    %930 = arith.addf %928, %929 : vector<8x32xf32>
    %931 = math.tanh %930 : vector<8x32xf32>
    %932 = arith.mulf %927, %931 : vector<8x32xf32>
    %c40_305 = arith.constant 40 : index
    %c0_306 = arith.constant 0 : index
    %933 = vector.load %arg23[%c40_305, %c0_306] : memref<128x32xf32, #tpu.memory_space<vmem>>, vector<8x32xf32>
    tpu.vector_store %arg23[%c40_305, %c0_306], %917 {strides = array<i32>} : memref<128x32xf32, #tpu.memory_space<vmem>>, vector<8x32xf32>,
    %c80_307 = arith.constant 80 : index
    %c0_308 = arith.constant 0 : index
    %934 = vector.load %arg24[%c80_307, %c0_308] : memref<128x32xf32, #tpu.memory_space<vmem>>, vector<8x32xf32>
    tpu.vector_store %arg24[%c80_307, %c0_308], %932 {strides = array<i32>} : memref<128x32xf32, #tpu.memory_space<vmem>>, vector<8x32xf32>,
    %c48_309 = arith.constant 48 : index
    %c0_310 = arith.constant 0 : index
    %935 = vector.load %arg19[%c48_309, %c0_310] : memref<128x128xf32, #tpu.memory_space<vmem>>, vector<8x128xf32>
    %936 = arith.truncf %917 : vector<8x32xf32> to vector<8x32xbf16>
    %cst_311 = arith.constant dense<0.000000e+00> : vector<8x128xf32>
    %937 = tpu.matmul %936, %689, %cst_311 {dimension_numbers = #tpu.dot_dimension_numbers<[1], [0], [0], [1], [0, 0, 1, 1], [], []>} : vector<8x32xbf16>, vector<32x128xbf16>, vector<8x128xf32> -> vector<8x128xf32>
    %938 = arith.addf %935, %937 : vector<8x128xf32>
    %c72_312 = arith.constant 72 : index
    %c0_313 = arith.constant 0 : index
    %939 = vector.load %arg20[%c72_312, %c0_313] : memref<128x128xf32, #tpu.memory_space<vmem>>, vector<8x128xf32>
    %940 = arith.truncf %932 : vector<8x32xf32> to vector<8x32xbf16>
    %cst_314 = arith.constant dense<0.000000e+00> : vector<8x128xf32>
    %941 = tpu.matmul %940, %690, %cst_314 {dimension_numbers = #tpu.dot_dimension_numbers<[1], [0], [0], [1], [0, 0, 1, 1], [], []>} : vector<8x32xbf16>, vector<32x128xbf16>, vector<8x128xf32> -> vector<8x128xf32>
    %942 = arith.addf %939, %941 : vector<8x128xf32>
    %943 = arith.negf %938 : vector<8x128xf32>
    %944 = math.exp %943 : vector<8x128xf32>
    %cst_315 = arith.constant 1.000000e+00 : f32
    %945 = vector.broadcast %cst_315 : f32 to vector<8x128xf32>
    %946 = arith.addf %945, %944 : vector<8x128xf32>
    %947 = arith.divf %945, %946 : vector<8x128xf32>
    %948 = math.tanh %938 : vector<8x128xf32>
    %949 = vector.extract_strided_slice %947 {offsets = [0, 0], sizes = [8, 32], strides = [1, 1]} : vector<8x128xf32> to vector<8x32xf32>
    %950 = vector.extract_strided_slice %947 {offsets = [0, 32], sizes = [8, 32], strides = [1, 1]} : vector<8x128xf32> to vector<8x32xf32>
    %951 = vector.extract_strided_slice %948 {offsets = [0, 64], sizes = [8, 32], strides = [1, 1]} : vector<8x128xf32> to vector<8x32xf32>
    %952 = vector.extract_strided_slice %947 {offsets = [0, 96], sizes = [8, 32], strides = [1, 1]} : vector<8x128xf32> to vector<8x32xf32>
    %953 = arith.mulf %950, %915 : vector<8x32xf32>
    %954 = arith.mulf %949, %951 : vector<8x32xf32>
    %955 = arith.addf %953, %954 : vector<8x32xf32>
    %956 = math.tanh %955 : vector<8x32xf32>
    %957 = arith.mulf %952, %956 : vector<8x32xf32>
    %958 = arith.negf %942 : vector<8x128xf32>
    %959 = math.exp %958 : vector<8x128xf32>
    %cst_316 = arith.constant 1.000000e+00 : f32
    %960 = vector.broadcast %cst_316 : f32 to vector<8x128xf32>
    %961 = arith.addf %960, %959 : vector<8x128xf32>
    %962 = arith.divf %960, %961 : vector<8x128xf32>
    %963 = math.tanh %942 : vector<8x128xf32>
    %964 = vector.extract_strided_slice %962 {offsets = [0, 0], sizes = [8, 32], strides = [1, 1]} : vector<8x128xf32> to vector<8x32xf32>
    %965 = vector.extract_strided_slice %962 {offsets = [0, 32], sizes = [8, 32], strides = [1, 1]} : vector<8x128xf32> to vector<8x32xf32>
    %966 = vector.extract_strided_slice %963 {offsets = [0, 64], sizes = [8, 32], strides = [1, 1]} : vector<8x128xf32> to vector<8x32xf32>
    %967 = vector.extract_strided_slice %962 {offsets = [0, 96], sizes = [8, 32], strides = [1, 1]} : vector<8x128xf32> to vector<8x32xf32>
    %968 = arith.mulf %965, %930 : vector<8x32xf32>
    %969 = arith.mulf %964, %966 : vector<8x32xf32>
    %970 = arith.addf %968, %969 : vector<8x32xf32>
    %971 = math.tanh %970 : vector<8x32xf32>
    %972 = arith.mulf %967, %971 : vector<8x32xf32>
    %c48_317 = arith.constant 48 : index
    %c0_318 = arith.constant 0 : index
    %973 = vector.load %arg23[%c48_317, %c0_318] : memref<128x32xf32, #tpu.memory_space<vmem>>, vector<8x32xf32>
    tpu.vector_store %arg23[%c48_317, %c0_318], %957 {strides = array<i32>} : memref<128x32xf32, #tpu.memory_space<vmem>>, vector<8x32xf32>,
    %c72_319 = arith.constant 72 : index
    %c0_320 = arith.constant 0 : index
    %974 = vector.load %arg24[%c72_319, %c0_320] : memref<128x32xf32, #tpu.memory_space<vmem>>, vector<8x32xf32>
    tpu.vector_store %arg24[%c72_319, %c0_320], %972 {strides = array<i32>} : memref<128x32xf32, #tpu.memory_space<vmem>>, vector<8x32xf32>,
    %c56_321 = arith.constant 56 : index
    %c0_322 = arith.constant 0 : index
    %975 = vector.load %arg19[%c56_321, %c0_322] : memref<128x128xf32, #tpu.memory_space<vmem>>, vector<8x128xf32>
    %976 = arith.truncf %957 : vector<8x32xf32> to vector<8x32xbf16>
    %cst_323 = arith.constant dense<0.000000e+00> : vector<8x128xf32>
    %977 = tpu.matmul %976, %689, %cst_323 {dimension_numbers = #tpu.dot_dimension_numbers<[1], [0], [0], [1], [0, 0, 1, 1], [], []>} : vector<8x32xbf16>, vector<32x128xbf16>, vector<8x128xf32> -> vector<8x128xf32>
    %978 = arith.addf %975, %977 : vector<8x128xf32>
    %c64_324 = arith.constant 64 : index
    %c0_325 = arith.constant 0 : index
    %979 = vector.load %arg20[%c64_324, %c0_325] : memref<128x128xf32, #tpu.memory_space<vmem>>, vector<8x128xf32>
    %980 = arith.truncf %972 : vector<8x32xf32> to vector<8x32xbf16>
    %cst_326 = arith.constant dense<0.000000e+00> : vector<8x128xf32>
    %981 = tpu.matmul %980, %690, %cst_326 {dimension_numbers = #tpu.dot_dimension_numbers<[1], [0], [0], [1], [0, 0, 1, 1], [], []>} : vector<8x32xbf16>, vector<32x128xbf16>, vector<8x128xf32> -> vector<8x128xf32>
    %982 = arith.addf %979, %981 : vector<8x128xf32>
    %983 = arith.negf %978 : vector<8x128xf32>
    %984 = math.exp %983 : vector<8x128xf32>
    %cst_327 = arith.constant 1.000000e+00 : f32
    %985 = vector.broadcast %cst_327 : f32 to vector<8x128xf32>
    %986 = arith.addf %985, %984 : vector<8x128xf32>
    %987 = arith.divf %985, %986 : vector<8x128xf32>
    %988 = math.tanh %978 : vector<8x128xf32>
    %989 = vector.extract_strided_slice %987 {offsets = [0, 0], sizes = [8, 32], strides = [1, 1]} : vector<8x128xf32> to vector<8x32xf32>
    %990 = vector.extract_strided_slice %987 {offsets = [0, 32], sizes = [8, 32], strides = [1, 1]} : vector<8x128xf32> to vector<8x32xf32>
    %991 = vector.extract_strided_slice %988 {offsets = [0, 64], sizes = [8, 32], strides = [1, 1]} : vector<8x128xf32> to vector<8x32xf32>
    %992 = vector.extract_strided_slice %987 {offsets = [0, 96], sizes = [8, 32], strides = [1, 1]} : vector<8x128xf32> to vector<8x32xf32>
    %993 = arith.mulf %990, %955 : vector<8x32xf32>
    %994 = arith.mulf %989, %991 : vector<8x32xf32>
    %995 = arith.addf %993, %994 : vector<8x32xf32>
    %996 = math.tanh %995 : vector<8x32xf32>
    %997 = arith.mulf %992, %996 : vector<8x32xf32>
    %998 = arith.negf %982 : vector<8x128xf32>
    %999 = math.exp %998 : vector<8x128xf32>
    %cst_328 = arith.constant 1.000000e+00 : f32
    %1000 = vector.broadcast %cst_328 : f32 to vector<8x128xf32>
    %1001 = arith.addf %1000, %999 : vector<8x128xf32>
    %1002 = arith.divf %1000, %1001 : vector<8x128xf32>
    %1003 = math.tanh %982 : vector<8x128xf32>
    %1004 = vector.extract_strided_slice %1002 {offsets = [0, 0], sizes = [8, 32], strides = [1, 1]} : vector<8x128xf32> to vector<8x32xf32>
    %1005 = vector.extract_strided_slice %1002 {offsets = [0, 32], sizes = [8, 32], strides = [1, 1]} : vector<8x128xf32> to vector<8x32xf32>
    %1006 = vector.extract_strided_slice %1003 {offsets = [0, 64], sizes = [8, 32], strides = [1, 1]} : vector<8x128xf32> to vector<8x32xf32>
    %1007 = vector.extract_strided_slice %1002 {offsets = [0, 96], sizes = [8, 32], strides = [1, 1]} : vector<8x128xf32> to vector<8x32xf32>
    %1008 = arith.mulf %1005, %970 : vector<8x32xf32>
    %1009 = arith.mulf %1004, %1006 : vector<8x32xf32>
    %1010 = arith.addf %1008, %1009 : vector<8x32xf32>
    %1011 = math.tanh %1010 : vector<8x32xf32>
    %1012 = arith.mulf %1007, %1011 : vector<8x32xf32>
    %c56_329 = arith.constant 56 : index
    %c0_330 = arith.constant 0 : index
    %1013 = vector.load %arg23[%c56_329, %c0_330] : memref<128x32xf32, #tpu.memory_space<vmem>>, vector<8x32xf32>
    tpu.vector_store %arg23[%c56_329, %c0_330], %997 {strides = array<i32>} : memref<128x32xf32, #tpu.memory_space<vmem>>, vector<8x32xf32>,
    %c64_331 = arith.constant 64 : index
    %c0_332 = arith.constant 0 : index
    %1014 = vector.load %arg24[%c64_331, %c0_332] : memref<128x32xf32, #tpu.memory_space<vmem>>, vector<8x32xf32>
    tpu.vector_store %arg24[%c64_331, %c0_332], %1012 {strides = array<i32>} : memref<128x32xf32, #tpu.memory_space<vmem>>, vector<8x32xf32>,
    %c64_333 = arith.constant 64 : index
    %c0_334 = arith.constant 0 : index
    %1015 = vector.load %arg19[%c64_333, %c0_334] : memref<128x128xf32, #tpu.memory_space<vmem>>, vector<8x128xf32>
    %1016 = arith.truncf %997 : vector<8x32xf32> to vector<8x32xbf16>
    %cst_335 = arith.constant dense<0.000000e+00> : vector<8x128xf32>
    %1017 = tpu.matmul %1016, %689, %cst_335 {dimension_numbers = #tpu.dot_dimension_numbers<[1], [0], [0], [1], [0, 0, 1, 1], [], []>} : vector<8x32xbf16>, vector<32x128xbf16>, vector<8x128xf32> -> vector<8x128xf32>
    %1018 = arith.addf %1015, %1017 : vector<8x128xf32>
    %c56_336 = arith.constant 56 : index
    %c0_337 = arith.constant 0 : index
    %1019 = vector.load %arg20[%c56_336, %c0_337] : memref<128x128xf32, #tpu.memory_space<vmem>>, vector<8x128xf32>
    %1020 = arith.truncf %1012 : vector<8x32xf32> to vector<8x32xbf16>
    %cst_338 = arith.constant dense<0.000000e+00> : vector<8x128xf32>
    %1021 = tpu.matmul %1020, %690, %cst_338 {dimension_numbers = #tpu.dot_dimension_numbers<[1], [0], [0], [1], [0, 0, 1, 1], [], []>} : vector<8x32xbf16>, vector<32x128xbf16>, vector<8x128xf32> -> vector<8x128xf32>
    %1022 = arith.addf %1019, %1021 : vector<8x128xf32>
    %1023 = arith.negf %1018 : vector<8x128xf32>
    %1024 = math.exp %1023 : vector<8x128xf32>
    %cst_339 = arith.constant 1.000000e+00 : f32
    %1025 = vector.broadcast %cst_339 : f32 to vector<8x128xf32>
    %1026 = arith.addf %1025, %1024 : vector<8x128xf32>
    %1027 = arith.divf %1025, %1026 : vector<8x128xf32>
    %1028 = math.tanh %1018 : vector<8x128xf32>
    %1029 = vector.extract_strided_slice %1027 {offsets = [0, 0], sizes = [8, 32], strides = [1, 1]} : vector<8x128xf32> to vector<8x32xf32>
    %1030 = vector.extract_strided_slice %1027 {offsets = [0, 32], sizes = [8, 32], strides = [1, 1]} : vector<8x128xf32> to vector<8x32xf32>
    %1031 = vector.extract_strided_slice %1028 {offsets = [0, 64], sizes = [8, 32], strides = [1, 1]} : vector<8x128xf32> to vector<8x32xf32>
    %1032 = vector.extract_strided_slice %1027 {offsets = [0, 96], sizes = [8, 32], strides = [1, 1]} : vector<8x128xf32> to vector<8x32xf32>
    %1033 = arith.mulf %1030, %995 : vector<8x32xf32>
    %1034 = arith.mulf %1029, %1031 : vector<8x32xf32>
    %1035 = arith.addf %1033, %1034 : vector<8x32xf32>
    %1036 = math.tanh %1035 : vector<8x32xf32>
    %1037 = arith.mulf %1032, %1036 : vector<8x32xf32>
    %1038 = arith.negf %1022 : vector<8x128xf32>
    %1039 = math.exp %1038 : vector<8x128xf32>
    %cst_340 = arith.constant 1.000000e+00 : f32
    %1040 = vector.broadcast %cst_340 : f32 to vector<8x128xf32>
    %1041 = arith.addf %1040, %1039 : vector<8x128xf32>
    %1042 = arith.divf %1040, %1041 : vector<8x128xf32>
    %1043 = math.tanh %1022 : vector<8x128xf32>
    %1044 = vector.extract_strided_slice %1042 {offsets = [0, 0], sizes = [8, 32], strides = [1, 1]} : vector<8x128xf32> to vector<8x32xf32>
    %1045 = vector.extract_strided_slice %1042 {offsets = [0, 32], sizes = [8, 32], strides = [1, 1]} : vector<8x128xf32> to vector<8x32xf32>
    %1046 = vector.extract_strided_slice %1043 {offsets = [0, 64], sizes = [8, 32], strides = [1, 1]} : vector<8x128xf32> to vector<8x32xf32>
    %1047 = vector.extract_strided_slice %1042 {offsets = [0, 96], sizes = [8, 32], strides = [1, 1]} : vector<8x128xf32> to vector<8x32xf32>
    %1048 = arith.mulf %1045, %1010 : vector<8x32xf32>
    %1049 = arith.mulf %1044, %1046 : vector<8x32xf32>
    %1050 = arith.addf %1048, %1049 : vector<8x32xf32>
    %1051 = math.tanh %1050 : vector<8x32xf32>
    %1052 = arith.mulf %1047, %1051 : vector<8x32xf32>
    %c64_341 = arith.constant 64 : index
    %c0_342 = arith.constant 0 : index
    %1053 = vector.load %arg23[%c64_341, %c0_342] : memref<128x32xf32, #tpu.memory_space<vmem>>, vector<8x32xf32>
    tpu.vector_store %arg23[%c64_341, %c0_342], %1037 {strides = array<i32>} : memref<128x32xf32, #tpu.memory_space<vmem>>, vector<8x32xf32>,
    %c56_343 = arith.constant 56 : index
    %c0_344 = arith.constant 0 : index
    %1054 = vector.load %arg24[%c56_343, %c0_344] : memref<128x32xf32, #tpu.memory_space<vmem>>, vector<8x32xf32>
    tpu.vector_store %arg24[%c56_343, %c0_344], %1052 {strides = array<i32>} : memref<128x32xf32, #tpu.memory_space<vmem>>, vector<8x32xf32>,
    %c72_345 = arith.constant 72 : index
    %c0_346 = arith.constant 0 : index
    %1055 = vector.load %arg19[%c72_345, %c0_346] : memref<128x128xf32, #tpu.memory_space<vmem>>, vector<8x128xf32>
    %1056 = arith.truncf %1037 : vector<8x32xf32> to vector<8x32xbf16>
    %cst_347 = arith.constant dense<0.000000e+00> : vector<8x128xf32>
    %1057 = tpu.matmul %1056, %689, %cst_347 {dimension_numbers = #tpu.dot_dimension_numbers<[1], [0], [0], [1], [0, 0, 1, 1], [], []>} : vector<8x32xbf16>, vector<32x128xbf16>, vector<8x128xf32> -> vector<8x128xf32>
    %1058 = arith.addf %1055, %1057 : vector<8x128xf32>
    %c48_348 = arith.constant 48 : index
    %c0_349 = arith.constant 0 : index
    %1059 = vector.load %arg20[%c48_348, %c0_349] : memref<128x128xf32, #tpu.memory_space<vmem>>, vector<8x128xf32>
    %1060 = arith.truncf %1052 : vector<8x32xf32> to vector<8x32xbf16>
    %cst_350 = arith.constant dense<0.000000e+00> : vector<8x128xf32>
    %1061 = tpu.matmul %1060, %690, %cst_350 {dimension_numbers = #tpu.dot_dimension_numbers<[1], [0], [0], [1], [0, 0, 1, 1], [], []>} : vector<8x32xbf16>, vector<32x128xbf16>, vector<8x128xf32> -> vector<8x128xf32>
    %1062 = arith.addf %1059, %1061 : vector<8x128xf32>
    %1063 = arith.negf %1058 : vector<8x128xf32>
    %1064 = math.exp %1063 : vector<8x128xf32>
    %cst_351 = arith.constant 1.000000e+00 : f32
    %1065 = vector.broadcast %cst_351 : f32 to vector<8x128xf32>
    %1066 = arith.addf %1065, %1064 : vector<8x128xf32>
    %1067 = arith.divf %1065, %1066 : vector<8x128xf32>
    %1068 = math.tanh %1058 : vector<8x128xf32>
    %1069 = vector.extract_strided_slice %1067 {offsets = [0, 0], sizes = [8, 32], strides = [1, 1]} : vector<8x128xf32> to vector<8x32xf32>
    %1070 = vector.extract_strided_slice %1067 {offsets = [0, 32], sizes = [8, 32], strides = [1, 1]} : vector<8x128xf32> to vector<8x32xf32>
    %1071 = vector.extract_strided_slice %1068 {offsets = [0, 64], sizes = [8, 32], strides = [1, 1]} : vector<8x128xf32> to vector<8x32xf32>
    %1072 = vector.extract_strided_slice %1067 {offsets = [0, 96], sizes = [8, 32], strides = [1, 1]} : vector<8x128xf32> to vector<8x32xf32>
    %1073 = arith.mulf %1070, %1035 : vector<8x32xf32>
    %1074 = arith.mulf %1069, %1071 : vector<8x32xf32>
    %1075 = arith.addf %1073, %1074 : vector<8x32xf32>
    %1076 = math.tanh %1075 : vector<8x32xf32>
    %1077 = arith.mulf %1072, %1076 : vector<8x32xf32>
    %1078 = arith.negf %1062 : vector<8x128xf32>
    %1079 = math.exp %1078 : vector<8x128xf32>
    %cst_352 = arith.constant 1.000000e+00 : f32
    %1080 = vector.broadcast %cst_352 : f32 to vector<8x128xf32>
    %1081 = arith.addf %1080, %1079 : vector<8x128xf32>
    %1082 = arith.divf %1080, %1081 : vector<8x128xf32>
    %1083 = math.tanh %1062 : vector<8x128xf32>
    %1084 = vector.extract_strided_slice %1082 {offsets = [0, 0], sizes = [8, 32], strides = [1, 1]} : vector<8x128xf32> to vector<8x32xf32>
    %1085 = vector.extract_strided_slice %1082 {offsets = [0, 32], sizes = [8, 32], strides = [1, 1]} : vector<8x128xf32> to vector<8x32xf32>
    %1086 = vector.extract_strided_slice %1083 {offsets = [0, 64], sizes = [8, 32], strides = [1, 1]} : vector<8x128xf32> to vector<8x32xf32>
    %1087 = vector.extract_strided_slice %1082 {offsets = [0, 96], sizes = [8, 32], strides = [1, 1]} : vector<8x128xf32> to vector<8x32xf32>
    %1088 = arith.mulf %1085, %1050 : vector<8x32xf32>
    %1089 = arith.mulf %1084, %1086 : vector<8x32xf32>
    %1090 = arith.addf %1088, %1089 : vector<8x32xf32>
    %1091 = math.tanh %1090 : vector<8x32xf32>
    %1092 = arith.mulf %1087, %1091 : vector<8x32xf32>
    %c72_353 = arith.constant 72 : index
    %c0_354 = arith.constant 0 : index
    %1093 = vector.load %arg23[%c72_353, %c0_354] : memref<128x32xf32, #tpu.memory_space<vmem>>, vector<8x32xf32>
    tpu.vector_store %arg23[%c72_353, %c0_354], %1077 {strides = array<i32>} : memref<128x32xf32, #tpu.memory_space<vmem>>, vector<8x32xf32>,
    %c48_355 = arith.constant 48 : index
    %c0_356 = arith.constant 0 : index
    %1094 = vector.load %arg24[%c48_355, %c0_356] : memref<128x32xf32, #tpu.memory_space<vmem>>, vector<8x32xf32>
    tpu.vector_store %arg24[%c48_355, %c0_356], %1092 {strides = array<i32>} : memref<128x32xf32, #tpu.memory_space<vmem>>, vector<8x32xf32>,
    %c80_357 = arith.constant 80 : index
    %c0_358 = arith.constant 0 : index
    %1095 = vector.load %arg19[%c80_357, %c0_358] : memref<128x128xf32, #tpu.memory_space<vmem>>, vector<8x128xf32>
    %1096 = arith.truncf %1077 : vector<8x32xf32> to vector<8x32xbf16>
    %cst_359 = arith.constant dense<0.000000e+00> : vector<8x128xf32>
    %1097 = tpu.matmul %1096, %689, %cst_359 {dimension_numbers = #tpu.dot_dimension_numbers<[1], [0], [0], [1], [0, 0, 1, 1], [], []>} : vector<8x32xbf16>, vector<32x128xbf16>, vector<8x128xf32> -> vector<8x128xf32>
    %1098 = arith.addf %1095, %1097 : vector<8x128xf32>
    %c40_360 = arith.constant 40 : index
    %c0_361 = arith.constant 0 : index
    %1099 = vector.load %arg20[%c40_360, %c0_361] : memref<128x128xf32, #tpu.memory_space<vmem>>, vector<8x128xf32>
    %1100 = arith.truncf %1092 : vector<8x32xf32> to vector<8x32xbf16>
    %cst_362 = arith.constant dense<0.000000e+00> : vector<8x128xf32>
    %1101 = tpu.matmul %1100, %690, %cst_362 {dimension_numbers = #tpu.dot_dimension_numbers<[1], [0], [0], [1], [0, 0, 1, 1], [], []>} : vector<8x32xbf16>, vector<32x128xbf16>, vector<8x128xf32> -> vector<8x128xf32>
    %1102 = arith.addf %1099, %1101 : vector<8x128xf32>
    %1103 = arith.negf %1098 : vector<8x128xf32>
    %1104 = math.exp %1103 : vector<8x128xf32>
    %cst_363 = arith.constant 1.000000e+00 : f32
    %1105 = vector.broadcast %cst_363 : f32 to vector<8x128xf32>
    %1106 = arith.addf %1105, %1104 : vector<8x128xf32>
    %1107 = arith.divf %1105, %1106 : vector<8x128xf32>
    %1108 = math.tanh %1098 : vector<8x128xf32>
    %1109 = vector.extract_strided_slice %1107 {offsets = [0, 0], sizes = [8, 32], strides = [1, 1]} : vector<8x128xf32> to vector<8x32xf32>
    %1110 = vector.extract_strided_slice %1107 {offsets = [0, 32], sizes = [8, 32], strides = [1, 1]} : vector<8x128xf32> to vector<8x32xf32>
    %1111 = vector.extract_strided_slice %1108 {offsets = [0, 64], sizes = [8, 32], strides = [1, 1]} : vector<8x128xf32> to vector<8x32xf32>
    %1112 = vector.extract_strided_slice %1107 {offsets = [0, 96], sizes = [8, 32], strides = [1, 1]} : vector<8x128xf32> to vector<8x32xf32>
    %1113 = arith.mulf %1110, %1075 : vector<8x32xf32>
    %1114 = arith.mulf %1109, %1111 : vector<8x32xf32>
    %1115 = arith.addf %1113, %1114 : vector<8x32xf32>
    %1116 = math.tanh %1115 : vector<8x32xf32>
    %1117 = arith.mulf %1112, %1116 : vector<8x32xf32>
    %1118 = arith.negf %1102 : vector<8x128xf32>
    %1119 = math.exp %1118 : vector<8x128xf32>
    %cst_364 = arith.constant 1.000000e+00 : f32
    %1120 = vector.broadcast %cst_364 : f32 to vector<8x128xf32>
    %1121 = arith.addf %1120, %1119 : vector<8x128xf32>
    %1122 = arith.divf %1120, %1121 : vector<8x128xf32>
    %1123 = math.tanh %1102 : vector<8x128xf32>
    %1124 = vector.extract_strided_slice %1122 {offsets = [0, 0], sizes = [8, 32], strides = [1, 1]} : vector<8x128xf32> to vector<8x32xf32>
    %1125 = vector.extract_strided_slice %1122 {offsets = [0, 32], sizes = [8, 32], strides = [1, 1]} : vector<8x128xf32> to vector<8x32xf32>
    %1126 = vector.extract_strided_slice %1123 {offsets = [0, 64], sizes = [8, 32], strides = [1, 1]} : vector<8x128xf32> to vector<8x32xf32>
    %1127 = vector.extract_strided_slice %1122 {offsets = [0, 96], sizes = [8, 32], strides = [1, 1]} : vector<8x128xf32> to vector<8x32xf32>
    %1128 = arith.mulf %1125, %1090 : vector<8x32xf32>
    %1129 = arith.mulf %1124, %1126 : vector<8x32xf32>
    %1130 = arith.addf %1128, %1129 : vector<8x32xf32>
    %1131 = math.tanh %1130 : vector<8x32xf32>
    %1132 = arith.mulf %1127, %1131 : vector<8x32xf32>
    %c80_365 = arith.constant 80 : index
    %c0_366 = arith.constant 0 : index
    %1133 = vector.load %arg23[%c80_365, %c0_366] : memref<128x32xf32, #tpu.memory_space<vmem>>, vector<8x32xf32>
    tpu.vector_store %arg23[%c80_365, %c0_366], %1117 {strides = array<i32>} : memref<128x32xf32, #tpu.memory_space<vmem>>, vector<8x32xf32>,
    %c40_367 = arith.constant 40 : index
    %c0_368 = arith.constant 0 : index
    %1134 = vector.load %arg24[%c40_367, %c0_368] : memref<128x32xf32, #tpu.memory_space<vmem>>, vector<8x32xf32>
    tpu.vector_store %arg24[%c40_367, %c0_368], %1132 {strides = array<i32>} : memref<128x32xf32, #tpu.memory_space<vmem>>, vector<8x32xf32>,
    %c88_369 = arith.constant 88 : index
    %c0_370 = arith.constant 0 : index
    %1135 = vector.load %arg19[%c88_369, %c0_370] : memref<128x128xf32, #tpu.memory_space<vmem>>, vector<8x128xf32>
    %1136 = arith.truncf %1117 : vector<8x32xf32> to vector<8x32xbf16>
    %cst_371 = arith.constant dense<0.000000e+00> : vector<8x128xf32>
    %1137 = tpu.matmul %1136, %689, %cst_371 {dimension_numbers = #tpu.dot_dimension_numbers<[1], [0], [0], [1], [0, 0, 1, 1], [], []>} : vector<8x32xbf16>, vector<32x128xbf16>, vector<8x128xf32> -> vector<8x128xf32>
    %1138 = arith.addf %1135, %1137 : vector<8x128xf32>
    %c32_372 = arith.constant 32 : index
    %c0_373 = arith.constant 0 : index
    %1139 = vector.load %arg20[%c32_372, %c0_373] : memref<128x128xf32, #tpu.memory_space<vmem>>, vector<8x128xf32>
    %1140 = arith.truncf %1132 : vector<8x32xf32> to vector<8x32xbf16>
    %cst_374 = arith.constant dense<0.000000e+00> : vector<8x128xf32>
    %1141 = tpu.matmul %1140, %690, %cst_374 {dimension_numbers = #tpu.dot_dimension_numbers<[1], [0], [0], [1], [0, 0, 1, 1], [], []>} : vector<8x32xbf16>, vector<32x128xbf16>, vector<8x128xf32> -> vector<8x128xf32>
    %1142 = arith.addf %1139, %1141 : vector<8x128xf32>
    %1143 = arith.negf %1138 : vector<8x128xf32>
    %1144 = math.exp %1143 : vector<8x128xf32>
    %cst_375 = arith.constant 1.000000e+00 : f32
    %1145 = vector.broadcast %cst_375 : f32 to vector<8x128xf32>
    %1146 = arith.addf %1145, %1144 : vector<8x128xf32>
    %1147 = arith.divf %1145, %1146 : vector<8x128xf32>
    %1148 = math.tanh %1138 : vector<8x128xf32>
    %1149 = vector.extract_strided_slice %1147 {offsets = [0, 0], sizes = [8, 32], strides = [1, 1]} : vector<8x128xf32> to vector<8x32xf32>
    %1150 = vector.extract_strided_slice %1147 {offsets = [0, 32], sizes = [8, 32], strides = [1, 1]} : vector<8x128xf32> to vector<8x32xf32>
    %1151 = vector.extract_strided_slice %1148 {offsets = [0, 64], sizes = [8, 32], strides = [1, 1]} : vector<8x128xf32> to vector<8x32xf32>
    %1152 = vector.extract_strided_slice %1147 {offsets = [0, 96], sizes = [8, 32], strides = [1, 1]} : vector<8x128xf32> to vector<8x32xf32>
    %1153 = arith.mulf %1150, %1115 : vector<8x32xf32>
    %1154 = arith.mulf %1149, %1151 : vector<8x32xf32>
    %1155 = arith.addf %1153, %1154 : vector<8x32xf32>
    %1156 = math.tanh %1155 : vector<8x32xf32>
    %1157 = arith.mulf %1152, %1156 : vector<8x32xf32>
    %1158 = arith.negf %1142 : vector<8x128xf32>
    %1159 = math.exp %1158 : vector<8x128xf32>
    %cst_376 = arith.constant 1.000000e+00 : f32
    %1160 = vector.broadcast %cst_376 : f32 to vector<8x128xf32>
    %1161 = arith.addf %1160, %1159 : vector<8x128xf32>
    %1162 = arith.divf %1160, %1161 : vector<8x128xf32>
    %1163 = math.tanh %1142 : vector<8x128xf32>
    %1164 = vector.extract_strided_slice %1162 {offsets = [0, 0], sizes = [8, 32], strides = [1, 1]} : vector<8x128xf32> to vector<8x32xf32>
    %1165 = vector.extract_strided_slice %1162 {offsets = [0, 32], sizes = [8, 32], strides = [1, 1]} : vector<8x128xf32> to vector<8x32xf32>
    %1166 = vector.extract_strided_slice %1163 {offsets = [0, 64], sizes = [8, 32], strides = [1, 1]} : vector<8x128xf32> to vector<8x32xf32>
    %1167 = vector.extract_strided_slice %1162 {offsets = [0, 96], sizes = [8, 32], strides = [1, 1]} : vector<8x128xf32> to vector<8x32xf32>
    %1168 = arith.mulf %1165, %1130 : vector<8x32xf32>
    %1169 = arith.mulf %1164, %1166 : vector<8x32xf32>
    %1170 = arith.addf %1168, %1169 : vector<8x32xf32>
    %1171 = math.tanh %1170 : vector<8x32xf32>
    %1172 = arith.mulf %1167, %1171 : vector<8x32xf32>
    %c88_377 = arith.constant 88 : index
    %c0_378 = arith.constant 0 : index
    %1173 = vector.load %arg23[%c88_377, %c0_378] : memref<128x32xf32, #tpu.memory_space<vmem>>, vector<8x32xf32>
    tpu.vector_store %arg23[%c88_377, %c0_378], %1157 {strides = array<i32>} : memref<128x32xf32, #tpu.memory_space<vmem>>, vector<8x32xf32>,
    %c32_379 = arith.constant 32 : index
    %c0_380 = arith.constant 0 : index
    %1174 = vector.load %arg24[%c32_379, %c0_380] : memref<128x32xf32, #tpu.memory_space<vmem>>, vector<8x32xf32>
    tpu.vector_store %arg24[%c32_379, %c0_380], %1172 {strides = array<i32>} : memref<128x32xf32, #tpu.memory_space<vmem>>, vector<8x32xf32>,
    %c96_381 = arith.constant 96 : index
    %c0_382 = arith.constant 0 : index
    %1175 = vector.load %arg19[%c96_381, %c0_382] : memref<128x128xf32, #tpu.memory_space<vmem>>, vector<8x128xf32>
    %1176 = arith.truncf %1157 : vector<8x32xf32> to vector<8x32xbf16>
    %cst_383 = arith.constant dense<0.000000e+00> : vector<8x128xf32>
    %1177 = tpu.matmul %1176, %689, %cst_383 {dimension_numbers = #tpu.dot_dimension_numbers<[1], [0], [0], [1], [0, 0, 1, 1], [], []>} : vector<8x32xbf16>, vector<32x128xbf16>, vector<8x128xf32> -> vector<8x128xf32>
    %1178 = arith.addf %1175, %1177 : vector<8x128xf32>
    %c24_384 = arith.constant 24 : index
    %c0_385 = arith.constant 0 : index
    %1179 = vector.load %arg20[%c24_384, %c0_385] : memref<128x128xf32, #tpu.memory_space<vmem>>, vector<8x128xf32>
    %1180 = arith.truncf %1172 : vector<8x32xf32> to vector<8x32xbf16>
    %cst_386 = arith.constant dense<0.000000e+00> : vector<8x128xf32>
    %1181 = tpu.matmul %1180, %690, %cst_386 {dimension_numbers = #tpu.dot_dimension_numbers<[1], [0], [0], [1], [0, 0, 1, 1], [], []>} : vector<8x32xbf16>, vector<32x128xbf16>, vector<8x128xf32> -> vector<8x128xf32>
    %1182 = arith.addf %1179, %1181 : vector<8x128xf32>
    %1183 = arith.negf %1178 : vector<8x128xf32>
    %1184 = math.exp %1183 : vector<8x128xf32>
    %cst_387 = arith.constant 1.000000e+00 : f32
    %1185 = vector.broadcast %cst_387 : f32 to vector<8x128xf32>
    %1186 = arith.addf %1185, %1184 : vector<8x128xf32>
    %1187 = arith.divf %1185, %1186 : vector<8x128xf32>
    %1188 = math.tanh %1178 : vector<8x128xf32>
    %1189 = vector.extract_strided_slice %1187 {offsets = [0, 0], sizes = [8, 32], strides = [1, 1]} : vector<8x128xf32> to vector<8x32xf32>
    %1190 = vector.extract_strided_slice %1187 {offsets = [0, 32], sizes = [8, 32], strides = [1, 1]} : vector<8x128xf32> to vector<8x32xf32>
    %1191 = vector.extract_strided_slice %1188 {offsets = [0, 64], sizes = [8, 32], strides = [1, 1]} : vector<8x128xf32> to vector<8x32xf32>
    %1192 = vector.extract_strided_slice %1187 {offsets = [0, 96], sizes = [8, 32], strides = [1, 1]} : vector<8x128xf32> to vector<8x32xf32>
    %1193 = arith.mulf %1190, %1155 : vector<8x32xf32>
    %1194 = arith.mulf %1189, %1191 : vector<8x32xf32>
    %1195 = arith.addf %1193, %1194 : vector<8x32xf32>
    %1196 = math.tanh %1195 : vector<8x32xf32>
    %1197 = arith.mulf %1192, %1196 : vector<8x32xf32>
    %1198 = arith.negf %1182 : vector<8x128xf32>
    %1199 = math.exp %1198 : vector<8x128xf32>
    %cst_388 = arith.constant 1.000000e+00 : f32
    %1200 = vector.broadcast %cst_388 : f32 to vector<8x128xf32>
    %1201 = arith.addf %1200, %1199 : vector<8x128xf32>
    %1202 = arith.divf %1200, %1201 : vector<8x128xf32>
    %1203 = math.tanh %1182 : vector<8x128xf32>
    %1204 = vector.extract_strided_slice %1202 {offsets = [0, 0], sizes = [8, 32], strides = [1, 1]} : vector<8x128xf32> to vector<8x32xf32>
    %1205 = vector.extract_strided_slice %1202 {offsets = [0, 32], sizes = [8, 32], strides = [1, 1]} : vector<8x128xf32> to vector<8x32xf32>
    %1206 = vector.extract_strided_slice %1203 {offsets = [0, 64], sizes = [8, 32], strides = [1, 1]} : vector<8x128xf32> to vector<8x32xf32>
    %1207 = vector.extract_strided_slice %1202 {offsets = [0, 96], sizes = [8, 32], strides = [1, 1]} : vector<8x128xf32> to vector<8x32xf32>
    %1208 = arith.mulf %1205, %1170 : vector<8x32xf32>
    %1209 = arith.mulf %1204, %1206 : vector<8x32xf32>
    %1210 = arith.addf %1208, %1209 : vector<8x32xf32>
    %1211 = math.tanh %1210 : vector<8x32xf32>
    %1212 = arith.mulf %1207, %1211 : vector<8x32xf32>
    %c96_389 = arith.constant 96 : index
    %c0_390 = arith.constant 0 : index
    %1213 = vector.load %arg23[%c96_389, %c0_390] : memref<128x32xf32, #tpu.memory_space<vmem>>, vector<8x32xf32>
    tpu.vector_store %arg23[%c96_389, %c0_390], %1197 {strides = array<i32>} : memref<128x32xf32, #tpu.memory_space<vmem>>, vector<8x32xf32>,
    %c24_391 = arith.constant 24 : index
    %c0_392 = arith.constant 0 : index
    %1214 = vector.load %arg24[%c24_391, %c0_392] : memref<128x32xf32, #tpu.memory_space<vmem>>, vector<8x32xf32>
    tpu.vector_store %arg24[%c24_391, %c0_392], %1212 {strides = array<i32>} : memref<128x32xf32, #tpu.memory_space<vmem>>, vector<8x32xf32>,
    %c104_393 = arith.constant 104 : index
    %c0_394 = arith.constant 0 : index
    %1215 = vector.load %arg19[%c104_393, %c0_394] : memref<128x128xf32, #tpu.memory_space<vmem>>, vector<8x128xf32>
    %1216 = arith.truncf %1197 : vector<8x32xf32> to vector<8x32xbf16>
    %cst_395 = arith.constant dense<0.000000e+00> : vector<8x128xf32>
    %1217 = tpu.matmul %1216, %689, %cst_395 {dimension_numbers = #tpu.dot_dimension_numbers<[1], [0], [0], [1], [0, 0, 1, 1], [], []>} : vector<8x32xbf16>, vector<32x128xbf16>, vector<8x128xf32> -> vector<8x128xf32>
    %1218 = arith.addf %1215, %1217 : vector<8x128xf32>
    %c16_396 = arith.constant 16 : index
    %c0_397 = arith.constant 0 : index
    %1219 = vector.load %arg20[%c16_396, %c0_397] : memref<128x128xf32, #tpu.memory_space<vmem>>, vector<8x128xf32>
    %1220 = arith.truncf %1212 : vector<8x32xf32> to vector<8x32xbf16>
    %cst_398 = arith.constant dense<0.000000e+00> : vector<8x128xf32>
    %1221 = tpu.matmul %1220, %690, %cst_398 {dimension_numbers = #tpu.dot_dimension_numbers<[1], [0], [0], [1], [0, 0, 1, 1], [], []>} : vector<8x32xbf16>, vector<32x128xbf16>, vector<8x128xf32> -> vector<8x128xf32>
    %1222 = arith.addf %1219, %1221 : vector<8x128xf32>
    %1223 = arith.negf %1218 : vector<8x128xf32>
    %1224 = math.exp %1223 : vector<8x128xf32>
    %cst_399 = arith.constant 1.000000e+00 : f32
    %1225 = vector.broadcast %cst_399 : f32 to vector<8x128xf32>
    %1226 = arith.addf %1225, %1224 : vector<8x128xf32>
    %1227 = arith.divf %1225, %1226 : vector<8x128xf32>
    %1228 = math.tanh %1218 : vector<8x128xf32>
    %1229 = vector.extract_strided_slice %1227 {offsets = [0, 0], sizes = [8, 32], strides = [1, 1]} : vector<8x128xf32> to vector<8x32xf32>
    %1230 = vector.extract_strided_slice %1227 {offsets = [0, 32], sizes = [8, 32], strides = [1, 1]} : vector<8x128xf32> to vector<8x32xf32>
    %1231 = vector.extract_strided_slice %1228 {offsets = [0, 64], sizes = [8, 32], strides = [1, 1]} : vector<8x128xf32> to vector<8x32xf32>
    %1232 = vector.extract_strided_slice %1227 {offsets = [0, 96], sizes = [8, 32], strides = [1, 1]} : vector<8x128xf32> to vector<8x32xf32>
    %1233 = arith.mulf %1230, %1195 : vector<8x32xf32>
    %1234 = arith.mulf %1229, %1231 : vector<8x32xf32>
    %1235 = arith.addf %1233, %1234 : vector<8x32xf32>
    %1236 = math.tanh %1235 : vector<8x32xf32>
    %1237 = arith.mulf %1232, %1236 : vector<8x32xf32>
    %1238 = arith.negf %1222 : vector<8x128xf32>
    %1239 = math.exp %1238 : vector<8x128xf32>
    %cst_400 = arith.constant 1.000000e+00 : f32
    %1240 = vector.broadcast %cst_400 : f32 to vector<8x128xf32>
    %1241 = arith.addf %1240, %1239 : vector<8x128xf32>
    %1242 = arith.divf %1240, %1241 : vector<8x128xf32>
    %1243 = math.tanh %1222 : vector<8x128xf32>
    %1244 = vector.extract_strided_slice %1242 {offsets = [0, 0], sizes = [8, 32], strides = [1, 1]} : vector<8x128xf32> to vector<8x32xf32>
    %1245 = vector.extract_strided_slice %1242 {offsets = [0, 32], sizes = [8, 32], strides = [1, 1]} : vector<8x128xf32> to vector<8x32xf32>
    %1246 = vector.extract_strided_slice %1243 {offsets = [0, 64], sizes = [8, 32], strides = [1, 1]} : vector<8x128xf32> to vector<8x32xf32>
    %1247 = vector.extract_strided_slice %1242 {offsets = [0, 96], sizes = [8, 32], strides = [1, 1]} : vector<8x128xf32> to vector<8x32xf32>
    %1248 = arith.mulf %1245, %1210 : vector<8x32xf32>
    %1249 = arith.mulf %1244, %1246 : vector<8x32xf32>
    %1250 = arith.addf %1248, %1249 : vector<8x32xf32>
    %1251 = math.tanh %1250 : vector<8x32xf32>
    %1252 = arith.mulf %1247, %1251 : vector<8x32xf32>
    %c104_401 = arith.constant 104 : index
    %c0_402 = arith.constant 0 : index
    %1253 = vector.load %arg23[%c104_401, %c0_402] : memref<128x32xf32, #tpu.memory_space<vmem>>, vector<8x32xf32>
    tpu.vector_store %arg23[%c104_401, %c0_402], %1237 {strides = array<i32>} : memref<128x32xf32, #tpu.memory_space<vmem>>, vector<8x32xf32>,
    %c16_403 = arith.constant 16 : index
    %c0_404 = arith.constant 0 : index
    %1254 = vector.load %arg24[%c16_403, %c0_404] : memref<128x32xf32, #tpu.memory_space<vmem>>, vector<8x32xf32>
    tpu.vector_store %arg24[%c16_403, %c0_404], %1252 {strides = array<i32>} : memref<128x32xf32, #tpu.memory_space<vmem>>, vector<8x32xf32>,
    %c112_405 = arith.constant 112 : index
    %c0_406 = arith.constant 0 : index
    %1255 = vector.load %arg19[%c112_405, %c0_406] : memref<128x128xf32, #tpu.memory_space<vmem>>, vector<8x128xf32>
    %1256 = arith.truncf %1237 : vector<8x32xf32> to vector<8x32xbf16>
    %cst_407 = arith.constant dense<0.000000e+00> : vector<8x128xf32>
    %1257 = tpu.matmul %1256, %689, %cst_407 {dimension_numbers = #tpu.dot_dimension_numbers<[1], [0], [0], [1], [0, 0, 1, 1], [], []>} : vector<8x32xbf16>, vector<32x128xbf16>, vector<8x128xf32> -> vector<8x128xf32>
    %1258 = arith.addf %1255, %1257 : vector<8x128xf32>
    %c8_408 = arith.constant 8 : index
    %c0_409 = arith.constant 0 : index
    %1259 = vector.load %arg20[%c8_408, %c0_409] : memref<128x128xf32, #tpu.memory_space<vmem>>, vector<8x128xf32>
    %1260 = arith.truncf %1252 : vector<8x32xf32> to vector<8x32xbf16>
    %cst_410 = arith.constant dense<0.000000e+00> : vector<8x128xf32>
    %1261 = tpu.matmul %1260, %690, %cst_410 {dimension_numbers = #tpu.dot_dimension_numbers<[1], [0], [0], [1], [0, 0, 1, 1], [], []>} : vector<8x32xbf16>, vector<32x128xbf16>, vector<8x128xf32> -> vector<8x128xf32>
    %1262 = arith.addf %1259, %1261 : vector<8x128xf32>
    %1263 = arith.negf %1258 : vector<8x128xf32>
    %1264 = math.exp %1263 : vector<8x128xf32>
    %cst_411 = arith.constant 1.000000e+00 : f32
    %1265 = vector.broadcast %cst_411 : f32 to vector<8x128xf32>
    %1266 = arith.addf %1265, %1264 : vector<8x128xf32>
    %1267 = arith.divf %1265, %1266 : vector<8x128xf32>
    %1268 = math.tanh %1258 : vector<8x128xf32>
    %1269 = vector.extract_strided_slice %1267 {offsets = [0, 0], sizes = [8, 32], strides = [1, 1]} : vector<8x128xf32> to vector<8x32xf32>
    %1270 = vector.extract_strided_slice %1267 {offsets = [0, 32], sizes = [8, 32], strides = [1, 1]} : vector<8x128xf32> to vector<8x32xf32>
    %1271 = vector.extract_strided_slice %1268 {offsets = [0, 64], sizes = [8, 32], strides = [1, 1]} : vector<8x128xf32> to vector<8x32xf32>
    %1272 = vector.extract_strided_slice %1267 {offsets = [0, 96], sizes = [8, 32], strides = [1, 1]} : vector<8x128xf32> to vector<8x32xf32>
    %1273 = arith.mulf %1270, %1235 : vector<8x32xf32>
    %1274 = arith.mulf %1269, %1271 : vector<8x32xf32>
    %1275 = arith.addf %1273, %1274 : vector<8x32xf32>
    %1276 = math.tanh %1275 : vector<8x32xf32>
    %1277 = arith.mulf %1272, %1276 : vector<8x32xf32>
    %1278 = arith.negf %1262 : vector<8x128xf32>
    %1279 = math.exp %1278 : vector<8x128xf32>
    %cst_412 = arith.constant 1.000000e+00 : f32
    %1280 = vector.broadcast %cst_412 : f32 to vector<8x128xf32>
    %1281 = arith.addf %1280, %1279 : vector<8x128xf32>
    %1282 = arith.divf %1280, %1281 : vector<8x128xf32>
    %1283 = math.tanh %1262 : vector<8x128xf32>
    %1284 = vector.extract_strided_slice %1282 {offsets = [0, 0], sizes = [8, 32], strides = [1, 1]} : vector<8x128xf32> to vector<8x32xf32>
    %1285 = vector.extract_strided_slice %1282 {offsets = [0, 32], sizes = [8, 32], strides = [1, 1]} : vector<8x128xf32> to vector<8x32xf32>
    %1286 = vector.extract_strided_slice %1283 {offsets = [0, 64], sizes = [8, 32], strides = [1, 1]} : vector<8x128xf32> to vector<8x32xf32>
    %1287 = vector.extract_strided_slice %1282 {offsets = [0, 96], sizes = [8, 32], strides = [1, 1]} : vector<8x128xf32> to vector<8x32xf32>
    %1288 = arith.mulf %1285, %1250 : vector<8x32xf32>
    %1289 = arith.mulf %1284, %1286 : vector<8x32xf32>
    %1290 = arith.addf %1288, %1289 : vector<8x32xf32>
    %1291 = math.tanh %1290 : vector<8x32xf32>
    %1292 = arith.mulf %1287, %1291 : vector<8x32xf32>
    %c112_413 = arith.constant 112 : index
    %c0_414 = arith.constant 0 : index
    %1293 = vector.load %arg23[%c112_413, %c0_414] : memref<128x32xf32, #tpu.memory_space<vmem>>, vector<8x32xf32>
    tpu.vector_store %arg23[%c112_413, %c0_414], %1277 {strides = array<i32>} : memref<128x32xf32, #tpu.memory_space<vmem>>, vector<8x32xf32>,
    %c8_415 = arith.constant 8 : index
    %c0_416 = arith.constant 0 : index
    %1294 = vector.load %arg24[%c8_415, %c0_416] : memref<128x32xf32, #tpu.memory_space<vmem>>, vector<8x32xf32>
    tpu.vector_store %arg24[%c8_415, %c0_416], %1292 {strides = array<i32>} : memref<128x32xf32, #tpu.memory_space<vmem>>, vector<8x32xf32>,
    %c120_417 = arith.constant 120 : index
    %c0_418 = arith.constant 0 : index
    %1295 = vector.load %arg19[%c120_417, %c0_418] : memref<128x128xf32, #tpu.memory_space<vmem>>, vector<8x128xf32>
    %1296 = arith.truncf %1277 : vector<8x32xf32> to vector<8x32xbf16>
    %cst_419 = arith.constant dense<0.000000e+00> : vector<8x128xf32>
    %1297 = tpu.matmul %1296, %689, %cst_419 {dimension_numbers = #tpu.dot_dimension_numbers<[1], [0], [0], [1], [0, 0, 1, 1], [], []>} : vector<8x32xbf16>, vector<32x128xbf16>, vector<8x128xf32> -> vector<8x128xf32>
    %1298 = arith.addf %1295, %1297 : vector<8x128xf32>
    %c0_420 = arith.constant 0 : index
    %c0_421 = arith.constant 0 : index
    %1299 = vector.load %arg20[%c0_420, %c0_421] : memref<128x128xf32, #tpu.memory_space<vmem>>, vector<8x128xf32>
    %1300 = arith.truncf %1292 : vector<8x32xf32> to vector<8x32xbf16>
    %cst_422 = arith.constant dense<0.000000e+00> : vector<8x128xf32>
    %1301 = tpu.matmul %1300, %690, %cst_422 {dimension_numbers = #tpu.dot_dimension_numbers<[1], [0], [0], [1], [0, 0, 1, 1], [], []>} : vector<8x32xbf16>, vector<32x128xbf16>, vector<8x128xf32> -> vector<8x128xf32>
    %1302 = arith.addf %1299, %1301 : vector<8x128xf32>
    %1303 = arith.negf %1298 : vector<8x128xf32>
    %1304 = math.exp %1303 : vector<8x128xf32>
    %cst_423 = arith.constant 1.000000e+00 : f32
    %1305 = vector.broadcast %cst_423 : f32 to vector<8x128xf32>
    %1306 = arith.addf %1305, %1304 : vector<8x128xf32>
    %1307 = arith.divf %1305, %1306 : vector<8x128xf32>
    %1308 = math.tanh %1298 : vector<8x128xf32>
    %1309 = vector.extract_strided_slice %1307 {offsets = [0, 0], sizes = [8, 32], strides = [1, 1]} : vector<8x128xf32> to vector<8x32xf32>
    %1310 = vector.extract_strided_slice %1307 {offsets = [0, 32], sizes = [8, 32], strides = [1, 1]} : vector<8x128xf32> to vector<8x32xf32>
    %1311 = vector.extract_strided_slice %1308 {offsets = [0, 64], sizes = [8, 32], strides = [1, 1]} : vector<8x128xf32> to vector<8x32xf32>
    %1312 = vector.extract_strided_slice %1307 {offsets = [0, 96], sizes = [8, 32], strides = [1, 1]} : vector<8x128xf32> to vector<8x32xf32>
    %1313 = arith.mulf %1310, %1275 : vector<8x32xf32>
    %1314 = arith.mulf %1309, %1311 : vector<8x32xf32>
    %1315 = arith.addf %1313, %1314 : vector<8x32xf32>
    %1316 = math.tanh %1315 : vector<8x32xf32>
    %1317 = arith.mulf %1312, %1316 : vector<8x32xf32>
    %1318 = arith.negf %1302 : vector<8x128xf32>
    %1319 = math.exp %1318 : vector<8x128xf32>
    %cst_424 = arith.constant 1.000000e+00 : f32
    %1320 = vector.broadcast %cst_424 : f32 to vector<8x128xf32>
    %1321 = arith.addf %1320, %1319 : vector<8x128xf32>
    %1322 = arith.divf %1320, %1321 : vector<8x128xf32>
    %1323 = math.tanh %1302 : vector<8x128xf32>
    %1324 = vector.extract_strided_slice %1322 {offsets = [0, 0], sizes = [8, 32], strides = [1, 1]} : vector<8x128xf32> to vector<8x32xf32>
    %1325 = vector.extract_strided_slice %1322 {offsets = [0, 32], sizes = [8, 32], strides = [1, 1]} : vector<8x128xf32> to vector<8x32xf32>
    %1326 = vector.extract_strided_slice %1323 {offsets = [0, 64], sizes = [8, 32], strides = [1, 1]} : vector<8x128xf32> to vector<8x32xf32>
    %1327 = vector.extract_strided_slice %1322 {offsets = [0, 96], sizes = [8, 32], strides = [1, 1]} : vector<8x128xf32> to vector<8x32xf32>
    %1328 = arith.mulf %1325, %1290 : vector<8x32xf32>
    %1329 = arith.mulf %1324, %1326 : vector<8x32xf32>
    %1330 = arith.addf %1328, %1329 : vector<8x32xf32>
    %1331 = math.tanh %1330 : vector<8x32xf32>
    %1332 = arith.mulf %1327, %1331 : vector<8x32xf32>
    %c120_425 = arith.constant 120 : index
    %c0_426 = arith.constant 0 : index
    %1333 = vector.load %arg23[%c120_425, %c0_426] : memref<128x32xf32, #tpu.memory_space<vmem>>, vector<8x32xf32>
    tpu.vector_store %arg23[%c120_425, %c0_426], %1317 {strides = array<i32>} : memref<128x32xf32, #tpu.memory_space<vmem>>, vector<8x32xf32>,
    %c0_427 = arith.constant 0 : index
    %c0_428 = arith.constant 0 : index
    %1334 = vector.load %arg24[%c0_427, %c0_428] : memref<128x32xf32, #tpu.memory_space<vmem>>, vector<8x32xf32>
    tpu.vector_store %arg24[%c0_427, %c0_428], %1332 {strides = array<i32>} : memref<128x32xf32, #tpu.memory_space<vmem>>, vector<8x32xf32>,
    %c0_429 = arith.constant 0 : index
    %c0_430 = arith.constant 0 : index
    %1335 = vector.load %arg23[%c0_429, %c0_430] : memref<128x32xf32, #tpu.memory_space<vmem>>, vector<128x32xf32>
    %1336 = arith.truncf %1335 : vector<128x32xf32> to vector<128x32xbf16>
    %c0_431 = arith.constant 0 : index
    %c0_432 = arith.constant 0 : index
    %1337 = vector.load %arg16[%c0_431, %c0_432] : memref<64x128xbf16, #tpu.memory_space<vmem>>, vector<32x128xbf16>
    %cst_433 = arith.constant dense<0.000000e+00> : vector<128x128xf32>
    %1338 = tpu.matmul %1336, %1337, %cst_433 {dimension_numbers = #tpu.dot_dimension_numbers<[1], [0], [0], [1], [0, 0, 1, 1], [], []>} : vector<128x32xbf16>, vector<32x128xbf16>, vector<128x128xf32> -> vector<128x128xf32>
    %c0_434 = arith.constant 0 : index
    %c0_435 = arith.constant 0 : index
    %1339 = vector.load %arg24[%c0_434, %c0_435] : memref<128x32xf32, #tpu.memory_space<vmem>>, vector<128x32xf32>
    %1340 = arith.truncf %1339 : vector<128x32xf32> to vector<128x32xbf16>
    %c32_436 = arith.constant 32 : index
    %c0_437 = arith.constant 0 : index
    %1341 = vector.load %arg16[%c32_436, %c0_437] : memref<64x128xbf16, #tpu.memory_space<vmem>>, vector<32x128xbf16>
    %cst_438 = arith.constant dense<0.000000e+00> : vector<128x128xf32>
    %1342 = tpu.matmul %1340, %1341, %cst_438 {dimension_numbers = #tpu.dot_dimension_numbers<[1], [0], [0], [1], [0, 0, 1, 1], [], []>} : vector<128x32xbf16>, vector<32x128xbf16>, vector<128x128xf32> -> vector<128x128xf32>
    %1343 = arith.addf %1338, %1342 : vector<128x128xf32>
    %c0_439 = arith.constant 0 : index
    %c0_440 = arith.constant 0 : index
    %1344 = vector.load %arg17[%c0_439, %c0_440] : memref<1x128xf32, #tpu.memory_space<vmem>>, vector<1x128xf32>
    %1345 = vector.broadcast %1344 : vector<1x128xf32> to vector<128x128xf32>
    %1346 = arith.addf %1343, %1345 : vector<128x128xf32>
    %c0_441 = arith.constant 0 : index
    %c0_442 = arith.constant 0 : index
    %1347 = vector.load %arg18[%c0_441, %c0_442] : memref<128x128xf32, #tpu.memory_space<vmem>>, vector<128x128xf32>
    tpu.vector_store %arg18[%c0_441, %c0_442], %1346 {strides = array<i32>} : memref<128x128xf32, #tpu.memory_space<vmem>>, vector<128x128xf32>,
    return
  }
  func.func @transform_0(%arg0: i32) -> (i32, i32) {
    %c0_i32 = arith.constant 0 : i32
    %c0_i32_0 = arith.constant 0 : i32
    %c0_i32_1 = arith.constant 0 : i32
    return %c0_i32, %c0_i32_0 : i32, i32
  }
  func.func @transform_1(%arg0: i32) -> (i32, i32) {
    %c0_i32 = arith.constant 0 : i32
    %c0_i32_0 = arith.constant 0 : i32
    %c0_i32_1 = arith.constant 0 : i32
    return %c0_i32, %c0_i32_0 : i32, i32
  }
  func.func @transform_2(%arg0: i32) -> (i32, i32) {
    %c0_i32 = arith.constant 0 : i32
    %c0_i32_0 = arith.constant 0 : i32
    %c0_i32_1 = arith.constant 0 : i32
    return %c0_i32, %c0_i32_0 : i32, i32
  }
  func.func @transform_3(%arg0: i32) -> (i32, i32) {
    %c0_i32 = arith.constant 0 : i32
    %c0_i32_0 = arith.constant 0 : i32
    %c0_i32_1 = arith.constant 0 : i32
    return %c0_i32, %c0_i32_0 : i32, i32
  }
  func.func @transform_4(%arg0: i32) -> (i32, i32) {
    %c0_i32 = arith.constant 0 : i32
    %c0_i32_0 = arith.constant 0 : i32
    %c0_i32_1 = arith.constant 0 : i32
    return %c0_i32, %c0_i32_0 : i32, i32
  }
  func.func @transform_5(%arg0: i32) -> (i32, i32) {
    %c0_i32 = arith.constant 0 : i32
    %c0_i32_0 = arith.constant 0 : i32
    %c0_i32_1 = arith.constant 0 : i32
    return %c0_i32, %c0_i32_0 : i32, i32
  }
  func.func @transform_6(%arg0: i32) -> (i32, i32) {
    %c0_i32 = arith.constant 0 : i32
    %c0_i32_0 = arith.constant 0 : i32
    %c0_i32_1 = arith.constant 0 : i32
    return %c0_i32, %c0_i32_0 : i32, i32
  }
  func.func @transform_7(%arg0: i32) -> (i32, i32) {
    %c0_i32 = arith.constant 0 : i32
    %c0_i32_0 = arith.constant 0 : i32
    %c0_i32_1 = arith.constant 0 : i32
    return %c0_i32, %c0_i32_0 : i32, i32
  }
  func.func @transform_8(%arg0: i32) -> (i32, i32) {
    %c0_i32 = arith.constant 0 : i32
    %c0_i32_0 = arith.constant 0 : i32
    %c0_i32_1 = arith.constant 0 : i32
    return %c0_i32, %c0_i32_0 : i32, i32
  }
  func.func @transform_9(%arg0: i32) -> (i32, i32) {
    %c0_i32 = arith.constant 0 : i32
    %c0_i32_0 = arith.constant 0 : i32
    %c0_i32_1 = arith.constant 0 : i32
    return %c0_i32, %c0_i32_0 : i32, i32
  }
  func.func @transform_10(%arg0: i32) -> (i32, i32) {
    %c0_i32 = arith.constant 0 : i32
    %c0_i32_0 = arith.constant 0 : i32
    %c0_i32_1 = arith.constant 0 : i32
    return %c0_i32, %c0_i32_0 : i32, i32
  }
  func.func @transform_11(%arg0: i32) -> (i32, i32) {
    %c0_i32 = arith.constant 0 : i32
    %c0_i32_0 = arith.constant 0 : i32
    %c0_i32_1 = arith.constant 0 : i32
    return %c0_i32, %c0_i32_0 : i32, i32
  }
  func.func @transform_12(%arg0: i32) -> (i32, i32) {
    %c0_i32 = arith.constant 0 : i32
    %c0_i32_0 = arith.constant 0 : i32
    %c0_i32_1 = arith.constant 0 : i32
    return %c0_i32, %c0_i32_0 : i32, i32
  }
  func.func @transform_13(%arg0: i32) -> (i32, i32) {
    %c0_i32 = arith.constant 0 : i32
    %c0_i32_0 = arith.constant 0 : i32
    %c0_i32_1 = arith.constant 0 : i32
    return %c0_i32, %c0_i32_0 : i32, i32
  }
  func.func @transform_14(%arg0: i32) -> (i32, i32) {
    %c0_i32 = arith.constant 0 : i32
    %c0_i32_0 = arith.constant 0 : i32
    %c0_i32_1 = arith.constant 0 : i32
    return %c0_i32, %c0_i32_0 : i32, i32
  }
  func.func @transform_15(%arg0: i32) -> (i32, i32) {
    %c0_i32 = arith.constant 0 : i32
    %c0_i32_0 = arith.constant 0 : i32
    %c0_i32_1 = arith.constant 0 : i32
    return %c0_i32, %c0_i32_0 : i32, i32
  }
  func.func @transform_16(%arg0: i32) -> (i32, i32) {
    %c0_i32 = arith.constant 0 : i32
    %c0_i32_0 = arith.constant 0 : i32
    %c0_i32_1 = arith.constant 0 : i32
    return %c0_i32, %c0_i32_0 : i32, i32
  }
  func.func @transform_17(%arg0: i32) -> (i32, i32) {
    %c0_i32 = arith.constant 0 : i32
    %c0_i32_0 = arith.constant 0 : i32
    %c0_i32_1 = arith.constant 0 : i32
    return %c0_i32, %c0_i32_0 : i32, i32
  }
}

</mosaic_0001>

<bundles_post_ra>
// kernel: crnn_forward.1
= control target key start
LH: loop header
LB: loop body
LE: loop exit
PB: predicated region body
PF: predicated region fallthrough
CT: control target
= control target key end

     0   :  { %v8433_v19 = vmov 0.0   ;;  %vm8434_vm0 = vmmov 0   ;;  %v8435_v22 = vmov 0   ;;  %vm336_vm1 = vcmask 261120   ;;  %s8437_s21 = smov 32   ;;  %s10534_s1 = inlined_call_operand.vmem [shape: bf16[128,32], index: 1, kind: input, shape index: {}]   ;;  %s10535_s0 = inlined_call_operand.vmem [shape: bf16[128,128], index: 0, kind: input, shape index: {}]   ;;  %s10536_s3 = inlined_call_operand.vmem [shape: bf16[32,128], index: 3, kind: input, shape index: {}]   ;;  %s10537_s4 = inlined_call_operand.vmem [shape: bf16[32,128], index: 4, kind: input, shape index: {}]   ;;  %s10538_s6 = inlined_call_operand.vmem [shape: bf16[32,128], index: 6, kind: input, shape index: {}]   ;;  %s10539_s7 = inlined_call_operand.vmem [shape: bf16[32,128], index: 7, kind: input, shape index: {}]   ;;  %s10540_s2 = inlined_call_operand.vmem [shape: f32[1,32], index: 2, kind: input, shape index: {}]   ;;  %s10541_s5 = inlined_call_operand.vmem [shape: f32[1,128], index: 5, kind: input, shape index: {}]   ;;  %s10542_s8 = inlined_call_operand.vmem [shape: f32[1,128], index: 8, kind: input, shape index: {}]   ;;  %s10543_s9 = inlined_call_operand.vmem [shape: bf16[64,128], index: 9, kind: input, shape index: {}]   ;;  %s10544_s12 = inlined_call_operand.vmem [shape: bf16[64,128], index: 12, kind: input, shape index: {}]   ;;  %s10545_s13 = inlined_call_operand.vmem [shape: bf16[32,128], index: 13, kind: input, shape index: {}]   ;;  %s10546_s10 = inlined_call_operand.vmem [shape: bf16[32,128], index: 10, kind: input, shape index: {}]   ;;  %s10547_s11 = inlined_call_operand.vmem [shape: f32[1,128], index: 11, kind: input, shape index: {}]   ;;  %s10548_s14 = inlined_call_operand.vmem [shape: f32[1,128], index: 14, kind: input, shape index: {}]   ;;  %s10549_s15 = inlined_call_operand.vmem [shape: bf16[64,128], index: 15, kind: input, shape index: {}]   ;;  %s10550_s16 = inlined_call_operand.vmem [shape: f32[1,128], index: 16, kind: input, shape index: {}]   ;;  %s10551_s17 = inlined_call_operand.vmem [shape: f32[128,128], index: 17, kind: output, shape index: {}]  }
   0x1   :  { %10554 = sst [smem:[#allocation8_spill]] %s10534_s1  ;;  %v7879_v16 = vld [vmem:[%s10536_s3 + $0x8] sm:$0xff]   ;;  %v7880_v17 = vld [vmem:[%s10536_s3] sm:$0xff]  }
   0x2   :  { %10555 = sst [smem:[#allocation9_spill]] %s10535_s0  ;;  %7186 = vmatprep.subr.bf16.mxu1 %v7879_v16  ;;  %v8585_v18 = vld [vmem:[%s10537_s4 + $0x8] sm:$0xff]   ;;  %v8593_v20 = vld [vmem:[%s10537_s4] sm:$0xff]   ;;  %s8436_s0 = smov 64  }
   0x3   :  { %s10556_s26 = sld [smem:[#allocation8_spill]]  ;;  %7187 = vmatpush3.bf16.msra.mxu1 %v7879_v16  ;;  %v7882_v21 = vld [vmem:[%s10538_s6 + $0x8] sm:$0xff]   ;;  %v8614_v24 = vld [vmem:[%s10539_s7] sm:$0xff]  }
   0x4   :  { %s10557_s20 = sld [smem:[#allocation9_spill]]  ;;  %7188 = vmatprep.subr.bf16.mxu1 %v7880_v17  ;;  %v8608_v23 = vld [vmem:[%s10539_s7 + $0x8] sm:$0xff]   ;;  %v6632_v27 = vld [vmem:[%s10540_s2] ss:$0 sm:$0xff] }
   0x5   :  { %v7884_v43 = vld [vmem:[%s10538_s6] sm:$0xff]  }
   0x7   :  { %7189 = vmatpush3.bf16.msra.mxu1 %v7880_v17 }
   0x8   :  { %7206 = vmatprep.subr.bf16.mxu1 %v7882_v21 }
   0x9   :  { %v7863_v0 = vld [vmem:[%s10556_s26 + $0x38] sm:$0xff]   ;;  %v7864_v1 = vld [vmem:[%s10556_s26 + $0x30] sm:$0xff]   ;;  %v7865_v2 = vld [vmem:[%s10556_s26 + $0x28] sm:$0xff]  }
   0xa   :  { %7154 = vmatprep.subr.bf16.mxu0 %v7863_v0  ;;  %v7866_v3 = vld [vmem:[%s10556_s26 + $0x20] sm:$0xff]   ;;  %v7867_v5 = vld [vmem:[%s10556_s26 + $0x18] sm:$0xff]   ;;  %v7868_v6 = vld [vmem:[%s10556_s26 + $0x10] sm:$0xff]  }
   0xb   :  { %7155 = vmatpush3.bf16.msra.mxu0 %v7863_v0  ;;  %v7871_v4 = vld [vmem:[%s10557_s20] sm:$0xff]   ;;  %v7869_v7 = vld [vmem:[%s10556_s26 + $0x8] sm:$0xff]   ;;  %v7873_v10 = vld [vmem:[%s10557_s20 + $0x10] sm:$0xff]  }
   0xc   :  { %7156 = vmatprep.subr.bf16.mxu0 %v7864_v1  ;;  %7170 = vmatprep.mubr.bf16.mxu0 %v7871_v4  ;;  %v7870_v8 = vld [vmem:[%s10556_s26] sm:$0xff]   ;;  %v7872_v9 = vld [vmem:[%s10557_s20 + $0x8] sm:$0xff]   ;;  %v7874_v11 = vld [vmem:[%s10557_s20 + $0x18] sm:$0xff]  }
   0xd   :  { %v7875_v12 = vld [vmem:[%s10557_s20 + $0x20] sm:$0xff]   ;;  %v7876_v13 = vld [vmem:[%s10557_s20 + $0x28] sm:$0xff]   ;;  %v7877_v14 = vld [vmem:[%s10557_s20 + $0x30] sm:$0xff]  }
   0xe   :  { %v7878_v15 = vld [vmem:[%s10557_s20 + $0x38] sm:$0xff]  }
   0xf   :  { %7157 = vmatpush3.bf16.msra.mxu0 %v7864_v1 }
  0x10   :  { %7158 = vmatprep.subr.bf16.mxu0 %v7865_v2 }
  0x13   :  { %7159 = vmatpush3.bf16.msra.mxu0 %v7865_v2 }
  0x14   :  { %7160 = vmatprep.subr.bf16.mxu0 %v7866_v3 }
  0x17   :  { %7161 = vmatpush3.bf16.msra.mxu0 %v7866_v3 }
  0x18   :  { %7162 = vmatprep.subr.bf16.mxu0 %v7867_v5 }
  0x1b   :  { %7163 = vmatpush3.bf16.msra.mxu0 %v7867_v5 }
  0x1c   :  { %7164 = vmatprep.subr.bf16.mxu0 %v7868_v6 }
  0x1f   :  { %7165 = vmatpush3.bf16.msra.mxu0 %v7868_v6 }
  0x20   :  { %7166 = vmatprep.subr.bf16.mxu0 %v7869_v7 }
  0x23   :  { %7167 = vmatpush3.bf16.msra.mxu0 %v7869_v7 }
  0x24   :  { %7168 = vmatprep.subr.bf16.mxu0 %v7870_v8 }
  0x27   :  { %7169 = vmatpush3.bf16.msra.mxu0 %v7870_v8 }
  0x28   :  { %7226 = vmatprep.subr.bf16.mxu0 %v8433_v19 }
  0x2a   :  { %7171 = vmatmul.mubr.bf16.vlgmr.msra.gmra.mxu0 %v7872_v9 }
  0x2b   :  { %7174 = vmatprep.mubr.bf16.mxu0 %v7873_v10  ;;  %7227 = vmatpush3.bf16.msra.mxu0 %v8585_v18 }
  0x2c   :  { %7228 = vmatprep.subr.bf16.mxu0 %v8433_v19 }
  0x2f   :  { %7229 = vmatpush3.bf16.msra.mxu0 %v8593_v20 }
  0x30   :  { %7234 = vmatprep.subr.bf16.mxu0 %v8433_v19 }
  0x32   :  { %7175 = vmatmul.mubr.bf16.gmra.mxu0 %v7874_v11 }
  0x33   :  { %7178 = vmatprep.mubr.bf16.mxu0 %v7875_v12 }
  0x3a   :  { %7179 = vmatmul.mubr.bf16.gmra.mxu0 %v7876_v13 }
  0x3b   :  { %7182 = vmatprep.mubr.bf16.mxu0 %v7877_v14 }
  0x42   :  { %7183 = vmatmul.mubr.bf16.gmra.mxu0 %v7878_v15 }
  0x43   :  { %7230 = vmatprep.mubr.msk.bf16.mxu0 %vm8434_vm0, %v8433_v19 }
  0x4a   :  { %7231 = vmatmul.mubr.bf16.vlgmr.msra.gmra.mxu0 %v8435_v22 }
  0x4b   :  { %7238 = vmatprep.mubr.msk.bf16.mxu0 %vm8434_vm0, %v8433_v19  ;;  %7235 = vmatpush3.bf16.msra.mxu0 %v8608_v23 }
  0x4c   :  { %7236 = vmatprep.subr.bf16.mxu0 %v8433_v19 }
  0x4f   :  { %7237 = vmatpush3.bf16.msra.mxu0 %v8614_v24 }
  0x50   :  { %7250 = vmatprep.subr.bf16.mxu0 %v8433_v19 }
  0x52   :  { %7239 = vmatmul.mubr.bf16.vlgmr.msra.gmra.mxu0 %v8435_v22 }
  0x53   :  { %7251 = vmatpush3.bf16.msra.mxu0 %v8608_v23  ;;  %7254 = vmatprep.mubr.msk.bf16.mxu0 %vm8434_vm0, %v8433_v19 }
  0x54   :  { %7252 = vmatprep.subr.bf16.mxu0 %v8433_v19 }
  0x57   :  { %7253 = vmatpush3.bf16.msra.mxu0 %v8614_v24 }
  0x58   :  { %7266 = vmatprep.subr.bf16.mxu0 %v8433_v19 }
  0xea   :  { %v7172_v25 = vpop.f32.mrf.mxu0 }
  0xeb   :  { %v235_v31 = vadd.f32 %v7172_v25, %v6632_v27 }
  0xec   :  { %v226_v26 = vpop.f32.mrf.mxu0 }
  0xed   :  { %v227_v29 = vadd.f32 %v6632_v27, %v226_v26  ;;  %v291_v38 = vmax.f32 %v235_v31, 0.0 }
  0xee   :  { %v7173_v28 = vpop.f32.mrf.mxu0 }
  0xef   :  { %v238_v30 = vadd.f32 %v7173_v28, %v6632_v27  ;;  %v289_v36 = vmax.f32 %v227_v29, 0.0 }
  0xf0   :  { %v229_v32 = vpop.f32.mrf.mxu0 }
  0xf1   :  { %v230_v33 = vadd.f32 %v6632_v27, %v229_v32  ;;  %v292_v34 = vmax.f32 %v238_v30, 0.0 }
  0xf2   :  { %v7176_v35 = vpop.f32.mrf.mxu0 }
  0xf3   :  { %v290_v37 = vmax.f32 %v230_v33, 0.0  ;;  %v306_v41 = vpack.c.bf16 %v292_v34, %v291_v38  ;;  %v251_v46 = vadd.f32 %v7176_v35, %v6632_v27  ;;  %v8662_v33 = vld [vmem:[%s10541_s5] ss:$0 sm:$0xff] }
  0xf4   :  { %v242_v39 = vpop.f32.mrf.mxu0 }
  0xf5   :  { %v305_v40 = vpack.c.bf16 %v290_v37, %v289_v36  ;;  %v243_v44 = vadd.f32 %v6632_v27, %v242_v39  ;;  %v295_v53 = vmax.f32 %v251_v46, 0.0 }
  0xf6   :  { %v7177_v42 = vpop.f32.mrf.mxu0 }
  0xf7   :  { %v254_v45 = vadd.f32 %v7177_v42, %v6632_v27  ;;  %7190 = vmatprep.mubr.msk.bf16.mxu1 %vm336_vm1, %v305_v40  ;;  %v293_v51 = vmax.f32 %v243_v44, 0.0 }
  0xf8   :  { %v245_v47 = vpop.f32.mrf.mxu0  ;;  %7191 = vmatmul.mubr.msk.bf16.vlgmr.msra.gmra.mxu1 %vm336_vm1, %v306_v41 }
  0xf9   :  { %v246_v48 = vadd.f32 %v6632_v27, %v245_v47  ;;  %7207 = vmatpush3.bf16.msra.mxu1 %v7882_v21  ;;  %v296_v49 = vmax.f32 %v254_v45, 0.0 }
  0xfa   :  { %v7180_v50 = vpop.f32.mrf.mxu0  ;;  %7208 = vmatprep.subr.bf16.mxu1 %v7884_v43 }
  0xfb   :  { %v294_v52 = vmax.f32 %v246_v48, 0.0  ;;  %v308_v56 = vpack.c.bf16 %v296_v49, %v295_v53  ;;  %v267_v60 = vadd.f32 %v7180_v50, %v6632_v27 }
  0xfc   :  { %v258_v54 = vpop.f32.mrf.mxu0 }
  0xfd   :  { %v307_v55 = vpack.c.bf16 %v294_v52, %v293_v51  ;;  %7209 = vmatpush3.bf16.msra.mxu1 %v7884_v43  ;;  %v259_v58 = vadd.f32 %v6632_v27, %v258_v54  ;;  %v299_v3 = vmax.f32 %v267_v60, 0.0 }
  0xfe   :  { %v7181_v57 = vpop.f32.mrf.mxu0  ;;  %7242 = vmatprep.subr.bf16.mxu1 %v8433_v19 }
  0xff   :  { %v270_v59 = vadd.f32 %v7181_v57, %v6632_v27  ;;  %7194 = vmatprep.mubr.msk.bf16.mxu1 %vm336_vm1, %v307_v55  ;;  %v297_v1 = vmax.f32 %v259_v58, 0.0 }
 0x100   :  { %v261_v61 = vpop.f32.mrf.mxu0  ;;  %7195 = vmatmul.mubr.msk.bf16.gmra.mxu1 %vm336_vm1, %v308_v56 }
 0x101   :  { %v262_v62 = vadd.f32 %v6632_v27, %v261_v61  ;;  %v300_v63 = vmax.f32 %v270_v59, 0.0  ;;  %v8708_v61 = vld [vmem:[%s10542_s8] ss:$0 sm:$0xff] }
 0x102   :  { %v7184_v0 = vpop.f32.mrf.mxu0 }
 0x103   :  { %v298_v2 = vmax.f32 %v262_v62, 0.0  ;;  %v310_v6 = vpack.c.bf16 %v300_v63, %v299_v3  ;;  %v283_v10 = vadd.f32 %v7184_v0, %v6632_v27 }
 0x104   :  { %v274_v4 = vpop.f32.mrf.mxu0 }
 0x105   :  { %v309_v5 = vpack.c.bf16 %v298_v2, %v297_v1  ;;  %v275_v8 = vadd.f32 %v6632_v27, %v274_v4  ;;  %v303_v16 = vmax.f32 %v283_v10, 0.0 }
 0x106   :  { %v7185_v7 = vpop.f32.mrf.mxu0 }
 0x107   :  { %v286_v9 = vadd.f32 %v7185_v7, %v6632_v27  ;;  %7198 = vmatprep.mubr.msk.bf16.mxu1 %vm336_vm1, %v309_v5  ;;  %v301_v14 = vmax.f32 %v275_v8, 0.0 }
 0x108   :  { %v277_v11 = vpop.f32.mrf.mxu0  ;;  %7199 = vmatmul.mubr.msk.bf16.gmra.mxu1 %vm336_vm1, %v310_v6 }
 0x109   :  { %v278_v12 = vadd.f32 %v6632_v27, %v277_v11  ;;  %v304_v13 = vmax.f32 %v286_v9, 0.0 }
 0x10a   :  { %v8655_v25 = vpop.f32.mrf.mxu0 }
 0x10b   :  { %v302_v15 = vmax.f32 %v278_v12, 0.0  ;;  %v312_v21 = vpack.c.bf16 %v304_v13, %v303_v16 }
 0x10c   :  { %v7232_v26 = vpop.f32.mrf.mxu0 }
 0x10d   :  { %v311_v17 = vpack.c.bf16 %v302_v15, %v301_v14 }
 0x10e   :  { %v671_v27 = vpop.f32.mrf.mxu0 }
 0x10f   :  { %7202 = vmatprep.mubr.msk.bf16.mxu1 %vm336_vm1, %v311_v17 }
 0x110   :  { %7203 = vmatmul.mubr.msk.bf16.gmra.mxu1 %vm336_vm1, %v312_v21  ;;  %v7233_v28 = vpop.f32.mrf.mxu0 }
 0x111   :  { %7210 = vmatprep.mubr.msk.bf16.mxu1 %vm336_vm1, %v305_v40 }
 0x112   :  { %v8657_v29 = vpop.f32.mrf.mxu0 }
 0x114   :  { %v7240_v30 = vpop.f32.mrf.mxu0 }
 0x116   :  { %v725_v31 = vpop.f32.mrf.mxu0 }
 0x118   :  { %7211 = vmatmul.mubr.msk.bf16.vlgmr.msra.gmra.mxu1 %vm336_vm1, %v306_v41  ;;  %v7241_v32 = vpop.f32.mrf.mxu0 }
 0x119   :  { %7214 = vmatprep.mubr.msk.bf16.mxu1 %vm336_vm1, %v307_v55  ;;  %7243 = vmatpush3.bf16.msra.mxu1 %v8585_v18 }
 0x11a   :  { %7244 = vmatprep.subr.bf16.mxu1 %v8433_v19 }
 0x11d   :  { %7245 = vmatpush3.bf16.msra.mxu1 %v8593_v20 }
 0x11e   :  { %7258 = vmatprep.subr.bf16.mxu1 %v8433_v19 }
 0x120   :  { %7215 = vmatmul.mubr.msk.bf16.gmra.mxu1 %vm336_vm1, %v308_v56 }
 0x121   :  { %7218 = vmatprep.mubr.msk.bf16.mxu1 %vm336_vm1, %v309_v5 }
 0x128   :  { %7219 = vmatmul.mubr.msk.bf16.gmra.mxu1 %vm336_vm1, %v310_v6 }
 0x129   :  { %7222 = vmatprep.mubr.msk.bf16.mxu1 %vm336_vm1, %v311_v17 }
 0x130   :  { %7223 = vmatmul.mubr.msk.bf16.gmra.mxu1 %vm336_vm1, %v312_v21 }
 0x131   :  { %7246 = vmatprep.mubr.msk.bf16.mxu1 %vm8434_vm0, %v8433_v19 }
 0x1b8   :  { %v7192_v34 = vpop.f32.mrf.mxu1 }
 0x1b9   :  { %v8665_v35 = vadd.f32 %v7192_v34, %v8662_v33 }
 0x1ba   :  { %v395_v36 = vpop.f32.mrf.mxu1 }
 0x1bb   :  { %v396_v32 = vadd.f32 %v8662_v33, %v395_v36 }
 0x1bc   :  { %v7193_v37 = vpop.f32.mrf.mxu1 }
 0x1bd   :  { %v8668_v38 = vadd.f32 %v7193_v37, %v8662_v33 }
 0x1be   :  { %v8670_v39 = vpop.f32.mrf.mxu1 }
 0x1c0   :  { %v7196_v40 = vpop.f32.mrf.mxu1 }
 0x1c1   :  { %v8673_v41 = vadd.f32 %v7196_v40, %v8662_v33  ;;  %v674_v40 = vadd.f32 %v8655_v25, %v396_v32 }
 0x1c2   :  { %v411_v42 = vpop.f32.mrf.mxu1 }
 0x1c3   :  { %v8676_v43 = vadd.f32 %v8662_v33, %v411_v42 }
 0x1c4   :  { %v7197_v44 = vpop.f32.mrf.mxu1 }
 0x1c5   :  { %v8679_v45 = vadd.f32 %v7197_v44, %v8662_v33 }
 0x1c6   :  { %v8681_v46 = vpop.f32.mrf.mxu1 }
 0x1c8   :  { %v7200_v47 = vpop.f32.mrf.mxu1 }
 0x1c9   :  { %v8684_v48 = vadd.f32 %v7200_v47, %v8662_v33 }
 0x1ca   :  { %v427_v49 = vpop.f32.mrf.mxu1 }
 0x1cb   :  { %v8687_v50 = vadd.f32 %v8662_v33, %v427_v49  ;;  %v6675_v49 = vmul.f32 -1.442695, %v674_v40 }
 0x1cc   :  { %v7201_v51 = vpop.f32.mrf.mxu1 }
 0x1cd   :  { %v8690_v52 = vadd.f32 %v7201_v51, %v8662_v33 }
 0x1ce   :  { %v8692_v53 = vpop.f32.mrf.mxu1 }
 0x1d0   :  { %v7204_v54 = vpop.f32.mrf.mxu1 }
 0x1d1   :  { %v8695_v55 = vadd.f32 %v7204_v54, %v8662_v33 }
 0x1d2   :  { %v443_v56 = vpop.f32.mrf.mxu1 }
 0x1d3   :  { %v8698_v57 = vadd.f32 %v8662_v33, %v443_v56 }
 0x1d4   :  { %v7205_v58 = vpop.f32.mrf.mxu1 }
 0x1d5   :  { %v8701_v59 = vadd.f32 %v7205_v58, %v8662_v33 }
 0x1d6   :  { %v8703_v60 = vpop.f32.mrf.mxu1 }
 0x1d8   :  { %v7212_v62 = vpop.f32.mrf.mxu1 }
 0x1d9   :  { %v8711_v63 = vadd.f32 %v7212_v62, %v8708_v61 }
 0x1da   :  { %v531_v0 = vpop.f32.mrf.mxu1 }
 0x1db   :  { %v8714_v1 = vadd.f32 %v8708_v61, %v531_v0 }
 0x1dc   :  { %v7213_v2 = vpop.f32.mrf.mxu1 }
 0x1dd   :  { %v8717_v3 = vadd.f32 %v7213_v2, %v8708_v61 }
 0x1de   :  { %v8719_v4 = vpop.f32.mrf.mxu1 }
 0x1e0   :  { %v7216_v5 = vpop.f32.mrf.mxu1 }
 0x1e1   :  { %v8722_v6 = vadd.f32 %v7216_v5, %v8708_v61 }
 0x1e2   :  { %v547_v7 = vpop.f32.mrf.mxu1 }
 0x1e3   :  { %v8725_v8 = vadd.f32 %v8708_v61, %v547_v7 }
 0x1e4   :  { %v7217_v9 = vpop.f32.mrf.mxu1 }
 0x1e5   :  { %v8728_v10 = vadd.f32 %v7217_v9, %v8708_v61 }
 0x1e6   :  { %v8730_v11 = vpop.f32.mrf.mxu1 }
 0x1e8   :  { %v7220_v12 = vpop.f32.mrf.mxu1 }
 0x1e9   :  { %v8733_v13 = vadd.f32 %v7220_v12, %v8708_v61 }
 0x1ea   :  { %v563_v14 = vpop.f32.mrf.mxu1 }
 0x1eb   :  { %v8736_v15 = vadd.f32 %v8708_v61, %v563_v14 }
 0x1ec   :  { %v7221_v16 = vpop.f32.mrf.mxu1 }
 0x1ed   :  { %v8739_v17 = vadd.f32 %v7221_v16, %v8708_v61 }
 0x1ee   :  { %v8741_v21 = vpop.f32.mrf.mxu1 }
 0x1f0   :  { %v7224_v26 = vpop.f32.mrf.mxu1 }
 0x1f1   :  { %v8744_v27 = vadd.f32 %v7224_v26, %v8708_v61 }
 0x1f2   :  { %v579_v28 = vpop.f32.mrf.mxu1 }
 0x1f3   :  { %v8747_v30 = vadd.f32 %v8708_v61, %v579_v28 }
 0x1f4   :  { %v7225_v31 = vpop.f32.mrf.mxu1 }
 0x1f5   :  { %v591_v34 = vadd.f32 %v7225_v31, %v8708_v61 }
 0x1f7   :  { %v728_v37 = vadd.f32 %v8657_v29, %v591_v34 }
 0x1f9   :  { %7903 = vtanh.f32 %v728_v37  ;;  %v6676_v47 = vmul.f32 -1.442695, %v728_v37 }
 0x1fa   :  { %7905 = vtanh.f32 %v674_v40 }
 0x1fb   :  { %7907 = vpow2.f32 %v6676_v47 }
 0x1fc   :  { %7909 = vpow2.f32 %v6675_v49 }
 0x206   :  { %v7904_v42 = vpop.eup %7903 }
 0x207   :  { %762 = vrot.lane.b32.xlu0 %v7904_v42, %s8436_s0  ;;  %v7906_v44 = vpop.eup %7905 }
 0x208   :  { %v7908_v36 = vpop.eup %7907 }
 0x209   :  { %v756_v51 = vadd.f32 1.0, %v7908_v36  ;;  %v7910_v54 = vpop.eup %7909 }
 0x20a   :  { %v732_v56 = vadd.f32 1.0, %v7910_v54 }
 0x20b   :  { %738 = vrot.lane.b32.xlu0 %v7906_v44, %s8436_s0  ;;  %7911 = vrcp.f32 %v756_v51  ;;  %v8790_v51 = vpop.f32.mrf.mxu1 }
 0x20c   :  { %7913 = vrcp.f32 %v732_v56  ;;  %v399_v56 = vadd.f32 %v8662_v33, %v8670_v39 }
 0x218   :  { %v7912_v25 = vpop.eup %7911 }
 0x219   :  { %v7914_v62 = vpop.eup %7913  ;;  %v760_v5 = vmul.f32 0.0, %v7912_v25 }
 0x21a   :  { %v736_v12 = vmul.f32 0.0, %v7914_v62 }
 0x279   :  { %v763_v29 = vpop.permute.xlu0 %762 }
 0x27a   :  { %v765_v58 = vmul.f32 %v7912_v25, %v763_v29 }
 0x27c   :  { %767 = vrot.lane.b32.xlu1 %v765_v58, %s8437_s21 }
 0x27d   :  { %v739_v0 = vpop.permute.xlu0 %738 }
 0x27e   :  { %v741_v2 = vmul.f32 %v7914_v62, %v739_v0 }
 0x280   :  { %743 = vrot.lane.b32.xlu1 %v741_v2, %s8437_s21 }
 0x2ee   :  { %v768_v7 = vpop.permute.xlu1 %767 }
 0x2ef   :  { %v8757_v9 = vadd.f32 %v768_v7, %v760_v5 }
 0x2f1   :  { %7915 = vtanh.f32 %v8757_v9 }
 0x2f2   :  { %v744_v14 = vpop.permute.xlu1 %743 }
 0x2f3   :  { %v8760_v16 = vadd.f32 %v744_v14, %v736_v12 }
 0x2f5   :  { %7917 = vtanh.f32 %v8760_v16 }
 0x2fe   :  { %v7916_v26 = vpop.eup %7915 }
 0x2ff   :  { %773 = vrot.lane.b32.xlu0 %v7916_v26, %s8436_s0 }
 0x302   :  { %v7918_v28 = vpop.eup %7917 }
 0x303   :  { %749 = vrot.lane.b32.xlu1 %v7918_v28, %s8436_s0 }
 0x371   :  { %v774_v31 = vpop.permute.xlu0 %773 }
 0x372   :  { %v8765_v32 = vmul.f32 %v7912_v25, %v774_v31 }
 0x374   :  { %v837_v34 = vpack.c.bf16 %v8765_v32, %v8765_v32 }
 0x375   :  { %v750_v37 = vpop.permute.xlu1 %749 }
 0x376   :  { %v8769_v40 = vmul.f32 %v7914_v62, %v750_v37  ;;  %839 = vrot.lane.b32.xlu0 %v837_v34, %s8437_s21 }
 0x378   :  { %v788_v42 = vpack.c.bf16 %v8769_v40, %v8769_v40 }
 0x37a   :  { %790 = vrot.lane.b32.xlu1 %v788_v42, %s8437_s21 }
 0x3e8   :  { %v840_v44 = vpop.permute.xlu0 %839 }
 0x3e9   :  { %7255 = vmatmul.mubr.msk.bf16.vlgmr.msra.gmra.mxu0 %vm336_vm1, %v840_v44 }
 0x3ea   :  { %7267 = vmatpush3.bf16.msra.mxu0 %v8608_v23  ;;  %7270 = vmatprep.mubr.msk.bf16.mxu0 %vm8434_vm0, %v8433_v19 }
 0x3eb   :  { %7268 = vmatprep.subr.bf16.mxu0 %v8433_v19 }
 0x3ec   :  { %v791_v47 = vpop.permute.xlu1 %790 }
 0x3ed   :  { %7247 = vmatmul.mubr.msk.bf16.vlgmr.msra.gmra.mxu1 %vm336_vm1, %v791_v47 }
 0x3ee   :  { %7269 = vmatpush3.bf16.msra.mxu0 %v8614_v24  ;;  %7259 = vmatpush3.bf16.msra.mxu1 %v8585_v18 }
 0x3ef   :  { %7260 = vmatprep.subr.bf16.mxu1 %v8433_v19  ;;  %7262 = vmatprep.mubr.msk.bf16.mxu1 %vm8434_vm0, %v8433_v19 }
 0x3f0   :  { %7282 = vmatprep.subr.bf16.mxu0 %v8433_v19 }
 0x3f2   :  { %7261 = vmatpush3.bf16.msra.mxu1 %v8593_v20 }
 0x3f3   :  { %7274 = vmatprep.subr.bf16.mxu1 %v8433_v19 }
 0x4a9   :  { %v878_v49 = vpop.f32.mrf.mxu0 }
 0x4aa   :  { %v884_v36 = vadd.f32 %v878_v49, %v8744_v27 }
 0x4ab   :  { %v7256_v54 = vpop.f32.mrf.mxu0 }
 0x4ac   :  { %7919 = vtanh.f32 %v884_v36  ;;  %v6680_v27 = vmul.f32 -1.442695, %v884_v36 }
 0x4ad   :  { %v829_v25 = vpop.f32.mrf.mxu1  ;;  %v881_v29 = vpop.f32.mrf.mxu0 }
 0x4ae   :  { %v835_v58 = vadd.f32 %v829_v25, %v399_v56 }
 0x4af   :  { %v7248_v62 = vpop.f32.mrf.mxu1  ;;  %v7257_v0 = vpop.f32.mrf.mxu0 }
 0x4b0   :  { %7921 = vtanh.f32 %v835_v58  ;;  %v6679_v14 = vmul.f32 -1.442695, %v835_v58 }
 0x4b1   :  { %v832_v2 = vpop.f32.mrf.mxu1  ;;  %7923 = vpow2.f32 %v6680_v27 }
 0x4b2   :  { %7925 = vpow2.f32 %v6679_v14 }
 0x4b3   :  { %v7249_v5 = vpop.f32.mrf.mxu1 }
 0x4b9   :  { %v7920_v7 = vpop.eup %7919 }
 0x4ba   :  { %918 = vrot.lane.b32.xlu0 %v7920_v7, %s8436_s0 }
 0x4bd   :  { %v7922_v12 = vpop.eup %7921 }
 0x4be   :  { %894 = vrot.lane.b32.xlu1 %v7922_v12, %s8436_s0  ;;  %v7924_v39 = vpop.eup %7923 }
 0x4bf   :  { %v912_v26 = vadd.f32 1.0, %v7924_v39  ;;  %v7926_v28 = vpop.eup %7925  ;;  %v583_v39 = vadd.f32 %v8708_v61, %v8790_v51 }
 0x4c0   :  { %v888_v31 = vadd.f32 1.0, %v7926_v28 }
 0x4c1   :  { %7927 = vrcp.f32 %v912_v26 }
 0x4c2   :  { %7929 = vrcp.f32 %v888_v31 }
 0x4ce   :  { %v7928_v34 = vpop.eup %7927 }
 0x4cf   :  { %v7930_v44 = vpop.eup %7929  ;;  %v916_v36 = vmul.f32 %v7928_v34, %v8757_v9 }
 0x4d0   :  { %v892_v25 = vmul.f32 %v7930_v44, %v8760_v16 }
 0x52c   :  { %v919_v37 = vpop.permute.xlu0 %918 }
 0x52d   :  { %v921_v42 = vmul.f32 %v7928_v34, %v919_v37 }
 0x52f   :  { %923 = vrot.lane.b32.xlu0 %v921_v42, %s8437_s21 }
 0x530   :  { %v895_v47 = vpop.permute.xlu1 %894 }
 0x531   :  { %v897_v49 = vmul.f32 %v7930_v44, %v895_v47 }
 0x533   :  { %899 = vrot.lane.b32.xlu1 %v897_v49, %s8437_s21 }
 0x5a1   :  { %v924_v54 = vpop.permute.xlu0 %923 }
 0x5a2   :  { %v8799_v56 = vadd.f32 %v924_v54, %v916_v36 }
 0x5a4   :  { %7931 = vtanh.f32 %v8799_v56 }
 0x5a5   :  { %v900_v29 = vpop.permute.xlu1 %899 }
 0x5a6   :  { %v8803_v58 = vadd.f32 %v900_v29, %v892_v25 }
 0x5a8   :  { %7933 = vtanh.f32 %v8803_v58 }
 0x5b1   :  { %v7932_v62 = vpop.eup %7931 }
 0x5b2   :  { %929 = vrot.lane.b32.xlu0 %v7932_v62, %s8436_s0 }
 0x5b5   :  { %v7934_v0 = vpop.eup %7933 }
 0x5b6   :  { %905 = vrot.lane.b32.xlu1 %v7934_v0, %s8436_s0 }
 0x624   :  { %v930_v2 = vpop.permute.xlu0 %929 }
 0x625   :  { %v8808_v9 = vmul.f32 %v7928_v34, %v930_v2 }
 0x627   :  { %v993_v5 = vpack.c.bf16 %v8808_v9, %v8808_v9 }
 0x628   :  { %v906_v7 = vpop.permute.xlu1 %905 }
 0x629   :  { %v8812_v12 = vmul.f32 %v7930_v44, %v906_v7  ;;  %995 = vrot.lane.b32.xlu0 %v993_v5, %s8437_s21 }
 0x62b   :  { %v944_v16 = vpack.c.bf16 %v8812_v12, %v8812_v12 }
 0x62d   :  { %946 = vrot.lane.b32.xlu1 %v944_v16, %s8437_s21 }
 0x69b   :  { %v996_v27 = vpop.permute.xlu0 %995 }
 0x69c   :  { %7271 = vmatmul.mubr.msk.bf16.vlgmr.msra.gmra.mxu0 %vm336_vm1, %v996_v27 }
 0x69d   :  { %7283 = vmatpush3.bf16.msra.mxu0 %v8608_v23  ;;  %7286 = vmatprep.mubr.msk.bf16.mxu0 %vm8434_vm0, %v8433_v19 }
 0x69e   :  { %7284 = vmatprep.subr.bf16.mxu0 %v8433_v19 }
 0x69f   :  { %v947_v14 = vpop.permute.xlu1 %946 }
 0x6a0   :  { %7263 = vmatmul.mubr.msk.bf16.vlgmr.msra.gmra.mxu1 %vm336_vm1, %v947_v14 }
 0x6a1   :  { %7285 = vmatpush3.bf16.msra.mxu0 %v8614_v24  ;;  %7275 = vmatpush3.bf16.msra.mxu1 %v8585_v18 }
 0x6a2   :  { %7276 = vmatprep.subr.bf16.mxu1 %v8433_v19  ;;  %7278 = vmatprep.mubr.msk.bf16.mxu1 %vm8434_vm0, %v8433_v19 }
 0x6a3   :  { %7298 = vmatprep.subr.bf16.mxu0 %v8433_v19 }
 0x6a5   :  { %7277 = vmatpush3.bf16.msra.mxu1 %v8593_v20 }
 0x6a6   :  { %7290 = vmatprep.subr.bf16.mxu1 %v8433_v19 }
 0x75c   :  { %v1034_v26 = vpop.f32.mrf.mxu0 }
 0x75d   :  { %v1040_v28 = vadd.f32 %v1034_v26, %v583_v39 }
 0x75e   :  { %v7272_v31 = vpop.f32.mrf.mxu0 }
 0x75f   :  { %7935 = vtanh.f32 %v1040_v28  ;;  %v6684_v51 = vmul.f32 -1.442695, %v1040_v28 }
 0x760   :  { %v985_v34 = vpop.f32.mrf.mxu1  ;;  %v1037_v37 = vpop.f32.mrf.mxu0 }
 0x761   :  { %v991_v42 = vadd.f32 %v985_v34, %v8665_v35 }
 0x762   :  { %v7264_v44 = vpop.f32.mrf.mxu1  ;;  %v7273_v47 = vpop.f32.mrf.mxu0 }
 0x763   :  { %7937 = vtanh.f32 %v991_v42  ;;  %v6683_v29 = vmul.f32 -1.442695, %v991_v42 }
 0x764   :  { %v988_v49 = vpop.f32.mrf.mxu1  ;;  %7939 = vpow2.f32 %v6684_v51 }
 0x765   :  { %7941 = vpow2.f32 %v6683_v29 }
 0x766   :  { %v7265_v36 = vpop.f32.mrf.mxu1 }
 0x76c   :  { %v7936_v54 = vpop.eup %7935 }
 0x76d   :  { %1074 = vrot.lane.b32.xlu0 %v7936_v54, %s8436_s0 }
 0x770   :  { %v7938_v25 = vpop.eup %7937 }
 0x771   :  { %1050 = vrot.lane.b32.xlu1 %v7938_v25, %s8436_s0  ;;  %v7940_v62 = vpop.eup %7939 }
 0x772   :  { %v1068_v0 = vadd.f32 1.0, %v7940_v62  ;;  %v7942_v2 = vpop.eup %7941 }
 0x773   :  { %v1044_v35 = vadd.f32 1.0, %v7942_v2 }
 0x774   :  { %7943 = vrcp.f32 %v1068_v0 }
 0x775   :  { %7945 = vrcp.f32 %v1044_v35 }
 0x781   :  { %v7944_v5 = vpop.eup %7943 }
 0x782   :  { %v7946_v27 = vpop.eup %7945  ;;  %v1072_v26 = vmul.f32 %v7944_v5, %v8799_v56 }
 0x783   :  { %v1048_v34 = vmul.f32 %v7946_v27, %v8803_v58 }
 0x7df   :  { %v1075_v7 = vpop.permute.xlu0 %1074 }
 0x7e0   :  { %v1077_v16 = vmul.f32 %v7944_v5, %v1075_v7 }
 0x7e2   :  { %1079 = vrot.lane.b32.xlu0 %v1077_v16, %s8437_s21 }
 0x7e3   :  { %v1051_v14 = vpop.permute.xlu1 %1050 }
 0x7e4   :  { %v1053_v39 = vmul.f32 %v7946_v27, %v1051_v14 }
 0x7e6   :  { %1055 = vrot.lane.b32.xlu1 %v1053_v39, %s8437_s21 }
 0x854   :  { %v1080_v28 = vpop.permute.xlu0 %1079 }
 0x855   :  { %v8840_v31 = vadd.f32 %v1080_v28, %v1072_v26 }
 0x857   :  { %7947 = vtanh.f32 %v8840_v31 }
 0x858   :  { %v1056_v37 = vpop.permute.xlu1 %1055 }
 0x859   :  { %v8844_v42 = vadd.f32 %v1056_v37, %v1048_v34 }
 0x85b   :  { %7949 = vtanh.f32 %v8844_v42 }
 0x864   :  { %v7948_v44 = vpop.eup %7947 }
 0x865   :  { %1085 = vrot.lane.b32.xlu0 %v7948_v44, %s8436_s0 }
 0x868   :  { %v7950_v47 = vpop.eup %7949 }
 0x869   :  { %1061 = vrot.lane.b32.xlu1 %v7950_v47, %s8436_s0 }
 0x8d7   :  { %v1086_v49 = vpop.permute.xlu0 %1085 }
 0x8d8   :  { %v8849_v56 = vmul.f32 %v7944_v5, %v1086_v49 }
 0x8da   :  { %v1149_v36 = vpack.c.bf16 %v8849_v56, %v8849_v56 }
 0x8db   :  { %v1062_v54 = vpop.permute.xlu1 %1061 }
 0x8dc   :  { %v8853_v25 = vmul.f32 %v7946_v27, %v1062_v54  ;;  %1151 = vrot.lane.b32.xlu0 %v1149_v36, %s8437_s21 }
 0x8de   :  { %v1100_v58 = vpack.c.bf16 %v8853_v25, %v8853_v25 }
 0x8e0   :  { %1102 = vrot.lane.b32.xlu1 %v1100_v58, %s8437_s21 }
 0x94e   :  { %v1152_v51 = vpop.permute.xlu0 %1151 }
 0x94f   :  { %7287 = vmatmul.mubr.msk.bf16.vlgmr.msra.gmra.mxu0 %vm336_vm1, %v1152_v51 }
 0x950   :  { %7299 = vmatpush3.bf16.msra.mxu0 %v8608_v23  ;;  %7302 = vmatprep.mubr.msk.bf16.mxu0 %vm8434_vm0, %v8433_v19 }
 0x951   :  { %7300 = vmatprep.subr.bf16.mxu0 %v8433_v19 }
 0x952   :  { %v1103_v29 = vpop.permute.xlu1 %1102 }
 0x953   :  { %7279 = vmatmul.mubr.msk.bf16.vlgmr.msra.gmra.mxu1 %vm336_vm1, %v1103_v29 }
 0x954   :  { %7301 = vmatpush3.bf16.msra.mxu0 %v8614_v24  ;;  %7291 = vmatpush3.bf16.msra.mxu1 %v8585_v18 }
 0x955   :  { %7292 = vmatprep.subr.bf16.mxu1 %v8433_v19  ;;  %7294 = vmatprep.mubr.msk.bf16.mxu1 %vm8434_vm0, %v8433_v19 }
 0x956   :  { %7314 = vmatprep.subr.bf16.mxu0 %v8433_v19 }
 0x958   :  { %7293 = vmatpush3.bf16.msra.mxu1 %v8593_v20 }
 0x959   :  { %7306 = vmatprep.subr.bf16.mxu1 %v8433_v19 }
 0xa0f   :  { %v1190_v62 = vpop.f32.mrf.mxu0 }
 0xa10   :  { %v1196_v0 = vadd.f32 %v1190_v62, %v8747_v30 }
 0xa11   :  { %v7288_v2 = vpop.f32.mrf.mxu0 }
 0xa12   :  { %7951 = vtanh.f32 %v1196_v0  ;;  %v6688_v34 = vmul.f32 -1.442695, %v1196_v0 }
 0xa13   :  { %v1141_v35 = vpop.f32.mrf.mxu1  ;;  %v1193_v5 = vpop.f32.mrf.mxu0 }
 0xa14   :  { %v1147_v7 = vadd.f32 %v1141_v35, %v8668_v38 }
 0xa15   :  { %v7280_v16 = vpop.f32.mrf.mxu1  ;;  %v7289_v27 = vpop.f32.mrf.mxu0 }
 0xa16   :  { %7953 = vtanh.f32 %v1147_v7  ;;  %v6687_v30 = vmul.f32 -1.442695, %v1147_v7 }
 0xa17   :  { %v1144_v14 = vpop.f32.mrf.mxu1  ;;  %7955 = vpow2.f32 %v6688_v34 }
 0xa18   :  { %7957 = vpow2.f32 %v6687_v30 }
 0xa19   :  { %v7281_v39 = vpop.f32.mrf.mxu1 }
 0xa1f   :  { %v7952_v26 = vpop.eup %7951 }
 0xa20   :  { %1230 = vrot.lane.b32.xlu0 %v7952_v26, %s8436_s0 }
 0xa23   :  { %v7954_v28 = vpop.eup %7953 }
 0xa24   :  { %1206 = vrot.lane.b32.xlu1 %v7954_v28, %s8436_s0  ;;  %v7956_v37 = vpop.eup %7955 }
 0xa25   :  { %v1224_v44 = vadd.f32 1.0, %v7956_v37  ;;  %v7958_v47 = vpop.eup %7957 }
 0xa26   :  { %v1200_v38 = vadd.f32 1.0, %v7958_v47 }
 0xa27   :  { %7959 = vrcp.f32 %v1224_v44 }
 0xa28   :  { %7961 = vrcp.f32 %v1200_v38 }
 0xa34   :  { %v7960_v49 = vpop.eup %7959 }
 0xa35   :  { %v7962_v58 = vpop.eup %7961  ;;  %v1228_v62 = vmul.f32 %v7960_v49, %v8840_v31 }
 0xa36   :  { %v1204_v35 = vmul.f32 %v7962_v58, %v8844_v42 }
 0xa92   :  { %v1231_v36 = vpop.permute.xlu0 %1230 }
 0xa93   :  { %v1233_v54 = vmul.f32 %v7960_v49, %v1231_v36 }
 0xa95   :  { %1235 = vrot.lane.b32.xlu0 %v1233_v54, %s8437_s21 }
 0xa96   :  { %v1207_v51 = vpop.permute.xlu1 %1206 }
 0xa97   :  { %v1209_v29 = vmul.f32 %v7962_v58, %v1207_v51 }
 0xa99   :  { %1211 = vrot.lane.b32.xlu1 %v1209_v29, %s8437_s21 }
 0xb07   :  { %v1236_v0 = vpop.permute.xlu0 %1235 }
 0xb08   :  { %v8880_v2 = vadd.f32 %v1236_v0, %v1228_v62 }
 0xb0a   :  { %7963 = vtanh.f32 %v8880_v2 }
 0xb0b   :  { %v1212_v5 = vpop.permute.xlu1 %1211 }
 0xb0c   :  { %v8884_v7 = vadd.f32 %v1212_v5, %v1204_v35 }
 0xb0e   :  { %7965 = vtanh.f32 %v8884_v7 }
 0xb17   :  { %v7964_v16 = vpop.eup %7963 }
 0xb18   :  { %1241 = vrot.lane.b32.xlu0 %v7964_v16, %s8436_s0 }
 0xb1b   :  { %v7966_v27 = vpop.eup %7965 }
 0xb1c   :  { %1217 = vrot.lane.b32.xlu1 %v7966_v27, %s8436_s0 }
 0xb8a   :  { %v1242_v14 = vpop.permute.xlu0 %1241 }
 0xb8b   :  { %v8889_v31 = vmul.f32 %v7960_v49, %v1242_v14 }
 0xb8d   :  { %v1305_v39 = vpack.c.bf16 %v8889_v31, %v8889_v31 }
 0xb8e   :  { %v1218_v26 = vpop.permute.xlu1 %1217 }
 0xb8f   :  { %v8893_v28 = vmul.f32 %v7962_v58, %v1218_v26  ;;  %1307 = vrot.lane.b32.xlu0 %v1305_v39, %s8437_s21 }
 0xb91   :  { %v1256_v42 = vpack.c.bf16 %v8893_v28, %v8893_v28 }
 0xb93   :  { %1258 = vrot.lane.b32.xlu1 %v1256_v42, %s8437_s21 }
 0xc01   :  { %v1308_v34 = vpop.permute.xlu0 %1307 }
 0xc02   :  { %7303 = vmatmul.mubr.msk.bf16.vlgmr.msra.gmra.mxu0 %vm336_vm1, %v1308_v34 }
 0xc03   :  { %7315 = vmatpush3.bf16.msra.mxu0 %v8608_v23  ;;  %7318 = vmatprep.mubr.msk.bf16.mxu0 %vm8434_vm0, %v8433_v19 }
 0xc04   :  { %7316 = vmatprep.subr.bf16.mxu0 %v8433_v19 }
 0xc05   :  { %v1259_v30 = vpop.permute.xlu1 %1258 }
 0xc06   :  { %7295 = vmatmul.mubr.msk.bf16.vlgmr.msra.gmra.mxu1 %vm336_vm1, %v1259_v30 }
 0xc07   :  { %7317 = vmatpush3.bf16.msra.mxu0 %v8614_v24  ;;  %7307 = vmatpush3.bf16.msra.mxu1 %v8585_v18 }
 0xc08   :  { %7308 = vmatprep.subr.bf16.mxu1 %v8433_v19  ;;  %7310 = vmatprep.mubr.msk.bf16.mxu1 %vm8434_vm0, %v8433_v19 }
 0xc09   :  { %7330 = vmatprep.subr.bf16.mxu0 %v8433_v19 }
 0xc0b   :  { %7309 = vmatpush3.bf16.msra.mxu1 %v8593_v20 }
 0xc0c   :  { %7322 = vmatprep.subr.bf16.mxu1 %v8433_v19 }
 0xcc2   :  { %v1346_v37 = vpop.f32.mrf.mxu0 }
 0xcc3   :  { %v1352_v44 = vadd.f32 %v1346_v37, %v8739_v17 }
 0xcc4   :  { %v7304_v47 = vpop.f32.mrf.mxu0 }
 0xcc5   :  { %7967 = vtanh.f32 %v1352_v44  ;;  %v6692_v62 = vmul.f32 -1.442695, %v1352_v44 }
 0xcc6   :  { %v1297_v38 = vpop.f32.mrf.mxu1  ;;  %v1349_v49 = vpop.f32.mrf.mxu0 }
 0xcc7   :  { %v1303_v18 = vadd.f32 %v1297_v38, %v8676_v43 }
 0xcc8   :  { %v7296_v36 = vpop.f32.mrf.mxu1  ;;  %v7305_v54 = vpop.f32.mrf.mxu0 }
 0xcc9   :  { %7969 = vtanh.f32 %v1303_v18  ;;  %v6691_v17 = vmul.f32 -1.442695, %v1303_v18 }
 0xcca   :  { %v1300_v58 = vpop.f32.mrf.mxu1  ;;  %7971 = vpow2.f32 %v6692_v62  ;;  %v8949_v62 = vld [vmem:[%s10537_s4 + $0x8] sm:$0xff]  }
 0xccb   :  { %7973 = vpow2.f32 %v6691_v17 }
 0xccc   :  { %v7297_v51 = vpop.f32.mrf.mxu1 }
 0xcd2   :  { %v7968_v29 = vpop.eup %7967 }
 0xcd3   :  { %1386 = vrot.lane.b32.xlu0 %v7968_v29, %s8436_s0 }
 0xcd6   :  { %v7970_v20 = vpop.eup %7969 }
 0xcd7   :  { %1362 = vrot.lane.b32.xlu1 %v7970_v20, %s8436_s0  ;;  %v7972_v0 = vpop.eup %7971 }
 0xcd8   :  { %v1380_v35 = vadd.f32 1.0, %v7972_v0  ;;  %v7974_v5 = vpop.eup %7973 }
 0xcd9   :  { %v1356_v43 = vadd.f32 1.0, %v7974_v5 }
 0xcda   :  { %7975 = vrcp.f32 %v1380_v35  ;;  %v415_v35 = vadd.f32 %v8662_v33, %v8681_v46 }
 0xcdb   :  { %7977 = vrcp.f32 %v1356_v43 }
 0xce7   :  { %v7976_v16 = vpop.eup %7975 }
 0xce8   :  { %v7978_v39 = vpop.eup %7977  ;;  %v1384_v34 = vmul.f32 %v7976_v16, %v8880_v2 }
 0xce9   :  { %v1360_v44 = vmul.f32 %v7978_v39, %v8884_v7 }
 0xd45   :  { %v1387_v27 = vpop.permute.xlu0 %1386 }
 0xd46   :  { %v1389_v14 = vmul.f32 %v7976_v16, %v1387_v27 }
 0xd48   :  { %1391 = vrot.lane.b32.xlu0 %v1389_v14, %s8437_s21 }
 0xd49   :  { %v1363_v26 = vpop.permute.xlu1 %1362 }
 0xd4a   :  { %v1365_v42 = vmul.f32 %v7978_v39, %v1363_v26 }
 0xd4c   :  { %1367 = vrot.lane.b32.xlu1 %v1365_v42, %s8437_s21 }
 0xdba   :  { %v1392_v30 = vpop.permute.xlu0 %1391 }
 0xdbb   :  { %v8920_v37 = vadd.f32 %v1392_v30, %v1384_v34 }
 0xdbd   :  { %7979 = vtanh.f32 %v8920_v37 }
 0xdbe   :  { %v1368_v47 = vpop.permute.xlu1 %1367 }
 0xdbf   :  { %v8924_v38 = vadd.f32 %v1368_v47, %v1360_v44 }
 0xdc1   :  { %7981 = vtanh.f32 %v8924_v38 }
 0xdca   :  { %v7980_v49 = vpop.eup %7979 }
 0xdcb   :  { %1397 = vrot.lane.b32.xlu0 %v7980_v49, %s8436_s0 }
 0xdce   :  { %v7982_v18 = vpop.eup %7981 }
 0xdcf   :  { %1373 = vrot.lane.b32.xlu1 %v7982_v18, %s8436_s0 }
 0xe3d   :  { %v1398_v36 = vpop.permute.xlu0 %1397 }
 0xe3e   :  { %v8929_v2 = vmul.f32 %v7976_v16, %v1398_v36 }
 0xe40   :  { %v1461_v54 = vpack.c.bf16 %v8929_v2, %v8929_v2 }
 0xe41   :  { %v1374_v58 = vpop.permute.xlu1 %1373 }
 0xe42   :  { %v8933_v51 = vmul.f32 %v7978_v39, %v1374_v58  ;;  %1463 = vrot.lane.b32.xlu0 %v1461_v54, %s8437_s21 }
 0xe44   :  { %v1412_v7 = vpack.c.bf16 %v8933_v51, %v8933_v51 }
 0xe46   :  { %1414 = vrot.lane.b32.xlu1 %v1412_v7, %s8437_s21 }
 0xeb4   :  { %v1464_v29 = vpop.permute.xlu0 %1463 }
 0xeb5   :  { %7319 = vmatmul.mubr.msk.bf16.vlgmr.msra.gmra.mxu0 %vm336_vm1, %v1464_v29 }
 0xeb6   :  { %7331 = vmatpush3.bf16.msra.mxu0 %v8608_v23  ;;  %7334 = vmatprep.mubr.msk.bf16.mxu0 %vm8434_vm0, %v8433_v19  ;;  %v8959_v23 = vld [vmem:[%s10537_s4] sm:$0xff]  }
 0xeb7   :  { %7332 = vmatprep.subr.bf16.mxu0 %v8433_v19 }
 0xeb8   :  { %v1415_v20 = vpop.permute.xlu1 %1414 }
 0xeb9   :  { %7311 = vmatmul.mubr.msk.bf16.vlgmr.msra.gmra.mxu1 %vm336_vm1, %v1415_v20 }
 0xeba   :  { %7333 = vmatpush3.bf16.msra.mxu0 %v8614_v24  ;;  %7323 = vmatpush3.bf16.msra.mxu1 %v8949_v62 }
 0xebb   :  { %7324 = vmatprep.subr.bf16.mxu1 %v8433_v19  ;;  %7326 = vmatprep.mubr.msk.bf16.mxu1 %vm8434_vm0, %v8433_v19 }
 0xebc   :  { %7346 = vmatprep.subr.bf16.mxu0 %v8433_v19 }
 0xebe   :  { %7325 = vmatpush3.bf16.msra.mxu1 %v8959_v23 }
 0xebf   :  { %7338 = vmatprep.subr.bf16.mxu1 %v8433_v19 }
 0xf75   :  { %v1502_v24 = vpop.f32.mrf.mxu0 }
 0xf76   :  { %v1508_v17 = vadd.f32 %v1502_v24, %v8733_v13 }
 0xf77   :  { %v7320_v0 = vpop.f32.mrf.mxu0 }
 0xf78   :  { %7983 = vtanh.f32 %v1508_v17  ;;  %v6696_v13 = vmul.f32 -1.442695, %v1508_v17 }
 0xf79   :  { %v1453_v5 = vpop.f32.mrf.mxu1  ;;  %v1505_v43 = vpop.f32.mrf.mxu0 }
 0xf7a   :  { %v1459_v16 = vadd.f32 %v1453_v5, %v415_v35 }
 0xf7b   :  { %v7312_v27 = vpop.f32.mrf.mxu1  ;;  %v7321_v14 = vpop.f32.mrf.mxu0 }
 0xf7c   :  { %7985 = vtanh.f32 %v1459_v16  ;;  %v6695_v30 = vmul.f32 -1.442695, %v1459_v16 }
 0xf7d   :  { %v1456_v39 = vpop.f32.mrf.mxu1  ;;  %7987 = vpow2.f32 %v6696_v13  ;;  %v9004_v13 = vld [vmem:[%s10539_s7] sm:$0xff]  }
 0xf7e   :  { %7989 = vpow2.f32 %v6695_v30  ;;  %v567_v30 = vadd.f32 %v8708_v61, %v8741_v21 }
 0xf7f   :  { %v7313_v26 = vpop.f32.mrf.mxu1 }
 0xf85   :  { %v7984_v42 = vpop.eup %7983 }
 0xf86   :  { %1542 = vrot.lane.b32.xlu0 %v7984_v42, %s8436_s0  ;;  %v8994_v42 = vld [vmem:[%s10539_s7 + $0x8] sm:$0xff]  }
 0xf89   :  { %v7986_v34 = vpop.eup %7985 }
 0xf8a   :  { %1518 = vrot.lane.b32.xlu1 %v7986_v34, %s8436_s0  ;;  %v7988_v33 = vpop.eup %7987 }
 0xf8b   :  { %v1536_v46 = vadd.f32 1.0, %v7988_v33  ;;  %v7990_v44 = vpop.eup %7989 }
 0xf8c   :  { %v1512_v47 = vadd.f32 1.0, %v7990_v44 }
 0xf8d   :  { %7991 = vrcp.f32 %v1536_v46 }
 0xf8e   :  { %7993 = vrcp.f32 %v1512_v47 }
 0xf9a   :  { %v7992_v49 = vpop.eup %7991 }
 0xf9b   :  { %v7994_v54 = vpop.eup %7993  ;;  %v1540_v29 = vmul.f32 %v7992_v49, %v8920_v37 }
 0xf9c   :  { %v1516_v17 = vmul.f32 %v7994_v54, %v8924_v38 }
 0xff8   :  { %v1543_v18 = vpop.permute.xlu0 %1542 }
 0xff9   :  { %v1545_v36 = vmul.f32 %v7992_v49, %v1543_v18 }
 0xffb   :  { %1547 = vrot.lane.b32.xlu0 %v1545_v36, %s8437_s21 }
 0xffc   :  { %v1519_v58 = vpop.permute.xlu1 %1518 }
 0xffd   :  { %v1521_v7 = vmul.f32 %v7994_v54, %v1519_v58 }
 0xfff   :  { %1523 = vrot.lane.b32.xlu1 %v1521_v7, %s8437_s21 }
0x106d   :  { %v1548_v20 = vpop.permute.xlu0 %1547 }
0x106e   :  { %v8971_v24 = vadd.f32 %v1548_v20, %v1540_v29 }
0x1070   :  { %7995 = vtanh.f32 %v8971_v24 }
0x1071   :  { %v1524_v0 = vpop.permute.xlu1 %1523 }
0x1072   :  { %v8975_v35 = vadd.f32 %v1524_v0, %v1516_v17 }
0x1074   :  { %7997 = vtanh.f32 %v8975_v35 }
0x107d   :  { %v7996_v5 = vpop.eup %7995 }
0x107e   :  { %1553 = vrot.lane.b32.xlu0 %v7996_v5, %s8436_s0 }
0x1081   :  { %v7998_v43 = vpop.eup %7997 }
0x1082   :  { %1529 = vrot.lane.b32.xlu1 %v7998_v43, %s8436_s0 }
0x10f0   :  { %v1554_v16 = vpop.permute.xlu0 %1553 }
0x10f1   :  { %v8980_v37 = vmul.f32 %v7992_v49, %v1554_v16 }
0x10f3   :  { %v1617_v27 = vpack.c.bf16 %v8980_v37, %v8980_v37 }
0x10f4   :  { %v1530_v14 = vpop.permute.xlu1 %1529 }
0x10f5   :  { %v8984_v39 = vmul.f32 %v7994_v54, %v1530_v14  ;;  %1619 = vrot.lane.b32.xlu0 %v1617_v27, %s8437_s21 }
0x10f7   :  { %v1568_v38 = vpack.c.bf16 %v8984_v39, %v8984_v39 }
0x10f9   :  { %1570 = vrot.lane.b32.xlu1 %v1568_v38, %s8437_s21 }
0x1167   :  { %v1620_v26 = vpop.permute.xlu0 %1619 }
0x1168   :  { %7335 = vmatmul.mubr.msk.bf16.vlgmr.msra.gmra.mxu0 %vm336_vm1, %v1620_v26 }
0x1169   :  { %7347 = vmatpush3.bf16.msra.mxu0 %v8994_v42  ;;  %7350 = vmatprep.mubr.msk.bf16.mxu0 %vm8434_vm0, %v8433_v19 }
0x116a   :  { %7348 = vmatprep.subr.bf16.mxu0 %v8433_v19 }
0x116b   :  { %v1571_v34 = vpop.permute.xlu1 %1570 }
0x116c   :  { %7327 = vmatmul.mubr.msk.bf16.vlgmr.msra.gmra.mxu1 %vm336_vm1, %v1571_v34 }
0x116d   :  { %7349 = vmatpush3.bf16.msra.mxu0 %v9004_v13  ;;  %7339 = vmatpush3.bf16.msra.mxu1 %v8949_v62 }
0x116e   :  { %7340 = vmatprep.subr.bf16.mxu1 %v8433_v19  ;;  %7342 = vmatprep.mubr.msk.bf16.mxu1 %vm8434_vm0, %v8433_v19 }
0x116f   :  { %7362 = vmatprep.subr.bf16.mxu0 %v8433_v19 }
0x1171   :  { %7341 = vmatpush3.bf16.msra.mxu1 %v8959_v23 }
0x1172   :  { %7354 = vmatprep.subr.bf16.mxu1 %v8433_v19 }
0x1228   :  { %v1658_v33 = vpop.f32.mrf.mxu0 }
0x1229   :  { %v1664_v46 = vadd.f32 %v1658_v33, %v567_v30 }
0x122a   :  { %v7336_v44 = vpop.f32.mrf.mxu0 }
0x122b   :  { %7999 = vtanh.f32 %v1664_v46  ;;  %v6700_v61 = vmul.f32 -1.442695, %v1664_v46 }
0x122c   :  { %v1609_v47 = vpop.f32.mrf.mxu1  ;;  %v1661_v49 = vpop.f32.mrf.mxu0 }
0x122d   :  { %v1615_v18 = vadd.f32 %v1609_v47, %v8673_v41 }
0x122e   :  { %v7328_v36 = vpop.f32.mrf.mxu1  ;;  %v7337_v54 = vpop.f32.mrf.mxu0 }
0x122f   :  { %8001 = vtanh.f32 %v1615_v18  ;;  %v6699_v21 = vmul.f32 -1.442695, %v1615_v18 }
0x1230   :  { %v1612_v58 = vpop.f32.mrf.mxu1  ;;  %8003 = vpow2.f32 %v6700_v61 }
0x1231   :  { %8005 = vpow2.f32 %v6699_v21 }
0x1232   :  { %v7329_v7 = vpop.f32.mrf.mxu1 }
0x1238   :  { %v8000_v29 = vpop.eup %7999 }
0x1239   :  { %1698 = vrot.lane.b32.xlu0 %v8000_v29, %s8436_s0 }
0x123c   :  { %v8002_v20 = vpop.eup %8001 }
0x123d   :  { %1674 = vrot.lane.b32.xlu1 %v8002_v20, %s8436_s0  ;;  %v8004_v17 = vpop.eup %8003 }
0x123e   :  { %v1692_v0 = vadd.f32 1.0, %v8004_v17  ;;  %v8006_v5 = vpop.eup %8005 }
0x123f   :  { %v1668_v41 = vadd.f32 1.0, %v8006_v5 }
0x1240   :  { %8007 = vrcp.f32 %v1692_v0 }
0x1241   :  { %8009 = vrcp.f32 %v1668_v41 }
0x124d   :  { %v8008_v43 = vpop.eup %8007 }
0x124e   :  { %v8010_v14 = vpop.eup %8009  ;;  %v1696_v34 = vmul.f32 %v8008_v43, %v8971_v24 }
0x124f   :  { %v1672_v46 = vmul.f32 %v8010_v14, %v8975_v35 }
0x12ab   :  { %v1699_v16 = vpop.permute.xlu0 %1698 }
0x12ac   :  { %v1701_v27 = vmul.f32 %v8008_v43, %v1699_v16 }
0x12ae   :  { %1703 = vrot.lane.b32.xlu0 %v1701_v27, %s8437_s21 }
0x12af   :  { %v1675_v38 = vpop.permute.xlu1 %1674 }
0x12b0   :  { %v1677_v26 = vmul.f32 %v8010_v14, %v1675_v38 }
0x12b2   :  { %1679 = vrot.lane.b32.xlu1 %v1677_v26, %s8437_s21 }
0x1320   :  { %v1704_v30 = vpop.permute.xlu0 %1703 }
0x1321   :  { %v9022_v33 = vadd.f32 %v1704_v30, %v1696_v34 }
0x1323   :  { %8011 = vtanh.f32 %v9022_v33 }
0x1324   :  { %v1680_v44 = vpop.permute.xlu1 %1679 }
0x1325   :  { %v9026_v47 = vadd.f32 %v1680_v44, %v1672_v46 }
0x1327   :  { %8013 = vtanh.f32 %v9026_v47 }
0x1330   :  { %v8012_v49 = vpop.eup %8011 }
0x1331   :  { %1709 = vrot.lane.b32.xlu0 %v8012_v49, %s8436_s0 }
0x1334   :  { %v8014_v18 = vpop.eup %8013 }
0x1335   :  { %1685 = vrot.lane.b32.xlu1 %v8014_v18, %s8436_s0 }
0x13a3   :  { %v1710_v36 = vpop.permute.xlu0 %1709 }
0x13a4   :  { %v9031_v24 = vmul.f32 %v8008_v43, %v1710_v36 }
0x13a6   :  { %v1773_v54 = vpack.c.bf16 %v9031_v24, %v9031_v24 }
0x13a7   :  { %v1686_v58 = vpop.permute.xlu1 %1685 }
0x13a8   :  { %v9035_v7 = vmul.f32 %v8010_v14, %v1686_v58  ;;  %1775 = vrot.lane.b32.xlu0 %v1773_v54, %s8437_s21 }
0x13aa   :  { %v1724_v35 = vpack.c.bf16 %v9035_v7, %v9035_v7 }
0x13ac   :  { %1726 = vrot.lane.b32.xlu1 %v1724_v35, %s8437_s21 }
0x141a   :  { %v1776_v29 = vpop.permute.xlu0 %1775 }
0x141b   :  { %7351 = vmatmul.mubr.msk.bf16.vlgmr.msra.gmra.mxu0 %vm336_vm1, %v1776_v29 }
0x141c   :  { %7363 = vmatpush3.bf16.msra.mxu0 %v8994_v42  ;;  %7366 = vmatprep.mubr.msk.bf16.mxu0 %vm8434_vm0, %v8433_v19 }
0x141d   :  { %7364 = vmatprep.subr.bf16.mxu0 %v8433_v19 }
0x141e   :  { %v1727_v20 = vpop.permute.xlu1 %1726 }
0x141f   :  { %7343 = vmatmul.mubr.msk.bf16.vlgmr.msra.gmra.mxu1 %vm336_vm1, %v1727_v20 }
0x1420   :  { %7365 = vmatpush3.bf16.msra.mxu0 %v9004_v13  ;;  %7355 = vmatpush3.bf16.msra.mxu1 %v8949_v62 }
0x1421   :  { %7356 = vmatprep.subr.bf16.mxu1 %v8433_v19  ;;  %7358 = vmatprep.mubr.msk.bf16.mxu1 %vm8434_vm0, %v8433_v19 }
0x1422   :  { %7378 = vmatprep.subr.bf16.mxu0 %v8433_v19 }
0x1424   :  { %7357 = vmatpush3.bf16.msra.mxu1 %v8959_v23 }
0x1425   :  { %7370 = vmatprep.subr.bf16.mxu1 %v8433_v19 }
0x14db   :  { %v1814_v61 = vpop.f32.mrf.mxu0 }
0x14dc   :  { %v1820_v21 = vadd.f32 %v1814_v61, %v8736_v15 }
0x14dd   :  { %v7352_v17 = vpop.f32.mrf.mxu0 }
0x14de   :  { %8015 = vtanh.f32 %v1820_v21  ;;  %v6704_v34 = vmul.f32 -1.442695, %v1820_v21 }
0x14df   :  { %v1765_v0 = vpop.f32.mrf.mxu1  ;;  %v1817_v5 = vpop.f32.mrf.mxu0 }
0x14e0   :  { %v1771_v41 = vadd.f32 %v1765_v0, %v8679_v45 }
0x14e1   :  { %v7344_v43 = vpop.f32.mrf.mxu1  ;;  %v7353_v16 = vpop.f32.mrf.mxu0 }
0x14e2   :  { %8017 = vtanh.f32 %v1771_v41  ;;  %v6703_v15 = vmul.f32 -1.442695, %v1771_v41 }
0x14e3   :  { %v1768_v27 = vpop.f32.mrf.mxu1  ;;  %8019 = vpow2.f32 %v6704_v34 }
0x14e4   :  { %8021 = vpow2.f32 %v6703_v15 }
0x14e5   :  { %v7345_v14 = vpop.f32.mrf.mxu1 }
0x14eb   :  { %v8016_v38 = vpop.eup %8015 }
0x14ec   :  { %1854 = vrot.lane.b32.xlu0 %v8016_v38, %s8436_s0 }
0x14ef   :  { %v8018_v26 = vpop.eup %8017 }
0x14f0   :  { %1830 = vrot.lane.b32.xlu1 %v8018_v26, %s8436_s0  ;;  %v8020_v30 = vpop.eup %8019 }
0x14f1   :  { %v1848_v46 = vadd.f32 1.0, %v8020_v30  ;;  %v8022_v44 = vpop.eup %8021 }
0x14f2   :  { %v1824_v45 = vadd.f32 1.0, %v8022_v44 }
0x14f3   :  { %8023 = vrcp.f32 %v1848_v46 }
0x14f4   :  { %8025 = vrcp.f32 %v1824_v45 }
0x1500   :  { %v8024_v49 = vpop.eup %8023 }
0x1501   :  { %v8026_v54 = vpop.eup %8025  ;;  %v1852_v29 = vmul.f32 %v8024_v49, %v9022_v33 }
0x1502   :  { %v1828_v21 = vmul.f32 %v8026_v54, %v9026_v47 }
0x155e   :  { %v1855_v18 = vpop.permute.xlu0 %1854 }
0x155f   :  { %v1857_v36 = vmul.f32 %v8024_v49, %v1855_v18 }
0x1561   :  { %1859 = vrot.lane.b32.xlu0 %v1857_v36, %s8437_s21 }
0x1562   :  { %v1831_v58 = vpop.permute.xlu1 %1830 }
0x1563   :  { %v1833_v35 = vmul.f32 %v8026_v54, %v1831_v58 }
0x1565   :  { %1835 = vrot.lane.b32.xlu1 %v1833_v35, %s8437_s21 }
0x15d3   :  { %v1860_v20 = vpop.permute.xlu0 %1859 }
0x15d4   :  { %v9062_v61 = vadd.f32 %v1860_v20, %v1852_v29 }
0x15d6   :  { %8027 = vtanh.f32 %v9062_v61 }
0x15d7   :  { %v1836_v17 = vpop.permute.xlu1 %1835 }
0x15d8   :  { %v9066_v0 = vadd.f32 %v1836_v17, %v1828_v21 }
0x15da   :  { %8029 = vtanh.f32 %v9066_v0 }
0x15e3   :  { %v8028_v5 = vpop.eup %8027 }
0x15e4   :  { %1865 = vrot.lane.b32.xlu0 %v8028_v5, %s8436_s0 }
0x15e7   :  { %v8030_v41 = vpop.eup %8029 }
0x15e8   :  { %1841 = vrot.lane.b32.xlu1 %v8030_v41, %s8436_s0 }
0x1656   :  { %v1866_v43 = vpop.permute.xlu0 %1865 }
0x1657   :  { %v9071_v33 = vmul.f32 %v8024_v49, %v1866_v43 }
0x1659   :  { %v1929_v16 = vpack.c.bf16 %v9071_v33, %v9071_v33 }
0x165a   :  { %v1842_v27 = vpop.permute.xlu1 %1841 }
0x165b   :  { %v9075_v14 = vmul.f32 %v8026_v54, %v1842_v27  ;;  %1931 = vrot.lane.b32.xlu0 %v1929_v16, %s8437_s21 }
0x165d   :  { %v1880_v47 = vpack.c.bf16 %v9075_v14, %v9075_v14 }
0x165f   :  { %1882 = vrot.lane.b32.xlu1 %v1880_v47, %s8437_s21 }
0x16cd   :  { %v1932_v38 = vpop.permute.xlu0 %1931 }
0x16ce   :  { %7367 = vmatmul.mubr.msk.bf16.vlgmr.msra.gmra.mxu0 %vm336_vm1, %v1932_v38 }
0x16cf   :  { %7379 = vmatpush3.bf16.msra.mxu0 %v8994_v42  ;;  %7382 = vmatprep.mubr.msk.bf16.mxu0 %vm8434_vm0, %v8433_v19 }
0x16d0   :  { %7380 = vmatprep.subr.bf16.mxu0 %v8433_v19 }
0x16d1   :  { %v1883_v26 = vpop.permute.xlu1 %1882 }
0x16d2   :  { %7359 = vmatmul.mubr.msk.bf16.vlgmr.msra.gmra.mxu1 %vm336_vm1, %v1883_v26 }
0x16d3   :  { %7381 = vmatpush3.bf16.msra.mxu0 %v9004_v13  ;;  %7371 = vmatpush3.bf16.msra.mxu1 %v8949_v62 }
0x16d4   :  { %7372 = vmatprep.subr.bf16.mxu1 %v8433_v19  ;;  %7374 = vmatprep.mubr.msk.bf16.mxu1 %vm8434_vm0, %v8433_v19 }
0x16d5   :  { %7394 = vmatprep.subr.bf16.mxu0 %v8433_v19 }
0x16d7   :  { %7373 = vmatpush3.bf16.msra.mxu1 %v8959_v23 }
0x16d8   :  { %7386 = vmatprep.subr.bf16.mxu1 %v8433_v19 }
0x178e   :  { %v1970_v34 = vpop.f32.mrf.mxu0 }
0x178f   :  { %v1976_v15 = vadd.f32 %v1970_v34, %v8728_v10 }
0x1790   :  { %v7368_v30 = vpop.f32.mrf.mxu0 }
0x1791   :  { %8031 = vtanh.f32 %v1976_v15  ;;  %v6708_v29 = vmul.f32 -1.442695, %v1976_v15 }
0x1792   :  { %v1921_v46 = vpop.f32.mrf.mxu1  ;;  %v1973_v44 = vpop.f32.mrf.mxu0 }
0x1793   :  { %v1927_v45 = vadd.f32 %v1921_v46, %v8687_v50 }
0x1794   :  { %v7360_v49 = vpop.f32.mrf.mxu1  ;;  %v7369_v18 = vpop.f32.mrf.mxu0 }
0x1795   :  { %8033 = vtanh.f32 %v1927_v45  ;;  %v6707_v10 = vmul.f32 -1.442695, %v1927_v45 }
0x1796   :  { %v1924_v36 = vpop.f32.mrf.mxu1  ;;  %8035 = vpow2.f32 %v6708_v29 }
0x1797   :  { %8037 = vpow2.f32 %v6707_v10 }
0x1798   :  { %v7361_v54 = vpop.f32.mrf.mxu1 }
0x179e   :  { %v8032_v58 = vpop.eup %8031 }
0x179f   :  { %2010 = vrot.lane.b32.xlu0 %v8032_v58, %s8436_s0 }
0x17a2   :  { %v8034_v35 = vpop.eup %8033 }
0x17a3   :  { %1986 = vrot.lane.b32.xlu1 %v8034_v35, %s8436_s0  ;;  %v8036_v20 = vpop.eup %8035 }
0x17a4   :  { %v2004_v21 = vadd.f32 1.0, %v8036_v20  ;;  %v8038_v17 = vpop.eup %8037 }
0x17a5   :  { %v1980_v50 = vadd.f32 1.0, %v8038_v17 }
0x17a6   :  { %8039 = vrcp.f32 %v2004_v21  ;;  %v9139_v21 = vld [vmem:[%s10541_s5] ss:$0 sm:$0xff] }
0x17a7   :  { %8041 = vrcp.f32 %v1980_v50  ;;  %v431_v17 = vadd.f32 %v9139_v21, %v8692_v53 }
0x17b3   :  { %v8040_v5 = vpop.eup %8039 }
0x17b4   :  { %v8042_v16 = vpop.eup %8041  ;;  %v2008_v38 = vmul.f32 %v8040_v5, %v9062_v61 }
0x17b5   :  { %v1984_v15 = vmul.f32 %v8042_v16, %v9066_v0 }
0x1811   :  { %v2011_v41 = vpop.permute.xlu0 %2010 }
0x1812   :  { %v2013_v43 = vmul.f32 %v8040_v5, %v2011_v41 }
0x1814   :  { %2015 = vrot.lane.b32.xlu0 %v2013_v43, %s8437_s21 }
0x1815   :  { %v1987_v27 = vpop.permute.xlu1 %1986 }
0x1816   :  { %v1989_v47 = vmul.f32 %v8042_v16, %v1987_v27 }
0x1818   :  { %1991 = vrot.lane.b32.xlu1 %v1989_v47, %s8437_s21 }
0x1886   :  { %v2016_v26 = vpop.permute.xlu0 %2015 }
0x1887   :  { %v9102_v34 = vadd.f32 %v2016_v26, %v2008_v38 }
0x1889   :  { %8043 = vtanh.f32 %v9102_v34 }
0x188a   :  { %v1992_v30 = vpop.permute.xlu1 %1991 }
0x188b   :  { %v9106_v46 = vadd.f32 %v1992_v30, %v1984_v15 }
0x188d   :  { %8045 = vtanh.f32 %v9106_v46 }
0x1896   :  { %v8044_v44 = vpop.eup %8043 }
0x1897   :  { %2021 = vrot.lane.b32.xlu0 %v8044_v44, %s8436_s0 }
0x189a   :  { %v8046_v45 = vpop.eup %8045 }
0x189b   :  { %1997 = vrot.lane.b32.xlu1 %v8046_v45, %s8436_s0 }
0x1909   :  { %v2022_v49 = vpop.permute.xlu0 %2021 }
0x190a   :  { %v9111_v61 = vmul.f32 %v8040_v5, %v2022_v49 }
0x190c   :  { %v2085_v18 = vpack.c.bf16 %v9111_v61, %v9111_v61 }
0x190d   :  { %v1998_v36 = vpop.permute.xlu1 %1997 }
0x190e   :  { %v9115_v54 = vmul.f32 %v8042_v16, %v1998_v36  ;;  %2087 = vrot.lane.b32.xlu0 %v2085_v18, %s8437_s21 }
0x1910   :  { %v2036_v0 = vpack.c.bf16 %v9115_v54, %v9115_v54 }
0x1912   :  { %2038 = vrot.lane.b32.xlu1 %v2036_v0, %s8437_s21 }
0x1980   :  { %v2088_v58 = vpop.permute.xlu0 %2087 }
0x1981   :  { %7383 = vmatmul.mubr.msk.bf16.vlgmr.msra.gmra.mxu0 %vm336_vm1, %v2088_v58 }
0x1982   :  { %7395 = vmatpush3.bf16.msra.mxu0 %v8994_v42  ;;  %7398 = vmatprep.mubr.msk.bf16.mxu0 %vm8434_vm0, %v8433_v19 }
0x1983   :  { %7396 = vmatprep.subr.bf16.mxu0 %v8433_v19 }
0x1984   :  { %v2039_v35 = vpop.permute.xlu1 %2038 }
0x1985   :  { %7375 = vmatmul.mubr.msk.bf16.vlgmr.msra.gmra.mxu1 %vm336_vm1, %v2039_v35 }
0x1986   :  { %7397 = vmatpush3.bf16.msra.mxu0 %v9004_v13  ;;  %7387 = vmatpush3.bf16.msra.mxu1 %v8949_v62 }
0x1987   :  { %7388 = vmatprep.subr.bf16.mxu1 %v8433_v19  ;;  %7390 = vmatprep.mubr.msk.bf16.mxu1 %vm8434_vm0, %v8433_v19 }
0x1988   :  { %7410 = vmatprep.subr.bf16.mxu0 %v8433_v19 }
0x198a   :  { %7389 = vmatpush3.bf16.msra.mxu1 %v8959_v23 }
0x198b   :  { %7402 = vmatprep.subr.bf16.mxu1 %v8433_v19 }
0x1a41   :  { %v2126_v29 = vpop.f32.mrf.mxu0 }
0x1a42   :  { %v2132_v10 = vadd.f32 %v2126_v29, %v8722_v6 }
0x1a43   :  { %v7384_v20 = vpop.f32.mrf.mxu0 }
0x1a44   :  { %8047 = vtanh.f32 %v2132_v10  ;;  %v6712_v26 = vmul.f32 -1.442695, %v2132_v10 }
0x1a45   :  { %v2077_v50 = vpop.f32.mrf.mxu1  ;;  %v2129_v5 = vpop.f32.mrf.mxu0 }
0x1a46   :  { %v2083_v41 = vadd.f32 %v2077_v50, %v431_v17 }
0x1a47   :  { %v7376_v43 = vpop.f32.mrf.mxu1  ;;  %v7385_v16 = vpop.f32.mrf.mxu0 }
0x1a48   :  { %8049 = vtanh.f32 %v2083_v41  ;;  %v6711_v15 = vmul.f32 -1.442695, %v2083_v41 }
0x1a49   :  { %v2080_v27 = vpop.f32.mrf.mxu1  ;;  %8051 = vpow2.f32 %v6712_v26 }
0x1a4a   :  { %8053 = vpow2.f32 %v6711_v15  ;;  %v9184_v15 = vld [vmem:[%s10542_s8] ss:$0 sm:$0xff] }
0x1a4b   :  { %v7377_v47 = vpop.f32.mrf.mxu1 }
0x1a51   :  { %v8048_v38 = vpop.eup %8047 }
0x1a52   :  { %2166 = vrot.lane.b32.xlu0 %v8048_v38, %s8436_s0 }
0x1a55   :  { %v8050_v6 = vpop.eup %8049 }
0x1a56   :  { %2142 = vrot.lane.b32.xlu1 %v8050_v6, %s8436_s0  ;;  %v8052_v53 = vpop.eup %8051 }
0x1a57   :  { %v2160_v30 = vadd.f32 1.0, %v8052_v53  ;;  %v8054_v44 = vpop.eup %8053  ;;  %v551_v53 = vadd.f32 %v9184_v15, %v8730_v11 }
0x1a58   :  { %v2136_v45 = vadd.f32 1.0, %v8054_v44 }
0x1a59   :  { %8055 = vrcp.f32 %v2160_v30 }
0x1a5a   :  { %8057 = vrcp.f32 %v2136_v45 }
0x1a66   :  { %v8056_v49 = vpop.eup %8055 }
0x1a67   :  { %v8058_v0 = vpop.eup %8057  ;;  %v2164_v29 = vmul.f32 %v8056_v49, %v9102_v34 }
0x1a68   :  { %v2140_v17 = vmul.f32 %v8058_v0, %v9106_v46 }
0x1ac4   :  { %v2167_v18 = vpop.permute.xlu0 %2166 }
0x1ac5   :  { %v2169_v36 = vmul.f32 %v8056_v49, %v2167_v18 }
0x1ac7   :  { %2171 = vrot.lane.b32.xlu0 %v2169_v36, %s8437_s21 }
0x1ac8   :  { %v2143_v58 = vpop.permute.xlu1 %2142 }
0x1ac9   :  { %v2145_v35 = vmul.f32 %v8058_v0, %v2143_v58 }
0x1acb   :  { %2147 = vrot.lane.b32.xlu1 %v2145_v35, %s8437_s21 }
0x1b39   :  { %v2172_v10 = vpop.permute.xlu0 %2171 }
0x1b3a   :  { %v9148_v20 = vadd.f32 %v2172_v10, %v2164_v29 }
0x1b3c   :  { %8059 = vtanh.f32 %v9148_v20 }
0x1b3d   :  { %v2148_v50 = vpop.permute.xlu1 %2147 }
0x1b3e   :  { %v9152_v5 = vadd.f32 %v2148_v50, %v2140_v17 }
0x1b40   :  { %8061 = vtanh.f32 %v9152_v5 }
0x1b49   :  { %v8060_v41 = vpop.eup %8059 }
0x1b4a   :  { %2177 = vrot.lane.b32.xlu0 %v8060_v41, %s8436_s0 }
0x1b4d   :  { %v8062_v43 = vpop.eup %8061 }
0x1b4e   :  { %2153 = vrot.lane.b32.xlu1 %v8062_v43, %s8436_s0 }
0x1bbc   :  { %v2178_v16 = vpop.permute.xlu0 %2177 }
0x1bbd   :  { %v9157_v34 = vmul.f32 %v8056_v49, %v2178_v16 }
0x1bbf   :  { %v2241_v27 = vpack.c.bf16 %v9157_v34, %v9157_v34 }
0x1bc0   :  { %v2154_v47 = vpop.permute.xlu1 %2153 }
0x1bc1   :  { %v9161_v38 = vmul.f32 %v8058_v0, %v2154_v47  ;;  %2243 = vrot.lane.b32.xlu0 %v2241_v27, %s8437_s21 }
0x1bc3   :  { %v2192_v46 = vpack.c.bf16 %v9161_v38, %v9161_v38 }
0x1bc5   :  { %2194 = vrot.lane.b32.xlu1 %v2192_v46, %s8437_s21 }
0x1c33   :  { %v2244_v6 = vpop.permute.xlu0 %2243 }
0x1c34   :  { %7399 = vmatmul.mubr.msk.bf16.vlgmr.msra.gmra.mxu0 %vm336_vm1, %v2244_v6 }
0x1c35   :  { %7411 = vmatpush3.bf16.msra.mxu0 %v8994_v42  ;;  %7414 = vmatprep.mubr.msk.bf16.mxu0 %vm8434_vm0, %v8433_v19 }
0x1c36   :  { %7412 = vmatprep.subr.bf16.mxu0 %v8433_v19 }
0x1c37   :  { %v2195_v26 = vpop.permute.xlu1 %2194 }
0x1c38   :  { %7391 = vmatmul.mubr.msk.bf16.vlgmr.msra.gmra.mxu1 %vm336_vm1, %v2195_v26 }
0x1c39   :  { %7413 = vmatpush3.bf16.msra.mxu0 %v9004_v13  ;;  %7403 = vmatpush3.bf16.msra.mxu1 %v8949_v62 }
0x1c3a   :  { %7404 = vmatprep.subr.bf16.mxu1 %v8433_v19  ;;  %7406 = vmatprep.mubr.msk.bf16.mxu1 %vm8434_vm0, %v8433_v19 }
0x1c3b   :  { %7426 = vmatprep.subr.bf16.mxu0 %v8433_v19 }
0x1c3d   :  { %7405 = vmatpush3.bf16.msra.mxu1 %v8959_v23 }
0x1c3e   :  { %7418 = vmatprep.subr.bf16.mxu1 %v8433_v19 }
0x1cf4   :  { %v2282_v30 = vpop.f32.mrf.mxu0 }
0x1cf5   :  { %v2288_v44 = vadd.f32 %v2282_v30, %v551_v53 }
0x1cf6   :  { %v7400_v45 = vpop.f32.mrf.mxu0 }
0x1cf7   :  { %8063 = vtanh.f32 %v2288_v44  ;;  %v6716_v11 = vmul.f32 -1.442695, %v2288_v44 }
0x1cf8   :  { %v2233_v49 = vpop.f32.mrf.mxu1  ;;  %v2285_v18 = vpop.f32.mrf.mxu0 }
0x1cf9   :  { %v2239_v36 = vadd.f32 %v2233_v49, %v8684_v48 }
0x1cfa   :  { %v7392_v0 = vpop.f32.mrf.mxu1  ;;  %v7401_v58 = vpop.f32.mrf.mxu0 }
0x1cfb   :  { %8065 = vtanh.f32 %v2239_v36  ;;  %v6715_v50 = vmul.f32 -1.442695, %v2239_v36 }
0x1cfc   :  { %v2236_v35 = vpop.f32.mrf.mxu1  ;;  %8067 = vpow2.f32 %v6716_v11 }
0x1cfd   :  { %8069 = vpow2.f32 %v6715_v50 }
0x1cfe   :  { %v7393_v29 = vpop.f32.mrf.mxu1 }
0x1d04   :  { %v8064_v10 = vpop.eup %8063 }
0x1d05   :  { %2322 = vrot.lane.b32.xlu0 %v8064_v10, %s8436_s0 }
0x1d08   :  { %v8066_v17 = vpop.eup %8065 }
0x1d09   :  { %2298 = vrot.lane.b32.xlu1 %v8066_v17, %s8436_s0  ;;  %v8068_v41 = vpop.eup %8067 }
0x1d0a   :  { %v2316_v43 = vadd.f32 1.0, %v8068_v41  ;;  %v8070_v16 = vpop.eup %8069 }
0x1d0b   :  { %v2292_v48 = vadd.f32 1.0, %v8070_v16 }
0x1d0c   :  { %8071 = vrcp.f32 %v2316_v43 }
0x1d0d   :  { %8073 = vrcp.f32 %v2292_v48 }
0x1d19   :  { %v8072_v27 = vpop.eup %8071 }
0x1d1a   :  { %v8074_v6 = vpop.eup %8073  ;;  %v2320_v30 = vmul.f32 %v8072_v27, %v9148_v20 }
0x1d1b   :  { %v2296_v49 = vmul.f32 %v8074_v6, %v9152_v5 }
0x1d77   :  { %v2323_v47 = vpop.permute.xlu0 %2322 }
0x1d78   :  { %v2325_v46 = vmul.f32 %v8072_v27, %v2323_v47 }
0x1d7a   :  { %2327 = vrot.lane.b32.xlu0 %v2325_v46, %s8437_s21 }
0x1d7b   :  { %v2299_v26 = vpop.permute.xlu1 %2298 }
0x1d7c   :  { %v2301_v53 = vmul.f32 %v8074_v6, %v2299_v26 }
0x1d7e   :  { %2303 = vrot.lane.b32.xlu1 %v2301_v53, %s8437_s21 }
0x1dec   :  { %v2328_v44 = vpop.permute.xlu0 %2327 }
0x1ded   :  { %v9194_v45 = vadd.f32 %v2328_v44, %v2320_v30 }
0x1def   :  { %8075 = vtanh.f32 %v9194_v45 }
0x1df0   :  { %v2304_v18 = vpop.permute.xlu1 %2303 }
0x1df1   :  { %v9198_v36 = vadd.f32 %v2304_v18, %v2296_v49 }
0x1df3   :  { %8077 = vtanh.f32 %v9198_v36 }
0x1dfc   :  { %v8076_v0 = vpop.eup %8075 }
0x1dfd   :  { %2333 = vrot.lane.b32.xlu0 %v8076_v0, %s8436_s0 }
0x1e00   :  { %v8078_v58 = vpop.eup %8077 }
0x1e01   :  { %2309 = vrot.lane.b32.xlu1 %v8078_v58, %s8436_s0 }
0x1e6f   :  { %v2334_v35 = vpop.permute.xlu0 %2333 }
0x1e70   :  { %v9203_v20 = vmul.f32 %v8072_v27, %v2334_v35 }
0x1e72   :  { %v2397_v29 = vpack.c.bf16 %v9203_v20, %v9203_v20 }
0x1e73   :  { %v2310_v10 = vpop.permute.xlu1 %2309 }
0x1e74   :  { %v9207_v17 = vmul.f32 %v8074_v6, %v2310_v10  ;;  %2399 = vrot.lane.b32.xlu0 %v2397_v29, %s8437_s21 }
0x1e76   :  { %v2348_v5 = vpack.c.bf16 %v9207_v17, %v9207_v17 }
0x1e78   :  { %2350 = vrot.lane.b32.xlu1 %v2348_v5, %s8437_s21 }
0x1ee6   :  { %v2400_v11 = vpop.permute.xlu0 %2399 }
0x1ee7   :  { %7415 = vmatmul.mubr.msk.bf16.vlgmr.msra.gmra.mxu0 %vm336_vm1, %v2400_v11 }
0x1ee8   :  { %7427 = vmatpush3.bf16.msra.mxu0 %v8994_v42  ;;  %7430 = vmatprep.mubr.msk.bf16.mxu0 %vm8434_vm0, %v8433_v19 }
0x1ee9   :  { %7428 = vmatprep.subr.bf16.mxu0 %v8433_v19 }
0x1eea   :  { %v2351_v50 = vpop.permute.xlu1 %2350 }
0x1eeb   :  { %7407 = vmatmul.mubr.msk.bf16.vlgmr.msra.gmra.mxu1 %vm336_vm1, %v2351_v50 }
0x1eec   :  { %7429 = vmatpush3.bf16.msra.mxu0 %v9004_v13  ;;  %7419 = vmatpush3.bf16.msra.mxu1 %v8949_v62 }
0x1eed   :  { %7420 = vmatprep.subr.bf16.mxu1 %v8433_v19  ;;  %7422 = vmatprep.mubr.msk.bf16.mxu1 %vm8434_vm0, %v8433_v19 }
0x1eee   :  { %7442 = vmatprep.subr.bf16.mxu0 %v8433_v19 }
0x1ef0   :  { %7421 = vmatpush3.bf16.msra.mxu1 %v8959_v23 }
0x1ef1   :  { %7434 = vmatprep.subr.bf16.mxu1 %v8433_v19 }
0x1fa7   :  { %v2438_v41 = vpop.f32.mrf.mxu0 }
0x1fa8   :  { %v2444_v43 = vadd.f32 %v2438_v41, %v8725_v8 }
0x1fa9   :  { %v7416_v16 = vpop.f32.mrf.mxu0 }
0x1faa   :  { %8079 = vtanh.f32 %v2444_v43  ;;  %v6720_v49 = vmul.f32 -1.442695, %v2444_v43 }
0x1fab   :  { %v2389_v48 = vpop.f32.mrf.mxu1  ;;  %v2441_v27 = vpop.f32.mrf.mxu0 }
0x1fac   :  { %v2395_v47 = vadd.f32 %v2389_v48, %v8690_v52 }
0x1fad   :  { %v7408_v46 = vpop.f32.mrf.mxu1  ;;  %v7417_v6 = vpop.f32.mrf.mxu0 }
0x1fae   :  { %8081 = vtanh.f32 %v2395_v47  ;;  %v6719_v8 = vmul.f32 -1.442695, %v2395_v47 }
0x1faf   :  { %v2392_v26 = vpop.f32.mrf.mxu1  ;;  %8083 = vpow2.f32 %v6720_v49 }
0x1fb0   :  { %8085 = vpow2.f32 %v6719_v8 }
0x1fb1   :  { %v7409_v53 = vpop.f32.mrf.mxu1 }
0x1fb7   :  { %v8080_v30 = vpop.eup %8079 }
0x1fb8   :  { %2478 = vrot.lane.b32.xlu0 %v8080_v30, %s8436_s0 }
0x1fbb   :  { %v8082_v44 = vpop.eup %8081 }
0x1fbc   :  { %2454 = vrot.lane.b32.xlu1 %v8082_v44, %s8436_s0  ;;  %v8084_v18 = vpop.eup %8083 }
0x1fbd   :  { %v2472_v0 = vadd.f32 1.0, %v8084_v18  ;;  %v8086_v58 = vpop.eup %8085 }
0x1fbe   :  { %v2448_v52 = vadd.f32 1.0, %v8086_v58 }
0x1fbf   :  { %8087 = vrcp.f32 %v2472_v0 }
0x1fc0   :  { %8089 = vrcp.f32 %v2448_v52 }
0x1fcc   :  { %v8088_v35 = vpop.eup %8087 }
0x1fcd   :  { %v8090_v5 = vpop.eup %8089  ;;  %v2476_v41 = vmul.f32 %v8088_v35, %v9194_v45 }
0x1fce   :  { %v2452_v48 = vmul.f32 %v8090_v5, %v9198_v36 }
0x202a   :  { %v2479_v29 = vpop.permute.xlu0 %2478 }
0x202b   :  { %v2481_v10 = vmul.f32 %v8088_v35, %v2479_v29 }
0x202d   :  { %2483 = vrot.lane.b32.xlu0 %v2481_v10, %s8437_s21 }
0x202e   :  { %v2455_v11 = vpop.permute.xlu1 %2454 }
0x202f   :  { %v2457_v50 = vmul.f32 %v8090_v5, %v2455_v11 }
0x2031   :  { %2459 = vrot.lane.b32.xlu1 %v2457_v50, %s8437_s21 }
0x209f   :  { %v2484_v43 = vpop.permute.xlu0 %2483 }
0x20a0   :  { %v9234_v16 = vadd.f32 %v2484_v43, %v2476_v41 }
0x20a2   :  { %8091 = vtanh.f32 %v9234_v16 }
0x20a3   :  { %v2460_v27 = vpop.permute.xlu1 %2459 }
0x20a4   :  { %v9238_v47 = vadd.f32 %v2460_v27, %v2452_v48 }
0x20a6   :  { %8093 = vtanh.f32 %v9238_v47 }
0x20af   :  { %v8092_v46 = vpop.eup %8091 }
0x20b0   :  { %2489 = vrot.lane.b32.xlu0 %v8092_v46, %s8436_s0 }
0x20b3   :  { %v8094_v6 = vpop.eup %8093 }
0x20b4   :  { %2465 = vrot.lane.b32.xlu1 %v8094_v6, %s8436_s0 }
0x2122   :  { %v2490_v26 = vpop.permute.xlu0 %2489 }
0x2123   :  { %v9243_v45 = vmul.f32 %v8088_v35, %v2490_v26 }
0x2125   :  { %v2553_v53 = vpack.c.bf16 %v9243_v45, %v9243_v45 }
0x2126   :  { %v2466_v30 = vpop.permute.xlu1 %2465 }
0x2127   :  { %v9247_v44 = vmul.f32 %v8090_v5, %v2466_v30  ;;  %2555 = vrot.lane.b32.xlu0 %v2553_v53, %s8437_s21 }
0x2129   :  { %v2504_v36 = vpack.c.bf16 %v9247_v44, %v9247_v44 }
0x212b   :  { %2506 = vrot.lane.b32.xlu1 %v2504_v36, %s8437_s21 }
0x2199   :  { %v2556_v49 = vpop.permute.xlu0 %2555 }
0x219a   :  { %7431 = vmatmul.mubr.msk.bf16.vlgmr.msra.gmra.mxu0 %vm336_vm1, %v2556_v49 }
0x219b   :  { %7443 = vmatpush3.bf16.msra.mxu0 %v8994_v42  ;;  %7446 = vmatprep.mubr.msk.bf16.mxu0 %vm8434_vm0, %v8433_v19 }
0x219c   :  { %7444 = vmatprep.subr.bf16.mxu0 %v8433_v19 }
0x219d   :  { %v2507_v8 = vpop.permute.xlu1 %2506 }
0x219e   :  { %7423 = vmatmul.mubr.msk.bf16.vlgmr.msra.gmra.mxu1 %vm336_vm1, %v2507_v8 }
0x219f   :  { %7445 = vmatpush3.bf16.msra.mxu0 %v9004_v13  ;;  %7435 = vmatpush3.bf16.msra.mxu1 %v8949_v62 }
0x21a0   :  { %7436 = vmatprep.subr.bf16.mxu1 %v8433_v19  ;;  %7438 = vmatprep.mubr.msk.bf16.mxu1 %vm8434_vm0, %v8433_v19 }
0x21a1   :  { %7458 = vmatprep.subr.bf16.mxu0 %v8433_v19 }
0x21a3   :  { %7437 = vmatpush3.bf16.msra.mxu1 %v8959_v23 }
0x21a4   :  { %7450 = vmatprep.subr.bf16.mxu1 %v8433_v19 }
0x225a   :  { %v2594_v18 = vpop.f32.mrf.mxu0 }
0x225b   :  { %v2600_v0 = vadd.f32 %v2594_v18, %v8717_v3 }
0x225c   :  { %v7432_v58 = vpop.f32.mrf.mxu0 }
0x225d   :  { %8095 = vtanh.f32 %v2600_v0  ;;  %v6724_v41 = vmul.f32 -1.442695, %v2600_v0 }
0x225e   :  { %v2545_v52 = vpop.f32.mrf.mxu1  ;;  %v2597_v35 = vpop.f32.mrf.mxu0 }
0x225f   :  { %v2551_v62 = vadd.f32 %v2545_v52, %v8698_v57 }
0x2260   :  { %v7424_v29 = vpop.f32.mrf.mxu1  ;;  %v7433_v10 = vpop.f32.mrf.mxu0 }
0x2261   :  { %8097 = vtanh.f32 %v2551_v62  ;;  %v6723_v3 = vmul.f32 -1.442695, %v2551_v62 }
0x2262   :  { %v2548_v5 = vpop.f32.mrf.mxu1  ;;  %8099 = vpow2.f32 %v6724_v41  ;;  %v9303_v41 = vld [vmem:[%s10537_s4 + $0x8] sm:$0xff]  }
0x2263   :  { %8101 = vpow2.f32 %v6723_v3 }
0x2264   :  { %v7425_v11 = vpop.f32.mrf.mxu1 }
0x226a   :  { %v8096_v50 = vpop.eup %8095 }
0x226b   :  { %2634 = vrot.lane.b32.xlu0 %v8096_v50, %s8436_s0 }
0x226e   :  { %v8098_v23 = vpop.eup %8097 }
0x226f   :  { %2610 = vrot.lane.b32.xlu1 %v8098_v23, %s8436_s0  ;;  %v8100_v43 = vpop.eup %8099 }
0x2270   :  { %v2628_v48 = vadd.f32 1.0, %v8100_v43  ;;  %v8102_v27 = vpop.eup %8101 }
0x2271   :  { %v2604_v57 = vadd.f32 1.0, %v8102_v27 }
0x2272   :  { %8103 = vrcp.f32 %v2628_v48  ;;  %v447_v48 = vadd.f32 %v9139_v21, %v8703_v60 }
0x2273   :  { %8105 = vrcp.f32 %v2604_v57 }
0x227f   :  { %v8104_v46 = vpop.eup %8103 }
0x2280   :  { %v8106_v53 = vpop.eup %8105  ;;  %v2632_v49 = vmul.f32 %v8104_v46, %v9234_v16 }
0x2281   :  { %v2608_v0 = vmul.f32 %v8106_v53, %v9238_v47 }
0x22dd   :  { %v2635_v6 = vpop.permute.xlu0 %2634 }
0x22de   :  { %v2637_v26 = vmul.f32 %v8104_v46, %v2635_v6 }
0x22e0   :  { %2639 = vrot.lane.b32.xlu0 %v2637_v26, %s8437_s21 }
0x22e1   :  { %v2611_v30 = vpop.permute.xlu1 %2610 }
0x22e2   :  { %v2613_v36 = vmul.f32 %v8106_v53, %v2611_v30 }
0x22e4   :  { %2615 = vrot.lane.b32.xlu1 %v2613_v36, %s8437_s21 }
0x2352   :  { %v2640_v8 = vpop.permute.xlu0 %2639 }
0x2353   :  { %v9274_v18 = vadd.f32 %v2640_v8, %v2632_v49 }
0x2355   :  { %8107 = vtanh.f32 %v9274_v18 }
0x2356   :  { %v2616_v58 = vpop.permute.xlu1 %2615 }
0x2357   :  { %v9278_v52 = vadd.f32 %v2616_v58, %v2608_v0 }
0x2359   :  { %8109 = vtanh.f32 %v9278_v52 }
0x2362   :  { %v8108_v35 = vpop.eup %8107 }
0x2363   :  { %2645 = vrot.lane.b32.xlu0 %v8108_v35, %s8436_s0 }
0x2366   :  { %v8110_v62 = vpop.eup %8109 }
0x2367   :  { %2621 = vrot.lane.b32.xlu1 %v8110_v62, %s8436_s0 }
0x23d5   :  { %v2646_v29 = vpop.permute.xlu0 %2645 }
0x23d6   :  { %v9283_v16 = vmul.f32 %v8104_v46, %v2646_v29 }
0x23d8   :  { %v2709_v10 = vpack.c.bf16 %v9283_v16, %v9283_v16 }
0x23d9   :  { %v2622_v5 = vpop.permute.xlu1 %2621 }
0x23da   :  { %v9287_v11 = vmul.f32 %v8106_v53, %v2622_v5  ;;  %2711 = vrot.lane.b32.xlu0 %v2709_v10, %s8437_s21 }
0x23dc   :  { %v2660_v47 = vpack.c.bf16 %v9287_v11, %v9287_v11 }
0x23de   :  { %2662 = vrot.lane.b32.xlu1 %v2660_v47, %s8437_s21 }
0x244c   :  { %v2712_v50 = vpop.permute.xlu0 %2711 }
0x244d   :  { %7447 = vmatmul.mubr.msk.bf16.vlgmr.msra.gmra.mxu0 %vm336_vm1, %v2712_v50 }
0x244e   :  { %7459 = vmatpush3.bf16.msra.mxu0 %v8994_v42  ;;  %7462 = vmatprep.mubr.msk.bf16.mxu0 %vm8434_vm0, %v8433_v19  ;;  %v9313_v42 = vld [vmem:[%s10537_s4] sm:$0xff]  }
0x244f   :  { %7460 = vmatprep.subr.bf16.mxu0 %v8433_v19 }
0x2450   :  { %v2663_v23 = vpop.permute.xlu1 %2662 }
0x2451   :  { %7439 = vmatmul.mubr.msk.bf16.vlgmr.msra.gmra.mxu1 %vm336_vm1, %v2663_v23 }
0x2452   :  { %7461 = vmatpush3.bf16.msra.mxu0 %v9004_v13  ;;  %7451 = vmatpush3.bf16.msra.mxu1 %v9303_v41 }
0x2453   :  { %7452 = vmatprep.subr.bf16.mxu1 %v8433_v19  ;;  %7454 = vmatprep.mubr.msk.bf16.mxu1 %vm8434_vm0, %v8433_v19 }
0x2454   :  { %7474 = vmatprep.subr.bf16.mxu0 %v8433_v19 }
0x2456   :  { %7453 = vmatpush3.bf16.msra.mxu1 %v9313_v42 }
0x2457   :  { %7466 = vmatprep.subr.bf16.mxu1 %v8433_v19 }
0x250d   :  { %v2750_v13 = vpop.f32.mrf.mxu0 }
0x250e   :  { %v2756_v3 = vadd.f32 %v2750_v13, %v8711_v63 }
0x250f   :  { %v7448_v43 = vpop.f32.mrf.mxu0 }
0x2510   :  { %8111 = vtanh.f32 %v2756_v3  ;;  %v6728_v63 = vmul.f32 -1.442695, %v2756_v3 }
0x2511   :  { %v2701_v27 = vpop.f32.mrf.mxu1  ;;  %v2753_v57 = vpop.f32.mrf.mxu0 }
0x2512   :  { %v2707_v46 = vadd.f32 %v2701_v27, %v447_v48 }
0x2513   :  { %v7440_v6 = vpop.f32.mrf.mxu1  ;;  %v7449_v26 = vpop.f32.mrf.mxu0 }
0x2514   :  { %8113 = vtanh.f32 %v2707_v46  ;;  %v6727_v8 = vmul.f32 -1.442695, %v2707_v46 }
0x2515   :  { %v2704_v53 = vpop.f32.mrf.mxu1  ;;  %8115 = vpow2.f32 %v6728_v63  ;;  %v8424_v63 = vld [vmem:[%s10539_s7] sm:$0xff]  }
0x2516   :  { %8117 = vpow2.f32 %v6727_v8  ;;  %v535_v8 = vadd.f32 %v9184_v15, %v8719_v4 }
0x2517   :  { %v7441_v30 = vpop.f32.mrf.mxu1 }
0x251d   :  { %v8112_v36 = vpop.eup %8111 }
0x251e   :  { %2790 = vrot.lane.b32.xlu0 %v8112_v36, %s8436_s0  ;;  %v8423_v36 = vld [vmem:[%s10539_s7 + $0x8] sm:$0xff]  }
0x2521   :  { %v8114_v49 = vpop.eup %8113 }
0x2522   :  { %2766 = vrot.lane.b32.xlu1 %v8114_v49, %s8436_s0  ;;  %v8116_v60 = vpop.eup %8115 }
0x2523   :  { %v2784_v21 = vadd.f32 1.0, %v8116_v60  ;;  %v8118_v0 = vpop.eup %8117 }
0x2524   :  { %v2760_v58 = vadd.f32 1.0, %v8118_v0 }
0x2525   :  { %8119 = vrcp.f32 %v2784_v21 }
0x2526   :  { %8121 = vrcp.f32 %v2760_v58 }
0x2532   :  { %v8120_v35 = vpop.eup %8119 }
0x2533   :  { %v8122_v10 = vpop.eup %8121  ;;  %v2788_v50 = vmul.f32 %v8120_v35, %v9274_v18 }
0x2534   :  { %v2764_v3 = vmul.f32 %v8122_v10, %v9278_v52 }
0x2590   :  { %v2791_v62 = vpop.permute.xlu0 %2790 }
0x2591   :  { %v2793_v29 = vmul.f32 %v8120_v35, %v2791_v62 }
0x2593   :  { %2795 = vrot.lane.b32.xlu0 %v2793_v29, %s8437_s21 }
0x2594   :  { %v2767_v5 = vpop.permute.xlu1 %2766 }
0x2595   :  { %v2769_v47 = vmul.f32 %v8122_v10, %v2767_v5 }
0x2597   :  { %2771 = vrot.lane.b32.xlu1 %v2769_v47, %s8437_s21 }
0x2605   :  { %v2796_v23 = vpop.permute.xlu0 %2795 }
0x2606   :  { %v9325_v13 = vadd.f32 %v2796_v23, %v2788_v50 }
0x2608   :  { %8123 = vtanh.f32 %v9325_v13 }
0x2609   :  { %v2772_v43 = vpop.permute.xlu1 %2771 }
0x260a   :  { %v9329_v48 = vadd.f32 %v2772_v43, %v2764_v3 }
0x260c   :  { %8125 = vtanh.f32 %v9329_v48 }
0x2615   :  { %v8124_v27 = vpop.eup %8123 }
0x2616   :  { %2801 = vrot.lane.b32.xlu0 %v8124_v27, %s8436_s0 }
0x2619   :  { %v8126_v57 = vpop.eup %8125 }
0x261a   :  { %2777 = vrot.lane.b32.xlu1 %v8126_v57, %s8436_s0 }
0x2688   :  { %v2802_v46 = vpop.permute.xlu0 %2801 }
0x2689   :  { %v9334_v18 = vmul.f32 %v8120_v35, %v2802_v46 }
0x268b   :  { %v2865_v6 = vpack.c.bf16 %v9334_v18, %v9334_v18 }
0x268c   :  { %v2778_v26 = vpop.permute.xlu1 %2777 }
0x268d   :  { %v9338_v53 = vmul.f32 %v8122_v10, %v2778_v26  ;;  %2867 = vrot.lane.b32.xlu0 %v2865_v6, %s8437_s21 }
0x268f   :  { %v2816_v52 = vpack.c.bf16 %v9338_v53, %v9338_v53 }
0x2691   :  { %2818 = vrot.lane.b32.xlu1 %v2816_v52, %s8437_s21 }
0x26ff   :  { %v2868_v30 = vpop.permute.xlu0 %2867 }
0x2700   :  { %7463 = vmatmul.mubr.msk.bf16.vlgmr.msra.gmra.mxu0 %vm336_vm1, %v2868_v30 }
0x2701   :  { %7475 = vmatpush3.bf16.msra.mxu0 %v8423_v36  ;;  %7478 = vmatprep.mubr.msk.bf16.mxu0 %vm8434_vm0, %v8433_v19 }
0x2702   :  { %7476 = vmatprep.subr.bf16.mxu0 %v8433_v19 }
0x2703   :  { %v2819_v49 = vpop.permute.xlu1 %2818 }
0x2704   :  { %7455 = vmatmul.mubr.msk.bf16.vlgmr.msra.gmra.mxu1 %vm336_vm1, %v2819_v49 }
0x2705   :  { %7477 = vmatpush3.bf16.msra.mxu0 %v8424_v63  ;;  %7467 = vmatpush3.bf16.msra.mxu1 %v9303_v41 }
0x2706   :  { %7468 = vmatprep.subr.bf16.mxu1 %v8433_v19  ;;  %7470 = vmatprep.mubr.msk.bf16.mxu1 %vm8434_vm0, %v8433_v19 }
0x2709   :  { %7469 = vmatpush3.bf16.msra.mxu1 %v9313_v42 }
0x27c0   :  { %v2906_v60 = vpop.f32.mrf.mxu0 }
0x27c1   :  { %v2912_v21 = vadd.f32 %v2906_v60, %v535_v8 }
0x27c2   :  { %v7464_v0 = vpop.f32.mrf.mxu0 }
0x27c3   :  { %8127 = vtanh.f32 %v2912_v21  ;;  %v6732_v4 = vmul.f32 -1.442695, %v2912_v21 }
0x27c4   :  { %v2857_v58 = vpop.f32.mrf.mxu1  ;;  %v2909_v35 = vpop.f32.mrf.mxu0 }
0x27c5   :  { %v2863_v62 = vadd.f32 %v2857_v58, %v8695_v55 }
0x27c6   :  { %v7456_v29 = vpop.f32.mrf.mxu1  ;;  %v7465_v41 = vpop.f32.mrf.mxu0 }
0x27c7   :  { %8129 = vtanh.f32 %v2863_v62  ;;  %v6731_v15 = vmul.f32 -1.442695, %v2863_v62 }
0x27c8   :  { %v2860_v10 = vpop.f32.mrf.mxu1  ;;  %8131 = vpow2.f32 %v6732_v4 }
0x27c9   :  { %8133 = vpow2.f32 %v6731_v15 }
0x27ca   :  { %v7457_v5 = vpop.f32.mrf.mxu1 }
0x27d0   :  { %v8128_v47 = vpop.eup %8127 }
0x27d1   :  { %2946 = vrot.lane.b32.xlu0 %v8128_v47, %s8436_s0 }
0x27d4   :  { %v8130_v42 = vpop.eup %8129 }
0x27d5   :  { %2922 = vrot.lane.b32.xlu1 %v8130_v42, %s8436_s0  ;;  %v8132_v50 = vpop.eup %8131 }
0x27d6   :  { %v2940_v23 = vadd.f32 1.0, %v8132_v50  ;;  %v8134_v3 = vpop.eup %8133 }
0x27d7   :  { %v2916_v55 = vadd.f32 1.0, %v8134_v3 }
0x27d8   :  { %8135 = vrcp.f32 %v2940_v23 }
0x27d9   :  { %8137 = vrcp.f32 %v2916_v55 }
0x27e5   :  { %v8136_v43 = vpop.eup %8135 }
0x27e6   :  { %v8138_v46 = vpop.eup %8137  ;;  %v2944_v52 = vmul.f32 %v8136_v43, %v9325_v13 }
0x27e7   :  { %v2920_v49 = vmul.f32 %v8138_v46, %v9329_v48 }
0x2843   :  { %v2947_v27 = vpop.permute.xlu0 %2946 }
0x2844   :  { %v2949_v57 = vmul.f32 %v8136_v43, %v2947_v27 }
0x2846   :  { %2951 = vrot.lane.b32.xlu0 %v2949_v57, %s8437_s21 }
0x2847   :  { %v2923_v6 = vpop.permute.xlu1 %2922 }
0x2848   :  { %v2925_v26 = vmul.f32 %v8138_v46, %v2923_v6 }
0x284a   :  { %2927 = vrot.lane.b32.xlu1 %v2925_v26, %s8437_s21 }
0x28b8   :  { %v2952_v30 = vpop.permute.xlu0 %2951 }
0x28b9   :  { %v2954_v36 = vadd.f32 %v2952_v30, %v2944_v52 }
0x28bb   :  { %8139 = vtanh.f32 %v2954_v36 }
0x28bc   :  { %v2928_v63 = vpop.permute.xlu1 %2927 }
0x28bd   :  { %v2930_v8 = vadd.f32 %v2928_v63, %v2920_v49 }
0x28bf   :  { %8141 = vtanh.f32 %v2930_v8 }
0x28c8   :  { %v8140_v60 = vpop.eup %8139 }
0x28c9   :  { %2957 = vrot.lane.b32.xlu0 %v8140_v60, %s8436_s0 }
0x28cc   :  { %v8142_v21 = vpop.eup %8141 }
0x28cd   :  { %2933 = vrot.lane.b32.xlu1 %v8142_v21, %s8436_s0 }
0x293b   :  { %v2958_v0 = vpop.permute.xlu0 %2957 }
0x293c   :  { %v9371_v58 = vmul.f32 %v8136_v43, %v2958_v0 }
0x293e   :  { %v3021_v13 = vpack.c.bf16 %v9371_v58, %v9371_v58 }
0x293f   :  { %v2934_v35 = vpop.permute.xlu1 %2933 }
0x2940   :  { %v9375_v62 = vmul.f32 %v8138_v46, %v2934_v35  ;;  %3023 = vrot.lane.b32.xlu0 %v3021_v13, %s8437_s21 }
0x2942   :  { %v2972_v48 = vpack.c.bf16 %v9375_v62, %v9375_v62 }
0x2944   :  { %2974 = vrot.lane.b32.xlu1 %v2972_v48, %s8437_s21 }
0x29b2   :  { %v3024_v29 = vpop.permute.xlu0 %3023 }
0x29b3   :  { %7479 = vmatmul.mubr.msk.bf16.vlgmr.msra.gmra.mxu0 %vm336_vm1, %v3024_v29 }
0x29b6   :  { %v2975_v41 = vpop.permute.xlu1 %2974 }
0x29b7   :  { %7471 = vmatmul.mubr.msk.bf16.vlgmr.msra.gmra.mxu1 %vm336_vm1, %v2975_v41 }
0x2a73   :  { %v3062_v10 = vpop.f32.mrf.mxu0 }
0x2a74   :  { %v3068_v5 = vadd.f32 %v3062_v10, %v8714_v1 }
0x2a75   :  { %v7480_v47 = vpop.f32.mrf.mxu0 }
0x2a76   :  { %8143 = vtanh.f32 %v3068_v5  ;;  %v6736_v57 = vmul.f32 -1.442695, %v3068_v5  ;;  %v7887_v5 = vld [vmem:[%s10543_s9 + $0x8] sm:$0xff]  }
0x2a77   :  { %v3013_v42 = vpop.f32.mrf.mxu1  ;;  %v3065_v4 = vpop.f32.mrf.mxu0  ;;  %7502 = vmatprep.subr.bf16.mxu0 %v7887_v5 }
0x2a78   :  { %v3019_v15 = vadd.f32 %v3013_v42, %v8701_v59  ;;  %7503 = vmatpush3.bf16.msra.mxu0 %v7887_v5 }
0x2a79   :  { %v7472_v50 = vpop.f32.mrf.mxu1  ;;  %v7481_v23 = vpop.f32.mrf.mxu0 }
0x2a7a   :  { %8145 = vtanh.f32 %v3019_v15  ;;  %v6735_v1 = vmul.f32 -1.442695, %v3019_v15 }
0x2a7b   :  { %v3016_v3 = vpop.f32.mrf.mxu1  ;;  %8147 = vpow2.f32 %v6736_v57 }
0x2a7c   :  { %8149 = vpow2.f32 %v6735_v1 }
0x2a7d   :  { %v7473_v55 = vpop.f32.mrf.mxu1 }
0x2a83   :  { %v8144_v43 = vpop.eup %8143 }
0x2a84   :  { %3102 = vrot.lane.b32.xlu0 %v8144_v43, %s8436_s0 }
0x2a87   :  { %v8146_v27 = vpop.eup %8145 }
0x2a88   :  { %3078 = vrot.lane.b32.xlu1 %v8146_v27, %s8436_s0  ;;  %v8148_v46 = vpop.eup %8147 }
0x2a89   :  { %v3096_v6 = vadd.f32 1.0, %v8148_v46  ;;  %v8150_v26 = vpop.eup %8149 }
0x2a8a   :  { %v3072_v59 = vadd.f32 1.0, %v8150_v26 }
0x2a8b   :  { %8151 = vrcp.f32 %v3096_v6 }
0x2a8c   :  { %8153 = vrcp.f32 %v3072_v59 }
0x2a98   :  { %v8152_v52 = vpop.eup %8151 }
0x2a99   :  { %v9388_v63 = vpop.eup %8153  ;;  %v3100_v0 = vmul.f32 %v8152_v52, %v2954_v36  ;;  %v7888_v36 = vld [vmem:[%s10543_s9] sm:$0xff]  }
0x2a9a   :  { %v3076_v48 = vmul.f32 %v9388_v63, %v2930_v8  ;;  %7504 = vmatprep.subr.bf16.mxu0 %v7888_v36 }
0x2a9b   :  { %7505 = vmatpush3.bf16.msra.mxu0 %v7888_v36 }
0x2af6   :  { %v3103_v30 = vpop.permute.xlu0 %3102 }
0x2af7   :  { %v3105_v49 = vmul.f32 %v8152_v52, %v3103_v30 }
0x2af9   :  { %3107 = vrot.lane.b32.xlu0 %v3105_v49, %s8437_s21 }
0x2afa   :  { %v3079_v60 = vpop.permute.xlu1 %3078 }
0x2afb   :  { %v3081_v21 = vmul.f32 %v9388_v63, %v3079_v60 }
0x2afd   :  { %3083 = vrot.lane.b32.xlu1 %v3081_v21, %s8437_s21 }
0x2b6b   :  { %v3108_v13 = vpop.permute.xlu0 %3107 }
0x2b6c   :  { %v3110_v35 = vadd.f32 %v3108_v13, %v3100_v0 }
0x2b6e   :  { %8155 = vtanh.f32 %v3110_v35 }
0x2b6f   :  { %v3084_v29 = vpop.permute.xlu1 %3083 }
0x2b70   :  { %v3086_v41 = vadd.f32 %v3084_v29, %v3076_v48  ;;  %v7893_v29 = vld [vmem:[%s10544_s12 + $0x10] sm:$0xff]  }
0x2b72   :  { %8157 = vtanh.f32 %v3086_v41 }
0x2b7b   :  { %v8156_v10 = vpop.eup %8155 }
0x2b7c   :  { %3113 = vrot.lane.b32.xlu0 %v8156_v10, %s8436_s0 }
0x2b7f   :  { %v8158_v47 = vpop.eup %8157 }
0x2b80   :  { %778 = vrot.lane.b32.xlu0 %v8769_v40, %s8437_s21  ;;  %3089 = vrot.lane.b32.xlu1 %v8158_v47, %s8436_s0  ;;  %v7889_v40 = vld [vmem:[%s10543_s9 + $0x18] sm:$0xff]  }
0x2b81   :  { %7482 = vmatprep.subr.bf16.mxu1 %v7889_v40 }
0x2b82   :  { %7483 = vmatpush3.bf16.msra.mxu1 %v7889_v40 }
0x2b84   :  { %2967 = vrot.lane.b32.xlu0 %v9371_v58, %s8437_s21  ;;  %934 = vrot.lane.b32.xlu1 %v8812_v12, %s8437_s21  ;;  %v7890_v12 = vld [vmem:[%s10543_s9 + $0x10] sm:$0xff]  }
0x2b85   :  { %7484 = vmatprep.subr.bf16.mxu1 %v7890_v12 }
0x2b86   :  { %7485 = vmatpush3.bf16.msra.mxu1 %v7890_v12 }
0x2b88   :  { %1090 = vrot.lane.b32.xlu0 %v8853_v25, %s8437_s21  ;;  %1246 = vrot.lane.b32.xlu1 %v8893_v28, %s8437_s21 }
0x2b8c   :  { %2655 = vrot.lane.b32.xlu0 %v9283_v16, %s8437_s21  ;;  %2811 = vrot.lane.b32.xlu1 %v9334_v18, %s8437_s21  ;;  %v7894_v16 = vld [vmem:[%s10544_s12] sm:$0xff]  }
0x2b90   :  { %1402 = vrot.lane.b32.xlu0 %v8933_v51, %s8437_s21  ;;  %1558 = vrot.lane.b32.xlu1 %v8984_v39, %s8437_s21  ;;  %v7892_v51 = vld [vmem:[%s10544_s12 + $0x8] sm:$0xff]  }
0x2b91   :  { %7542 = vmatprep.subr.bf16.mxu0 %v7892_v51 }
0x2b94   :  { %2343 = vrot.lane.b32.xlu0 %v9203_v20, %s8437_s21  ;;  %2499 = vrot.lane.b32.xlu1 %v9243_v45, %s8437_s21 }
0x2b98   :  { %1714 = vrot.lane.b32.xlu0 %v9035_v7, %s8437_s21  ;;  %1870 = vrot.lane.b32.xlu1 %v9075_v14, %s8437_s21 }
0x2b9c   :  { %2031 = vrot.lane.b32.xlu0 %v9111_v61, %s8437_s21  ;;  %2187 = vrot.lane.b32.xlu1 %v9157_v34, %s8437_s21 }
0x2ba0   :  { %1719 = vrot.lane.b32.xlu0 %v9031_v24, %s8437_s21  ;;  %1875 = vrot.lane.b32.xlu1 %v9071_v33, %s8437_s21 }
0x2ba4   :  { %2026 = vrot.lane.b32.xlu0 %v9115_v54, %s8437_s21 }
0x2ba8   :  { %1407 = vrot.lane.b32.xlu0 %v8929_v2, %s8437_s21 }
0x2bac   :  { %2338 = vrot.lane.b32.xlu0 %v9207_v17, %s8437_s21 }
0x2bb0   :  { %1095 = vrot.lane.b32.xlu0 %v8849_v56, %s8437_s21 }
0x2bb4   :  { %2650 = vrot.lane.b32.xlu0 %v9287_v11, %s8437_s21 }
0x2bb8   :  { %783 = vrot.lane.b32.xlu0 %v8765_v32, %s8437_s21  ;;  %v9459_v32 = vld [vmem:[%s10544_s12 + $0x18] sm:$0xff]  }
0x2bb9   :  { %7522 = vmatprep.subr.bf16.mxu1 %v9459_v32 }
0x2bbc   :  { %2962 = vrot.lane.b32.xlu0 %v9375_v62, %s8437_s21 }
0x2bee   :  { %v3114_v56 = vpop.permute.xlu0 %3113 }
0x2bef   :  { %v3116_v25 = vmul.f32 %v8152_v52, %v3114_v56 }
0x2bf1   :  { %3123 = vrot.lane.b32.xlu1 %v3116_v25, %s8437_s21 }
0x2bf2   :  { %v779_v28 = vpop.permute.xlu0 %778  ;;  %v3090_v2 = vpop.permute.xlu1 %3089 }
0x2bf3   :  { %781 = vst.msk [vmem:[#allocation4] sm:$0xff] %vm336_vm1, %v779_v28 }
0x2bf5   :  { %2182 = vrot.lane.b32.xlu1 %v9161_v38, %s8437_s21 }
0x2bf6   :  { %v2968_v39 = vpop.permute.xlu0 %2967  ;;  %v935_v24 = vpop.permute.xlu1 %934 }
0x2bf7   :  { %2970 = vst.msk [vmem:[#allocation5 + $0x8] sm:$0xff] %vm336_vm1, %v2968_v39  ;;  %937 = vst.msk [vmem:[#allocation4 + $0x8] sm:$0xff] %vm336_vm1, %v935_v24 }
0x2bf9   :  { %1563 = vrot.lane.b32.xlu1 %v8980_v37, %s8437_s21 }
0x2bfa   :  { %v1091_v7 = vpop.permute.xlu0 %1090  ;;  %v1247_v33 = vpop.permute.xlu1 %1246  ;;  %v3127_v54 = vld [vmem:[#allocation4] sm:$0xff] }
0x2bfb   :  { %1093 = vst.msk [vmem:[#allocation4 + $0x10] sm:$0xff] %vm336_vm1, %v1091_v7  ;;  %1249 = vst.msk [vmem:[#allocation4 + $0x18] sm:$0xff] %vm336_vm1, %v1247_v33 }
0x2bfd   :  { %2494 = vrot.lane.b32.xlu1 %v9247_v44, %s8437_s21 }
0x2bfe   :  { %v2656_v14 = vpop.permute.xlu0 %2655  ;;  %v2812_v61 = vpop.permute.xlu1 %2811  ;;  %v3128_v34 = vld [vmem:[#allocation4 + $0x8] sm:$0xff] }
0x2bff   :  { %2658 = vst.msk [vmem:[#allocation5 + $0x18] sm:$0xff] %vm336_vm1, %v2656_v14  ;;  %2814 = vst.msk [vmem:[#allocation5 + $0x10] sm:$0xff] %vm336_vm1, %v2812_v61  ;;  %v9478_v38 = vpack.c.bf16 %v3128_v34, %v3127_v54  ;;  %v3152_v30 = vld [vmem:[#allocation5 + $0x8] sm:$0xff] }
0x2c01   :  { %1251 = vrot.lane.b32.xlu1 %v8889_v31, %s8437_s21  ;;  %7506 = vmatprep.mubr.msk.bf16.mxu0 %vm336_vm1, %v9478_v38 }
0x2c02   :  { %v1403_v37 = vpop.permute.xlu0 %1402  ;;  %v1559_v20 = vpop.permute.xlu1 %1558  ;;  %v3129_v17 = vld [vmem:[#allocation4 + $0x10] sm:$0xff]  ;;  %v3130_v45 = vld [vmem:[#allocation4 + $0x18] sm:$0xff] }
0x2c03   :  { %1405 = vst.msk [vmem:[#allocation4 + $0x20] sm:$0xff] %vm336_vm1, %v1403_v37  ;;  %1561 = vst.msk [vmem:[#allocation4 + $0x28] sm:$0xff] %vm336_vm1, %v1559_v20  ;;  %v9486_v44 = vpack.c.bf16 %v3130_v45, %v3129_v17 }
0x2c05   :  { %2806 = vrot.lane.b32.xlu1 %v9338_v53, %s8437_s21  ;;  %7507 = vmatmul.mubr.msk.bf16.vlgmr.msra.gmra.mxu0 %vm336_vm1, %v9486_v44  ;;  %v3092_v53 = vmul.f32 %v9388_v63, %v3090_v2 }
0x2c06   :  { %v2344_v31 = vpop.permute.xlu0 %2343  ;;  %v2500_v11 = vpop.permute.xlu1 %2499  ;;  %7543 = vmatpush3.bf16.msra.mxu0 %v7892_v51  ;;  %v3153_v49 = vld [vmem:[#allocation5 + $0x10] sm:$0xff]  ;;  %v3154_v63 = vld [vmem:[#allocation5 + $0x18] sm:$0xff] }
0x2c07   :  { %2346 = vst.msk [vmem:[#allocation5 + $0x28] sm:$0xff] %vm336_vm1, %v2344_v31  ;;  %2502 = vst.msk [vmem:[#allocation5 + $0x20] sm:$0xff] %vm336_vm1, %v2500_v11  ;;  %7544 = vmatprep.subr.bf16.mxu0 %v7894_v16  ;;  %v3168_v48 = vpack.c.bf16 %v3154_v63, %v3153_v49 }
0x2c09   :  { %939 = vrot.lane.b32.xlu1 %v8808_v9, %s8437_s21 }
0x2c0a   :  { %v1715_v18 = vpop.permute.xlu0 %1714  ;;  %v1871_v8 = vpop.permute.xlu1 %1870  ;;  %v3131_v58 = vld [vmem:[#allocation4 + $0x20] sm:$0xff]  ;;  %v3132_v62 = vld [vmem:[#allocation4 + $0x28] sm:$0xff]  ;;  %7545 = vmatpush3.bf16.msra.mxu0 %v7894_v16 }
0x2c0b   :  { %1717 = vst.msk [vmem:[#allocation4 + $0x30] sm:$0xff] %vm336_vm1, %v1715_v18  ;;  %1873 = vst.msk [vmem:[#allocation4 + $0x38] sm:$0xff] %vm336_vm1, %v1871_v8  ;;  %v9502_v42 = vpack.c.bf16 %v3132_v62, %v3131_v58  ;;  %7570 = vmatprep.subr.bf16.mxu0 %v8433_v19 }
0x2c0d   :  { %3118 = vrot.lane.b32.xlu1 %v3092_v53, %s8437_s21  ;;  %7510 = vmatprep.mubr.msk.bf16.mxu0 %vm336_vm1, %v9502_v42 }
0x2c0e   :  { %v2032_v9 = vpop.permute.xlu0 %2031  ;;  %v2188_v4 = vpop.permute.xlu1 %2187  ;;  %v3155_v0 = vld [vmem:[#allocation5 + $0x20] sm:$0xff]  ;;  %v3156_v13 = vld [vmem:[#allocation5 + $0x28] sm:$0xff] }
0x2c0f   :  { %2034 = vst.msk [vmem:[#allocation5 + $0x38] sm:$0xff] %vm336_vm1, %v2032_v9  ;;  %2190 = vst.msk [vmem:[#allocation5 + $0x30] sm:$0xff] %vm336_vm1, %v2188_v4  ;;  %v3169_v41 = vpack.c.bf16 %v3156_v13, %v3155_v0  ;;  %v9557_v9 = vld [vmem:[%s10546_s10 + $0x8] sm:$0xff]  }
0x2c10   :  { %v9563_v4 = vld [vmem:[%s10545_s13 + $0x8] sm:$0xff]  }
0x2c12   :  { %v1720_v15 = vpop.permute.xlu0 %1719  ;;  %v1876_v50 = vpop.permute.xlu1 %1875  ;;  %v3133_v23 = vld [vmem:[#allocation4 + $0x30] sm:$0xff]  ;;  %v3134_v3 = vld [vmem:[#allocation4 + $0x38] sm:$0xff] }
0x2c13   :  { %1722 = vst.msk [vmem:[#allocation5 + $0x48] sm:$0xff] %vm336_vm1, %v1720_v15  ;;  %1878 = vst.msk [vmem:[#allocation5 + $0x40] sm:$0xff] %vm336_vm1, %v1876_v50  ;;  %v9512_v55 = vpack.c.bf16 %v3134_v3, %v3133_v23  ;;  %v9581_v15 = vld [vmem:[%s10545_s13] sm:$0xff]  }
0x2c15   :  { %7511 = vmatmul.mubr.msk.bf16.gmra.mxu0 %vm336_vm1, %v9512_v55 }
0x2c16   :  { %v2027_v43 = vpop.permute.xlu0 %2026  ;;  %v3157_v40 = vld [vmem:[#allocation5 + $0x30] sm:$0xff]  ;;  %v3158_v12 = vld [vmem:[#allocation5 + $0x38] sm:$0xff] }
0x2c17   :  { %2029 = vst.msk [vmem:[#allocation4 + $0x40] sm:$0xff] %vm336_vm1, %v2027_v43  ;;  %v3170_v2 = vpack.c.bf16 %v3158_v12, %v3157_v40 }
0x2c1a   :  { %v1408_v27 = vpop.permute.xlu0 %1407  ;;  %v3159_v25 = vld [vmem:[#allocation5 + $0x40] sm:$0xff]  ;;  %v3160_v28 = vld [vmem:[#allocation5 + $0x48] sm:$0xff] }
0x2c1b   :  { %1410 = vst.msk [vmem:[#allocation5 + $0x58] sm:$0xff] %vm336_vm1, %v1408_v27  ;;  %v3171_v51 = vpack.c.bf16 %v3160_v28, %v3159_v25 }
0x2c1e   :  { %v2339_v57 = vpop.permute.xlu0 %2338  ;;  %v3135_v5 = vld [vmem:[#allocation4 + $0x40] sm:$0xff] }
0x2c1f   :  { %2341 = vst.msk [vmem:[#allocation4 + $0x50] sm:$0xff] %vm336_vm1, %v2339_v57 }
0x2c22   :  { %v1096_v1 = vpop.permute.xlu0 %1095  ;;  %v3162_v54 = vld [vmem:[#allocation5 + $0x58] sm:$0xff] }
0x2c23   :  { %1098 = vst.msk [vmem:[#allocation5 + $0x68] sm:$0xff] %vm336_vm1, %v1096_v1 }
0x2c26   :  { %v2651_v46 = vpop.permute.xlu0 %2650 }
0x2c27   :  { %2653 = vst.msk [vmem:[#allocation4 + $0x60] sm:$0xff] %vm336_vm1, %v2651_v46 }
0x2c2a   :  { %v784_v6 = vpop.permute.xlu0 %783  ;;  %v3164_v37 = vld [vmem:[#allocation5 + $0x68] sm:$0xff] }
0x2c2b   :  { %786 = vst.msk [vmem:[#allocation5 + $0x78] sm:$0xff] %vm336_vm1, %v784_v6 }
0x2c2e   :  { %v2963_v26 = vpop.permute.xlu0 %2962  ;;  %v3139_v45 = vld [vmem:[#allocation4 + $0x60] sm:$0xff] }
0x2c2f   :  { %2965 = vst.msk [vmem:[#allocation4 + $0x70] sm:$0xff] %vm336_vm1, %v2963_v26 }
0x2c32   :  { %v3166_v18 = vld [vmem:[#allocation5 + $0x78] sm:$0xff] }
0x2c36   :  { %v3141_v58 = vld [vmem:[#allocation4 + $0x70] sm:$0xff] }
0x2c63   :  { %v3124_v59 = vpop.permute.xlu1 %3123 }
0x2c64   :  { %3126 = vst.msk [vmem:[#allocation5] sm:$0xff] %vm336_vm1, %v3124_v59 }
0x2c67   :  { %v2183_v52 = vpop.permute.xlu1 %2182 }
0x2c68   :  { %2185 = vst.msk [vmem:[#allocation4 + $0x48] sm:$0xff] %vm336_vm1, %v2183_v52 }
0x2c6b   :  { %v1564_v60 = vpop.permute.xlu1 %1563  ;;  %v3151_v21 = vld [vmem:[#allocation5] sm:$0xff] }
0x2c6c   :  { %1566 = vst.msk [vmem:[#allocation5 + $0x50] sm:$0xff] %vm336_vm1, %v1564_v60  ;;  %v3167_v35 = vpack.c.bf16 %v3152_v30, %v3151_v21 }
0x2c6e   :  { %7486 = vmatprep.mubr.msk.bf16.mxu1 %vm336_vm1, %v3167_v35 }
0x2c6f   :  { %7487 = vmatmul.mubr.msk.bf16.vlgmr.msra.gmra.mxu1 %vm336_vm1, %v3168_v48  ;;  %v2495_v10 = vpop.permute.xlu1 %2494  ;;  %v3136_v47 = vld [vmem:[#allocation4 + $0x48] sm:$0xff] }
0x2c70   :  { %2497 = vst.msk [vmem:[#allocation4 + $0x58] sm:$0xff] %vm336_vm1, %v2495_v10  ;;  %7490 = vmatprep.mubr.msk.bf16.mxu1 %vm336_vm1, %v3169_v41  ;;  %v9533_v36 = vpack.c.bf16 %v3136_v47, %v3135_v5  ;;  %7523 = vmatpush3.bf16.msra.mxu1 %v9459_v32  ;;  %v3137_v32 = vld [vmem:[#allocation4 + $0x50] sm:$0xff] }
0x2c71   :  { %7524 = vmatprep.subr.bf16.mxu1 %v7893_v29 }
0x2c72   :  { %7514 = vmatprep.mubr.msk.bf16.mxu0 %vm336_vm1, %v9533_v36 }
0x2c73   :  { %v1252_v56 = vpop.permute.xlu1 %1251  ;;  %v3161_v33 = vld [vmem:[#allocation5 + $0x50] sm:$0xff] }
0x2c74   :  { %1254 = vst.msk [vmem:[#allocation5 + $0x60] sm:$0xff] %vm336_vm1, %v1252_v56  ;;  %7525 = vmatpush3.bf16.msra.mxu1 %v7893_v29  ;;  %v3172_v34 = vpack.c.bf16 %v3162_v54, %v3161_v33 }
0x2c75   :  { %7562 = vmatprep.subr.bf16.mxu1 %v8433_v19 }
0x2c77   :  { %7491 = vmatmul.mubr.msk.bf16.gmra.mxu1 %vm336_vm1, %v3170_v2  ;;  %v2807_v39 = vpop.permute.xlu1 %2806  ;;  %v3138_v24 = vld [vmem:[#allocation4 + $0x58] sm:$0xff] }
0x2c78   :  { %2809 = vst.msk [vmem:[#allocation4 + $0x68] sm:$0xff] %vm336_vm1, %v2807_v39  ;;  %7494 = vmatprep.mubr.msk.bf16.mxu1 %vm336_vm1, %v3171_v51  ;;  %v3148_v7 = vpack.c.bf16 %v3138_v24, %v3137_v32 }
0x2c7a   :  { %7515 = vmatmul.mubr.msk.bf16.gmra.mxu0 %vm336_vm1, %v3148_v7 }
0x2c7b   :  { %v940_v14 = vpop.permute.xlu1 %939  ;;  %v3163_v61 = vld [vmem:[#allocation5 + $0x60] sm:$0xff] }
0x2c7c   :  { %942 = vst.msk [vmem:[#allocation5 + $0x70] sm:$0xff] %vm336_vm1, %v940_v14  ;;  %v3173_v20 = vpack.c.bf16 %v3164_v37, %v3163_v61 }
0x2c7f   :  { %7495 = vmatmul.mubr.msk.bf16.gmra.mxu1 %vm336_vm1, %v3172_v34  ;;  %v3119_v17 = vpop.permute.xlu1 %3118  ;;  %v3140_v16 = vld [vmem:[#allocation4 + $0x68] sm:$0xff] }
0x2c80   :  { %3121 = vst.msk [vmem:[#allocation4 + $0x78] sm:$0xff] %vm336_vm1, %v3119_v17  ;;  %7498 = vmatprep.mubr.msk.bf16.mxu1 %vm336_vm1, %v3173_v20  ;;  %v3149_v31 = vpack.c.bf16 %v3140_v16, %v3139_v45 }
0x2c82   :  { %7518 = vmatprep.mubr.msk.bf16.mxu0 %vm336_vm1, %v3149_v31 }
0x2c83   :  { %v3165_v11 = vld [vmem:[#allocation5 + $0x70] sm:$0xff] }
0x2c84   :  { %v3174_v8 = vpack.c.bf16 %v3166_v18, %v3165_v11 }
0x2c87   :  { %7499 = vmatmul.mubr.msk.bf16.gmra.mxu1 %vm336_vm1, %v3174_v8  ;;  %v3142_v62 = vld [vmem:[#allocation4 + $0x78] sm:$0xff] }
0x2c88   :  { %7526 = vmatprep.mubr.msk.bf16.mxu1 %vm336_vm1, %v3167_v35  ;;  %v3150_v53 = vpack.c.bf16 %v3142_v62, %v3141_v58 }
0x2c8a   :  { %7519 = vmatmul.mubr.msk.bf16.gmra.mxu0 %vm336_vm1, %v3150_v53 }
0x2c8b   :  { %7546 = vmatprep.mubr.msk.bf16.mxu0 %vm336_vm1, %v9478_v38  ;;  %v9570_v38 = vld [vmem:[%s10546_s10] sm:$0xff]  }
0x2c8f   :  { %7527 = vmatmul.mubr.msk.bf16.vlgmr.msra.gmra.mxu1 %vm336_vm1, %v3168_v48 }
0x2c90   :  { %7530 = vmatprep.mubr.msk.bf16.mxu1 %vm336_vm1, %v3169_v41  ;;  %7563 = vmatpush3.bf16.msra.mxu1 %v9557_v9 }
0x2c91   :  { %7564 = vmatprep.subr.bf16.mxu1 %v8433_v19 }
0x2c92   :  { %7547 = vmatmul.mubr.msk.bf16.vlgmr.msra.gmra.mxu0 %vm336_vm1, %v9486_v44 }
0x2c93   :  { %7571 = vmatpush3.bf16.msra.mxu0 %v9563_v4  ;;  %7550 = vmatprep.mubr.msk.bf16.mxu0 %vm336_vm1, %v9502_v42 }
0x2c94   :  { %7572 = vmatprep.subr.bf16.mxu0 %v8433_v19  ;;  %7565 = vmatpush3.bf16.msra.mxu1 %v9570_v38 }
0x2c95   :  { %7578 = vmatprep.subr.bf16.mxu1 %v8433_v19 }
0x2c97   :  { %7531 = vmatmul.mubr.msk.bf16.gmra.mxu1 %vm336_vm1, %v3170_v2  ;;  %7573 = vmatpush3.bf16.msra.mxu0 %v9581_v15 }
0x2c98   :  { %7534 = vmatprep.mubr.msk.bf16.mxu1 %vm336_vm1, %v3171_v51  ;;  %7586 = vmatprep.subr.bf16.mxu0 %v8433_v19 }
0x2c9a   :  { %7551 = vmatmul.mubr.msk.bf16.gmra.mxu0 %vm336_vm1, %v9512_v55  ;;  %v9623_v55 = vld [vmem:[%s10547_s11] ss:$0 sm:$0xff] }
0x2c9b   :  { %7554 = vmatprep.mubr.msk.bf16.mxu0 %vm336_vm1, %v9533_v36 }
0x2c9f   :  { %7535 = vmatmul.mubr.msk.bf16.gmra.mxu1 %vm336_vm1, %v3172_v34 }
0x2ca0   :  { %7538 = vmatprep.mubr.msk.bf16.mxu1 %vm336_vm1, %v3173_v20 }
0x2ca2   :  { %7555 = vmatmul.mubr.msk.bf16.gmra.mxu0 %vm336_vm1, %v3148_v7 }
0x2ca3   :  { %7558 = vmatprep.mubr.msk.bf16.mxu0 %vm336_vm1, %v3149_v31 }
0x2ca7   :  { %7539 = vmatmul.mubr.msk.bf16.gmra.mxu1 %vm336_vm1, %v3174_v8 }
0x2ca8   :  { %7566 = vmatprep.mubr.msk.bf16.mxu1 %vm8434_vm0, %v8433_v19 }
0x2caa   :  { %7559 = vmatmul.mubr.msk.bf16.gmra.mxu0 %vm336_vm1, %v3150_v53 }
0x2cab   :  { %7574 = vmatprep.mubr.msk.bf16.mxu0 %vm8434_vm0, %v8433_v19 }
0x2caf   :  { %7567 = vmatmul.mubr.bf16.vlgmr.msra.gmra.mxu1 %v8435_v22 }
0x2cb0   :  { %7579 = vmatpush3.bf16.msra.mxu1 %v9557_v9  ;;  %7582 = vmatprep.mubr.msk.bf16.mxu1 %vm8434_vm0, %v8433_v19 }
0x2cb1   :  { %7580 = vmatprep.subr.bf16.mxu1 %v8433_v19 }
0x2cb2   :  { %7575 = vmatmul.mubr.bf16.vlgmr.msra.gmra.mxu0 %v8435_v22 }
0x2cb3   :  { %7587 = vmatpush3.bf16.msra.mxu0 %v9563_v4  ;;  %7590 = vmatprep.mubr.msk.bf16.mxu0 %vm8434_vm0, %v8433_v19 }
0x2cb4   :  { %7581 = vmatpush3.bf16.msra.mxu1 %v9570_v38  ;;  %7588 = vmatprep.subr.bf16.mxu0 %v8433_v19 }
0x2cb5   :  { %7594 = vmatprep.subr.bf16.mxu1 %v8433_v19 }
0x2cb7   :  { %7589 = vmatpush3.bf16.msra.mxu0 %v9581_v15 }
0x2cb8   :  { %7602 = vmatprep.subr.bf16.mxu0 %v8433_v19 }
0x2cc5   :  { %v7508_v44 = vpop.f32.mrf.mxu0 }
0x2cc7   :  { %v9618_v42 = vpop.f32.mrf.mxu0 }
0x2cc9   :  { %v7509_v50 = vpop.f32.mrf.mxu0 }
0x2ccb   :  { %v3389_v22 = vpop.f32.mrf.mxu0 }
0x2cd5   :  { %v7512_v23 = vpop.f32.mrf.mxu0 }
0x2cd7   :  { %v3402_v43 = vpop.f32.mrf.mxu0 }
0x2cd9   :  { %v7513_v6 = vpop.f32.mrf.mxu0 }
0x2cdb   :  { %v3405_v63 = vpop.f32.mrf.mxu0 }
0x2d2f   :  { %v7488_v3 = vpop.f32.mrf.mxu1 }
0x2d30   :  { %v3395_v27 = vadd.f32 %v7508_v44, %v7488_v3 }
0x2d31   :  { %v9625_v57 = vpop.f32.mrf.mxu1 }
0x2d32   :  { %v9628_v1 = vadd.f32 %v9623_v55, %v3395_v27  ;;  %v9672_v27 = vld [vmem:[%s10548_s14] ss:$0 sm:$0xff] }
0x2d33   :  { %v7489_v46 = vpop.f32.mrf.mxu1 }
0x2d34   :  { %v3398_v26 = vadd.f32 %v7509_v50, %v7489_v46 }
0x2d35   :  { %v3256_v59 = vpop.f32.mrf.mxu1 }
0x2d36   :  { %v3390_v52 = vadd.f32 %v3389_v22, %v3256_v59  ;;  %v9631_v30 = vadd.f32 %v9623_v55, %v3398_v26 }
0x2d37   :  { %v7492_v49 = vpop.f32.mrf.mxu1 }
0x2d38   :  { %v3411_v60 = vadd.f32 %v7512_v23, %v7492_v49  ;;  %v9634_v21 = vadd.f32 %v9623_v55, %v3390_v52 }
0x2d39   :  { %v3269_v0 = vpop.f32.mrf.mxu1 }
0x2d3a   :  { %v3403_v13 = vadd.f32 %v3402_v43, %v3269_v0  ;;  %v7516_v35 = vpop.f32.mrf.mxu0  ;;  %v9637_v48 = vadd.f32 %v9623_v55, %v3411_v60 }
0x2d3b   :  { %v7493_v29 = vpop.f32.mrf.mxu1 }
0x2d3c   :  { %v3414_v41 = vadd.f32 %v7513_v6, %v7493_v29  ;;  %v9640_v10 = vadd.f32 %v9623_v55, %v3403_v13  ;;  %v3418_v5 = vpop.f32.mrf.mxu0 }
0x2d3d   :  { %v3272_v47 = vpop.f32.mrf.mxu1 }
0x2d3e   :  { %v3406_v36 = vadd.f32 %v3405_v63, %v3272_v47  ;;  %v9643_v40 = vadd.f32 %v9623_v55, %v3414_v41  ;;  %v7517_v28 = vpop.f32.mrf.mxu0 }
0x2d3f   :  { %v7496_v12 = vpop.f32.mrf.mxu1 }
0x2d40   :  { %v3427_v56 = vadd.f32 %v7516_v35, %v7496_v12  ;;  %v9646_v25 = vadd.f32 %v9623_v55, %v3406_v36  ;;  %v3421_v33 = vpop.f32.mrf.mxu0 }
0x2d41   :  { %v3285_v2 = vpop.f32.mrf.mxu1 }
0x2d42   :  { %v3419_v51 = vadd.f32 %v3418_v5, %v3285_v2  ;;  %v9649_v39 = vadd.f32 %v9623_v55, %v3427_v56 }
0x2d43   :  { %v7497_v32 = vpop.f32.mrf.mxu1 }
0x2d44   :  { %v3430_v24 = vadd.f32 %v7517_v28, %v7497_v32  ;;  %v9652_v7 = vadd.f32 %v9623_v55, %v3419_v51 }
0x2d45   :  { %v3288_v14 = vpop.f32.mrf.mxu1 }
0x2d46   :  { %v3422_v61 = vadd.f32 %v3421_v33, %v3288_v14  ;;  %v9655_v54 = vadd.f32 %v9623_v55, %v3430_v24 }
0x2d47   :  { %v7500_v34 = vpop.f32.mrf.mxu1 }
0x2d48   :  { %v9658_v37 = vadd.f32 %v9623_v55, %v3422_v61 }
0x2d49   :  { %v3301_v20 = vpop.f32.mrf.mxu1 }
0x2d4a   :  { %v7520_v17 = vpop.f32.mrf.mxu0 }
0x2d4b   :  { %v3443_v45 = vadd.f32 %v7520_v17, %v7500_v34  ;;  %v7501_v16 = vpop.f32.mrf.mxu1 }
0x2d4c   :  { %v3434_v31 = vpop.f32.mrf.mxu0 }
0x2d4d   :  { %v3435_v11 = vadd.f32 %v3434_v31, %v3301_v20  ;;  %v3304_v18 = vpop.f32.mrf.mxu1  ;;  %v9661_v8 = vadd.f32 %v9623_v55, %v3443_v45 }
0x2d4e   :  { %v7521_v58 = vpop.f32.mrf.mxu0 }
0x2d4f   :  { %v3446_v62 = vadd.f32 %v7521_v58, %v7501_v16  ;;  %v7528_v53 = vpop.f32.mrf.mxu1  ;;  %v9664_v44 = vadd.f32 %v9623_v55, %v3435_v11 }
0x2d50   :  { %v3437_v50 = vpop.f32.mrf.mxu0 }
0x2d51   :  { %v3438_v22 = vadd.f32 %v3437_v50, %v3304_v18  ;;  %v3542_v23 = vpop.f32.mrf.mxu1  ;;  %v9667_v3 = vadd.f32 %v9623_v55, %v3446_v62 }
0x2d52   :  { %v7548_v43 = vpop.f32.mrf.mxu0 }
0x2d53   :  { %v3660_v46 = vadd.f32 %v7548_v43, %v7528_v53  ;;  %v7529_v6 = vpop.f32.mrf.mxu1  ;;  %v9675_v26 = vadd.f32 %v9623_v55, %v3438_v22 }
0x2d54   :  { %v3651_v59 = vpop.f32.mrf.mxu0 }
0x2d55   :  { %v3652_v52 = vadd.f32 %v3651_v59, %v3542_v23  ;;  %v3545_v49 = vpop.f32.mrf.mxu1  ;;  %v9678_v63 = vadd.f32 %v9672_v27, %v3660_v46 }
0x2d56   :  { %v7549_v60 = vpop.f32.mrf.mxu0 }
0x2d57   :  { %v3663_v0 = vadd.f32 %v7549_v60, %v7529_v6  ;;  %v7532_v13 = vpop.f32.mrf.mxu1  ;;  %v9681_v35 = vadd.f32 %v9672_v27, %v3652_v52 }
0x2d58   :  { %v3654_v29 = vpop.f32.mrf.mxu0 }
0x2d59   :  { %v3655_v41 = vadd.f32 %v3654_v29, %v3545_v49  ;;  %v3558_v5 = vpop.f32.mrf.mxu1  ;;  %v9684_v47 = vadd.f32 %v9672_v27, %v3663_v0  ;;  %v3387_v0 = vadd.f32 %v9618_v42, %v9625_v57 }
0x2d5a   :  { %v7552_v36 = vpop.f32.mrf.mxu0 }
0x2d5b   :  { %v3676_v12 = vadd.f32 %v7552_v36, %v7532_v13  ;;  %v7533_v56 = vpop.f32.mrf.mxu1  ;;  %v9687_v28 = vadd.f32 %v9672_v27, %v3655_v41 }
0x2d5c   :  { %v3667_v2 = vpop.f32.mrf.mxu0 }
0x2d5d   :  { %v3668_v51 = vadd.f32 %v3667_v2, %v3558_v5  ;;  %v3561_v32 = vpop.f32.mrf.mxu1  ;;  %v9690_v24 = vadd.f32 %v9672_v27, %v3676_v12 }
0x2d5e   :  { %v7553_v33 = vpop.f32.mrf.mxu0 }
0x2d5f   :  { %v3679_v14 = vadd.f32 %v7553_v33, %v7533_v56  ;;  %v7536_v61 = vpop.f32.mrf.mxu1  ;;  %v9693_v34 = vadd.f32 %v9672_v27, %v3668_v51 }
0x2d60   :  { %v3670_v20 = vpop.f32.mrf.mxu0 }
0x2d61   :  { %v3671_v17 = vadd.f32 %v3670_v20, %v3561_v32  ;;  %v3574_v45 = vpop.f32.mrf.mxu1  ;;  %v9696_v16 = vadd.f32 %v9672_v27, %v3679_v14  ;;  %v3456_v32 = vadd.f32 %v9623_v55, %v3387_v0 }
0x2d62   :  { %v7556_v31 = vpop.f32.mrf.mxu0 }
0x2d63   :  { %v3692_v11 = vadd.f32 %v7556_v31, %v7536_v61  ;;  %v7537_v18 = vpop.f32.mrf.mxu1  ;;  %v9699_v58 = vadd.f32 %v9672_v27, %v3671_v17 }
0x2d64   :  { %v3683_v62 = vpop.f32.mrf.mxu0 }
0x2d65   :  { %v3684_v53 = vadd.f32 %v3683_v62, %v3574_v45  ;;  %v3577_v50 = vpop.f32.mrf.mxu1  ;;  %v9702_v22 = vadd.f32 %v9672_v27, %v3692_v11 }
0x2d66   :  { %v7557_v23 = vpop.f32.mrf.mxu0 }
0x2d67   :  { %v3695_v43 = vadd.f32 %v7557_v23, %v7537_v18  ;;  %v7540_v46 = vpop.f32.mrf.mxu1  ;;  %v9705_v6 = vadd.f32 %v9672_v27, %v3684_v53 }
0x2d68   :  { %v3686_v59 = vpop.f32.mrf.mxu0 }
0x2d69   :  { %v3687_v52 = vadd.f32 %v3686_v59, %v3577_v50  ;;  %v3590_v49 = vpop.f32.mrf.mxu1  ;;  %v9708_v60 = vadd.f32 %v9672_v27, %v3695_v43 }
0x2d6a   :  { %v7560_v13 = vpop.f32.mrf.mxu0 }
0x2d6b   :  { %v3708_v29 = vadd.f32 %v7560_v13, %v7540_v46  ;;  %v7541_v41 = vpop.f32.mrf.mxu1  ;;  %v9713_v5 = vadd.f32 %v9672_v27, %v3687_v52 }
0x2d6c   :  { %v3699_v36 = vpop.f32.mrf.mxu0 }
0x2d6d   :  { %v3700_v12 = vadd.f32 %v3699_v36, %v3590_v49  ;;  %v3593_v56 = vpop.f32.mrf.mxu1  ;;  %v9716_v2 = vadd.f32 %v9672_v27, %v3708_v29 }
0x2d6e   :  { %v7561_v51 = vpop.f32.mrf.mxu0 }
0x2d6f   :  { %v3711_v33 = vadd.f32 %v7561_v51, %v7541_v41  ;;  %v3808_v14 = vpop.f32.mrf.mxu1  ;;  %v9720_v61 = vadd.f32 %v9672_v27, %v3700_v12 }
0x2d70   :  { %v3814_v42 = vadd.f32 %v3808_v14, %v3456_v32  ;;  %v3702_v57 = vpop.f32.mrf.mxu0 }
0x2d71   :  { %v3703_v20 = vadd.f32 %v3702_v57, %v3593_v56  ;;  %v3736_v17 = vadd.f32 %v9672_v27, %v3711_v33  ;;  %v7568_v45 = vpop.f32.mrf.mxu1 }
0x2d72   :  { %8159 = vtanh.f32 %v3814_v42  ;;  %v3862_v31 = vpop.f32.mrf.mxu0  ;;  %v6783_v59 = vmul.f32 -1.442695, %v3814_v42 }
0x2d73   :  { %v3868_v11 = vadd.f32 %v3862_v31, %v3736_v17  ;;  %v3811_v18 = vpop.f32.mrf.mxu1  ;;  %v9724_v62 = vadd.f32 %v9672_v27, %v3703_v20 }
0x2d74   :  { %v7576_v53 = vpop.f32.mrf.mxu0 }
0x2d75   :  { %8161 = vtanh.f32 %v3868_v11  ;;  %v7569_v55 = vpop.f32.mrf.mxu1  ;;  %v6784_v52 = vmul.f32 -1.442695, %v3868_v11 }
0x2d76   :  { %v3865_v50 = vpop.f32.mrf.mxu0  ;;  %8163 = vpow2.f32 %v6783_v59 }
0x2d77   :  { %8165 = vpow2.f32 %v6784_v52 }
0x2d78   :  { %v7577_v23 = vpop.f32.mrf.mxu0 }
0x2d7f   :  { %v8160_v43 = vpop.eup %8159 }
0x2d80   :  { %3878 = vrot.lane.b32.xlu1 %v8160_v43, %s8436_s0 }
0x2d82   :  { %v8162_v46 = vpop.eup %8161 }
0x2d83   :  { %3902 = vrot.lane.b32.xlu0 %v8162_v46, %s8436_s0  ;;  %v8164_v49 = vpop.eup %8163 }
0x2d84   :  { %v8166_v0 = vpop.eup %8165  ;;  %v3872_v13 = vadd.f32 1.0, %v8164_v49 }
0x2d85   :  { %v3896_v27 = vadd.f32 1.0, %v8166_v0 }
0x2d86   :  { %8167 = vrcp.f32 %v3872_v13 }
0x2d87   :  { %8169 = vrcp.f32 %v3896_v27 }
0x2d93   :  { %v8168_v29 = vpop.eup %8167 }
0x2d94   :  { %v8170_v12 = vpop.eup %8169  ;;  %v3876_v32 = vmul.f32 0.0, %v8168_v29 }
0x2d95   :  { %v3900_v42 = vmul.f32 0.0, %v8170_v12 }
0x2df2   :  { %v3879_v41 = vpop.permute.xlu1 %3878 }
0x2df3   :  { %v3881_v36 = vmul.f32 %v8168_v29, %v3879_v41 }
0x2df5   :  { %v3903_v56 = vpop.permute.xlu0 %3902  ;;  %3883 = vrot.lane.b32.xlu1 %v3881_v36, %s8437_s21 }
0x2df6   :  { %v3905_v51 = vmul.f32 %v8170_v12, %v3903_v56 }
0x2df8   :  { %3907 = vrot.lane.b32.xlu0 %v3905_v51, %s8437_s21 }
0x2e67   :  { %v3884_v33 = vpop.permute.xlu1 %3883 }
0x2e68   :  { %v9730_v14 = vadd.f32 %v3884_v33, %v3876_v32 }
0x2e6a   :  { %8171 = vtanh.f32 %v9730_v14  ;;  %v3908_v57 = vpop.permute.xlu0 %3907 }
0x2e6b   :  { %v9733_v20 = vadd.f32 %v3908_v57, %v3900_v42 }
0x2e6d   :  { %8173 = vtanh.f32 %v9733_v20 }
0x2e77   :  { %v8172_v17 = vpop.eup %8171 }
0x2e78   :  { %3889 = vrot.lane.b32.xlu1 %v8172_v17, %s8436_s0 }
0x2e7a   :  { %v8174_v45 = vpop.eup %8173 }
0x2e7b   :  { %3913 = vrot.lane.b32.xlu0 %v8174_v45, %s8436_s0 }
0x2eea   :  { %v3890_v31 = vpop.permute.xlu1 %3889 }
0x2eeb   :  { %v9738_v11 = vmul.f32 %v8168_v29, %v3890_v31 }
0x2eed   :  { %v3928_v18 = vpack.c.bf16 %v9738_v11, %v9738_v11  ;;  %v3914_v53 = vpop.permute.xlu0 %3913 }
0x2eee   :  { %v9742_v55 = vmul.f32 %v8170_v12, %v3914_v53 }
0x2eef   :  { %3930 = vrot.lane.b32.xlu1 %v3928_v18, %s8437_s21 }
0x2ef0   :  { %v3977_v50 = vpack.c.bf16 %v9742_v55, %v9742_v55 }
0x2ef2   :  { %3979 = vrot.lane.b32.xlu0 %v3977_v50, %s8437_s21 }
0x2f61   :  { %v3931_v23 = vpop.permute.xlu1 %3930 }
0x2f62   :  { %7583 = vmatmul.mubr.msk.bf16.vlgmr.msra.gmra.mxu1 %vm336_vm1, %v3931_v23 }
0x2f63   :  { %7595 = vmatpush3.bf16.msra.mxu1 %v9557_v9  ;;  %7598 = vmatprep.mubr.msk.bf16.mxu1 %vm8434_vm0, %v8433_v19 }
0x2f64   :  { %v3980_v43 = vpop.permute.xlu0 %3979  ;;  %7596 = vmatprep.subr.bf16.mxu1 %v8433_v19 }
0x2f65   :  { %7591 = vmatmul.mubr.msk.bf16.vlgmr.msra.gmra.mxu0 %vm336_vm1, %v3980_v43 }
0x2f66   :  { %7603 = vmatpush3.bf16.msra.mxu0 %v9563_v4  ;;  %7606 = vmatprep.mubr.msk.bf16.mxu0 %vm8434_vm0, %v8433_v19 }
0x2f67   :  { %7597 = vmatpush3.bf16.msra.mxu1 %v9570_v38  ;;  %7604 = vmatprep.subr.bf16.mxu0 %v8433_v19 }
0x2f68   :  { %7610 = vmatprep.subr.bf16.mxu1 %v8433_v19 }
0x2f6a   :  { %7605 = vmatpush3.bf16.msra.mxu0 %v9581_v15 }
0x2f6b   :  { %7618 = vmatprep.subr.bf16.mxu0 %v8433_v19 }
0x3022   :  { %v3969_v46 = vpop.f32.mrf.mxu1 }
0x3023   :  { %v3975_v59 = vadd.f32 %v3969_v46, %v9634_v21 }
0x3024   :  { %v7584_v52 = vpop.f32.mrf.mxu1 }
0x3025   :  { %8175 = vtanh.f32 %v3975_v59  ;;  %v4018_v49 = vpop.f32.mrf.mxu0  ;;  %v6787_v51 = vmul.f32 -1.442695, %v3975_v59 }
0x3026   :  { %v4024_v0 = vadd.f32 %v4018_v49, %v9716_v2  ;;  %v3972_v13 = vpop.f32.mrf.mxu1 }
0x3027   :  { %v7592_v27 = vpop.f32.mrf.mxu0 }
0x3028   :  { %8177 = vtanh.f32 %v4024_v0  ;;  %v7585_v29 = vpop.f32.mrf.mxu1  ;;  %v6788_v32 = vmul.f32 -1.442695, %v4024_v0 }
0x3029   :  { %v4021_v41 = vpop.f32.mrf.mxu0  ;;  %8179 = vpow2.f32 %v6787_v51 }
0x302a   :  { %8181 = vpow2.f32 %v6788_v32 }
0x302b   :  { %v7593_v36 = vpop.f32.mrf.mxu0 }
0x3032   :  { %v8176_v12 = vpop.eup %8175 }
0x3033   :  { %4034 = vrot.lane.b32.xlu1 %v8176_v12, %s8436_s0 }
0x3035   :  { %v8178_v56 = vpop.eup %8177 }
0x3036   :  { %4058 = vrot.lane.b32.xlu0 %v8178_v56, %s8436_s0  ;;  %v8180_v21 = vpop.eup %8179 }
0x3037   :  { %v8182_v33 = vpop.eup %8181  ;;  %v4028_v42 = vadd.f32 1.0, %v8180_v21 }
0x3038   :  { %v4052_v2 = vadd.f32 1.0, %v8182_v33 }
0x3039   :  { %8183 = vrcp.f32 %v4028_v42 }
0x303a   :  { %8185 = vrcp.f32 %v4052_v2 }
0x3046   :  { %v8184_v57 = vpop.eup %8183 }
0x3047   :  { %v8186_v31 = vpop.eup %8185  ;;  %v4032_v50 = vmul.f32 %v8184_v57, %v9730_v14 }
0x3048   :  { %v4056_v46 = vmul.f32 %v8186_v31, %v9733_v20 }
0x30a5   :  { %v4035_v17 = vpop.permute.xlu1 %4034 }
0x30a6   :  { %v4037_v45 = vmul.f32 %v8184_v57, %v4035_v17 }
0x30a8   :  { %v4059_v18 = vpop.permute.xlu0 %4058  ;;  %4039 = vrot.lane.b32.xlu1 %v4037_v45, %s8437_s21 }
0x30a9   :  { %v4061_v53 = vmul.f32 %v8186_v31, %v4059_v18 }
0x30ab   :  { %4063 = vrot.lane.b32.xlu0 %v4061_v53, %s8437_s21 }
0x311a   :  { %v4040_v23 = vpop.permute.xlu1 %4039 }
0x311b   :  { %v9769_v43 = vadd.f32 %v4040_v23, %v4032_v50 }
0x311d   :  { %8187 = vtanh.f32 %v9769_v43  ;;  %v4064_v59 = vpop.permute.xlu0 %4063 }
0x311e   :  { %v9773_v52 = vadd.f32 %v4064_v59, %v4056_v46 }
0x3120   :  { %8189 = vtanh.f32 %v9773_v52 }
0x312a   :  { %v8188_v49 = vpop.eup %8187 }
0x312b   :  { %4045 = vrot.lane.b32.xlu1 %v8188_v49, %s8436_s0 }
0x312d   :  { %v8190_v0 = vpop.eup %8189 }
0x312e   :  { %4069 = vrot.lane.b32.xlu0 %v8190_v0, %s8436_s0 }
0x319d   :  { %v4046_v13 = vpop.permute.xlu1 %4045 }
0x319e   :  { %v9778_v14 = vmul.f32 %v8184_v57, %v4046_v13 }
0x31a0   :  { %v4084_v27 = vpack.c.bf16 %v9778_v14, %v9778_v14  ;;  %v4070_v20 = vpop.permute.xlu0 %4069 }
0x31a1   :  { %v9782_v29 = vmul.f32 %v8186_v31, %v4070_v20 }
0x31a2   :  { %4086 = vrot.lane.b32.xlu1 %v4084_v27, %s8437_s21 }
0x31a3   :  { %v4133_v41 = vpack.c.bf16 %v9782_v29, %v9782_v29 }
0x31a5   :  { %4135 = vrot.lane.b32.xlu0 %v4133_v41, %s8437_s21 }
0x3214   :  { %v4087_v36 = vpop.permute.xlu1 %4086 }
0x3215   :  { %7599 = vmatmul.mubr.msk.bf16.vlgmr.msra.gmra.mxu1 %vm336_vm1, %v4087_v36 }
0x3216   :  { %7611 = vmatpush3.bf16.msra.mxu1 %v9557_v9  ;;  %7614 = vmatprep.mubr.msk.bf16.mxu1 %vm8434_vm0, %v8433_v19 }
0x3217   :  { %v4136_v12 = vpop.permute.xlu0 %4135  ;;  %7612 = vmatprep.subr.bf16.mxu1 %v8433_v19 }
0x3218   :  { %7607 = vmatmul.mubr.msk.bf16.vlgmr.msra.gmra.mxu0 %vm336_vm1, %v4136_v12 }
0x3219   :  { %7619 = vmatpush3.bf16.msra.mxu0 %v9563_v4  ;;  %7622 = vmatprep.mubr.msk.bf16.mxu0 %vm8434_vm0, %v8433_v19 }
0x321a   :  { %7613 = vmatpush3.bf16.msra.mxu1 %v9570_v38  ;;  %7620 = vmatprep.subr.bf16.mxu0 %v8433_v19 }
0x321b   :  { %7626 = vmatprep.subr.bf16.mxu1 %v8433_v19 }
0x321d   :  { %7621 = vmatpush3.bf16.msra.mxu0 %v9581_v15 }
0x321e   :  { %7634 = vmatprep.subr.bf16.mxu0 %v8433_v19 }
0x32d5   :  { %v4125_v56 = vpop.f32.mrf.mxu1 }
0x32d6   :  { %v4131_v51 = vadd.f32 %v4125_v56, %v9628_v1 }
0x32d7   :  { %v7600_v32 = vpop.f32.mrf.mxu1 }
0x32d8   :  { %8191 = vtanh.f32 %v4131_v51  ;;  %v4174_v21 = vpop.f32.mrf.mxu0  ;;  %v6791_v53 = vmul.f32 -1.442695, %v4131_v51 }
0x32d9   :  { %v4180_v33 = vadd.f32 %v4174_v21, %v9724_v62  ;;  %v4128_v42 = vpop.f32.mrf.mxu1 }
0x32da   :  { %v7608_v2 = vpop.f32.mrf.mxu0 }
0x32db   :  { %8193 = vtanh.f32 %v4180_v33  ;;  %v7601_v57 = vpop.f32.mrf.mxu1  ;;  %v6792_v50 = vmul.f32 -1.442695, %v4180_v33 }
0x32dc   :  { %v4177_v17 = vpop.f32.mrf.mxu0  ;;  %8195 = vpow2.f32 %v6791_v53 }
0x32dd   :  { %8197 = vpow2.f32 %v6792_v50 }
0x32de   :  { %v7609_v45 = vpop.f32.mrf.mxu0 }
0x32e5   :  { %v8192_v31 = vpop.eup %8191 }
0x32e6   :  { %4190 = vrot.lane.b32.xlu1 %v8192_v31, %s8436_s0 }
0x32e8   :  { %v8194_v18 = vpop.eup %8193 }
0x32e9   :  { %4214 = vrot.lane.b32.xlu0 %v8194_v18, %s8436_s0  ;;  %v8196_v1 = vpop.eup %8195 }
0x32ea   :  { %v8198_v23 = vpop.eup %8197  ;;  %v4184_v46 = vadd.f32 1.0, %v8196_v1 }
0x32eb   :  { %v4208_v62 = vadd.f32 1.0, %v8198_v23 }
0x32ec   :  { %8199 = vrcp.f32 %v4184_v46 }
0x32ed   :  { %8201 = vrcp.f32 %v4208_v62 }
0x32f9   :  { %v8200_v59 = vpop.eup %8199 }
0x32fa   :  { %v8202_v13 = vpop.eup %8201  ;;  %v4188_v41 = vmul.f32 %v8200_v59, %v9769_v43 }
0x32fb   :  { %v4212_v56 = vmul.f32 %v8202_v13, %v9773_v52 }
0x3358   :  { %v4191_v49 = vpop.permute.xlu1 %4190 }
0x3359   :  { %v4193_v0 = vmul.f32 %v8200_v59, %v4191_v49 }
0x335b   :  { %4195 = vrot.lane.b32.xlu1 %v4193_v0, %s8437_s21  ;;  %v4215_v27 = vpop.permute.xlu0 %4214 }
0x335c   :  { %v4217_v20 = vmul.f32 %v8202_v13, %v4215_v27 }
0x335e   :  { %4219 = vrot.lane.b32.xlu0 %v4217_v20, %s8437_s21 }
0x33cd   :  { %v4196_v36 = vpop.permute.xlu1 %4195 }
0x33ce   :  { %v9809_v12 = vadd.f32 %v4196_v36, %v4188_v41 }
0x33d0   :  { %8203 = vtanh.f32 %v9809_v12  ;;  %v4220_v51 = vpop.permute.xlu0 %4219 }
0x33d1   :  { %v9813_v32 = vadd.f32 %v4220_v51, %v4212_v56 }
0x33d3   :  { %8205 = vtanh.f32 %v9813_v32 }
0x33dd   :  { %v8204_v21 = vpop.eup %8203 }
0x33de   :  { %4201 = vrot.lane.b32.xlu1 %v8204_v21, %s8436_s0 }
0x33e0   :  { %v8206_v33 = vpop.eup %8205 }
0x33e1   :  { %4225 = vrot.lane.b32.xlu0 %v8206_v33, %s8436_s0 }
0x3450   :  { %v4202_v42 = vpop.permute.xlu1 %4201 }
0x3451   :  { %v9818_v43 = vmul.f32 %v8200_v59, %v4202_v42 }
0x3453   :  { %v4240_v2 = vpack.c.bf16 %v9818_v43, %v9818_v43  ;;  %v4226_v52 = vpop.permute.xlu0 %4225 }
0x3454   :  { %v9822_v57 = vmul.f32 %v8202_v13, %v4226_v52 }
0x3455   :  { %4242 = vrot.lane.b32.xlu1 %v4240_v2, %s8437_s21 }
0x3456   :  { %v4289_v17 = vpack.c.bf16 %v9822_v57, %v9822_v57 }
0x3458   :  { %4291 = vrot.lane.b32.xlu0 %v4289_v17, %s8437_s21 }
0x34c7   :  { %v4243_v45 = vpop.permute.xlu1 %4242 }
0x34c8   :  { %7615 = vmatmul.mubr.msk.bf16.vlgmr.msra.gmra.mxu1 %vm336_vm1, %v4243_v45 }
0x34c9   :  { %7627 = vmatpush3.bf16.msra.mxu1 %v9557_v9  ;;  %7630 = vmatprep.mubr.msk.bf16.mxu1 %vm8434_vm0, %v8433_v19 }
0x34ca   :  { %v4292_v31 = vpop.permute.xlu0 %4291  ;;  %7628 = vmatprep.subr.bf16.mxu1 %v8433_v19 }
0x34cb   :  { %7623 = vmatmul.mubr.msk.bf16.vlgmr.msra.gmra.mxu0 %vm336_vm1, %v4292_v31 }
0x34cc   :  { %7635 = vmatpush3.bf16.msra.mxu0 %v9563_v4  ;;  %7638 = vmatprep.mubr.msk.bf16.mxu0 %vm8434_vm0, %v8433_v19 }
0x34cd   :  { %7629 = vmatpush3.bf16.msra.mxu1 %v9570_v38  ;;  %7636 = vmatprep.subr.bf16.mxu0 %v8433_v19 }
0x34ce   :  { %7642 = vmatprep.subr.bf16.mxu1 %v8433_v19 }
0x34d0   :  { %7637 = vmatpush3.bf16.msra.mxu0 %v9581_v15 }
0x34d1   :  { %7650 = vmatprep.subr.bf16.mxu0 %v8433_v19 }
0x3588   :  { %v4281_v18 = vpop.f32.mrf.mxu1 }
0x3589   :  { %v4287_v53 = vadd.f32 %v4281_v18, %v9631_v30 }
0x358a   :  { %v7616_v50 = vpop.f32.mrf.mxu1 }
0x358b   :  { %8207 = vtanh.f32 %v4287_v53  ;;  %v4330_v1 = vpop.f32.mrf.mxu0  ;;  %v6795_v20 = vmul.f32 -1.442695, %v4287_v53 }
0x358c   :  { %v4336_v23 = vadd.f32 %v4330_v1, %v9720_v61  ;;  %v4284_v46 = vpop.f32.mrf.mxu1 }
0x358d   :  { %v7624_v62 = vpop.f32.mrf.mxu0 }
0x358e   :  { %8209 = vtanh.f32 %v4336_v23  ;;  %v7617_v59 = vpop.f32.mrf.mxu1  ;;  %v6796_v41 = vmul.f32 -1.442695, %v4336_v23 }
0x358f   :  { %v4333_v49 = vpop.f32.mrf.mxu0  ;;  %8211 = vpow2.f32 %v6795_v20 }
0x3590   :  { %8213 = vpow2.f32 %v6796_v41 }
0x3591   :  { %v7625_v0 = vpop.f32.mrf.mxu0 }
0x3598   :  { %v8208_v13 = vpop.eup %8207 }
0x3599   :  { %4346 = vrot.lane.b32.xlu1 %v8208_v13, %s8436_s0 }
0x359b   :  { %v8210_v27 = vpop.eup %8209 }
0x359c   :  { %4370 = vrot.lane.b32.xlu0 %v8210_v27, %s8436_s0  ;;  %v8212_v30 = vpop.eup %8211 }
0x359d   :  { %v8214_v36 = vpop.eup %8213  ;;  %v4340_v56 = vadd.f32 1.0, %v8212_v30 }
0x359e   :  { %v4364_v61 = vadd.f32 1.0, %v8214_v36 }
0x359f   :  { %8215 = vrcp.f32 %v4340_v56 }
0x35a0   :  { %8217 = vrcp.f32 %v4364_v61 }
0x35ac   :  { %v8216_v51 = vpop.eup %8215 }
0x35ad   :  { %v8218_v42 = vpop.eup %8217  ;;  %v4344_v17 = vmul.f32 %v8216_v51, %v9809_v12 }
0x35ae   :  { %v4368_v18 = vmul.f32 %v8218_v42, %v9813_v32 }
0x360b   :  { %v4347_v21 = vpop.permute.xlu1 %4346 }
0x360c   :  { %v4349_v33 = vmul.f32 %v8216_v51, %v4347_v21 }
0x360e   :  { %4351 = vrot.lane.b32.xlu1 %v4349_v33, %s8437_s21  ;;  %v4371_v2 = vpop.permute.xlu0 %4370 }
0x360f   :  { %v4373_v52 = vmul.f32 %v8218_v42, %v4371_v2 }
0x3611   :  { %4375 = vrot.lane.b32.xlu0 %v4373_v52, %s8437_s21 }
0x3680   :  { %v4352_v45 = vpop.permute.xlu1 %4351 }
0x3681   :  { %v9849_v31 = vadd.f32 %v4352_v45, %v4344_v17 }
0x3683   :  { %8219 = vtanh.f32 %v9849_v31  ;;  %v4376_v53 = vpop.permute.xlu0 %4375 }
0x3684   :  { %v9853_v50 = vadd.f32 %v4376_v53, %v4368_v18 }
0x3686   :  { %8221 = vtanh.f32 %v9853_v50 }
0x3690   :  { %v8220_v1 = vpop.eup %8219 }
0x3691   :  { %4357 = vrot.lane.b32.xlu1 %v8220_v1, %s8436_s0 }
0x3693   :  { %v8222_v23 = vpop.eup %8221 }
0x3694   :  { %4381 = vrot.lane.b32.xlu0 %v8222_v23, %s8436_s0 }
0x3703   :  { %v4358_v46 = vpop.permute.xlu1 %4357 }
0x3704   :  { %v9858_v12 = vmul.f32 %v8216_v51, %v4358_v46 }
0x3706   :  { %v4396_v62 = vpack.c.bf16 %v9858_v12, %v9858_v12  ;;  %v4382_v32 = vpop.permute.xlu0 %4381 }
0x3707   :  { %v9862_v59 = vmul.f32 %v8218_v42, %v4382_v32 }
0x3708   :  { %4398 = vrot.lane.b32.xlu1 %v4396_v62, %s8437_s21 }
0x3709   :  { %v4445_v49 = vpack.c.bf16 %v9862_v59, %v9862_v59 }
0x370b   :  { %4447 = vrot.lane.b32.xlu0 %v4445_v49, %s8437_s21 }
0x377a   :  { %v4399_v0 = vpop.permute.xlu1 %4398 }
0x377b   :  { %7631 = vmatmul.mubr.msk.bf16.vlgmr.msra.gmra.mxu1 %vm336_vm1, %v4399_v0 }
0x377c   :  { %7643 = vmatpush3.bf16.msra.mxu1 %v9557_v9  ;;  %7646 = vmatprep.mubr.msk.bf16.mxu1 %vm8434_vm0, %v8433_v19 }
0x377d   :  { %v4448_v13 = vpop.permute.xlu0 %4447  ;;  %7644 = vmatprep.subr.bf16.mxu1 %v8433_v19 }
0x377e   :  { %7639 = vmatmul.mubr.msk.bf16.vlgmr.msra.gmra.mxu0 %vm336_vm1, %v4448_v13 }
0x377f   :  { %7651 = vmatpush3.bf16.msra.mxu0 %v9563_v4  ;;  %7654 = vmatprep.mubr.msk.bf16.mxu0 %vm8434_vm0, %v8433_v19 }
0x3780   :  { %7645 = vmatpush3.bf16.msra.mxu1 %v9570_v38  ;;  %7652 = vmatprep.subr.bf16.mxu0 %v8433_v19 }
0x3781   :  { %7658 = vmatprep.subr.bf16.mxu1 %v8433_v19 }
0x3783   :  { %7653 = vmatpush3.bf16.msra.mxu0 %v9581_v15 }
0x3784   :  { %7666 = vmatprep.subr.bf16.mxu0 %v8433_v19 }
0x383b   :  { %v4437_v27 = vpop.f32.mrf.mxu1 }
0x383c   :  { %v4443_v20 = vadd.f32 %v4437_v27, %v9640_v10 }
0x383d   :  { %v7632_v41 = vpop.f32.mrf.mxu1 }
0x383e   :  { %8223 = vtanh.f32 %v4443_v20  ;;  %v4486_v30 = vpop.f32.mrf.mxu0  ;;  %v6799_v52 = vmul.f32 -1.442695, %v4443_v20 }
0x383f   :  { %v4492_v36 = vadd.f32 %v4486_v30, %v9708_v60  ;;  %v4440_v56 = vpop.f32.mrf.mxu1 }
0x3840   :  { %v7640_v61 = vpop.f32.mrf.mxu0 }
0x3841   :  { %8225 = vtanh.f32 %v4492_v36  ;;  %v7633_v51 = vpop.f32.mrf.mxu1  ;;  %v6800_v17 = vmul.f32 -1.442695, %v4492_v36 }
0x3842   :  { %v4489_v21 = vpop.f32.mrf.mxu0  ;;  %8227 = vpow2.f32 %v6799_v52 }
0x3843   :  { %8229 = vpow2.f32 %v6800_v17 }
0x3844   :  { %v7641_v33 = vpop.f32.mrf.mxu0 }
0x384b   :  { %v8224_v42 = vpop.eup %8223 }
0x384c   :  { %4502 = vrot.lane.b32.xlu1 %v8224_v42, %s8436_s0 }
0x384e   :  { %v8226_v2 = vpop.eup %8225 }
0x384f   :  { %4526 = vrot.lane.b32.xlu0 %v8226_v2, %s8436_s0  ;;  %v8228_v10 = vpop.eup %8227 }
0x3850   :  { %v8230_v45 = vpop.eup %8229  ;;  %v4496_v18 = vadd.f32 1.0, %v8228_v10 }
0x3851   :  { %v4520_v60 = vadd.f32 1.0, %v8230_v45 }
0x3852   :  { %8231 = vrcp.f32 %v4496_v18 }
0x3853   :  { %8233 = vrcp.f32 %v4520_v60 }
0x385f   :  { %v8232_v53 = vpop.eup %8231 }
0x3860   :  { %v8234_v46 = vpop.eup %8233  ;;  %v4500_v49 = vmul.f32 %v8232_v53, %v9849_v31 }
0x3861   :  { %v4524_v27 = vmul.f32 %v8234_v46, %v9853_v50 }
0x38be   :  { %v4503_v1 = vpop.permute.xlu1 %4502 }
0x38bf   :  { %v4505_v23 = vmul.f32 %v8232_v53, %v4503_v1 }
0x38c1   :  { %4507 = vrot.lane.b32.xlu1 %v4505_v23, %s8437_s21  ;;  %v4527_v62 = vpop.permute.xlu0 %4526 }
0x38c2   :  { %v4529_v32 = vmul.f32 %v8234_v46, %v4527_v62 }
0x38c4   :  { %4531 = vrot.lane.b32.xlu0 %v4529_v32, %s8437_s21 }
0x3933   :  { %v4508_v0 = vpop.permute.xlu1 %4507 }
0x3934   :  { %v9889_v13 = vadd.f32 %v4508_v0, %v4500_v49 }
0x3936   :  { %8235 = vtanh.f32 %v9889_v13  ;;  %v4532_v20 = vpop.permute.xlu0 %4531 }
0x3937   :  { %v9893_v41 = vadd.f32 %v4532_v20, %v4524_v27 }
0x3939   :  { %8237 = vtanh.f32 %v9893_v41 }
0x3943   :  { %v8236_v30 = vpop.eup %8235 }
0x3944   :  { %4513 = vrot.lane.b32.xlu1 %v8236_v30, %s8436_s0 }
0x3946   :  { %v8238_v36 = vpop.eup %8237 }
0x3947   :  { %4537 = vrot.lane.b32.xlu0 %v8238_v36, %s8436_s0 }
0x39b6   :  { %v4514_v56 = vpop.permute.xlu1 %4513 }
0x39b7   :  { %v9898_v31 = vmul.f32 %v8232_v53, %v4514_v56 }
0x39b9   :  { %v4552_v61 = vpack.c.bf16 %v9898_v31, %v9898_v31  ;;  %v4538_v50 = vpop.permute.xlu0 %4537 }
0x39ba   :  { %v9902_v51 = vmul.f32 %v8234_v46, %v4538_v50 }
0x39bb   :  { %4554 = vrot.lane.b32.xlu1 %v4552_v61, %s8437_s21 }
0x39bc   :  { %v4601_v21 = vpack.c.bf16 %v9902_v51, %v9902_v51 }
0x39be   :  { %4603 = vrot.lane.b32.xlu0 %v4601_v21, %s8437_s21 }
0x3a2d   :  { %v4555_v33 = vpop.permute.xlu1 %4554 }
0x3a2e   :  { %7647 = vmatmul.mubr.msk.bf16.vlgmr.msra.gmra.mxu1 %vm336_vm1, %v4555_v33 }
0x3a2f   :  { %7659 = vmatpush3.bf16.msra.mxu1 %v9557_v9  ;;  %7662 = vmatprep.mubr.msk.bf16.mxu1 %vm8434_vm0, %v8433_v19 }
0x3a30   :  { %v4604_v42 = vpop.permute.xlu0 %4603  ;;  %7660 = vmatprep.subr.bf16.mxu1 %v8433_v19 }
0x3a31   :  { %7655 = vmatmul.mubr.msk.bf16.vlgmr.msra.gmra.mxu0 %vm336_vm1, %v4604_v42 }
0x3a32   :  { %7667 = vmatpush3.bf16.msra.mxu0 %v9563_v4  ;;  %7670 = vmatprep.mubr.msk.bf16.mxu0 %vm8434_vm0, %v8433_v19 }
0x3a33   :  { %7661 = vmatpush3.bf16.msra.mxu1 %v9570_v38  ;;  %7668 = vmatprep.subr.bf16.mxu0 %v8433_v19 }
0x3a34   :  { %7674 = vmatprep.subr.bf16.mxu1 %v8433_v19 }
0x3a36   :  { %7669 = vmatpush3.bf16.msra.mxu0 %v9581_v15 }
0x3a37   :  { %7682 = vmatprep.subr.bf16.mxu0 %v8433_v19 }
0x3aee   :  { %v4593_v9 = vpop.f32.mrf.mxu1 }
0x3aef   :  { %v4599_v2 = vadd.f32 %v4593_v9, %v9646_v25 }
0x3af0   :  { %v7648_v52 = vpop.f32.mrf.mxu1 }
0x3af1   :  { %8239 = vtanh.f32 %v4599_v2  ;;  %v4642_v17 = vpop.f32.mrf.mxu0  ;;  %v6803_v1 = vmul.f32 -1.442695, %v4599_v2 }
0x3af2   :  { %v4648_v4 = vadd.f32 %v4642_v17, %v9702_v22  ;;  %v4596_v10 = vpop.f32.mrf.mxu1 }
0x3af3   :  { %v7656_v45 = vpop.f32.mrf.mxu0 }
0x3af4   :  { %8241 = vtanh.f32 %v4648_v4  ;;  %v7649_v38 = vpop.f32.mrf.mxu1  ;;  %v6804_v23 = vmul.f32 -1.442695, %v4648_v4  ;;  %v9952_v45 = vld [vmem:[%s10546_s10 + $0x8] sm:$0xff]  }
0x3af5   :  { %v4645_v18 = vpop.f32.mrf.mxu0  ;;  %8243 = vpow2.f32 %v6803_v1 }
0x3af6   :  { %8245 = vpow2.f32 %v6804_v23  ;;  %v9962_v18 = vld [vmem:[%s10545_s13 + $0x8] sm:$0xff]  }
0x3af7   :  { %v7657_v60 = vpop.f32.mrf.mxu0 }
0x3af8   :  { %v9970_v60 = vld [vmem:[%s10546_s10] sm:$0xff]  }
0x3afe   :  { %v8240_v53 = vpop.eup %8239 }
0x3aff   :  { %4658 = vrot.lane.b32.xlu1 %v8240_v53, %s8436_s0  ;;  %v9978_v53 = vld [vmem:[%s10545_s13] sm:$0xff]  }
0x3b01   :  { %v8242_v15 = vpop.eup %8241 }
0x3b02   :  { %4682 = vrot.lane.b32.xlu0 %v8242_v15, %s8436_s0  ;;  %v8244_v25 = vpop.eup %8243 }
0x3b03   :  { %v8246_v46 = vpop.eup %8245  ;;  %v4652_v62 = vadd.f32 1.0, %v8244_v25 }
0x3b04   :  { %v4676_v22 = vadd.f32 1.0, %v8246_v46 }
0x3b05   :  { %8247 = vrcp.f32 %v4652_v62 }
0x3b06   :  { %8249 = vrcp.f32 %v4676_v22 }
0x3b12   :  { %v8248_v32 = vpop.eup %8247 }
0x3b13   :  { %v8250_v27 = vpop.eup %8249  ;;  %v4656_v36 = vmul.f32 %v8248_v32, %v9889_v13 }
0x3b14   :  { %v4680_v50 = vmul.f32 %v8250_v27, %v9893_v41 }
0x3b71   :  { %v4659_v49 = vpop.permute.xlu1 %4658 }
0x3b72   :  { %v4661_v0 = vmul.f32 %v8248_v32, %v4659_v49 }
0x3b74   :  { %4663 = vrot.lane.b32.xlu1 %v4661_v0, %s8437_s21  ;;  %v4683_v20 = vpop.permute.xlu0 %4682 }
0x3b75   :  { %v4685_v30 = vmul.f32 %v8250_v27, %v4683_v20 }
0x3b77   :  { %4687 = vrot.lane.b32.xlu0 %v4685_v30, %s8437_s21 }
0x3be6   :  { %v4664_v56 = vpop.permute.xlu1 %4663 }
0x3be7   :  { %v9929_v61 = vadd.f32 %v4664_v56, %v4656_v36 }
0x3be9   :  { %8251 = vtanh.f32 %v9929_v61  ;;  %v4688_v21 = vpop.permute.xlu0 %4687 }
0x3bea   :  { %v9933_v33 = vadd.f32 %v4688_v21, %v4680_v50 }
0x3bec   :  { %8253 = vtanh.f32 %v9933_v33 }
0x3bf6   :  { %v8252_v42 = vpop.eup %8251 }
0x3bf7   :  { %4669 = vrot.lane.b32.xlu1 %v8252_v42, %s8436_s0 }
0x3bf9   :  { %v8254_v9 = vpop.eup %8253 }
0x3bfa   :  { %4693 = vrot.lane.b32.xlu0 %v8254_v9, %s8436_s0 }
0x3c69   :  { %v4670_v2 = vpop.permute.xlu1 %4669 }
0x3c6a   :  { %v9938_v13 = vmul.f32 %v8248_v32, %v4670_v2 }
0x3c6c   :  { %v4708_v52 = vpack.c.bf16 %v9938_v13, %v9938_v13  ;;  %v4694_v41 = vpop.permute.xlu0 %4693 }
0x3c6d   :  { %v9942_v17 = vmul.f32 %v8250_v27, %v4694_v41 }
0x3c6e   :  { %4710 = vrot.lane.b32.xlu1 %v4708_v52, %s8437_s21 }
0x3c6f   :  { %v4757_v4 = vpack.c.bf16 %v9942_v17, %v9942_v17 }
0x3c71   :  { %4759 = vrot.lane.b32.xlu0 %v4757_v4, %s8437_s21 }
0x3ce0   :  { %v4711_v10 = vpop.permute.xlu1 %4710 }
0x3ce1   :  { %7663 = vmatmul.mubr.msk.bf16.vlgmr.msra.gmra.mxu1 %vm336_vm1, %v4711_v10 }
0x3ce2   :  { %7675 = vmatpush3.bf16.msra.mxu1 %v9952_v45  ;;  %7678 = vmatprep.mubr.msk.bf16.mxu1 %vm8434_vm0, %v8433_v19 }
0x3ce3   :  { %v4760_v38 = vpop.permute.xlu0 %4759  ;;  %7676 = vmatprep.subr.bf16.mxu1 %v8433_v19 }
0x3ce4   :  { %7671 = vmatmul.mubr.msk.bf16.vlgmr.msra.gmra.mxu0 %vm336_vm1, %v4760_v38 }
0x3ce5   :  { %7683 = vmatpush3.bf16.msra.mxu0 %v9962_v18  ;;  %7686 = vmatprep.mubr.msk.bf16.mxu0 %vm8434_vm0, %v8433_v19 }
0x3ce6   :  { %7677 = vmatpush3.bf16.msra.mxu1 %v9970_v60  ;;  %7684 = vmatprep.subr.bf16.mxu0 %v8433_v19 }
0x3ce7   :  { %7690 = vmatprep.subr.bf16.mxu1 %v8433_v19 }
0x3ce9   :  { %7685 = vmatpush3.bf16.msra.mxu0 %v9978_v53 }
0x3cea   :  { %7698 = vmatprep.subr.bf16.mxu0 %v8433_v19 }
0x3da1   :  { %v4749_v15 = vpop.f32.mrf.mxu1 }
0x3da2   :  { %v4755_v1 = vadd.f32 %v4749_v15, %v9637_v48 }
0x3da3   :  { %v7664_v23 = vpop.f32.mrf.mxu1 }
0x3da4   :  { %8255 = vtanh.f32 %v4755_v1  ;;  %v4798_v25 = vpop.f32.mrf.mxu0  ;;  %v6807_v30 = vmul.f32 -1.442695, %v4755_v1 }
0x3da5   :  { %v4804_v46 = vadd.f32 %v4798_v25, %v9713_v5  ;;  %v4752_v62 = vpop.f32.mrf.mxu1 }
0x3da6   :  { %v7672_v22 = vpop.f32.mrf.mxu0 }
0x3da7   :  { %8257 = vtanh.f32 %v4804_v46  ;;  %v7665_v32 = vpop.f32.mrf.mxu1  ;;  %v6808_v36 = vmul.f32 -1.442695, %v4804_v46 }
0x3da8   :  { %v4801_v49 = vpop.f32.mrf.mxu0  ;;  %8259 = vpow2.f32 %v6807_v30 }
0x3da9   :  { %8261 = vpow2.f32 %v6808_v36 }
0x3daa   :  { %v7673_v0 = vpop.f32.mrf.mxu0 }
0x3db1   :  { %v8256_v27 = vpop.eup %8255 }
0x3db2   :  { %4814 = vrot.lane.b32.xlu1 %v8256_v27, %s8436_s0 }
0x3db4   :  { %v8258_v20 = vpop.eup %8257 }
0x3db5   :  { %4838 = vrot.lane.b32.xlu0 %v8258_v20, %s8436_s0  ;;  %v8260_v48 = vpop.eup %8259 }
0x3db6   :  { %v8262_v56 = vpop.eup %8261  ;;  %v4808_v50 = vadd.f32 1.0, %v8260_v48 }
0x3db7   :  { %v4832_v5 = vadd.f32 1.0, %v8262_v56 }
0x3db8   :  { %8263 = vrcp.f32 %v4808_v50 }
0x3db9   :  { %8265 = vrcp.f32 %v4832_v5 }
0x3dc5   :  { %v8264_v21 = vpop.eup %8263 }
0x3dc6   :  { %v8266_v2 = vpop.eup %8265  ;;  %v4812_v4 = vmul.f32 %v8264_v21, %v9929_v61 }
0x3dc7   :  { %v4836_v15 = vmul.f32 %v8266_v2, %v9933_v33 }
0x3e24   :  { %v4815_v42 = vpop.permute.xlu1 %4814 }
0x3e25   :  { %v4817_v9 = vmul.f32 %v8264_v21, %v4815_v42 }
0x3e27   :  { %4819 = vrot.lane.b32.xlu1 %v4817_v9, %s8437_s21  ;;  %v4839_v52 = vpop.permute.xlu0 %4838 }
0x3e28   :  { %v4841_v41 = vmul.f32 %v8266_v2, %v4839_v52 }
0x3e2a   :  { %4843 = vrot.lane.b32.xlu0 %v4841_v41, %s8437_s21 }
0x3e99   :  { %v4820_v10 = vpop.permute.xlu1 %4819 }
0x3e9a   :  { %v9989_v38 = vadd.f32 %v4820_v10, %v4812_v4 }
0x3e9c   :  { %8267 = vtanh.f32 %v9989_v38  ;;  %v4844_v1 = vpop.permute.xlu0 %4843 }
0x3e9d   :  { %v9993_v23 = vadd.f32 %v4844_v1, %v4836_v15 }
0x3e9f   :  { %8269 = vtanh.f32 %v9993_v23 }
0x3ea9   :  { %v8268_v25 = vpop.eup %8267 }
0x3eaa   :  { %4825 = vrot.lane.b32.xlu1 %v8268_v25, %s8436_s0 }
0x3eac   :  { %v8270_v46 = vpop.eup %8269 }
0x3ead   :  { %4849 = vrot.lane.b32.xlu0 %v8270_v46, %s8436_s0 }
0x3f1c   :  { %v4826_v62 = vpop.permute.xlu1 %4825 }
0x3f1d   :  { %v9998_v61 = vmul.f32 %v8264_v21, %v4826_v62 }
0x3f1f   :  { %v4864_v22 = vpack.c.bf16 %v9998_v61, %v9998_v61  ;;  %v4850_v33 = vpop.permute.xlu0 %4849 }
0x3f20   :  { %v10002_v32 = vmul.f32 %v8266_v2, %v4850_v33 }
0x3f21   :  { %4866 = vrot.lane.b32.xlu1 %v4864_v22, %s8437_s21 }
0x3f22   :  { %v4913_v49 = vpack.c.bf16 %v10002_v32, %v10002_v32 }
0x3f24   :  { %4915 = vrot.lane.b32.xlu0 %v4913_v49, %s8437_s21 }
0x3f93   :  { %v4867_v0 = vpop.permute.xlu1 %4866 }
0x3f94   :  { %7679 = vmatmul.mubr.msk.bf16.vlgmr.msra.gmra.mxu1 %vm336_vm1, %v4867_v0 }
0x3f95   :  { %7691 = vmatpush3.bf16.msra.mxu1 %v9952_v45  ;;  %7694 = vmatprep.mubr.msk.bf16.mxu1 %vm8434_vm0, %v8433_v19 }
0x3f96   :  { %v4916_v27 = vpop.permute.xlu0 %4915  ;;  %7692 = vmatprep.subr.bf16.mxu1 %v8433_v19 }
0x3f97   :  { %7687 = vmatmul.mubr.msk.bf16.vlgmr.msra.gmra.mxu0 %vm336_vm1, %v4916_v27 }
0x3f98   :  { %7699 = vmatpush3.bf16.msra.mxu0 %v9962_v18  ;;  %7702 = vmatprep.mubr.msk.bf16.mxu0 %vm8434_vm0, %v8433_v19 }
0x3f99   :  { %7693 = vmatpush3.bf16.msra.mxu1 %v9970_v60  ;;  %7700 = vmatprep.subr.bf16.mxu0 %v8433_v19 }
0x3f9a   :  { %7706 = vmatprep.subr.bf16.mxu1 %v8433_v19 }
0x3f9c   :  { %7701 = vmatpush3.bf16.msra.mxu0 %v9978_v53 }
0x3f9d   :  { %7714 = vmatprep.subr.bf16.mxu0 %v8433_v19 }
0x4054   :  { %v4905_v20 = vpop.f32.mrf.mxu1 }
0x4055   :  { %v4911_v30 = vadd.f32 %v4905_v20, %v9643_v40 }
0x4056   :  { %v7680_v36 = vpop.f32.mrf.mxu1 }
0x4057   :  { %8271 = vtanh.f32 %v4911_v30  ;;  %v4954_v48 = vpop.f32.mrf.mxu0  ;;  %v6811_v41 = vmul.f32 -1.442695, %v4911_v30 }
0x4058   :  { %v4960_v56 = vadd.f32 %v4954_v48, %v9705_v6  ;;  %v4908_v50 = vpop.f32.mrf.mxu1 }
0x4059   :  { %v7688_v5 = vpop.f32.mrf.mxu0 }
0x405a   :  { %8273 = vtanh.f32 %v4960_v56  ;;  %v7681_v21 = vpop.f32.mrf.mxu1  ;;  %v6812_v4 = vmul.f32 -1.442695, %v4960_v56 }
0x405b   :  { %v4957_v42 = vpop.f32.mrf.mxu0  ;;  %8275 = vpow2.f32 %v6811_v41 }
0x405c   :  { %8277 = vpow2.f32 %v6812_v4 }
0x405d   :  { %v7689_v9 = vpop.f32.mrf.mxu0 }
0x4064   :  { %v8272_v2 = vpop.eup %8271 }
0x4065   :  { %4970 = vrot.lane.b32.xlu1 %v8272_v2, %s8436_s0 }
0x4067   :  { %v8274_v52 = vpop.eup %8273 }
0x4068   :  { %4994 = vrot.lane.b32.xlu0 %v8274_v52, %s8436_s0  ;;  %v8276_v40 = vpop.eup %8275 }
0x4069   :  { %v8278_v10 = vpop.eup %8277  ;;  %v4964_v15 = vadd.f32 1.0, %v8276_v40 }
0x406a   :  { %v4988_v6 = vadd.f32 1.0, %v8278_v10 }
0x406b   :  { %8279 = vrcp.f32 %v4964_v15 }
0x406c   :  { %8281 = vrcp.f32 %v4988_v6 }
0x4078   :  { %v8280_v1 = vpop.eup %8279 }
0x4079   :  { %v8282_v62 = vpop.eup %8281  ;;  %v4968_v49 = vmul.f32 %v8280_v1, %v9989_v38 }
0x407a   :  { %v4992_v20 = vmul.f32 %v8282_v62, %v9993_v23 }
0x40d7   :  { %v4971_v25 = vpop.permute.xlu1 %4970 }
0x40d8   :  { %v4973_v46 = vmul.f32 %v8280_v1, %v4971_v25 }
0x40da   :  { %4975 = vrot.lane.b32.xlu1 %v4973_v46, %s8437_s21  ;;  %v4995_v22 = vpop.permute.xlu0 %4994 }
0x40db   :  { %v4997_v33 = vmul.f32 %v8282_v62, %v4995_v22 }
0x40dd   :  { %4999 = vrot.lane.b32.xlu0 %v4997_v33, %s8437_s21 }
0x414c   :  { %v4976_v0 = vpop.permute.xlu1 %4975 }
0x414d   :  { %v10029_v27 = vadd.f32 %v4976_v0, %v4968_v49 }
0x414f   :  { %8283 = vtanh.f32 %v10029_v27  ;;  %v5000_v30 = vpop.permute.xlu0 %4999 }
0x4150   :  { %v10033_v36 = vadd.f32 %v5000_v30, %v4992_v20 }
0x4152   :  { %8285 = vtanh.f32 %v10033_v36 }
0x415c   :  { %v8284_v48 = vpop.eup %8283 }
0x415d   :  { %4981 = vrot.lane.b32.xlu1 %v8284_v48, %s8436_s0 }
0x415f   :  { %v8286_v56 = vpop.eup %8285 }
0x4160   :  { %5005 = vrot.lane.b32.xlu0 %v8286_v56, %s8436_s0 }
0x41cf   :  { %v4982_v50 = vpop.permute.xlu1 %4981 }
0x41d0   :  { %v10038_v38 = vmul.f32 %v8280_v1, %v4982_v50 }
0x41d2   :  { %v5020_v5 = vpack.c.bf16 %v10038_v38, %v10038_v38  ;;  %v5006_v23 = vpop.permute.xlu0 %5005 }
0x41d3   :  { %v10042_v21 = vmul.f32 %v8282_v62, %v5006_v23 }
0x41d4   :  { %5022 = vrot.lane.b32.xlu1 %v5020_v5, %s8437_s21 }
0x41d5   :  { %v5069_v42 = vpack.c.bf16 %v10042_v21, %v10042_v21 }
0x41d7   :  { %5071 = vrot.lane.b32.xlu0 %v5069_v42, %s8437_s21 }
0x4246   :  { %v5023_v9 = vpop.permute.xlu1 %5022 }
0x4247   :  { %7695 = vmatmul.mubr.msk.bf16.vlgmr.msra.gmra.mxu1 %vm336_vm1, %v5023_v9 }
0x4248   :  { %7707 = vmatpush3.bf16.msra.mxu1 %v9952_v45  ;;  %7710 = vmatprep.mubr.msk.bf16.mxu1 %vm8434_vm0, %v8433_v19 }
0x4249   :  { %v5072_v2 = vpop.permute.xlu0 %5071  ;;  %7708 = vmatprep.subr.bf16.mxu1 %v8433_v19 }
0x424a   :  { %7703 = vmatmul.mubr.msk.bf16.vlgmr.msra.gmra.mxu0 %vm336_vm1, %v5072_v2 }
0x424b   :  { %7715 = vmatpush3.bf16.msra.mxu0 %v9962_v18  ;;  %7718 = vmatprep.mubr.msk.bf16.mxu0 %vm8434_vm0, %v8433_v19 }
0x424c   :  { %7709 = vmatpush3.bf16.msra.mxu1 %v9970_v60  ;;  %7716 = vmatprep.subr.bf16.mxu0 %v8433_v19 }
0x424d   :  { %7722 = vmatprep.subr.bf16.mxu1 %v8433_v19 }
0x424f   :  { %7717 = vmatpush3.bf16.msra.mxu0 %v9978_v53 }
0x4250   :  { %7730 = vmatprep.subr.bf16.mxu0 %v8433_v19 }
0x4307   :  { %v5061_v52 = vpop.f32.mrf.mxu1 }
0x4308   :  { %v5067_v41 = vadd.f32 %v5061_v52, %v9652_v7 }
0x4309   :  { %v7696_v4 = vpop.f32.mrf.mxu1 }
0x430a   :  { %8287 = vtanh.f32 %v5067_v41  ;;  %v5110_v40 = vpop.f32.mrf.mxu0  ;;  %v6815_v33 = vmul.f32 -1.442695, %v5067_v41 }
0x430b   :  { %v5116_v10 = vadd.f32 %v5110_v40, %v9696_v16  ;;  %v5064_v15 = vpop.f32.mrf.mxu1 }
0x430c   :  { %v7704_v6 = vpop.f32.mrf.mxu0 }
0x430d   :  { %8289 = vtanh.f32 %v5116_v10  ;;  %v7697_v1 = vpop.f32.mrf.mxu1  ;;  %v6816_v49 = vmul.f32 -1.442695, %v5116_v10 }
0x430e   :  { %v5113_v25 = vpop.f32.mrf.mxu0  ;;  %8291 = vpow2.f32 %v6815_v33 }
0x430f   :  { %8293 = vpow2.f32 %v6816_v49 }
0x4310   :  { %v7705_v46 = vpop.f32.mrf.mxu0 }
0x4317   :  { %v8288_v62 = vpop.eup %8287 }
0x4318   :  { %5126 = vrot.lane.b32.xlu1 %v8288_v62, %s8436_s0 }
0x431a   :  { %v8290_v22 = vpop.eup %8289 }
0x431b   :  { %5150 = vrot.lane.b32.xlu0 %v8290_v22, %s8436_s0  ;;  %v8292_v7 = vpop.eup %8291 }
0x431c   :  { %v8294_v0 = vpop.eup %8293  ;;  %v5120_v20 = vadd.f32 1.0, %v8292_v7 }
0x431d   :  { %v5144_v16 = vadd.f32 1.0, %v8294_v0 }
0x431e   :  { %8295 = vrcp.f32 %v5120_v20 }
0x431f   :  { %8297 = vrcp.f32 %v5144_v16 }
0x432b   :  { %v8296_v30 = vpop.eup %8295 }
0x432c   :  { %v8298_v50 = vpop.eup %8297  ;;  %v5124_v42 = vmul.f32 %v8296_v30, %v10029_v27 }
0x432d   :  { %v5148_v52 = vmul.f32 %v8298_v50, %v10033_v36 }
0x438a   :  { %v5127_v48 = vpop.permute.xlu1 %5126 }
0x438b   :  { %v5129_v56 = vmul.f32 %v8296_v30, %v5127_v48 }
0x438d   :  { %5131 = vrot.lane.b32.xlu1 %v5129_v56, %s8437_s21  ;;  %v5151_v5 = vpop.permute.xlu0 %5150 }
0x438e   :  { %v5153_v23 = vmul.f32 %v8298_v50, %v5151_v5 }
0x4390   :  { %5155 = vrot.lane.b32.xlu0 %v5153_v23, %s8437_s21 }
0x43ff   :  { %v5132_v9 = vpop.permute.xlu1 %5131 }
0x4400   :  { %v10069_v2 = vadd.f32 %v5132_v9, %v5124_v42 }
0x4402   :  { %8299 = vtanh.f32 %v10069_v2  ;;  %v5156_v41 = vpop.permute.xlu0 %5155 }
0x4403   :  { %v10073_v4 = vadd.f32 %v5156_v41, %v5148_v52 }
0x4405   :  { %8301 = vtanh.f32 %v10073_v4 }
0x440f   :  { %v8300_v40 = vpop.eup %8299 }
0x4410   :  { %5137 = vrot.lane.b32.xlu1 %v8300_v40, %s8436_s0 }
0x4412   :  { %v8302_v10 = vpop.eup %8301 }
0x4413   :  { %5161 = vrot.lane.b32.xlu0 %v8302_v10, %s8436_s0 }
0x4482   :  { %v5138_v15 = vpop.permute.xlu1 %5137 }
0x4483   :  { %v10078_v27 = vmul.f32 %v8296_v30, %v5138_v15 }
0x4485   :  { %v5176_v6 = vpack.c.bf16 %v10078_v27, %v10078_v27  ;;  %v5162_v36 = vpop.permute.xlu0 %5161 }
0x4486   :  { %v10082_v1 = vmul.f32 %v8298_v50, %v5162_v36 }
0x4487   :  { %5178 = vrot.lane.b32.xlu1 %v5176_v6, %s8437_s21 }
0x4488   :  { %v5225_v25 = vpack.c.bf16 %v10082_v1, %v10082_v1 }
0x448a   :  { %5227 = vrot.lane.b32.xlu0 %v5225_v25, %s8437_s21 }
0x44f9   :  { %v5179_v46 = vpop.permute.xlu1 %5178 }
0x44fa   :  { %7711 = vmatmul.mubr.msk.bf16.vlgmr.msra.gmra.mxu1 %vm336_vm1, %v5179_v46 }
0x44fb   :  { %7723 = vmatpush3.bf16.msra.mxu1 %v9952_v45  ;;  %7726 = vmatprep.mubr.msk.bf16.mxu1 %vm8434_vm0, %v8433_v19 }
0x44fc   :  { %v5228_v62 = vpop.permute.xlu0 %5227  ;;  %7724 = vmatprep.subr.bf16.mxu1 %v8433_v19 }
0x44fd   :  { %7719 = vmatmul.mubr.msk.bf16.vlgmr.msra.gmra.mxu0 %vm336_vm1, %v5228_v62 }
0x44fe   :  { %7731 = vmatpush3.bf16.msra.mxu0 %v9962_v18  ;;  %7734 = vmatprep.mubr.msk.bf16.mxu0 %vm8434_vm0, %v8433_v19 }
0x44ff   :  { %7725 = vmatpush3.bf16.msra.mxu1 %v9970_v60  ;;  %7732 = vmatprep.subr.bf16.mxu0 %v8433_v19 }
0x4500   :  { %7738 = vmatprep.subr.bf16.mxu1 %v8433_v19 }
0x4502   :  { %7733 = vmatpush3.bf16.msra.mxu0 %v9978_v53 }
0x4503   :  { %7746 = vmatprep.subr.bf16.mxu0 %v8433_v19 }
0x45ba   :  { %v5217_v22 = vpop.f32.mrf.mxu1 }
0x45bb   :  { %v5223_v33 = vadd.f32 %v5217_v22, %v9658_v37 }
0x45bc   :  { %v7712_v49 = vpop.f32.mrf.mxu1 }
0x45bd   :  { %8303 = vtanh.f32 %v5223_v33  ;;  %v5266_v7 = vpop.f32.mrf.mxu0  ;;  %v6819_v23 = vmul.f32 -1.442695, %v5223_v33 }
0x45be   :  { %v5272_v0 = vadd.f32 %v5266_v7, %v9690_v24  ;;  %v5220_v20 = vpop.f32.mrf.mxu1 }
0x45bf   :  { %v7720_v16 = vpop.f32.mrf.mxu0 }
0x45c0   :  { %8305 = vtanh.f32 %v5272_v0  ;;  %v7713_v30 = vpop.f32.mrf.mxu1  ;;  %v6820_v42 = vmul.f32 -1.442695, %v5272_v0 }
0x45c1   :  { %v5269_v48 = vpop.f32.mrf.mxu0  ;;  %8307 = vpow2.f32 %v6819_v23 }
0x45c2   :  { %8309 = vpow2.f32 %v6820_v42 }
0x45c3   :  { %v7721_v56 = vpop.f32.mrf.mxu0 }
0x45ca   :  { %v8304_v50 = vpop.eup %8303 }
0x45cb   :  { %5282 = vrot.lane.b32.xlu1 %v8304_v50, %s8436_s0 }
0x45cd   :  { %v8306_v5 = vpop.eup %8305 }
0x45ce   :  { %5306 = vrot.lane.b32.xlu0 %v8306_v5, %s8436_s0  ;;  %v8308_v37 = vpop.eup %8307 }
0x45cf   :  { %v8310_v9 = vpop.eup %8309  ;;  %v5276_v52 = vadd.f32 1.0, %v8308_v37 }
0x45d0   :  { %v5300_v24 = vadd.f32 1.0, %v8310_v9 }
0x45d1   :  { %8311 = vrcp.f32 %v5276_v52 }
0x45d2   :  { %8313 = vrcp.f32 %v5300_v24 }
0x45de   :  { %v8312_v41 = vpop.eup %8311 }
0x45df   :  { %v8314_v15 = vpop.eup %8313  ;;  %v5280_v25 = vmul.f32 %v8312_v41, %v10069_v2 }
0x45e0   :  { %v5304_v22 = vmul.f32 %v8314_v15, %v10073_v4 }
0x463d   :  { %v5283_v40 = vpop.permute.xlu1 %5282 }
0x463e   :  { %v5285_v10 = vmul.f32 %v8312_v41, %v5283_v40 }
0x4640   :  { %5287 = vrot.lane.b32.xlu1 %v5285_v10, %s8437_s21  ;;  %v5307_v6 = vpop.permute.xlu0 %5306 }
0x4641   :  { %v5309_v36 = vmul.f32 %v8314_v15, %v5307_v6 }
0x4643   :  { %5311 = vrot.lane.b32.xlu0 %v5309_v36, %s8437_s21 }
0x46b2   :  { %v5288_v46 = vpop.permute.xlu1 %5287 }
0x46b3   :  { %v10109_v62 = vadd.f32 %v5288_v46, %v5280_v25 }
0x46b5   :  { %8315 = vtanh.f32 %v10109_v62  ;;  %v5312_v33 = vpop.permute.xlu0 %5311 }
0x46b6   :  { %v10113_v49 = vadd.f32 %v5312_v33, %v5304_v22 }
0x46b8   :  { %8317 = vtanh.f32 %v10113_v49 }
0x46c2   :  { %v8316_v7 = vpop.eup %8315 }
0x46c3   :  { %5293 = vrot.lane.b32.xlu1 %v8316_v7, %s8436_s0 }
0x46c5   :  { %v8318_v0 = vpop.eup %8317 }
0x46c6   :  { %5317 = vrot.lane.b32.xlu0 %v8318_v0, %s8436_s0 }
0x4735   :  { %v5294_v20 = vpop.permute.xlu1 %5293 }
0x4736   :  { %v10118_v2 = vmul.f32 %v8312_v41, %v5294_v20 }
0x4738   :  { %v5332_v16 = vpack.c.bf16 %v10118_v2, %v10118_v2  ;;  %v5318_v4 = vpop.permute.xlu0 %5317 }
0x4739   :  { %v10122_v30 = vmul.f32 %v8314_v15, %v5318_v4 }
0x473a   :  { %5334 = vrot.lane.b32.xlu1 %v5332_v16, %s8437_s21 }
0x473b   :  { %v5381_v48 = vpack.c.bf16 %v10122_v30, %v10122_v30 }
0x473d   :  { %5383 = vrot.lane.b32.xlu0 %v5381_v48, %s8437_s21 }
0x47ac   :  { %v5335_v56 = vpop.permute.xlu1 %5334 }
0x47ad   :  { %7727 = vmatmul.mubr.msk.bf16.vlgmr.msra.gmra.mxu1 %vm336_vm1, %v5335_v56 }
0x47ae   :  { %7739 = vmatpush3.bf16.msra.mxu1 %v9952_v45  ;;  %7742 = vmatprep.mubr.msk.bf16.mxu1 %vm8434_vm0, %v8433_v19 }
0x47af   :  { %v5384_v50 = vpop.permute.xlu0 %5383  ;;  %7740 = vmatprep.subr.bf16.mxu1 %v8433_v19 }
0x47b0   :  { %7735 = vmatmul.mubr.msk.bf16.vlgmr.msra.gmra.mxu0 %vm336_vm1, %v5384_v50 }
0x47b1   :  { %7747 = vmatpush3.bf16.msra.mxu0 %v9962_v18  ;;  %7750 = vmatprep.mubr.msk.bf16.mxu0 %vm8434_vm0, %v8433_v19 }
0x47b2   :  { %7741 = vmatpush3.bf16.msra.mxu1 %v9970_v60  ;;  %7748 = vmatprep.subr.bf16.mxu0 %v8433_v19 }
0x47b3   :  { %7754 = vmatprep.subr.bf16.mxu1 %v8433_v19 }
0x47b5   :  { %7749 = vmatpush3.bf16.msra.mxu0 %v9978_v53 }
0x47b6   :  { %7762 = vmatprep.subr.bf16.mxu0 %v8433_v19 }
0x486d   :  { %v5373_v5 = vpop.f32.mrf.mxu1 }
0x486e   :  { %v5379_v23 = vadd.f32 %v5373_v5, %v9649_v39 }
0x486f   :  { %v7728_v42 = vpop.f32.mrf.mxu1 }
0x4870   :  { %8319 = vtanh.f32 %v5379_v23  ;;  %v5422_v37 = vpop.f32.mrf.mxu0  ;;  %v6823_v36 = vmul.f32 -1.442695, %v5379_v23 }
0x4871   :  { %v5428_v9 = vadd.f32 %v5422_v37, %v9699_v58  ;;  %v5376_v52 = vpop.f32.mrf.mxu1 }
0x4872   :  { %v7736_v24 = vpop.f32.mrf.mxu0 }
0x4873   :  { %8321 = vtanh.f32 %v5428_v9  ;;  %v7729_v41 = vpop.f32.mrf.mxu1  ;;  %v6824_v25 = vmul.f32 -1.442695, %v5428_v9 }
0x4874   :  { %v5425_v40 = vpop.f32.mrf.mxu0  ;;  %8323 = vpow2.f32 %v6823_v36 }
0x4875   :  { %8325 = vpow2.f32 %v6824_v25 }
0x4876   :  { %v7737_v10 = vpop.f32.mrf.mxu0 }
0x487d   :  { %v8320_v15 = vpop.eup %8319 }
0x487e   :  { %5438 = vrot.lane.b32.xlu1 %v8320_v15, %s8436_s0 }
0x4880   :  { %v8322_v6 = vpop.eup %8321 }
0x4881   :  { %5462 = vrot.lane.b32.xlu0 %v8322_v6, %s8436_s0  ;;  %v8324_v39 = vpop.eup %8323 }
0x4882   :  { %v8326_v46 = vpop.eup %8325  ;;  %v5432_v22 = vadd.f32 1.0, %v8324_v39 }
0x4883   :  { %v5456_v58 = vadd.f32 1.0, %v8326_v46 }
0x4884   :  { %8327 = vrcp.f32 %v5432_v22 }
0x4885   :  { %8329 = vrcp.f32 %v5456_v58 }
0x4891   :  { %v8328_v33 = vpop.eup %8327 }
0x4892   :  { %v8330_v20 = vpop.eup %8329  ;;  %v5436_v48 = vmul.f32 %v8328_v33, %v10109_v62 }
0x4893   :  { %v5460_v5 = vmul.f32 %v8330_v20, %v10113_v49 }
0x48f0   :  { %v5439_v7 = vpop.permute.xlu1 %5438 }
0x48f1   :  { %v5441_v0 = vmul.f32 %v8328_v33, %v5439_v7 }
0x48f3   :  { %5443 = vrot.lane.b32.xlu1 %v5441_v0, %s8437_s21  ;;  %v5463_v16 = vpop.permute.xlu0 %5462 }
0x48f4   :  { %v5465_v4 = vmul.f32 %v8330_v20, %v5463_v16 }
0x48f6   :  { %5467 = vrot.lane.b32.xlu0 %v5465_v4, %s8437_s21 }
0x4965   :  { %v5444_v56 = vpop.permute.xlu1 %5443 }
0x4966   :  { %v10149_v50 = vadd.f32 %v5444_v56, %v5436_v48 }
0x4968   :  { %8331 = vtanh.f32 %v10149_v50  ;;  %v5468_v23 = vpop.permute.xlu0 %5467 }
0x4969   :  { %v10153_v42 = vadd.f32 %v5468_v23, %v5460_v5 }
0x496b   :  { %8333 = vtanh.f32 %v10153_v42 }
0x4975   :  { %v8332_v37 = vpop.eup %8331 }
0x4976   :  { %5449 = vrot.lane.b32.xlu1 %v8332_v37, %s8436_s0 }
0x4978   :  { %v8334_v9 = vpop.eup %8333 }
0x4979   :  { %5473 = vrot.lane.b32.xlu0 %v8334_v9, %s8436_s0 }
0x49e8   :  { %v5450_v52 = vpop.permute.xlu1 %5449 }
0x49e9   :  { %v10158_v62 = vmul.f32 %v8328_v33, %v5450_v52 }
0x49eb   :  { %v5488_v24 = vpack.c.bf16 %v10158_v62, %v10158_v62  ;;  %v5474_v49 = vpop.permute.xlu0 %5473 }
0x49ec   :  { %v10162_v41 = vmul.f32 %v8330_v20, %v5474_v49 }
0x49ed   :  { %5490 = vrot.lane.b32.xlu1 %v5488_v24, %s8437_s21 }
0x49ee   :  { %v5537_v40 = vpack.c.bf16 %v10162_v41, %v10162_v41 }
0x49f0   :  { %5539 = vrot.lane.b32.xlu0 %v5537_v40, %s8437_s21 }
0x4a5f   :  { %v5491_v10 = vpop.permute.xlu1 %5490 }
0x4a60   :  { %7743 = vmatmul.mubr.msk.bf16.vlgmr.msra.gmra.mxu1 %vm336_vm1, %v5491_v10 }
0x4a61   :  { %7755 = vmatpush3.bf16.msra.mxu1 %v9952_v45  ;;  %7758 = vmatprep.mubr.msk.bf16.mxu1 %vm8434_vm0, %v8433_v19 }
0x4a62   :  { %v5540_v15 = vpop.permute.xlu0 %5539  ;;  %7756 = vmatprep.subr.bf16.mxu1 %v8433_v19 }
0x4a63   :  { %7751 = vmatmul.mubr.msk.bf16.vlgmr.msra.gmra.mxu0 %vm336_vm1, %v5540_v15 }
0x4a64   :  { %7763 = vmatpush3.bf16.msra.mxu0 %v9962_v18  ;;  %7766 = vmatprep.mubr.msk.bf16.mxu0 %vm8434_vm0, %v8433_v19 }
0x4a65   :  { %7757 = vmatpush3.bf16.msra.mxu1 %v9970_v60  ;;  %7764 = vmatprep.subr.bf16.mxu0 %v8433_v19 }
0x4a66   :  { %7770 = vmatprep.subr.bf16.mxu1 %v8433_v19 }
0x4a68   :  { %7765 = vmatpush3.bf16.msra.mxu0 %v9978_v53 }
0x4a69   :  { %7778 = vmatprep.subr.bf16.mxu0 %v8433_v19 }
0x4b20   :  { %v5529_v6 = vpop.f32.mrf.mxu1 }
0x4b21   :  { %v5535_v36 = vadd.f32 %v5529_v6, %v9655_v54 }
0x4b22   :  { %v7744_v25 = vpop.f32.mrf.mxu1 }
0x4b23   :  { %8335 = vtanh.f32 %v5535_v36  ;;  %v5578_v39 = vpop.f32.mrf.mxu0  ;;  %v6827_v4 = vmul.f32 -1.442695, %v5535_v36 }
0x4b24   :  { %v5584_v46 = vadd.f32 %v5578_v39, %v9693_v34  ;;  %v5532_v22 = vpop.f32.mrf.mxu1 }
0x4b25   :  { %v7752_v58 = vpop.f32.mrf.mxu0 }
0x4b26   :  { %8337 = vtanh.f32 %v5584_v46  ;;  %v7745_v33 = vpop.f32.mrf.mxu1  ;;  %v6828_v48 = vmul.f32 -1.442695, %v5584_v46 }
0x4b27   :  { %v5581_v7 = vpop.f32.mrf.mxu0  ;;  %8339 = vpow2.f32 %v6827_v4 }
0x4b28   :  { %8341 = vpow2.f32 %v6828_v48 }
0x4b29   :  { %v7753_v0 = vpop.f32.mrf.mxu0 }
0x4b30   :  { %v8336_v20 = vpop.eup %8335 }
0x4b31   :  { %5594 = vrot.lane.b32.xlu1 %v8336_v20, %s8436_s0 }
0x4b33   :  { %v8338_v16 = vpop.eup %8337 }
0x4b34   :  { %5618 = vrot.lane.b32.xlu0 %v8338_v16, %s8436_s0  ;;  %v8340_v54 = vpop.eup %8339 }
0x4b35   :  { %v8342_v56 = vpop.eup %8341  ;;  %v5588_v5 = vadd.f32 1.0, %v8340_v54 }
0x4b36   :  { %v5612_v34 = vadd.f32 1.0, %v8342_v56 }
0x4b37   :  { %8343 = vrcp.f32 %v5588_v5 }
0x4b38   :  { %8345 = vrcp.f32 %v5612_v34 }
0x4b44   :  { %v8344_v23 = vpop.eup %8343 }
0x4b45   :  { %v8346_v52 = vpop.eup %8345  ;;  %v5592_v40 = vmul.f32 %v8344_v23, %v10149_v50 }
0x4b46   :  { %v5616_v6 = vmul.f32 %v8346_v52, %v10153_v42 }
0x4ba3   :  { %v5595_v37 = vpop.permute.xlu1 %5594 }
0x4ba4   :  { %v5597_v9 = vmul.f32 %v8344_v23, %v5595_v37 }
0x4ba6   :  { %5599 = vrot.lane.b32.xlu1 %v5597_v9, %s8437_s21  ;;  %v5619_v24 = vpop.permute.xlu0 %5618 }
0x4ba7   :  { %v5621_v49 = vmul.f32 %v8346_v52, %v5619_v24 }
0x4ba9   :  { %5623 = vrot.lane.b32.xlu0 %v5621_v49, %s8437_s21 }
0x4c18   :  { %v5600_v10 = vpop.permute.xlu1 %5599 }
0x4c19   :  { %v10189_v15 = vadd.f32 %v5600_v10, %v5592_v40 }
0x4c1b   :  { %8347 = vtanh.f32 %v10189_v15  ;;  %v5624_v36 = vpop.permute.xlu0 %5623 }
0x4c1c   :  { %v10193_v25 = vadd.f32 %v5624_v36, %v5616_v6 }
0x4c1e   :  { %8349 = vtanh.f32 %v10193_v25 }
0x4c28   :  { %v8348_v39 = vpop.eup %8347 }
0x4c29   :  { %5605 = vrot.lane.b32.xlu1 %v8348_v39, %s8436_s0 }
0x4c2b   :  { %v8350_v46 = vpop.eup %8349 }
0x4c2c   :  { %5629 = vrot.lane.b32.xlu0 %v8350_v46, %s8436_s0 }
0x4c9b   :  { %v5606_v22 = vpop.permute.xlu1 %5605 }
0x4c9c   :  { %v10198_v50 = vmul.f32 %v8344_v23, %v5606_v22 }
0x4c9e   :  { %v5644_v58 = vpack.c.bf16 %v10198_v50, %v10198_v50  ;;  %v5630_v42 = vpop.permute.xlu0 %5629 }
0x4c9f   :  { %v10202_v33 = vmul.f32 %v8346_v52, %v5630_v42 }
0x4ca0   :  { %5646 = vrot.lane.b32.xlu1 %v5644_v58, %s8437_s21 }
0x4ca1   :  { %v5693_v7 = vpack.c.bf16 %v10202_v33, %v10202_v33 }
0x4ca3   :  { %5695 = vrot.lane.b32.xlu0 %v5693_v7, %s8437_s21 }
0x4d12   :  { %v5647_v0 = vpop.permute.xlu1 %5646 }
0x4d13   :  { %7759 = vmatmul.mubr.msk.bf16.vlgmr.msra.gmra.mxu1 %vm336_vm1, %v5647_v0 }
0x4d14   :  { %7771 = vmatpush3.bf16.msra.mxu1 %v9952_v45  ;;  %7774 = vmatprep.mubr.msk.bf16.mxu1 %vm8434_vm0, %v8433_v19 }
0x4d15   :  { %v5696_v20 = vpop.permute.xlu0 %5695  ;;  %7772 = vmatprep.subr.bf16.mxu1 %v8433_v19 }
0x4d16   :  { %7767 = vmatmul.mubr.msk.bf16.vlgmr.msra.gmra.mxu0 %vm336_vm1, %v5696_v20 }
0x4d17   :  { %7779 = vmatpush3.bf16.msra.mxu0 %v9962_v18  ;;  %7782 = vmatprep.mubr.msk.bf16.mxu0 %vm8434_vm0, %v8433_v19 }
0x4d18   :  { %7773 = vmatpush3.bf16.msra.mxu1 %v9970_v60  ;;  %7780 = vmatprep.subr.bf16.mxu0 %v8433_v19 }
0x4d19   :  { %7786 = vmatprep.subr.bf16.mxu1 %v8433_v19 }
0x4d1b   :  { %7781 = vmatpush3.bf16.msra.mxu0 %v9978_v53 }
0x4d1c   :  { %7794 = vmatprep.subr.bf16.mxu0 %v8433_v19 }
0x4dd3   :  { %v5685_v16 = vpop.f32.mrf.mxu1 }
0x4dd4   :  { %v5691_v4 = vadd.f32 %v5685_v16, %v9664_v44 }
0x4dd5   :  { %v7760_v48 = vpop.f32.mrf.mxu1 }
0x4dd6   :  { %8351 = vtanh.f32 %v5691_v4  ;;  %v5734_v54 = vpop.f32.mrf.mxu0  ;;  %v6831_v49 = vmul.f32 -1.442695, %v5691_v4 }
0x4dd7   :  { %v5740_v56 = vadd.f32 %v5734_v54, %v9684_v47  ;;  %v5688_v5 = vpop.f32.mrf.mxu1 }
0x4dd8   :  { %v7768_v34 = vpop.f32.mrf.mxu0 }
0x4dd9   :  { %8353 = vtanh.f32 %v5740_v56  ;;  %v7761_v23 = vpop.f32.mrf.mxu1  ;;  %v6832_v40 = vmul.f32 -1.442695, %v5740_v56 }
0x4dda   :  { %v5737_v37 = vpop.f32.mrf.mxu0  ;;  %8355 = vpow2.f32 %v6831_v49 }
0x4ddb   :  { %8357 = vpow2.f32 %v6832_v40 }
0x4ddc   :  { %v7769_v9 = vpop.f32.mrf.mxu0 }
0x4de3   :  { %v8352_v52 = vpop.eup %8351 }
0x4de4   :  { %5750 = vrot.lane.b32.xlu1 %v8352_v52, %s8436_s0 }
0x4de6   :  { %v8354_v24 = vpop.eup %8353 }
0x4de7   :  { %5774 = vrot.lane.b32.xlu0 %v8354_v24, %s8436_s0  ;;  %v8356_v44 = vpop.eup %8355 }
0x4de8   :  { %v8358_v10 = vpop.eup %8357  ;;  %v5744_v6 = vadd.f32 1.0, %v8356_v44 }
0x4de9   :  { %v5768_v47 = vadd.f32 1.0, %v8358_v10 }
0x4dea   :  { %8359 = vrcp.f32 %v5744_v6 }
0x4deb   :  { %8361 = vrcp.f32 %v5768_v47 }
0x4df7   :  { %v8360_v36 = vpop.eup %8359 }
0x4df8   :  { %v8362_v22 = vpop.eup %8361  ;;  %v5748_v7 = vmul.f32 %v8360_v36, %v10189_v15 }
0x4df9   :  { %v5772_v16 = vmul.f32 %v8362_v22, %v10193_v25 }
0x4e56   :  { %v5751_v39 = vpop.permute.xlu1 %5750 }
0x4e57   :  { %v5753_v46 = vmul.f32 %v8360_v36, %v5751_v39 }
0x4e59   :  { %5755 = vrot.lane.b32.xlu1 %v5753_v46, %s8437_s21  ;;  %v5775_v58 = vpop.permute.xlu0 %5774 }
0x4e5a   :  { %v5777_v42 = vmul.f32 %v8362_v22, %v5775_v58 }
0x4e5c   :  { %5779 = vrot.lane.b32.xlu0 %v5777_v42, %s8437_s21 }
0x4ecb   :  { %v5756_v0 = vpop.permute.xlu1 %5755 }
0x4ecc   :  { %v10229_v20 = vadd.f32 %v5756_v0, %v5748_v7 }
0x4ece   :  { %8363 = vtanh.f32 %v10229_v20  ;;  %v5780_v4 = vpop.permute.xlu0 %5779 }
0x4ecf   :  { %v10233_v48 = vadd.f32 %v5780_v4, %v5772_v16 }
0x4ed1   :  { %8365 = vtanh.f32 %v10233_v48 }
0x4edb   :  { %v8364_v54 = vpop.eup %8363 }
0x4edc   :  { %5761 = vrot.lane.b32.xlu1 %v8364_v54, %s8436_s0 }
0x4ede   :  { %v8366_v56 = vpop.eup %8365 }
0x4edf   :  { %5785 = vrot.lane.b32.xlu0 %v8366_v56, %s8436_s0 }
0x4f4e   :  { %v5762_v5 = vpop.permute.xlu1 %5761 }
0x4f4f   :  { %v10238_v15 = vmul.f32 %v8360_v36, %v5762_v5 }
0x4f51   :  { %v5800_v34 = vpack.c.bf16 %v10238_v15, %v10238_v15  ;;  %v5786_v25 = vpop.permute.xlu0 %5785 }
0x4f52   :  { %v10242_v23 = vmul.f32 %v8362_v22, %v5786_v25 }
0x4f53   :  { %5802 = vrot.lane.b32.xlu1 %v5800_v34, %s8437_s21 }
0x4f54   :  { %v5849_v37 = vpack.c.bf16 %v10242_v23, %v10242_v23 }
0x4f56   :  { %5851 = vrot.lane.b32.xlu0 %v5849_v37, %s8437_s21 }
0x4fc5   :  { %v5803_v9 = vpop.permute.xlu1 %5802 }
0x4fc6   :  { %7775 = vmatmul.mubr.msk.bf16.vlgmr.msra.gmra.mxu1 %vm336_vm1, %v5803_v9 }
0x4fc7   :  { %7787 = vmatpush3.bf16.msra.mxu1 %v9952_v45  ;;  %7790 = vmatprep.mubr.msk.bf16.mxu1 %vm8434_vm0, %v8433_v19 }
0x4fc8   :  { %v5852_v52 = vpop.permute.xlu0 %5851  ;;  %7788 = vmatprep.subr.bf16.mxu1 %v8433_v19 }
0x4fc9   :  { %7783 = vmatmul.mubr.msk.bf16.vlgmr.msra.gmra.mxu0 %vm336_vm1, %v5852_v52 }
0x4fca   :  { %7795 = vmatpush3.bf16.msra.mxu0 %v9962_v18  ;;  %7798 = vmatprep.mubr.msk.bf16.mxu0 %vm8434_vm0, %v8433_v19 }
0x4fcb   :  { %7789 = vmatpush3.bf16.msra.mxu1 %v9970_v60  ;;  %7796 = vmatprep.subr.bf16.mxu0 %v8433_v19 }
0x4fcc   :  { %7802 = vmatprep.subr.bf16.mxu1 %v8433_v19 }
0x4fce   :  { %7797 = vmatpush3.bf16.msra.mxu0 %v9978_v53 }
0x4fcf   :  { %7810 = vmatprep.subr.bf16.mxu0 %v8433_v19 }
0x5086   :  { %v5841_v45 = vpop.f32.mrf.mxu1 }
0x5087   :  { %v5847_v24 = vadd.f32 %v5841_v45, %v9675_v26 }
0x5088   :  { %v7776_v49 = vpop.f32.mrf.mxu1 }
0x5089   :  { %8367 = vtanh.f32 %v5847_v24  ;;  %v5890_v40 = vpop.f32.mrf.mxu0  ;;  %v6835_v39 = vmul.f32 -1.442695, %v5847_v24 }
0x508a   :  { %v5896_v18 = vadd.f32 %v5890_v40, %v9678_v63  ;;  %v5844_v44 = vpop.f32.mrf.mxu1 }
0x508b   :  { %v7784_v10 = vpop.f32.mrf.mxu0 }
0x508c   :  { %8369 = vtanh.f32 %v5896_v18  ;;  %v7777_v60 = vpop.f32.mrf.mxu1  ;;  %v6836_v46 = vmul.f32 -1.442695, %v5896_v18  ;;  %v8429_v10 = vld [vmem:[%s10546_s10 + $0x8] sm:$0xff]  }
0x508d   :  { %v5893_v6 = vpop.f32.mrf.mxu0  ;;  %8371 = vpow2.f32 %v6835_v39 }
0x508e   :  { %8373 = vpow2.f32 %v6836_v46  ;;  %v8430_v6 = vld [vmem:[%s10545_s13 + $0x8] sm:$0xff]  }
0x508f   :  { %v7785_v47 = vpop.f32.mrf.mxu0 }
0x5090   :  { %v8431_v47 = vld [vmem:[%s10546_s10] sm:$0xff]  }
0x5096   :  { %v8368_v36 = vpop.eup %8367 }
0x5097   :  { %5906 = vrot.lane.b32.xlu1 %v8368_v36, %s8436_s0  ;;  %v8432_v36 = vld [vmem:[%s10545_s13] sm:$0xff]  }
0x5099   :  { %v8370_v53 = vpop.eup %8369 }
0x509a   :  { %5930 = vrot.lane.b32.xlu0 %v8370_v53, %s8436_s0  ;;  %v8372_v26 = vpop.eup %8371 }
0x509b   :  { %v8374_v22 = vpop.eup %8373  ;;  %v5900_v58 = vadd.f32 1.0, %v8372_v26 }
0x509c   :  { %v5924_v63 = vadd.f32 1.0, %v8374_v22 }
0x509d   :  { %8375 = vrcp.f32 %v5900_v58 }
0x509e   :  { %8377 = vrcp.f32 %v5924_v63 }
0x50aa   :  { %v8376_v42 = vpop.eup %8375 }
0x50ab   :  { %v8378_v16 = vpop.eup %8377  ;;  %v5904_v56 = vmul.f32 %v8376_v42, %v10229_v20 }
0x50ac   :  { %v5928_v25 = vmul.f32 %v8378_v16, %v10233_v48 }
0x5109   :  { %v5907_v7 = vpop.permute.xlu1 %5906 }
0x510a   :  { %v5909_v0 = vmul.f32 %v8376_v42, %v5907_v7 }
0x510c   :  { %v5931_v4 = vpop.permute.xlu0 %5930  ;;  %5911 = vrot.lane.b32.xlu1 %v5909_v0, %s8437_s21 }
0x510d   :  { %v5933_v54 = vmul.f32 %v8378_v16, %v5931_v4 }
0x510f   :  { %5935 = vrot.lane.b32.xlu0 %v5933_v54, %s8437_s21 }
0x517e   :  { %v5912_v5 = vpop.permute.xlu1 %5911 }
0x517f   :  { %v10269_v34 = vadd.f32 %v5912_v5, %v5904_v56 }
0x5181   :  { %8379 = vtanh.f32 %v10269_v34  ;;  %v5936_v37 = vpop.permute.xlu0 %5935 }
0x5182   :  { %v10273_v9 = vadd.f32 %v5936_v37, %v5928_v25 }
0x5184   :  { %8381 = vtanh.f32 %v10273_v9 }
0x518e   :  { %v8380_v52 = vpop.eup %8379 }
0x518f   :  { %5917 = vrot.lane.b32.xlu1 %v8380_v52, %s8436_s0 }
0x5191   :  { %v8382_v45 = vpop.eup %8381 }
0x5192   :  { %5941 = vrot.lane.b32.xlu0 %v8382_v45, %s8436_s0 }
0x5201   :  { %v5918_v24 = vpop.permute.xlu1 %5917 }
0x5202   :  { %v10278_v20 = vmul.f32 %v8376_v42, %v5918_v24 }
0x5204   :  { %v5956_v49 = vpack.c.bf16 %v10278_v20, %v10278_v20  ;;  %v5942_v48 = vpop.permute.xlu0 %5941 }
0x5205   :  { %v10282_v40 = vmul.f32 %v8378_v16, %v5942_v48 }
0x5206   :  { %5958 = vrot.lane.b32.xlu1 %v5956_v49, %s8437_s21 }
0x5207   :  { %v6005_v18 = vpack.c.bf16 %v10282_v40, %v10282_v40 }
0x5209   :  { %6007 = vrot.lane.b32.xlu0 %v6005_v18, %s8437_s21 }
0x5278   :  { %v5959_v44 = vpop.permute.xlu1 %5958 }
0x5279   :  { %7791 = vmatmul.mubr.msk.bf16.vlgmr.msra.gmra.mxu1 %vm336_vm1, %v5959_v44 }
0x527a   :  { %7803 = vmatpush3.bf16.msra.mxu1 %v8429_v10  ;;  %7806 = vmatprep.mubr.msk.bf16.mxu1 %vm8434_vm0, %v8433_v19 }
0x527b   :  { %v6008_v60 = vpop.permute.xlu0 %6007  ;;  %7804 = vmatprep.subr.bf16.mxu1 %v8433_v19 }
0x527c   :  { %7799 = vmatmul.mubr.msk.bf16.vlgmr.msra.gmra.mxu0 %vm336_vm1, %v6008_v60 }
0x527d   :  { %7811 = vmatpush3.bf16.msra.mxu0 %v8430_v6  ;;  %7814 = vmatprep.mubr.msk.bf16.mxu0 %vm8434_vm0, %v8433_v19 }
0x527e   :  { %7805 = vmatpush3.bf16.msra.mxu1 %v8431_v47  ;;  %7812 = vmatprep.subr.bf16.mxu0 %v8433_v19 }
0x5281   :  { %7813 = vmatpush3.bf16.msra.mxu0 %v8432_v36 }
0x5339   :  { %v5997_v53 = vpop.f32.mrf.mxu1 }
0x533a   :  { %v6003_v39 = vadd.f32 %v5997_v53, %v9661_v8 }
0x533b   :  { %v7792_v46 = vpop.f32.mrf.mxu1 }
0x533c   :  { %8383 = vtanh.f32 %v6003_v39  ;;  %v6046_v26 = vpop.f32.mrf.mxu0  ;;  %v6839_v4 = vmul.f32 -1.442695, %v6003_v39 }
0x533d   :  { %v6052_v22 = vadd.f32 %v6046_v26, %v9687_v28  ;;  %v6000_v58 = vpop.f32.mrf.mxu1 }
0x533e   :  { %v7800_v63 = vpop.f32.mrf.mxu0 }
0x533f   :  { %8385 = vtanh.f32 %v6052_v22  ;;  %v7793_v42 = vpop.f32.mrf.mxu1  ;;  %v6840_v54 = vmul.f32 -1.442695, %v6052_v22 }
0x5340   :  { %v6049_v7 = vpop.f32.mrf.mxu0  ;;  %8387 = vpow2.f32 %v6839_v4 }
0x5341   :  { %8389 = vpow2.f32 %v6840_v54 }
0x5342   :  { %v7801_v0 = vpop.f32.mrf.mxu0 }
0x5349   :  { %v8384_v19 = vpop.eup %8383 }
0x534a   :  { %6062 = vrot.lane.b32.xlu1 %v8384_v19, %s8436_s0 }
0x534c   :  { %v8386_v16 = vpop.eup %8385 }
0x534d   :  { %6086 = vrot.lane.b32.xlu0 %v8386_v16, %s8436_s0  ;;  %v8388_v8 = vpop.eup %8387 }
0x534e   :  { %v8390_v56 = vpop.eup %8389  ;;  %v6056_v5 = vadd.f32 1.0, %v8388_v8 }
0x534f   :  { %v6080_v28 = vadd.f32 1.0, %v8390_v56 }
0x5350   :  { %8391 = vrcp.f32 %v6056_v5 }
0x5351   :  { %8393 = vrcp.f32 %v6080_v28 }
0x535d   :  { %v8392_v25 = vpop.eup %8391 }
0x535e   :  { %v8394_v45 = vpop.eup %8393  ;;  %v6060_v48 = vmul.f32 %v8392_v25, %v10269_v34 }
0x535f   :  { %v6084_v10 = vmul.f32 %v8394_v45, %v10273_v9 }
0x53bc   :  { %v6063_v37 = vpop.permute.xlu1 %6062 }
0x53bd   :  { %v6065_v52 = vmul.f32 %v8392_v25, %v6063_v37 }
0x53bf   :  { %v6087_v24 = vpop.permute.xlu0 %6086  ;;  %6067 = vrot.lane.b32.xlu1 %v6065_v52, %s8437_s21 }
0x53c0   :  { %v6089_v49 = vmul.f32 %v8394_v45, %v6087_v24 }
0x53c2   :  { %6091 = vrot.lane.b32.xlu0 %v6089_v49, %s8437_s21 }
0x5431   :  { %v6068_v18 = vpop.permute.xlu1 %6067 }
0x5432   :  { %v6070_v44 = vadd.f32 %v6068_v18, %v6060_v48 }
0x5434   :  { %8395 = vtanh.f32 %v6070_v44  ;;  %v6092_v60 = vpop.permute.xlu0 %6091 }
0x5435   :  { %v6094_v6 = vadd.f32 %v6092_v60, %v6084_v10 }
0x5437   :  { %8397 = vtanh.f32 %v6094_v6 }
0x5441   :  { %v8396_v47 = vpop.eup %8395 }
0x5442   :  { %6073 = vrot.lane.b32.xlu1 %v8396_v47, %s8436_s0 }
0x5444   :  { %v8398_v36 = vpop.eup %8397 }
0x5445   :  { %6097 = vrot.lane.b32.xlu0 %v8398_v36, %s8436_s0 }
0x54b4   :  { %v6074_v53 = vpop.permute.xlu1 %6073 }
0x54b5   :  { %v10318_v39 = vmul.f32 %v8392_v25, %v6074_v53 }
0x54b7   :  { %v6112_v34 = vpack.c.bf16 %v10318_v39, %v10318_v39  ;;  %v6098_v46 = vpop.permute.xlu0 %6097 }
0x54b8   :  { %v10322_v26 = vmul.f32 %v8394_v45, %v6098_v46 }
0x54b9   :  { %6114 = vrot.lane.b32.xlu1 %v6112_v34, %s8437_s21 }
0x54ba   :  { %v6161_v9 = vpack.c.bf16 %v10322_v26, %v10322_v26 }
0x54bc   :  { %6163 = vrot.lane.b32.xlu0 %v6161_v9, %s8437_s21 }
0x552b   :  { %v6115_v22 = vpop.permute.xlu1 %6114 }
0x552c   :  { %7807 = vmatmul.mubr.msk.bf16.vlgmr.msra.gmra.mxu1 %vm336_vm1, %v6115_v22 }
0x552e   :  { %v6164_v58 = vpop.permute.xlu0 %6163 }
0x552f   :  { %7815 = vmatmul.mubr.msk.bf16.vlgmr.msra.gmra.mxu0 %vm336_vm1, %v6164_v58 }
0x55ec   :  { %v6153_v63 = vpop.f32.mrf.mxu1 }
0x55ed   :  { %v6159_v42 = vadd.f32 %v6153_v63, %v9667_v3 }
0x55ee   :  { %v7808_v7 = vpop.f32.mrf.mxu1 }
0x55ef   :  { %8399 = vtanh.f32 %v6159_v42  ;;  %v6202_v0 = vpop.f32.mrf.mxu0  ;;  %v6843_v25 = vmul.f32 -1.442695, %v6159_v42 }
0x55f0   :  { %v6208_v19 = vadd.f32 %v6202_v0, %v9681_v35  ;;  %v6156_v16 = vpop.f32.mrf.mxu1 }
0x55f1   :  { %v7816_v4 = vpop.f32.mrf.mxu0 }
0x55f2   :  { %8401 = vtanh.f32 %v6208_v19  ;;  %v7809_v54 = vpop.f32.mrf.mxu1  ;;  %v6844_v37 = vmul.f32 -1.442695, %v6208_v19 }
0x55f3   :  { %v6205_v8 = vpop.f32.mrf.mxu0  ;;  %8403 = vpow2.f32 %v6843_v25 }
0x55f4   :  { %8405 = vpow2.f32 %v6844_v37 }
0x55f5   :  { %v7817_v56 = vpop.f32.mrf.mxu0 }
0x55fc   :  { %v8400_v5 = vpop.eup %8399 }
0x55fd   :  { %6218 = vrot.lane.b32.xlu1 %v8400_v5, %s8436_s0 }
0x55ff   :  { %v8402_v28 = vpop.eup %8401 }
0x5600   :  { %6242 = vrot.lane.b32.xlu0 %v8402_v28, %s8436_s0  ;;  %v8404_v3 = vpop.eup %8403 }
0x5601   :  { %v8406_v52 = vpop.eup %8405  ;;  %v6212_v45 = vadd.f32 1.0, %v8404_v3 }
0x5602   :  { %v6236_v35 = vadd.f32 1.0, %v8406_v52 }
0x5603   :  { %8407 = vrcp.f32 %v6212_v45 }
0x5604   :  { %8409 = vrcp.f32 %v6236_v35 }
0x5610   :  { %v10334_v24 = vpop.eup %8407 }
0x5611   :  { %v8410_v18 = vpop.eup %8409  ;;  %v6216_v47 = vmul.f32 %v10334_v24, %v6070_v44  ;;  %v7900_v44 = vld [vmem:[%s10549_s15] sm:$0xff]  }
0x5612   :  { %v6240_v34 = vmul.f32 %v8410_v18, %v6094_v6 }
0x566f   :  { %v6219_v49 = vpop.permute.xlu1 %6218 }
0x5670   :  { %v6221_v48 = vmul.f32 %v10334_v24, %v6219_v49 }
0x5672   :  { %v6243_v10 = vpop.permute.xlu0 %6242  ;;  %6223 = vrot.lane.b32.xlu1 %v6221_v48, %s8437_s21 }
0x5673   :  { %v6245_v60 = vmul.f32 %v8410_v18, %v6243_v10 }
0x5675   :  { %6247 = vrot.lane.b32.xlu0 %v6245_v60, %s8437_s21 }
0x5676   :  { %4074 = vrot.lane.b32.xlu1 %v9778_v14, %s8437_s21  ;;  %v7899_v14 = vld [vmem:[%s10549_s15 + $0x8] sm:$0xff]  }
0x5677   :  { %7838 = vmatprep.subr.bf16.mxu0 %v7899_v14 }
0x5678   :  { %7839 = vmatpush3.bf16.msra.mxu0 %v7899_v14 }
0x5679   :  { %7840 = vmatprep.subr.bf16.mxu0 %v7900_v44 }
0x567c   :  { %7841 = vmatpush3.bf16.msra.mxu0 %v7900_v44 }
0x56e4   :  { %v6224_v36 = vpop.permute.xlu1 %6223 }
0x56e5   :  { %v6226_v53 = vadd.f32 %v6224_v36, %v6216_v47 }
0x56e7   :  { %8411 = vtanh.f32 %v6226_v53  ;;  %v6248_v46 = vpop.permute.xlu0 %6247 }
0x56e8   :  { %v6250_v9 = vadd.f32 %v6248_v46, %v6240_v34  ;;  %v4075_v22 = vpop.permute.xlu1 %4074 }
0x56e9   :  { %4077 = vst.msk [vmem:[#allocation6 + $0x8] sm:$0xff] %vm336_vm1, %v4075_v22 }
0x56ea   :  { %8413 = vtanh.f32 %v6250_v9 }
0x56f4   :  { %v8412_v58 = vpop.eup %8411 }
0x56f5   :  { %6229 = vrot.lane.b32.xlu1 %v8412_v58, %s8436_s0 }
0x56f7   :  { %v8414_v63 = vpop.eup %8413 }
0x56f8   :  { %6253 = vrot.lane.b32.xlu0 %v8414_v63, %s8436_s0 }
0x56f9   :  { %4386 = vrot.lane.b32.xlu1 %v9858_v12, %s8437_s21 }
0x56fc   :  { %3918 = vrot.lane.b32.xlu0 %v9738_v11, %s8437_s21  ;;  %v7901_v11 = vld [vmem:[%s10549_s15 + $0x18] sm:$0xff]  }
0x56fd   :  { %5951 = vrot.lane.b32.xlu1 %v10282_v40, %s8437_s21  ;;  %7818 = vmatprep.subr.bf16.mxu1 %v7901_v11 }
0x56fe   :  { %7819 = vmatpush3.bf16.msra.mxu1 %v7901_v11 }
0x5700   :  { %6107 = vrot.lane.b32.xlu0 %v10322_v26, %s8437_s21 }
0x5701   :  { %4698 = vrot.lane.b32.xlu1 %v9938_v13, %s8437_s21 }
0x5704   :  { %4230 = vrot.lane.b32.xlu0 %v9818_v43, %s8437_s21  ;;  %v7902_v43 = vld [vmem:[%s10549_s15 + $0x10] sm:$0xff]  }
0x5705   :  { %5639 = vrot.lane.b32.xlu1 %v10202_v33, %s8437_s21  ;;  %7820 = vmatprep.subr.bf16.mxu1 %v7902_v43 }
0x5706   :  { %7821 = vmatpush3.bf16.msra.mxu1 %v7902_v43 }
0x5708   :  { %5795 = vrot.lane.b32.xlu0 %v10242_v23, %s8437_s21 }
0x5709   :  { %5010 = vrot.lane.b32.xlu1 %v10038_v38, %s8437_s21 }
0x570c   :  { %4542 = vrot.lane.b32.xlu0 %v9898_v31, %s8437_s21 }
0x570d   :  { %5327 = vrot.lane.b32.xlu1 %v10122_v30, %s8437_s21 }
0x5710   :  { %5483 = vrot.lane.b32.xlu0 %v10162_v41, %s8437_s21 }
0x5711   :  { %5015 = vrot.lane.b32.xlu1 %v10042_v21, %s8437_s21 }
0x5714   :  { %4854 = vrot.lane.b32.xlu0 %v9998_v61, %s8437_s21 }
0x5718   :  { %5171 = vrot.lane.b32.xlu0 %v10082_v1, %s8437_s21 }
0x571c   :  { %4859 = vrot.lane.b32.xlu0 %v10002_v32, %s8437_s21 }
0x5720   :  { %5166 = vrot.lane.b32.xlu0 %v10078_v27, %s8437_s21  ;;  %v6268_v27 = vld [vmem:[#allocation6 + $0x8] sm:$0xff] }
0x5724   :  { %4547 = vrot.lane.b32.xlu0 %v9902_v51, %s8437_s21 }
0x5728   :  { %5478 = vrot.lane.b32.xlu0 %v10158_v62, %s8437_s21 }
0x572c   :  { %4235 = vrot.lane.b32.xlu0 %v9822_v57, %s8437_s21 }
0x5730   :  { %5790 = vrot.lane.b32.xlu0 %v10238_v15, %s8437_s21 }
0x5734   :  { %3923 = vrot.lane.b32.xlu0 %v9742_v55, %s8437_s21 }
0x5738   :  { %6102 = vrot.lane.b32.xlu0 %v10318_v39, %s8437_s21 }
0x5767   :  { %v6230_v57 = vpop.permute.xlu1 %6229 }
0x5768   :  { %v6232_v26 = vmul.f32 %v10334_v24, %v6230_v57 }
0x576a   :  { %v6254_v12 = vpop.permute.xlu0 %6253 }
0x576b   :  { %v6256_v31 = vmul.f32 %v8410_v18, %v6254_v12  ;;  %v4387_v51 = vpop.permute.xlu1 %4386 }
0x576c   :  { %4389 = vst.msk [vmem:[#allocation6 + $0x18] sm:$0xff] %vm336_vm1, %v4387_v51 }
0x576d   :  { %6263 = vrot.lane.b32.xlu1 %v6256_v31, %s8437_s21 }
0x576e   :  { %v3919_v55 = vpop.permute.xlu0 %3918 }
0x576f   :  { %3921 = vst.msk [vmem:[#allocation6] sm:$0xff] %vm336_vm1, %v3919_v55  ;;  %v5952_v13 = vpop.permute.xlu1 %5951 }
0x5770   :  { %5954 = vst.msk [vmem:[#allocation7 + $0x10] sm:$0xff] %vm336_vm1, %v5952_v13 }
0x5771   :  { %5322 = vrot.lane.b32.xlu1 %v10118_v2, %s8437_s21 }
0x5772   :  { %v6108_v61 = vpop.permute.xlu0 %6107 }
0x5773   :  { %6110 = vst.msk [vmem:[#allocation7 + $0x8] sm:$0xff] %vm336_vm1, %v6108_v61  ;;  %v4699_v32 = vpop.permute.xlu1 %4698  ;;  %v6270_v33 = vld [vmem:[#allocation6 + $0x18] sm:$0xff] }
0x5774   :  { %4701 = vst.msk [vmem:[#allocation6 + $0x28] sm:$0xff] %vm336_vm1, %v4699_v32 }
0x5775   :  { %4703 = vrot.lane.b32.xlu1 %v9942_v17, %s8437_s21 }
0x5776   :  { %v4231_v38 = vpop.permute.xlu0 %4230  ;;  %v6267_v21 = vld [vmem:[#allocation6] sm:$0xff] }
0x5777   :  { %4233 = vst.msk [vmem:[#allocation6 + $0x10] sm:$0xff] %vm336_vm1, %v4231_v38  ;;  %v5640_v1 = vpop.permute.xlu1 %5639  ;;  %v6283_v30 = vpack.c.bf16 %v6268_v27, %v6267_v21  ;;  %v6297_v48 = vld [vmem:[#allocation7 + $0x10] sm:$0xff] }
0x5778   :  { %5642 = vst.msk [vmem:[#allocation7 + $0x20] sm:$0xff] %vm336_vm1, %v5640_v1 }
0x5779   :  { %7842 = vmatprep.mubr.msk.bf16.mxu0 %vm336_vm1, %v6283_v30  ;;  %5634 = vrot.lane.b32.xlu1 %v10198_v50, %s8437_s21 }
0x577a   :  { %v5796_v2 = vpop.permute.xlu0 %5795  ;;  %v6296_v35 = vld [vmem:[#allocation7 + $0x8] sm:$0xff] }
0x577b   :  { %5798 = vst.msk [vmem:[#allocation7 + $0x18] sm:$0xff] %vm336_vm1, %v5796_v2  ;;  %v5011_v62 = vpop.permute.xlu1 %5010  ;;  %v6272_v39 = vld [vmem:[#allocation6 + $0x28] sm:$0xff] }
0x577c   :  { %5013 = vst.msk [vmem:[#allocation6 + $0x38] sm:$0xff] %vm336_vm1, %v5011_v62 }
0x577d   :  { %4391 = vrot.lane.b32.xlu1 %v9862_v59, %s8437_s21 }
0x577e   :  { %v4543_v17 = vpop.permute.xlu0 %4542  ;;  %v6269_v41 = vld [vmem:[#allocation6 + $0x10] sm:$0xff] }
0x577f   :  { %4545 = vst.msk [vmem:[#allocation6 + $0x20] sm:$0xff] %vm336_vm1, %v4543_v17  ;;  %v5328_v15 = vpop.permute.xlu1 %5327  ;;  %v6284_v23 = vpack.c.bf16 %v6270_v33, %v6269_v41  ;;  %v6299_v10 = vld [vmem:[#allocation7 + $0x20] sm:$0xff] }
0x5780   :  { %5330 = vst.msk [vmem:[#allocation7 + $0x30] sm:$0xff] %vm336_vm1, %v5328_v15 }
0x5781   :  { %5946 = vrot.lane.b32.xlu1 %v10278_v20, %s8437_s21  ;;  %7843 = vmatmul.mubr.msk.bf16.vlgmr.msra.gmra.mxu0 %vm336_vm1, %v6284_v23 }
0x5782   :  { %v5484_v50 = vpop.permute.xlu0 %5483  ;;  %v6298_v3 = vld [vmem:[#allocation7 + $0x18] sm:$0xff] }
0x5783   :  { %5486 = vst.msk [vmem:[#allocation7 + $0x28] sm:$0xff] %vm336_vm1, %v5484_v50  ;;  %v5016_v40 = vpop.permute.xlu1 %5015  ;;  %v6274_v19 = vld [vmem:[#allocation6 + $0x38] sm:$0xff]  ;;  %v6312_v18 = vpack.c.bf16 %v6298_v3, %v6297_v48 }
0x5784   :  { %5018 = vst.msk [vmem:[#allocation7 + $0x40] sm:$0xff] %vm336_vm1, %v5016_v40 }
0x5785   :  { %4079 = vrot.lane.b32.xlu1 %v9782_v29, %s8437_s21 }
0x5786   :  { %v4855_v59 = vpop.permute.xlu0 %4854  ;;  %v6271_v6 = vld [vmem:[#allocation6 + $0x20] sm:$0xff] }
0x5787   :  { %4857 = vst.msk [vmem:[#allocation6 + $0x30] sm:$0xff] %vm336_vm1, %v4855_v59  ;;  %v6285_v42 = vpack.c.bf16 %v6272_v39, %v6271_v6  ;;  %v6301_v58 = vld [vmem:[#allocation7 + $0x30] sm:$0xff] }
0x5789   :  { %6258 = vrot.lane.b32.xlu1 %v6232_v26, %s8437_s21  ;;  %7846 = vmatprep.mubr.msk.bf16.mxu0 %vm336_vm1, %v6285_v42  ;;  %v10468_v26 = vld [vmem:[%s10550_s16] ss:$0 sm:$0xff] }
0x578a   :  { %v5172_v20 = vpop.permute.xlu0 %5171  ;;  %v6300_v24 = vld [vmem:[#allocation7 + $0x28] sm:$0xff] }
0x578b   :  { %5174 = vst.msk [vmem:[#allocation7 + $0x38] sm:$0xff] %vm336_vm1, %v5172_v20  ;;  %v6313_v60 = vpack.c.bf16 %v6300_v24, %v6299_v10  ;;  %v6303_v14 = vld [vmem:[#allocation7 + $0x40] sm:$0xff] }
0x578e   :  { %v4860_v7 = vpop.permute.xlu0 %4859  ;;  %v6273_v0 = vld [vmem:[#allocation6 + $0x30] sm:$0xff] }
0x578f   :  { %4862 = vst.msk [vmem:[#allocation7 + $0x48] sm:$0xff] %vm336_vm1, %v4860_v7  ;;  %v6286_v29 = vpack.c.bf16 %v6274_v19, %v6273_v0 }
0x5791   :  { %7847 = vmatmul.mubr.msk.bf16.gmra.mxu0 %vm336_vm1, %v6286_v29 }
0x5792   :  { %v5167_v16 = vpop.permute.xlu0 %5166  ;;  %v6302_v46 = vld [vmem:[#allocation7 + $0x38] sm:$0xff] }
0x5793   :  { %5169 = vst.msk [vmem:[#allocation6 + $0x40] sm:$0xff] %vm336_vm1, %v5167_v16  ;;  %v6314_v63 = vpack.c.bf16 %v6302_v46, %v6301_v58 }
0x5796   :  { %v4548_v4 = vpop.permute.xlu0 %4547  ;;  %v6304_v22 = vld [vmem:[#allocation7 + $0x48] sm:$0xff] }
0x5797   :  { %4550 = vst.msk [vmem:[#allocation7 + $0x58] sm:$0xff] %vm336_vm1, %v4548_v4  ;;  %v6315_v44 = vpack.c.bf16 %v6304_v22, %v6303_v14 }
0x579a   :  { %v5479_v54 = vpop.permute.xlu0 %5478  ;;  %v6275_v36 = vld [vmem:[#allocation6 + $0x40] sm:$0xff] }
0x579b   :  { %5481 = vst.msk [vmem:[#allocation6 + $0x50] sm:$0xff] %vm336_vm1, %v5479_v54 }
0x579e   :  { %v4236_v8 = vpop.permute.xlu0 %4235  ;;  %v6306_v13 = vld [vmem:[#allocation7 + $0x58] sm:$0xff] }
0x579f   :  { %4238 = vst.msk [vmem:[#allocation7 + $0x68] sm:$0xff] %vm336_vm1, %v4236_v8 }
0x57a2   :  { %v5791_v56 = vpop.permute.xlu0 %5790  ;;  %v6277_v43 = vld [vmem:[#allocation6 + $0x50] sm:$0xff] }
0x57a3   :  { %5793 = vst.msk [vmem:[#allocation6 + $0x60] sm:$0xff] %vm336_vm1, %v5791_v56 }
0x57a6   :  { %v3924_v5 = vpop.permute.xlu0 %3923  ;;  %v6308_v32 = vld [vmem:[#allocation7 + $0x68] sm:$0xff] }
0x57a7   :  { %3926 = vst.msk [vmem:[#allocation7 + $0x78] sm:$0xff] %vm336_vm1, %v3924_v5 }
0x57aa   :  { %v6103_v28 = vpop.permute.xlu0 %6102  ;;  %v6279_v27 = vld [vmem:[#allocation6 + $0x60] sm:$0xff] }
0x57ab   :  { %6105 = vst.msk [vmem:[#allocation6 + $0x70] sm:$0xff] %vm336_vm1, %v6103_v28 }
0x57ae   :  { %v6310_v62 = vld [vmem:[#allocation7 + $0x78] sm:$0xff] }
0x57b2   :  { %v6281_v41 = vld [vmem:[#allocation6 + $0x70] sm:$0xff] }
0x57df   :  { %v6264_v25 = vpop.permute.xlu1 %6263 }
0x57e0   :  { %6266 = vst.msk [vmem:[#allocation7] sm:$0xff] %vm336_vm1, %v6264_v25 }
0x57e3   :  { %v5323_v37 = vpop.permute.xlu1 %5322 }
0x57e4   :  { %5325 = vst.msk [vmem:[#allocation6 + $0x48] sm:$0xff] %vm336_vm1, %v5323_v37 }
0x57e7   :  { %v4704_v52 = vpop.permute.xlu1 %4703  ;;  %v6295_v45 = vld [vmem:[#allocation7] sm:$0xff] }
0x57e8   :  { %4706 = vst.msk [vmem:[#allocation7 + $0x50] sm:$0xff] %vm336_vm1, %v4704_v52  ;;  %v6311_v49 = vpack.c.bf16 %v6296_v35, %v6295_v45 }
0x57ea   :  { %7822 = vmatprep.mubr.msk.bf16.mxu1 %vm336_vm1, %v6311_v49 }
0x57eb   :  { %7823 = vmatmul.mubr.msk.bf16.vlgmr.msra.gmra.mxu1 %vm336_vm1, %v6312_v18  ;;  %v5635_v47 = vpop.permute.xlu1 %5634  ;;  %v6276_v53 = vld [vmem:[#allocation6 + $0x48] sm:$0xff] }
0x57ec   :  { %5637 = vst.msk [vmem:[#allocation6 + $0x58] sm:$0xff] %vm336_vm1, %v5635_v47  ;;  %7826 = vmatprep.mubr.msk.bf16.mxu1 %vm336_vm1, %v6313_v60  ;;  %v6287_v34 = vpack.c.bf16 %v6276_v53, %v6275_v36 }
0x57ee   :  { %7850 = vmatprep.mubr.msk.bf16.mxu0 %vm336_vm1, %v6287_v34 }
0x57ef   :  { %v4392_v9 = vpop.permute.xlu1 %4391  ;;  %v6305_v31 = vld [vmem:[#allocation7 + $0x50] sm:$0xff] }
0x57f0   :  { %4394 = vst.msk [vmem:[#allocation7 + $0x60] sm:$0xff] %vm336_vm1, %v4392_v9  ;;  %v6316_v61 = vpack.c.bf16 %v6306_v13, %v6305_v31 }
0x57f3   :  { %7827 = vmatmul.mubr.msk.bf16.gmra.mxu1 %vm336_vm1, %v6314_v63  ;;  %v5947_v11 = vpop.permute.xlu1 %5946  ;;  %v6278_v57 = vld [vmem:[#allocation6 + $0x58] sm:$0xff] }
0x57f4   :  { %5949 = vst.msk [vmem:[#allocation6 + $0x68] sm:$0xff] %vm336_vm1, %v5947_v11  ;;  %7830 = vmatprep.mubr.msk.bf16.mxu1 %vm336_vm1, %v6315_v44  ;;  %v6288_v12 = vpack.c.bf16 %v6278_v57, %v6277_v43 }
0x57f6   :  { %7851 = vmatmul.mubr.msk.bf16.gmra.mxu0 %vm336_vm1, %v6288_v12 }
0x57f7   :  { %v4080_v51 = vpop.permute.xlu1 %4079  ;;  %v6307_v55 = vld [vmem:[#allocation7 + $0x60] sm:$0xff] }
0x57f8   :  { %4082 = vst.msk [vmem:[#allocation7 + $0x70] sm:$0xff] %vm336_vm1, %v4080_v51  ;;  %v6317_v38 = vpack.c.bf16 %v6308_v32, %v6307_v55 }
0x57fb   :  { %7831 = vmatmul.mubr.msk.bf16.gmra.mxu1 %vm336_vm1, %v6316_v61  ;;  %v6259_v21 = vpop.permute.xlu1 %6258  ;;  %v6280_v1 = vld [vmem:[#allocation6 + $0x68] sm:$0xff] }
0x57fc   :  { %6261 = vst.msk [vmem:[#allocation6 + $0x78] sm:$0xff] %vm336_vm1, %v6259_v21  ;;  %7834 = vmatprep.mubr.msk.bf16.mxu1 %vm336_vm1, %v6317_v38  ;;  %v6289_v30 = vpack.c.bf16 %v6280_v1, %v6279_v27 }
0x57fe   :  { %7854 = vmatprep.mubr.msk.bf16.mxu0 %vm336_vm1, %v6289_v30 }
0x57ff   :  { %v6309_v2 = vld [vmem:[#allocation7 + $0x70] sm:$0xff] }
0x5800   :  { %v6318_v17 = vpack.c.bf16 %v6310_v62, %v6309_v2 }
0x5803   :  { %7835 = vmatmul.mubr.msk.bf16.gmra.mxu1 %vm336_vm1, %v6318_v17  ;;  %v6282_v33 = vld [vmem:[#allocation6 + $0x78] sm:$0xff] }
0x5804   :  { %v6290_v15 = vpack.c.bf16 %v6282_v33, %v6281_v41 }
0x5806   :  { %7855 = vmatmul.mubr.msk.bf16.gmra.mxu0 %vm336_vm1, %v6290_v15 }
0x5841   :  { %v7844_v23 = vpop.f32.mrf.mxu0 }
0x5843   :  { %v6526_v50 = vpop.f32.mrf.mxu0 }
0x5845   :  { %v7845_v40 = vpop.f32.mrf.mxu0 }
0x5847   :  { %v6529_v59 = vpop.f32.mrf.mxu0 }
0x5851   :  { %v7848_v6 = vpop.f32.mrf.mxu0 }
0x5853   :  { %v6542_v42 = vpop.f32.mrf.mxu0 }
0x5855   :  { %v7849_v16 = vpop.f32.mrf.mxu0 }
0x5857   :  { %v6545_v25 = vpop.f32.mrf.mxu0 }
0x58ab   :  { %v7824_v39 = vpop.f32.mrf.mxu1 }
0x58ac   :  { %v6535_v20 = vadd.f32 %v7844_v23, %v7824_v39 }
0x58ad   :  { %v6393_v7 = vpop.f32.mrf.mxu1 }
0x58ae   :  { %v6598_v0 = vadd.f32 %v10468_v26, %v6535_v20  ;;  %v6527_v19 = vadd.f32 %v6526_v50, %v6393_v7 }
0x58af   :  { %v7825_v29 = vpop.f32.mrf.mxu1 }
0x58b0   :  { %6614 = vst [vmem:[%s10551_s17 + $0x10] sm:$0xff] %v6598_v0  ;;  %v6596_v4 = vadd.f32 %v10468_v26, %v6527_v19  ;;  %v6538_v54 = vadd.f32 %v7845_v40, %v7825_v29 }
0x58b1   :  { %v6396_v8 = vpop.f32.mrf.mxu1 }
0x58b2   :  { %6612 = vst [vmem:[%s10551_s17] sm:$0xff] %v6596_v4  ;;  %v6599_v56 = vadd.f32 %v10468_v26, %v6538_v54  ;;  %v6530_v5 = vadd.f32 %v6529_v59, %v6396_v8 }
0x58b3   :  { %v7828_v28 = vpop.f32.mrf.mxu1 }
0x58b4   :  { %6615 = vst [vmem:[%s10551_s17 + $0x18] sm:$0xff] %v6599_v56  ;;  %v6597_v37 = vadd.f32 %v10468_v26, %v6530_v5  ;;  %v6551_v3 = vadd.f32 %v7848_v6, %v7828_v28 }
0x58b5   :  { %v6409_v52 = vpop.f32.mrf.mxu1 }
0x58b6   :  { %6613 = vst [vmem:[%s10551_s17 + $0x8] sm:$0xff] %v6597_v37  ;;  %v6602_v45 = vadd.f32 %v10468_v26, %v6551_v3  ;;  %v6543_v35 = vadd.f32 %v6542_v42, %v6409_v52  ;;  %v7852_v24 = vpop.f32.mrf.mxu0 }
0x58b7   :  { %v7829_v49 = vpop.f32.mrf.mxu1 }
0x58b8   :  { %6618 = vst [vmem:[%s10551_s17 + $0x30] sm:$0xff] %v6602_v45  ;;  %v6600_v48 = vadd.f32 %v10468_v26, %v6543_v35  ;;  %v6554_v18 = vadd.f32 %v7849_v16, %v7829_v49  ;;  %v6558_v10 = vpop.f32.mrf.mxu0 }
0x58b9   :  { %v6412_v60 = vpop.f32.mrf.mxu1 }
0x58ba   :  { %6616 = vst [vmem:[%s10551_s17 + $0x20] sm:$0xff] %v6600_v48  ;;  %v6603_v47 = vadd.f32 %v10468_v26, %v6554_v18  ;;  %v6546_v36 = vadd.f32 %v6545_v25, %v6412_v60  ;;  %v7853_v9 = vpop.f32.mrf.mxu0 }
0x58bb   :  { %v7832_v53 = vpop.f32.mrf.mxu1 }
0x58bc   :  { %6619 = vst [vmem:[%s10551_s17 + $0x38] sm:$0xff] %v6603_v47  ;;  %v6601_v34 = vadd.f32 %v10468_v26, %v6546_v36  ;;  %v6567_v46 = vadd.f32 %v7852_v24, %v7832_v53  ;;  %v6561_v43 = vpop.f32.mrf.mxu0 }
0x58bd   :  { %v6425_v22 = vpop.f32.mrf.mxu1 }
0x58be   :  { %6617 = vst [vmem:[%s10551_s17 + $0x28] sm:$0xff] %v6601_v34  ;;  %v6606_v58 = vadd.f32 %v10468_v26, %v6567_v46  ;;  %v6559_v63 = vadd.f32 %v6558_v10, %v6425_v22 }
0x58bf   :  { %v7833_v14 = vpop.f32.mrf.mxu1 }
0x58c0   :  { %6622 = vst [vmem:[%s10551_s17 + $0x50] sm:$0xff] %v6606_v58  ;;  %v6604_v44 = vadd.f32 %v10468_v26, %v6559_v63  ;;  %v6570_v11 = vadd.f32 %v7853_v9, %v7833_v14 }
0x58c1   :  { %v6428_v57 = vpop.f32.mrf.mxu1 }
0x58c2   :  { %6620 = vst [vmem:[%s10551_s17 + $0x40] sm:$0xff] %v6604_v44  ;;  %v6607_v12 = vadd.f32 %v10468_v26, %v6570_v11  ;;  %v6562_v31 = vadd.f32 %v6561_v43, %v6428_v57 }
0x58c3   :  { %v7836_v51 = vpop.f32.mrf.mxu1 }
0x58c4   :  { %6623 = vst [vmem:[%s10551_s17 + $0x58] sm:$0xff] %v6607_v12  ;;  %v6605_v55 = vadd.f32 %v10468_v26, %v6562_v31 }
0x58c5   :  { %v6441_v13 = vpop.f32.mrf.mxu1 }
0x58c6   :  { %6621 = vst [vmem:[%s10551_s17 + $0x48] sm:$0xff] %v6605_v55  ;;  %v7856_v61 = vpop.f32.mrf.mxu0 }
0x58c7   :  { %v6583_v32 = vadd.f32 %v7856_v61, %v7836_v51  ;;  %v7837_v38 = vpop.f32.mrf.mxu1 }
0x58c8   :  { %v6574_v21 = vpop.f32.mrf.mxu0 }
0x58c9   :  { %v6610_v27 = vadd.f32 %v10468_v26, %v6583_v32  ;;  %v6575_v1 = vadd.f32 %v6574_v21, %v6441_v13  ;;  %v6444_v17 = vpop.f32.mrf.mxu1 }
0x58ca   :  { %v7857_v30 = vpop.f32.mrf.mxu0 }
0x58cb   :  { %6626 = vst [vmem:[%s10551_s17 + $0x70] sm:$0xff] %v6610_v27  ;;  %v6608_v2 = vadd.f32 %v10468_v26, %v6575_v1  ;;  %v6586_v62 = vadd.f32 %v7857_v30, %v7837_v38 }
0x58cc   :  { %v6577_v41 = vpop.f32.mrf.mxu0 }
0x58cd   :  { %6624 = vst [vmem:[%s10551_s17 + $0x60] sm:$0xff] %v6608_v2  ;;  %v6611_v33 = vadd.f32 %v10468_v26, %v6586_v62  ;;  %v6578_v15 = vadd.f32 %v6577_v41, %v6444_v17 }
0x58cf   :  { %6627 = vst [vmem:[%s10551_s17 + $0x78] sm:$0xff] %v6611_v33  ;;  %v6609_v23 = vadd.f32 %v10468_v26, %v6578_v15 }
0x58d1   :  { %6625 = vst [vmem:[%s10551_s17 + $0x68] sm:$0xff] %v6609_v23 }

</bundles_post_ra>
